<compile_context>
chip_gen: v7x
topology: tpu7x:2x2x1
jax: 0.10.0
libtpu: 0.0.40
codegen_flags: <defaults>
</compile_context>

<pallas_src>
import functools
import math

import jax
import jax.numpy as jnp
from jax.experimental import pallas as pl
from jax.experimental.pallas import tpu as pltpu  # noqa: F401  (TPU backend)


# ----------------------------------------------------------------------------
# Fused forward kernel: one invocation, everything resident in VMEM.
# ----------------------------------------------------------------------------
def fused_transformer_kernel(
    x_ref, ew_ref, eb_ref,
    wqk_ref, bqk_ref, wv_ref, bv_ref,
    wz_ref, bz_ref, g1_ref, b1_ref, wf_ref, bf_ref, g2_ref, b2_ref,
    o_ref, *, n_enc, n_dec,
):
    S = x_ref.shape[0]             # sequence length (= img_length)
    E = ew_ref.shape[1]            # embedding size
    HE = wv_ref.shape[2]           # heads * E (lane-stacked head weights)
    H = HE // E
    inv_sqrt_e = 1.0 / math.sqrt(E)

    def layer_norm(y, g, b):
        mu = jnp.mean(y, axis=-1, keepdims=True)
        var = jnp.mean(jnp.square(y - mu), axis=-1, keepdims=True)
        return (y - mu) * jax.lax.rsqrt(var + 1e-5) * g + b

    def attn_layer(l, x_qk, v_in, v_is_zero):
        # Fused Q|K projection: one wide (S,E)@(E,2*H*E) dot for ALL heads.
        qk = jnp.dot(x_qk, wqk_ref[l], preferred_element_type=jnp.float32) + bqk_ref[l]
        q_s = qk[:, :HE]
        k_s = qk[:, HE:]
        if v_is_zero:
            # history == 0  =>  V projection collapses to the bias broadcast.
            v_s = jnp.broadcast_to(bv_ref[l], (S, HE))
        else:
            v_s = jnp.dot(v_in, wv_ref[l], preferred_element_type=jnp.float32) + bv_ref[l]

        z_heads = []
        for h in range(H):                      # H=4, statically unrolled
            lo = h * E
            q_h = q_s[:, lo:lo + E]
            k_h = k_s[:, lo:lo + E]
            v_h = v_s[:, lo:lo + E]
            # scores = K^T @ Q / sqrt(E)  (contract axis 0, no explicit .T)
            scores = jax.lax.dot_general(
                k_h, q_h,
                dimension_numbers=(((0,), (0,)), ((), ())),
                preferred_element_type=jnp.float32,
            ) * inv_sqrt_e
            # torch Softmax(dim=1) on the (E, E) score matrix == last axis here.
            m = jnp.max(scores, axis=-1, keepdims=True)
            p = jnp.exp(scores - m)
            attn = p / jnp.sum(p, axis=-1, keepdims=True)
            z_heads.append(jnp.dot(v_h, attn, preferred_element_type=jnp.float32))

        # cat(dim=1) over heads, then Wz:  (S, H*E) @ (H*E, E) in one dot.
        z_cat = jnp.concatenate(z_heads, axis=-1)
        o = jnp.dot(z_cat, wz_ref[l], preferred_element_type=jnp.float32) + bz_ref[l]
        ln1 = layer_norm(o, g1_ref[l], b1_ref[l]) + x_qk
        fn = jnp.dot(ln1, wf_ref[l], preferred_element_type=jnp.float32) + bf_ref[l]
        ln2 = layer_norm(fn, g2_ref[l], b2_ref[l]) + ln1
        return ln2

    # emb_encode_layer
    emb = jnp.dot(x_ref[...], ew_ref[...], preferred_element_type=jnp.float32) + eb_ref[...]

    # Encoder stack (Q/K/V and residual all from the running activation).
    for l in range(n_enc):
        emb = attn_layer(l, emb, emb, v_is_zero=False)

    # Decoder stack: Q/K and residual from the (fixed) encoder output,
    # V from the running history (which starts as zeros).
    if n_dec == 0:
        history = jnp.zeros((S, E), jnp.float32)
    else:
        history = attn_layer(n_enc, emb, emb, v_is_zero=True)
        for i in range(1, n_dec):
            history = attn_layer(n_enc + i, emb, history, v_is_zero=False)

    o_ref[...] = history


# ----------------------------------------------------------------------------
# Wrapper: single pallas_call, whole arrays as (default) full blocks in VMEM.
# ----------------------------------------------------------------------------
@functools.partial(jax.jit, static_argnames=("n_enc", "n_dec"))
def transformer_forward(x, params, *, n_enc, n_dec):
    S, _ = x.shape
    E = params["enc_w"].shape[1]
    out = pl.pallas_call(
        functools.partial(fused_transformer_kernel, n_enc=n_enc, n_dec=n_dec),
        out_shape=jax.ShapeDtypeStruct((S, E), jnp.float32),
    )(
        x, params["enc_w"], params["enc_b"],
        params["wqk"], params["bqk"], params["wv"], params["bv"],
        params["wz"], params["bz"],
        params["g1"], params["b1"], params["wf"], params["bf"],
        params["g2"], params["b2"],
    )
    # history.view(1, emb * img_length) — tiny reshape, done outside the kernel.
    return out.reshape(1, S * E)


# ----------------------------------------------------------------------------
# Parameter init (deterministic, torch-nn.Linear-style uniform).
# Layout invariant: head h of Wq occupies lanes [h*E, (h+1)*E) and head h of
# Wk occupies lanes [H*E + h*E, H*E + (h+1)*E) of the fused (E, 2*H*E) stack;
# Wv is (E, H*E) with the same per-head lane layout; Wz is stored as the
# (H*E, E) transpose of torch's nn.Linear(E*H, E).weight so that
# z_cat @ Wz matches cat(dim=1) -> Wz.
# ----------------------------------------------------------------------------
def _uniform(key, shape, bound):
    return jax.random.uniform(key, shape, jnp.float32, -bound, bound)


def make_params(key, img_length, E, H, n_enc, n_dec):
    L = n_enc + n_dec
    HE = H * E
    ks = jax.random.split(key, 10)
    be = 1.0 / math.sqrt(E)           # fan_in = E for Wq/Wk/Wv/Wf
    bzw = 1.0 / math.sqrt(E * H)      # fan_in = E*H for Wz
    bl = 1.0 / math.sqrt(img_length)  # fan_in = img_length for emb_encode
    return dict(
        enc_w=_uniform(ks[0], (img_length, E), bl),
        enc_b=_uniform(ks[1], (1, E), bl),
        wqk=_uniform(ks[2], (L, E, 2 * HE), be), bqk=_uniform(ks[3], (L, 1, 2 * HE), be),
        wv=_uniform(ks[4], (L, E, HE), be), bv=_uniform(ks[5], (L, 1, HE), be),
        wz=_uniform(ks[6], (L, HE, E), bzw), bz=_uniform(ks[7], (L, 1, E), bzw),
        g1=jnp.ones((L, 1, E), jnp.float32), b1=jnp.zeros((L, 1, E), jnp.float32),
        wf=_uniform(ks[8], (L, E, E), be), bf=_uniform(ks[9], (L, 1, E), be),
        g2=jnp.ones((L, 1, E), jnp.float32), b2=jnp.zeros((L, 1, E), jnp.float32),
    )


# ----------------------------------------------------------------------------
# Pure-JAX reference (mirrors the PyTorch math) for the correctness check.
# ----------------------------------------------------------------------------
def ref_forward(x, params, n_enc, n_dec):
    S = x.shape[0]
    E = params["enc_w"].shape[1]
    HE = params["wv"].shape[2]
    H = HE // E

    def ln(y, g, b):
        mu = jnp.mean(y, -1, keepdims=True)
        var = jnp.mean((y - mu) ** 2, -1, keepdims=True)
        return (y - mu) * jax.lax.rsqrt(var + 1e-5) * g + b

    def layer(l, x_qk, v_in):
        heads = []
        for h in range(H):
            qs = slice(h * E, (h + 1) * E)
            kssl = slice(HE + h * E, HE + (h + 1) * E)
            q = x_qk @ params["wqk"][l][:, qs] + params["bqk"][l][0, qs]
            k = x_qk @ params["wqk"][l][:, kssl] + params["bqk"][l][0, kssl]
            v = v_in @ params["wv"][l][:, qs] + params["bv"][l][0, qs]
            scores = (k.T @ q) / math.sqrt(E)
            attn = jax.nn.softmax(scores, axis=1)   # torch Softmax(dim=1)
            heads.append(v @ attn)
        Z = jnp.concatenate(heads, axis=1)
        O = Z @ params["wz"][l] + params["bz"][l][0]
        ln1 = ln(O, params["g1"][l][0], params["b1"][l][0]) + x_qk
        fn = ln1 @ params["wf"][l] + params["bf"][l][0]
        ln2 = ln(fn, params["g2"][l][0], params["b2"][l][0]) + ln1
        return ln2

    emb = x @ params["enc_w"] + params["enc_b"][0]
    for l in range(n_enc):
        emb = layer(l, emb, emb)
    history = jnp.zeros((S, E), jnp.float32)
    for i in range(n_dec):
        history = layer(n_enc + i, emb, history)
    return history.reshape(1, -1)


# ----------------------------------------------------------------------------
if __name__ == "__main__":
    IMG_LEN = 16      # img_length (sequence length = raw image side)
    EMB = 32          # emb_length
    HEADS = 4
    N_ENC, N_DEC = 3, 3

    root = jax.random.PRNGKey(0)
    k_x, k_p = jax.random.split(root)
    x = jax.random.normal(k_x, (IMG_LEN, IMG_LEN), jnp.float32)
    params = make_params(k_p, IMG_LEN, EMB, HEADS, N_ENC, N_DEC)

    out = transformer_forward(x, params, n_enc=N_ENC, n_dec=N_DEC)
    out = jax.block_until_ready(out)

    ref = ref_forward(x, params, N_ENC, N_DEC)
    assert out.shape == (1, EMB * IMG_LEN), out.shape
    max_err = float(jnp.max(jnp.abs(out - ref)))
    # Kernel uses default (single-pass) matmul precision; tolerance accounts
    # for that vs. the plain-JAX reference.
    assert jnp.allclose(out, ref, rtol=2e-2, atol=2e-2), max_err

    print("KERNEL_OK")
</pallas_src>

<mosaic_0001>
module attributes {stable_mosaic.version = 11 : i64} {
  func.func @fused_transformer_kernel(%arg0: memref<16x16xf32, #tpu.memory_space<vmem>>, %arg1: memref<16x32xf32, #tpu.memory_space<vmem>>, %arg2: memref<1x32xf32, #tpu.memory_space<vmem>>, %arg3: memref<6x32x256xf32, #tpu.memory_space<vmem>>, %arg4: memref<6x1x256xf32, #tpu.memory_space<vmem>>, %arg5: memref<6x32x128xf32, #tpu.memory_space<vmem>>, %arg6: memref<6x1x128xf32, #tpu.memory_space<vmem>>, %arg7: memref<6x128x32xf32, #tpu.memory_space<vmem>>, %arg8: memref<6x1x32xf32, #tpu.memory_space<vmem>>, %arg9: memref<6x1x32xf32, #tpu.memory_space<vmem>>, %arg10: memref<6x1x32xf32, #tpu.memory_space<vmem>>, %arg11: memref<6x32x32xf32, #tpu.memory_space<vmem>>, %arg12: memref<6x1x32xf32, #tpu.memory_space<vmem>>, %arg13: memref<6x1x32xf32, #tpu.memory_space<vmem>>, %arg14: memref<6x1x32xf32, #tpu.memory_space<vmem>>, %arg15: memref<16x32xf32, #tpu.memory_space<vmem>>) attributes {dimension_semantics = [], scalar_prefetch = 0 : i64, scratch_operands = 0 : i64, tpu.core_type = #tpu.core_type<tc>} {
    %c0 = arith.constant 0 : index
    %c0_0 = arith.constant 0 : index
    %0 = vector.load %arg0[%c0, %c0_0] : memref<16x16xf32, #tpu.memory_space<vmem>>, vector<16x16xf32>
    %c0_1 = arith.constant 0 : index
    %c0_2 = arith.constant 0 : index
    %1 = vector.load %arg1[%c0_1, %c0_2] : memref<16x32xf32, #tpu.memory_space<vmem>>, vector<16x32xf32>
    %cst = arith.constant dense<0.000000e+00> : vector<16x32xf32>
    %2 = tpu.matmul %0, %1, %cst {dimension_numbers = #tpu.dot_dimension_numbers<[1], [0], [0], [1], [0, 0, 1, 1], [], []>} : vector<16x16xf32>, vector<16x32xf32>, vector<16x32xf32> -> vector<16x32xf32>
    %c0_3 = arith.constant 0 : index
    %c0_4 = arith.constant 0 : index
    %3 = vector.load %arg2[%c0_3, %c0_4] : memref<1x32xf32, #tpu.memory_space<vmem>>, vector<1x32xf32>
    %4 = vector.broadcast %3 : vector<1x32xf32> to vector<16x32xf32>
    %5 = arith.addf %2, %4 : vector<16x32xf32>
    %c0_5 = arith.constant 0 : index
    %c0_6 = arith.constant 0 : index
    %c0_7 = arith.constant 0 : index
    %6 = vector.load %arg3[%c0_5, %c0_6, %c0_7] : memref<6x32x256xf32, #tpu.memory_space<vmem>>, vector<1x32x256xf32>
    %7 = vector.shape_cast %6 : vector<1x32x256xf32> to vector<32x256xf32>
    %cst_8 = arith.constant dense<0.000000e+00> : vector<16x256xf32>
    %8 = tpu.matmul %5, %7, %cst_8 {dimension_numbers = #tpu.dot_dimension_numbers<[1], [0], [0], [1], [0, 0, 1, 1], [], []>} : vector<16x32xf32>, vector<32x256xf32>, vector<16x256xf32> -> vector<16x256xf32>
    %c0_9 = arith.constant 0 : index
    %c0_10 = arith.constant 0 : index
    %c0_11 = arith.constant 0 : index
    %9 = vector.load %arg4[%c0_9, %c0_10, %c0_11] : memref<6x1x256xf32, #tpu.memory_space<vmem>>, vector<1x1x256xf32>
    %10 = vector.shape_cast %9 : vector<1x1x256xf32> to vector<1x256xf32>
    %11 = vector.broadcast %10 : vector<1x256xf32> to vector<16x256xf32>
    %12 = arith.addf %8, %11 : vector<16x256xf32>
    %13 = vector.extract_strided_slice %12 {offsets = [0, 0], sizes = [16, 128], strides = [1, 1]} : vector<16x256xf32> to vector<16x128xf32>
    %14 = vector.extract_strided_slice %12 {offsets = [0, 128], sizes = [16, 128], strides = [1, 1]} : vector<16x256xf32> to vector<16x128xf32>
    %c0_12 = arith.constant 0 : index
    %c0_13 = arith.constant 0 : index
    %c0_14 = arith.constant 0 : index
    %15 = vector.load %arg5[%c0_12, %c0_13, %c0_14] : memref<6x32x128xf32, #tpu.memory_space<vmem>>, vector<1x32x128xf32>
    %16 = vector.shape_cast %15 : vector<1x32x128xf32> to vector<32x128xf32>
    %cst_15 = arith.constant dense<0.000000e+00> : vector<16x128xf32>
    %17 = tpu.matmul %5, %16, %cst_15 {dimension_numbers = #tpu.dot_dimension_numbers<[1], [0], [0], [1], [0, 0, 1, 1], [], []>} : vector<16x32xf32>, vector<32x128xf32>, vector<16x128xf32> -> vector<16x128xf32>
    %c0_16 = arith.constant 0 : index
    %c0_17 = arith.constant 0 : index
    %c0_18 = arith.constant 0 : index
    %18 = vector.load %arg6[%c0_16, %c0_17, %c0_18] : memref<6x1x128xf32, #tpu.memory_space<vmem>>, vector<1x1x128xf32>
    %19 = vector.shape_cast %18 : vector<1x1x128xf32> to vector<1x128xf32>
    %20 = vector.broadcast %19 : vector<1x128xf32> to vector<16x128xf32>
    %21 = arith.addf %17, %20 : vector<16x128xf32>
    %22 = vector.extract_strided_slice %13 {offsets = [0, 0], sizes = [16, 32], strides = [1, 1]} : vector<16x128xf32> to vector<16x32xf32>
    %23 = vector.extract_strided_slice %14 {offsets = [0, 0], sizes = [16, 32], strides = [1, 1]} : vector<16x128xf32> to vector<16x32xf32>
    %24 = vector.extract_strided_slice %21 {offsets = [0, 0], sizes = [16, 32], strides = [1, 1]} : vector<16x128xf32> to vector<16x32xf32>
    %cst_19 = arith.constant dense<0.000000e+00> : vector<32x32xf32>
    %25 = tpu.matmul %23, %22, %cst_19 {dimension_numbers = #tpu.dot_dimension_numbers<[0], [0], [1], [1], [0, 1, 1, 1], [], []>} : vector<16x32xf32>, vector<16x32xf32>, vector<32x32xf32> -> vector<32x32xf32>
    %cst_20 = arith.constant 0.176776692 : f32
    %26 = vector.broadcast %cst_20 : f32 to vector<32x32xf32>
    %27 = arith.mulf %25, %26 : vector<32x32xf32>
    %cst_21 = arith.constant dense<0xFF800000> : vector<32xf32>
    %28 = vector.multi_reduction <maximumf>, %27, %cst_21 [1] : vector<32x32xf32> to vector<32xf32>
    %29 = vector.shape_cast %28 : vector<32xf32> to vector<32x1xf32>
    %30 = vector.broadcast %29 : vector<32x1xf32> to vector<32x32xf32>
    %31 = arith.subf %27, %30 : vector<32x32xf32>
    %32 = math.exp %31 : vector<32x32xf32>
    %cst_22 = arith.constant dense<0.000000e+00> : vector<32xf32>
    %33 = vector.multi_reduction <add>, %32, %cst_22 [1] : vector<32x32xf32> to vector<32xf32>
    %34 = vector.shape_cast %33 : vector<32xf32> to vector<32x1xf32>
    %35 = vector.broadcast %34 : vector<32x1xf32> to vector<32x32xf32>
    %36 = arith.divf %32, %35 : vector<32x32xf32>
    %cst_23 = arith.constant dense<0.000000e+00> : vector<16x32xf32>
    %37 = tpu.matmul %24, %36, %cst_23 {dimension_numbers = #tpu.dot_dimension_numbers<[1], [0], [0], [1], [0, 0, 1, 1], [], []>} : vector<16x32xf32>, vector<32x32xf32>, vector<16x32xf32> -> vector<16x32xf32>
    %38 = vector.extract_strided_slice %13 {offsets = [0, 32], sizes = [16, 32], strides = [1, 1]} : vector<16x128xf32> to vector<16x32xf32>
    %39 = vector.extract_strided_slice %14 {offsets = [0, 32], sizes = [16, 32], strides = [1, 1]} : vector<16x128xf32> to vector<16x32xf32>
    %40 = vector.extract_strided_slice %21 {offsets = [0, 32], sizes = [16, 32], strides = [1, 1]} : vector<16x128xf32> to vector<16x32xf32>
    %cst_24 = arith.constant dense<0.000000e+00> : vector<32x32xf32>
    %41 = tpu.matmul %39, %38, %cst_24 {dimension_numbers = #tpu.dot_dimension_numbers<[0], [0], [1], [1], [0, 1, 1, 1], [], []>} : vector<16x32xf32>, vector<16x32xf32>, vector<32x32xf32> -> vector<32x32xf32>
    %cst_25 = arith.constant 0.176776692 : f32
    %42 = vector.broadcast %cst_25 : f32 to vector<32x32xf32>
    %43 = arith.mulf %41, %42 : vector<32x32xf32>
    %cst_26 = arith.constant dense<0xFF800000> : vector<32xf32>
    %44 = vector.multi_reduction <maximumf>, %43, %cst_26 [1] : vector<32x32xf32> to vector<32xf32>
    %45 = vector.shape_cast %44 : vector<32xf32> to vector<32x1xf32>
    %46 = vector.broadcast %45 : vector<32x1xf32> to vector<32x32xf32>
    %47 = arith.subf %43, %46 : vector<32x32xf32>
    %48 = math.exp %47 : vector<32x32xf32>
    %cst_27 = arith.constant dense<0.000000e+00> : vector<32xf32>
    %49 = vector.multi_reduction <add>, %48, %cst_27 [1] : vector<32x32xf32> to vector<32xf32>
    %50 = vector.shape_cast %49 : vector<32xf32> to vector<32x1xf32>
    %51 = vector.broadcast %50 : vector<32x1xf32> to vector<32x32xf32>
    %52 = arith.divf %48, %51 : vector<32x32xf32>
    %cst_28 = arith.constant dense<0.000000e+00> : vector<16x32xf32>
    %53 = tpu.matmul %40, %52, %cst_28 {dimension_numbers = #tpu.dot_dimension_numbers<[1], [0], [0], [1], [0, 0, 1, 1], [], []>} : vector<16x32xf32>, vector<32x32xf32>, vector<16x32xf32> -> vector<16x32xf32>
    %54 = vector.extract_strided_slice %13 {offsets = [0, 64], sizes = [16, 32], strides = [1, 1]} : vector<16x128xf32> to vector<16x32xf32>
    %55 = vector.extract_strided_slice %14 {offsets = [0, 64], sizes = [16, 32], strides = [1, 1]} : vector<16x128xf32> to vector<16x32xf32>
    %56 = vector.extract_strided_slice %21 {offsets = [0, 64], sizes = [16, 32], strides = [1, 1]} : vector<16x128xf32> to vector<16x32xf32>
    %cst_29 = arith.constant dense<0.000000e+00> : vector<32x32xf32>
    %57 = tpu.matmul %55, %54, %cst_29 {dimension_numbers = #tpu.dot_dimension_numbers<[0], [0], [1], [1], [0, 1, 1, 1], [], []>} : vector<16x32xf32>, vector<16x32xf32>, vector<32x32xf32> -> vector<32x32xf32>
    %cst_30 = arith.constant 0.176776692 : f32
    %58 = vector.broadcast %cst_30 : f32 to vector<32x32xf32>
    %59 = arith.mulf %57, %58 : vector<32x32xf32>
    %cst_31 = arith.constant dense<0xFF800000> : vector<32xf32>
    %60 = vector.multi_reduction <maximumf>, %59, %cst_31 [1] : vector<32x32xf32> to vector<32xf32>
    %61 = vector.shape_cast %60 : vector<32xf32> to vector<32x1xf32>
    %62 = vector.broadcast %61 : vector<32x1xf32> to vector<32x32xf32>
    %63 = arith.subf %59, %62 : vector<32x32xf32>
    %64 = math.exp %63 : vector<32x32xf32>
    %cst_32 = arith.constant dense<0.000000e+00> : vector<32xf32>
    %65 = vector.multi_reduction <add>, %64, %cst_32 [1] : vector<32x32xf32> to vector<32xf32>
    %66 = vector.shape_cast %65 : vector<32xf32> to vector<32x1xf32>
    %67 = vector.broadcast %66 : vector<32x1xf32> to vector<32x32xf32>
    %68 = arith.divf %64, %67 : vector<32x32xf32>
    %cst_33 = arith.constant dense<0.000000e+00> : vector<16x32xf32>
    %69 = tpu.matmul %56, %68, %cst_33 {dimension_numbers = #tpu.dot_dimension_numbers<[1], [0], [0], [1], [0, 0, 1, 1], [], []>} : vector<16x32xf32>, vector<32x32xf32>, vector<16x32xf32> -> vector<16x32xf32>
    %70 = vector.extract_strided_slice %13 {offsets = [0, 96], sizes = [16, 32], strides = [1, 1]} : vector<16x128xf32> to vector<16x32xf32>
    %71 = vector.extract_strided_slice %14 {offsets = [0, 96], sizes = [16, 32], strides = [1, 1]} : vector<16x128xf32> to vector<16x32xf32>
    %72 = vector.extract_strided_slice %21 {offsets = [0, 96], sizes = [16, 32], strides = [1, 1]} : vector<16x128xf32> to vector<16x32xf32>
    %cst_34 = arith.constant dense<0.000000e+00> : vector<32x32xf32>
    %73 = tpu.matmul %71, %70, %cst_34 {dimension_numbers = #tpu.dot_dimension_numbers<[0], [0], [1], [1], [0, 1, 1, 1], [], []>} : vector<16x32xf32>, vector<16x32xf32>, vector<32x32xf32> -> vector<32x32xf32>
    %cst_35 = arith.constant 0.176776692 : f32
    %74 = vector.broadcast %cst_35 : f32 to vector<32x32xf32>
    %75 = arith.mulf %73, %74 : vector<32x32xf32>
    %cst_36 = arith.constant dense<0xFF800000> : vector<32xf32>
    %76 = vector.multi_reduction <maximumf>, %75, %cst_36 [1] : vector<32x32xf32> to vector<32xf32>
    %77 = vector.shape_cast %76 : vector<32xf32> to vector<32x1xf32>
    %78 = vector.broadcast %77 : vector<32x1xf32> to vector<32x32xf32>
    %79 = arith.subf %75, %78 : vector<32x32xf32>
    %80 = math.exp %79 : vector<32x32xf32>
    %cst_37 = arith.constant dense<0.000000e+00> : vector<32xf32>
    %81 = vector.multi_reduction <add>, %80, %cst_37 [1] : vector<32x32xf32> to vector<32xf32>
    %82 = vector.shape_cast %81 : vector<32xf32> to vector<32x1xf32>
    %83 = vector.broadcast %82 : vector<32x1xf32> to vector<32x32xf32>
    %84 = arith.divf %80, %83 : vector<32x32xf32>
    %cst_38 = arith.constant dense<0.000000e+00> : vector<16x32xf32>
    %85 = tpu.matmul %72, %84, %cst_38 {dimension_numbers = #tpu.dot_dimension_numbers<[1], [0], [0], [1], [0, 0, 1, 1], [], []>} : vector<16x32xf32>, vector<32x32xf32>, vector<16x32xf32> -> vector<16x32xf32>
    %86 = tpu.concatenate %37, %53, %69, %85 in 1 : vector<16x32xf32>, vector<16x32xf32>, vector<16x32xf32>, vector<16x32xf32> -> vector<16x128xf32>
    %c0_39 = arith.constant 0 : index
    %c0_40 = arith.constant 0 : index
    %c0_41 = arith.constant 0 : index
    %87 = vector.load %arg7[%c0_39, %c0_40, %c0_41] : memref<6x128x32xf32, #tpu.memory_space<vmem>>, vector<1x128x32xf32>
    %88 = vector.shape_cast %87 : vector<1x128x32xf32> to vector<128x32xf32>
    %cst_42 = arith.constant dense<0.000000e+00> : vector<16x32xf32>
    %89 = tpu.matmul %86, %88, %cst_42 {dimension_numbers = #tpu.dot_dimension_numbers<[1], [0], [0], [1], [0, 0, 1, 1], [], []>} : vector<16x128xf32>, vector<128x32xf32>, vector<16x32xf32> -> vector<16x32xf32>
    %c0_43 = arith.constant 0 : index
    %c0_44 = arith.constant 0 : index
    %c0_45 = arith.constant 0 : index
    %90 = vector.load %arg8[%c0_43, %c0_44, %c0_45] : memref<6x1x32xf32, #tpu.memory_space<vmem>>, vector<1x1x32xf32>
    %91 = vector.shape_cast %90 : vector<1x1x32xf32> to vector<1x32xf32>
    %92 = vector.broadcast %91 : vector<1x32xf32> to vector<16x32xf32>
    %93 = arith.addf %89, %92 : vector<16x32xf32>
    %c0_46 = arith.constant 0 : index
    %c0_47 = arith.constant 0 : index
    %c0_48 = arith.constant 0 : index
    %94 = vector.load %arg9[%c0_46, %c0_47, %c0_48] : memref<6x1x32xf32, #tpu.memory_space<vmem>>, vector<1x1x32xf32>
    %95 = vector.shape_cast %94 : vector<1x1x32xf32> to vector<1x32xf32>
    %c0_49 = arith.constant 0 : index
    %c0_50 = arith.constant 0 : index
    %c0_51 = arith.constant 0 : index
    %96 = vector.load %arg10[%c0_49, %c0_50, %c0_51] : memref<6x1x32xf32, #tpu.memory_space<vmem>>, vector<1x1x32xf32>
    %97 = vector.shape_cast %96 : vector<1x1x32xf32> to vector<1x32xf32>
    %cst_52 = arith.constant dense<0.000000e+00> : vector<16xf32>
    %98 = vector.multi_reduction <add>, %93, %cst_52 [1] : vector<16x32xf32> to vector<16xf32>
    %99 = vector.shape_cast %98 : vector<16xf32> to vector<16x1xf32>
    %cst_53 = arith.constant 3.200000e+01 : f32
    %100 = vector.broadcast %cst_53 : f32 to vector<16x1xf32>
    %101 = arith.divf %99, %100 : vector<16x1xf32>
    %102 = vector.broadcast %101 : vector<16x1xf32> to vector<16x32xf32>
    %103 = arith.subf %93, %102 : vector<16x32xf32>
    %104 = arith.mulf %103, %103 : vector<16x32xf32>
    %cst_54 = arith.constant dense<0.000000e+00> : vector<16xf32>
    %105 = vector.multi_reduction <add>, %104, %cst_54 [1] : vector<16x32xf32> to vector<16xf32>
    %106 = vector.shape_cast %105 : vector<16xf32> to vector<16x1xf32>
    %cst_55 = arith.constant 3.200000e+01 : f32
    %107 = vector.broadcast %cst_55 : f32 to vector<16x1xf32>
    %108 = arith.divf %106, %107 : vector<16x1xf32>
    %109 = vector.broadcast %101 : vector<16x1xf32> to vector<16x32xf32>
    %110 = arith.subf %93, %109 : vector<16x32xf32>
    %cst_56 = arith.constant 9.99999974E-6 : f32
    %111 = vector.broadcast %cst_56 : f32 to vector<16x1xf32>
    %112 = arith.addf %108, %111 : vector<16x1xf32>
    %113 = math.rsqrt %112 : vector<16x1xf32>
    %114 = vector.broadcast %113 : vector<16x1xf32> to vector<16x32xf32>
    %115 = arith.mulf %110, %114 : vector<16x32xf32>
    %116 = vector.broadcast %95 : vector<1x32xf32> to vector<16x32xf32>
    %117 = arith.mulf %115, %116 : vector<16x32xf32>
    %118 = vector.broadcast %97 : vector<1x32xf32> to vector<16x32xf32>
    %119 = arith.addf %117, %118 : vector<16x32xf32>
    %120 = arith.addf %119, %5 : vector<16x32xf32>
    %c0_57 = arith.constant 0 : index
    %c0_58 = arith.constant 0 : index
    %c0_59 = arith.constant 0 : index
    %121 = vector.load %arg11[%c0_57, %c0_58, %c0_59] : memref<6x32x32xf32, #tpu.memory_space<vmem>>, vector<1x32x32xf32>
    %122 = vector.shape_cast %121 : vector<1x32x32xf32> to vector<32x32xf32>
    %cst_60 = arith.constant dense<0.000000e+00> : vector<16x32xf32>
    %123 = tpu.matmul %120, %122, %cst_60 {dimension_numbers = #tpu.dot_dimension_numbers<[1], [0], [0], [1], [0, 0, 1, 1], [], []>} : vector<16x32xf32>, vector<32x32xf32>, vector<16x32xf32> -> vector<16x32xf32>
    %c0_61 = arith.constant 0 : index
    %c0_62 = arith.constant 0 : index
    %c0_63 = arith.constant 0 : index
    %124 = vector.load %arg12[%c0_61, %c0_62, %c0_63] : memref<6x1x32xf32, #tpu.memory_space<vmem>>, vector<1x1x32xf32>
    %125 = vector.shape_cast %124 : vector<1x1x32xf32> to vector<1x32xf32>
    %126 = vector.broadcast %125 : vector<1x32xf32> to vector<16x32xf32>
    %127 = arith.addf %123, %126 : vector<16x32xf32>
    %c0_64 = arith.constant 0 : index
    %c0_65 = arith.constant 0 : index
    %c0_66 = arith.constant 0 : index
    %128 = vector.load %arg13[%c0_64, %c0_65, %c0_66] : memref<6x1x32xf32, #tpu.memory_space<vmem>>, vector<1x1x32xf32>
    %129 = vector.shape_cast %128 : vector<1x1x32xf32> to vector<1x32xf32>
    %c0_67 = arith.constant 0 : index
    %c0_68 = arith.constant 0 : index
    %c0_69 = arith.constant 0 : index
    %130 = vector.load %arg14[%c0_67, %c0_68, %c0_69] : memref<6x1x32xf32, #tpu.memory_space<vmem>>, vector<1x1x32xf32>
    %131 = vector.shape_cast %130 : vector<1x1x32xf32> to vector<1x32xf32>
    %cst_70 = arith.constant dense<0.000000e+00> : vector<16xf32>
    %132 = vector.multi_reduction <add>, %127, %cst_70 [1] : vector<16x32xf32> to vector<16xf32>
    %133 = vector.shape_cast %132 : vector<16xf32> to vector<16x1xf32>
    %cst_71 = arith.constant 3.200000e+01 : f32
    %134 = vector.broadcast %cst_71 : f32 to vector<16x1xf32>
    %135 = arith.divf %133, %134 : vector<16x1xf32>
    %136 = vector.broadcast %135 : vector<16x1xf32> to vector<16x32xf32>
    %137 = arith.subf %127, %136 : vector<16x32xf32>
    %138 = arith.mulf %137, %137 : vector<16x32xf32>
    %cst_72 = arith.constant dense<0.000000e+00> : vector<16xf32>
    %139 = vector.multi_reduction <add>, %138, %cst_72 [1] : vector<16x32xf32> to vector<16xf32>
    %140 = vector.shape_cast %139 : vector<16xf32> to vector<16x1xf32>
    %cst_73 = arith.constant 3.200000e+01 : f32
    %141 = vector.broadcast %cst_73 : f32 to vector<16x1xf32>
    %142 = arith.divf %140, %141 : vector<16x1xf32>
    %143 = vector.broadcast %135 : vector<16x1xf32> to vector<16x32xf32>
    %144 = arith.subf %127, %143 : vector<16x32xf32>
    %cst_74 = arith.constant 9.99999974E-6 : f32
    %145 = vector.broadcast %cst_74 : f32 to vector<16x1xf32>
    %146 = arith.addf %142, %145 : vector<16x1xf32>
    %147 = math.rsqrt %146 : vector<16x1xf32>
    %148 = vector.broadcast %147 : vector<16x1xf32> to vector<16x32xf32>
    %149 = arith.mulf %144, %148 : vector<16x32xf32>
    %150 = vector.broadcast %129 : vector<1x32xf32> to vector<16x32xf32>
    %151 = arith.mulf %149, %150 : vector<16x32xf32>
    %152 = vector.broadcast %131 : vector<1x32xf32> to vector<16x32xf32>
    %153 = arith.addf %151, %152 : vector<16x32xf32>
    %154 = arith.addf %153, %120 : vector<16x32xf32>
    %c1 = arith.constant 1 : index
    %c0_75 = arith.constant 0 : index
    %c0_76 = arith.constant 0 : index
    %155 = vector.load %arg3[%c1, %c0_75, %c0_76] : memref<6x32x256xf32, #tpu.memory_space<vmem>>, vector<1x32x256xf32>
    %156 = vector.shape_cast %155 : vector<1x32x256xf32> to vector<32x256xf32>
    %cst_77 = arith.constant dense<0.000000e+00> : vector<16x256xf32>
    %157 = tpu.matmul %154, %156, %cst_77 {dimension_numbers = #tpu.dot_dimension_numbers<[1], [0], [0], [1], [0, 0, 1, 1], [], []>} : vector<16x32xf32>, vector<32x256xf32>, vector<16x256xf32> -> vector<16x256xf32>
    %c1_78 = arith.constant 1 : index
    %c0_79 = arith.constant 0 : index
    %c0_80 = arith.constant 0 : index
    %158 = vector.load %arg4[%c1_78, %c0_79, %c0_80] : memref<6x1x256xf32, #tpu.memory_space<vmem>>, vector<1x1x256xf32>
    %159 = vector.shape_cast %158 : vector<1x1x256xf32> to vector<1x256xf32>
    %160 = vector.broadcast %159 : vector<1x256xf32> to vector<16x256xf32>
    %161 = arith.addf %157, %160 : vector<16x256xf32>
    %162 = vector.extract_strided_slice %161 {offsets = [0, 0], sizes = [16, 128], strides = [1, 1]} : vector<16x256xf32> to vector<16x128xf32>
    %163 = vector.extract_strided_slice %161 {offsets = [0, 128], sizes = [16, 128], strides = [1, 1]} : vector<16x256xf32> to vector<16x128xf32>
    %c1_81 = arith.constant 1 : index
    %c0_82 = arith.constant 0 : index
    %c0_83 = arith.constant 0 : index
    %164 = vector.load %arg5[%c1_81, %c0_82, %c0_83] : memref<6x32x128xf32, #tpu.memory_space<vmem>>, vector<1x32x128xf32>
    %165 = vector.shape_cast %164 : vector<1x32x128xf32> to vector<32x128xf32>
    %cst_84 = arith.constant dense<0.000000e+00> : vector<16x128xf32>
    %166 = tpu.matmul %154, %165, %cst_84 {dimension_numbers = #tpu.dot_dimension_numbers<[1], [0], [0], [1], [0, 0, 1, 1], [], []>} : vector<16x32xf32>, vector<32x128xf32>, vector<16x128xf32> -> vector<16x128xf32>
    %c1_85 = arith.constant 1 : index
    %c0_86 = arith.constant 0 : index
    %c0_87 = arith.constant 0 : index
    %167 = vector.load %arg6[%c1_85, %c0_86, %c0_87] : memref<6x1x128xf32, #tpu.memory_space<vmem>>, vector<1x1x128xf32>
    %168 = vector.shape_cast %167 : vector<1x1x128xf32> to vector<1x128xf32>
    %169 = vector.broadcast %168 : vector<1x128xf32> to vector<16x128xf32>
    %170 = arith.addf %166, %169 : vector<16x128xf32>
    %171 = vector.extract_strided_slice %162 {offsets = [0, 0], sizes = [16, 32], strides = [1, 1]} : vector<16x128xf32> to vector<16x32xf32>
    %172 = vector.extract_strided_slice %163 {offsets = [0, 0], sizes = [16, 32], strides = [1, 1]} : vector<16x128xf32> to vector<16x32xf32>
    %173 = vector.extract_strided_slice %170 {offsets = [0, 0], sizes = [16, 32], strides = [1, 1]} : vector<16x128xf32> to vector<16x32xf32>
    %cst_88 = arith.constant dense<0.000000e+00> : vector<32x32xf32>
    %174 = tpu.matmul %172, %171, %cst_88 {dimension_numbers = #tpu.dot_dimension_numbers<[0], [0], [1], [1], [0, 1, 1, 1], [], []>} : vector<16x32xf32>, vector<16x32xf32>, vector<32x32xf32> -> vector<32x32xf32>
    %cst_89 = arith.constant 0.176776692 : f32
    %175 = vector.broadcast %cst_89 : f32 to vector<32x32xf32>
    %176 = arith.mulf %174, %175 : vector<32x32xf32>
    %cst_90 = arith.constant dense<0xFF800000> : vector<32xf32>
    %177 = vector.multi_reduction <maximumf>, %176, %cst_90 [1] : vector<32x32xf32> to vector<32xf32>
    %178 = vector.shape_cast %177 : vector<32xf32> to vector<32x1xf32>
    %179 = vector.broadcast %178 : vector<32x1xf32> to vector<32x32xf32>
    %180 = arith.subf %176, %179 : vector<32x32xf32>
    %181 = math.exp %180 : vector<32x32xf32>
    %cst_91 = arith.constant dense<0.000000e+00> : vector<32xf32>
    %182 = vector.multi_reduction <add>, %181, %cst_91 [1] : vector<32x32xf32> to vector<32xf32>
    %183 = vector.shape_cast %182 : vector<32xf32> to vector<32x1xf32>
    %184 = vector.broadcast %183 : vector<32x1xf32> to vector<32x32xf32>
    %185 = arith.divf %181, %184 : vector<32x32xf32>
    %cst_92 = arith.constant dense<0.000000e+00> : vector<16x32xf32>
    %186 = tpu.matmul %173, %185, %cst_92 {dimension_numbers = #tpu.dot_dimension_numbers<[1], [0], [0], [1], [0, 0, 1, 1], [], []>} : vector<16x32xf32>, vector<32x32xf32>, vector<16x32xf32> -> vector<16x32xf32>
    %187 = vector.extract_strided_slice %162 {offsets = [0, 32], sizes = [16, 32], strides = [1, 1]} : vector<16x128xf32> to vector<16x32xf32>
    %188 = vector.extract_strided_slice %163 {offsets = [0, 32], sizes = [16, 32], strides = [1, 1]} : vector<16x128xf32> to vector<16x32xf32>
    %189 = vector.extract_strided_slice %170 {offsets = [0, 32], sizes = [16, 32], strides = [1, 1]} : vector<16x128xf32> to vector<16x32xf32>
    %cst_93 = arith.constant dense<0.000000e+00> : vector<32x32xf32>
    %190 = tpu.matmul %188, %187, %cst_93 {dimension_numbers = #tpu.dot_dimension_numbers<[0], [0], [1], [1], [0, 1, 1, 1], [], []>} : vector<16x32xf32>, vector<16x32xf32>, vector<32x32xf32> -> vector<32x32xf32>
    %cst_94 = arith.constant 0.176776692 : f32
    %191 = vector.broadcast %cst_94 : f32 to vector<32x32xf32>
    %192 = arith.mulf %190, %191 : vector<32x32xf32>
    %cst_95 = arith.constant dense<0xFF800000> : vector<32xf32>
    %193 = vector.multi_reduction <maximumf>, %192, %cst_95 [1] : vector<32x32xf32> to vector<32xf32>
    %194 = vector.shape_cast %193 : vector<32xf32> to vector<32x1xf32>
    %195 = vector.broadcast %194 : vector<32x1xf32> to vector<32x32xf32>
    %196 = arith.subf %192, %195 : vector<32x32xf32>
    %197 = math.exp %196 : vector<32x32xf32>
    %cst_96 = arith.constant dense<0.000000e+00> : vector<32xf32>
    %198 = vector.multi_reduction <add>, %197, %cst_96 [1] : vector<32x32xf32> to vector<32xf32>
    %199 = vector.shape_cast %198 : vector<32xf32> to vector<32x1xf32>
    %200 = vector.broadcast %199 : vector<32x1xf32> to vector<32x32xf32>
    %201 = arith.divf %197, %200 : vector<32x32xf32>
    %cst_97 = arith.constant dense<0.000000e+00> : vector<16x32xf32>
    %202 = tpu.matmul %189, %201, %cst_97 {dimension_numbers = #tpu.dot_dimension_numbers<[1], [0], [0], [1], [0, 0, 1, 1], [], []>} : vector<16x32xf32>, vector<32x32xf32>, vector<16x32xf32> -> vector<16x32xf32>
    %203 = vector.extract_strided_slice %162 {offsets = [0, 64], sizes = [16, 32], strides = [1, 1]} : vector<16x128xf32> to vector<16x32xf32>
    %204 = vector.extract_strided_slice %163 {offsets = [0, 64], sizes = [16, 32], strides = [1, 1]} : vector<16x128xf32> to vector<16x32xf32>
    %205 = vector.extract_strided_slice %170 {offsets = [0, 64], sizes = [16, 32], strides = [1, 1]} : vector<16x128xf32> to vector<16x32xf32>
    %cst_98 = arith.constant dense<0.000000e+00> : vector<32x32xf32>
    %206 = tpu.matmul %204, %203, %cst_98 {dimension_numbers = #tpu.dot_dimension_numbers<[0], [0], [1], [1], [0, 1, 1, 1], [], []>} : vector<16x32xf32>, vector<16x32xf32>, vector<32x32xf32> -> vector<32x32xf32>
    %cst_99 = arith.constant 0.176776692 : f32
    %207 = vector.broadcast %cst_99 : f32 to vector<32x32xf32>
    %208 = arith.mulf %206, %207 : vector<32x32xf32>
    %cst_100 = arith.constant dense<0xFF800000> : vector<32xf32>
    %209 = vector.multi_reduction <maximumf>, %208, %cst_100 [1] : vector<32x32xf32> to vector<32xf32>
    %210 = vector.shape_cast %209 : vector<32xf32> to vector<32x1xf32>
    %211 = vector.broadcast %210 : vector<32x1xf32> to vector<32x32xf32>
    %212 = arith.subf %208, %211 : vector<32x32xf32>
    %213 = math.exp %212 : vector<32x32xf32>
    %cst_101 = arith.constant dense<0.000000e+00> : vector<32xf32>
    %214 = vector.multi_reduction <add>, %213, %cst_101 [1] : vector<32x32xf32> to vector<32xf32>
    %215 = vector.shape_cast %214 : vector<32xf32> to vector<32x1xf32>
    %216 = vector.broadcast %215 : vector<32x1xf32> to vector<32x32xf32>
    %217 = arith.divf %213, %216 : vector<32x32xf32>
    %cst_102 = arith.constant dense<0.000000e+00> : vector<16x32xf32>
    %218 = tpu.matmul %205, %217, %cst_102 {dimension_numbers = #tpu.dot_dimension_numbers<[1], [0], [0], [1], [0, 0, 1, 1], [], []>} : vector<16x32xf32>, vector<32x32xf32>, vector<16x32xf32> -> vector<16x32xf32>
    %219 = vector.extract_strided_slice %162 {offsets = [0, 96], sizes = [16, 32], strides = [1, 1]} : vector<16x128xf32> to vector<16x32xf32>
    %220 = vector.extract_strided_slice %163 {offsets = [0, 96], sizes = [16, 32], strides = [1, 1]} : vector<16x128xf32> to vector<16x32xf32>
    %221 = vector.extract_strided_slice %170 {offsets = [0, 96], sizes = [16, 32], strides = [1, 1]} : vector<16x128xf32> to vector<16x32xf32>
    %cst_103 = arith.constant dense<0.000000e+00> : vector<32x32xf32>
    %222 = tpu.matmul %220, %219, %cst_103 {dimension_numbers = #tpu.dot_dimension_numbers<[0], [0], [1], [1], [0, 1, 1, 1], [], []>} : vector<16x32xf32>, vector<16x32xf32>, vector<32x32xf32> -> vector<32x32xf32>
    %cst_104 = arith.constant 0.176776692 : f32
    %223 = vector.broadcast %cst_104 : f32 to vector<32x32xf32>
    %224 = arith.mulf %222, %223 : vector<32x32xf32>
    %cst_105 = arith.constant dense<0xFF800000> : vector<32xf32>
    %225 = vector.multi_reduction <maximumf>, %224, %cst_105 [1] : vector<32x32xf32> to vector<32xf32>
    %226 = vector.shape_cast %225 : vector<32xf32> to vector<32x1xf32>
    %227 = vector.broadcast %226 : vector<32x1xf32> to vector<32x32xf32>
    %228 = arith.subf %224, %227 : vector<32x32xf32>
    %229 = math.exp %228 : vector<32x32xf32>
    %cst_106 = arith.constant dense<0.000000e+00> : vector<32xf32>
    %230 = vector.multi_reduction <add>, %229, %cst_106 [1] : vector<32x32xf32> to vector<32xf32>
    %231 = vector.shape_cast %230 : vector<32xf32> to vector<32x1xf32>
    %232 = vector.broadcast %231 : vector<32x1xf32> to vector<32x32xf32>
    %233 = arith.divf %229, %232 : vector<32x32xf32>
    %cst_107 = arith.constant dense<0.000000e+00> : vector<16x32xf32>
    %234 = tpu.matmul %221, %233, %cst_107 {dimension_numbers = #tpu.dot_dimension_numbers<[1], [0], [0], [1], [0, 0, 1, 1], [], []>} : vector<16x32xf32>, vector<32x32xf32>, vector<16x32xf32> -> vector<16x32xf32>
    %235 = tpu.concatenate %186, %202, %218, %234 in 1 : vector<16x32xf32>, vector<16x32xf32>, vector<16x32xf32>, vector<16x32xf32> -> vector<16x128xf32>
    %c1_108 = arith.constant 1 : index
    %c0_109 = arith.constant 0 : index
    %c0_110 = arith.constant 0 : index
    %236 = vector.load %arg7[%c1_108, %c0_109, %c0_110] : memref<6x128x32xf32, #tpu.memory_space<vmem>>, vector<1x128x32xf32>
    %237 = vector.shape_cast %236 : vector<1x128x32xf32> to vector<128x32xf32>
    %cst_111 = arith.constant dense<0.000000e+00> : vector<16x32xf32>
    %238 = tpu.matmul %235, %237, %cst_111 {dimension_numbers = #tpu.dot_dimension_numbers<[1], [0], [0], [1], [0, 0, 1, 1], [], []>} : vector<16x128xf32>, vector<128x32xf32>, vector<16x32xf32> -> vector<16x32xf32>
    %c1_112 = arith.constant 1 : index
    %c0_113 = arith.constant 0 : index
    %c0_114 = arith.constant 0 : index
    %239 = vector.load %arg8[%c1_112, %c0_113, %c0_114] : memref<6x1x32xf32, #tpu.memory_space<vmem>>, vector<1x1x32xf32>
    %240 = vector.shape_cast %239 : vector<1x1x32xf32> to vector<1x32xf32>
    %241 = vector.broadcast %240 : vector<1x32xf32> to vector<16x32xf32>
    %242 = arith.addf %238, %241 : vector<16x32xf32>
    %c1_115 = arith.constant 1 : index
    %c0_116 = arith.constant 0 : index
    %c0_117 = arith.constant 0 : index
    %243 = vector.load %arg9[%c1_115, %c0_116, %c0_117] : memref<6x1x32xf32, #tpu.memory_space<vmem>>, vector<1x1x32xf32>
    %244 = vector.shape_cast %243 : vector<1x1x32xf32> to vector<1x32xf32>
    %c1_118 = arith.constant 1 : index
    %c0_119 = arith.constant 0 : index
    %c0_120 = arith.constant 0 : index
    %245 = vector.load %arg10[%c1_118, %c0_119, %c0_120] : memref<6x1x32xf32, #tpu.memory_space<vmem>>, vector<1x1x32xf32>
    %246 = vector.shape_cast %245 : vector<1x1x32xf32> to vector<1x32xf32>
    %cst_121 = arith.constant dense<0.000000e+00> : vector<16xf32>
    %247 = vector.multi_reduction <add>, %242, %cst_121 [1] : vector<16x32xf32> to vector<16xf32>
    %248 = vector.shape_cast %247 : vector<16xf32> to vector<16x1xf32>
    %cst_122 = arith.constant 3.200000e+01 : f32
    %249 = vector.broadcast %cst_122 : f32 to vector<16x1xf32>
    %250 = arith.divf %248, %249 : vector<16x1xf32>
    %251 = vector.broadcast %250 : vector<16x1xf32> to vector<16x32xf32>
    %252 = arith.subf %242, %251 : vector<16x32xf32>
    %253 = arith.mulf %252, %252 : vector<16x32xf32>
    %cst_123 = arith.constant dense<0.000000e+00> : vector<16xf32>
    %254 = vector.multi_reduction <add>, %253, %cst_123 [1] : vector<16x32xf32> to vector<16xf32>
    %255 = vector.shape_cast %254 : vector<16xf32> to vector<16x1xf32>
    %cst_124 = arith.constant 3.200000e+01 : f32
    %256 = vector.broadcast %cst_124 : f32 to vector<16x1xf32>
    %257 = arith.divf %255, %256 : vector<16x1xf32>
    %258 = vector.broadcast %250 : vector<16x1xf32> to vector<16x32xf32>
    %259 = arith.subf %242, %258 : vector<16x32xf32>
    %cst_125 = arith.constant 9.99999974E-6 : f32
    %260 = vector.broadcast %cst_125 : f32 to vector<16x1xf32>
    %261 = arith.addf %257, %260 : vector<16x1xf32>
    %262 = math.rsqrt %261 : vector<16x1xf32>
    %263 = vector.broadcast %262 : vector<16x1xf32> to vector<16x32xf32>
    %264 = arith.mulf %259, %263 : vector<16x32xf32>
    %265 = vector.broadcast %244 : vector<1x32xf32> to vector<16x32xf32>
    %266 = arith.mulf %264, %265 : vector<16x32xf32>
    %267 = vector.broadcast %246 : vector<1x32xf32> to vector<16x32xf32>
    %268 = arith.addf %266, %267 : vector<16x32xf32>
    %269 = arith.addf %268, %154 : vector<16x32xf32>
    %c1_126 = arith.constant 1 : index
    %c0_127 = arith.constant 0 : index
    %c0_128 = arith.constant 0 : index
    %270 = vector.load %arg11[%c1_126, %c0_127, %c0_128] : memref<6x32x32xf32, #tpu.memory_space<vmem>>, vector<1x32x32xf32>
    %271 = vector.shape_cast %270 : vector<1x32x32xf32> to vector<32x32xf32>
    %cst_129 = arith.constant dense<0.000000e+00> : vector<16x32xf32>
    %272 = tpu.matmul %269, %271, %cst_129 {dimension_numbers = #tpu.dot_dimension_numbers<[1], [0], [0], [1], [0, 0, 1, 1], [], []>} : vector<16x32xf32>, vector<32x32xf32>, vector<16x32xf32> -> vector<16x32xf32>
    %c1_130 = arith.constant 1 : index
    %c0_131 = arith.constant 0 : index
    %c0_132 = arith.constant 0 : index
    %273 = vector.load %arg12[%c1_130, %c0_131, %c0_132] : memref<6x1x32xf32, #tpu.memory_space<vmem>>, vector<1x1x32xf32>
    %274 = vector.shape_cast %273 : vector<1x1x32xf32> to vector<1x32xf32>
    %275 = vector.broadcast %274 : vector<1x32xf32> to vector<16x32xf32>
    %276 = arith.addf %272, %275 : vector<16x32xf32>
    %c1_133 = arith.constant 1 : index
    %c0_134 = arith.constant 0 : index
    %c0_135 = arith.constant 0 : index
    %277 = vector.load %arg13[%c1_133, %c0_134, %c0_135] : memref<6x1x32xf32, #tpu.memory_space<vmem>>, vector<1x1x32xf32>
    %278 = vector.shape_cast %277 : vector<1x1x32xf32> to vector<1x32xf32>
    %c1_136 = arith.constant 1 : index
    %c0_137 = arith.constant 0 : index
    %c0_138 = arith.constant 0 : index
    %279 = vector.load %arg14[%c1_136, %c0_137, %c0_138] : memref<6x1x32xf32, #tpu.memory_space<vmem>>, vector<1x1x32xf32>
    %280 = vector.shape_cast %279 : vector<1x1x32xf32> to vector<1x32xf32>
    %cst_139 = arith.constant dense<0.000000e+00> : vector<16xf32>
    %281 = vector.multi_reduction <add>, %276, %cst_139 [1] : vector<16x32xf32> to vector<16xf32>
    %282 = vector.shape_cast %281 : vector<16xf32> to vector<16x1xf32>
    %cst_140 = arith.constant 3.200000e+01 : f32
    %283 = vector.broadcast %cst_140 : f32 to vector<16x1xf32>
    %284 = arith.divf %282, %283 : vector<16x1xf32>
    %285 = vector.broadcast %284 : vector<16x1xf32> to vector<16x32xf32>
    %286 = arith.subf %276, %285 : vector<16x32xf32>
    %287 = arith.mulf %286, %286 : vector<16x32xf32>
    %cst_141 = arith.constant dense<0.000000e+00> : vector<16xf32>
    %288 = vector.multi_reduction <add>, %287, %cst_141 [1] : vector<16x32xf32> to vector<16xf32>
    %289 = vector.shape_cast %288 : vector<16xf32> to vector<16x1xf32>
    %cst_142 = arith.constant 3.200000e+01 : f32
    %290 = vector.broadcast %cst_142 : f32 to vector<16x1xf32>
    %291 = arith.divf %289, %290 : vector<16x1xf32>
    %292 = vector.broadcast %284 : vector<16x1xf32> to vector<16x32xf32>
    %293 = arith.subf %276, %292 : vector<16x32xf32>
    %cst_143 = arith.constant 9.99999974E-6 : f32
    %294 = vector.broadcast %cst_143 : f32 to vector<16x1xf32>
    %295 = arith.addf %291, %294 : vector<16x1xf32>
    %296 = math.rsqrt %295 : vector<16x1xf32>
    %297 = vector.broadcast %296 : vector<16x1xf32> to vector<16x32xf32>
    %298 = arith.mulf %293, %297 : vector<16x32xf32>
    %299 = vector.broadcast %278 : vector<1x32xf32> to vector<16x32xf32>
    %300 = arith.mulf %298, %299 : vector<16x32xf32>
    %301 = vector.broadcast %280 : vector<1x32xf32> to vector<16x32xf32>
    %302 = arith.addf %300, %301 : vector<16x32xf32>
    %303 = arith.addf %302, %269 : vector<16x32xf32>
    %c2 = arith.constant 2 : index
    %c0_144 = arith.constant 0 : index
    %c0_145 = arith.constant 0 : index
    %304 = vector.load %arg3[%c2, %c0_144, %c0_145] : memref<6x32x256xf32, #tpu.memory_space<vmem>>, vector<1x32x256xf32>
    %305 = vector.shape_cast %304 : vector<1x32x256xf32> to vector<32x256xf32>
    %cst_146 = arith.constant dense<0.000000e+00> : vector<16x256xf32>
    %306 = tpu.matmul %303, %305, %cst_146 {dimension_numbers = #tpu.dot_dimension_numbers<[1], [0], [0], [1], [0, 0, 1, 1], [], []>} : vector<16x32xf32>, vector<32x256xf32>, vector<16x256xf32> -> vector<16x256xf32>
    %c2_147 = arith.constant 2 : index
    %c0_148 = arith.constant 0 : index
    %c0_149 = arith.constant 0 : index
    %307 = vector.load %arg4[%c2_147, %c0_148, %c0_149] : memref<6x1x256xf32, #tpu.memory_space<vmem>>, vector<1x1x256xf32>
    %308 = vector.shape_cast %307 : vector<1x1x256xf32> to vector<1x256xf32>
    %309 = vector.broadcast %308 : vector<1x256xf32> to vector<16x256xf32>
    %310 = arith.addf %306, %309 : vector<16x256xf32>
    %311 = vector.extract_strided_slice %310 {offsets = [0, 0], sizes = [16, 128], strides = [1, 1]} : vector<16x256xf32> to vector<16x128xf32>
    %312 = vector.extract_strided_slice %310 {offsets = [0, 128], sizes = [16, 128], strides = [1, 1]} : vector<16x256xf32> to vector<16x128xf32>
    %c2_150 = arith.constant 2 : index
    %c0_151 = arith.constant 0 : index
    %c0_152 = arith.constant 0 : index
    %313 = vector.load %arg5[%c2_150, %c0_151, %c0_152] : memref<6x32x128xf32, #tpu.memory_space<vmem>>, vector<1x32x128xf32>
    %314 = vector.shape_cast %313 : vector<1x32x128xf32> to vector<32x128xf32>
    %cst_153 = arith.constant dense<0.000000e+00> : vector<16x128xf32>
    %315 = tpu.matmul %303, %314, %cst_153 {dimension_numbers = #tpu.dot_dimension_numbers<[1], [0], [0], [1], [0, 0, 1, 1], [], []>} : vector<16x32xf32>, vector<32x128xf32>, vector<16x128xf32> -> vector<16x128xf32>
    %c2_154 = arith.constant 2 : index
    %c0_155 = arith.constant 0 : index
    %c0_156 = arith.constant 0 : index
    %316 = vector.load %arg6[%c2_154, %c0_155, %c0_156] : memref<6x1x128xf32, #tpu.memory_space<vmem>>, vector<1x1x128xf32>
    %317 = vector.shape_cast %316 : vector<1x1x128xf32> to vector<1x128xf32>
    %318 = vector.broadcast %317 : vector<1x128xf32> to vector<16x128xf32>
    %319 = arith.addf %315, %318 : vector<16x128xf32>
    %320 = vector.extract_strided_slice %311 {offsets = [0, 0], sizes = [16, 32], strides = [1, 1]} : vector<16x128xf32> to vector<16x32xf32>
    %321 = vector.extract_strided_slice %312 {offsets = [0, 0], sizes = [16, 32], strides = [1, 1]} : vector<16x128xf32> to vector<16x32xf32>
    %322 = vector.extract_strided_slice %319 {offsets = [0, 0], sizes = [16, 32], strides = [1, 1]} : vector<16x128xf32> to vector<16x32xf32>
    %cst_157 = arith.constant dense<0.000000e+00> : vector<32x32xf32>
    %323 = tpu.matmul %321, %320, %cst_157 {dimension_numbers = #tpu.dot_dimension_numbers<[0], [0], [1], [1], [0, 1, 1, 1], [], []>} : vector<16x32xf32>, vector<16x32xf32>, vector<32x32xf32> -> vector<32x32xf32>
    %cst_158 = arith.constant 0.176776692 : f32
    %324 = vector.broadcast %cst_158 : f32 to vector<32x32xf32>
    %325 = arith.mulf %323, %324 : vector<32x32xf32>
    %cst_159 = arith.constant dense<0xFF800000> : vector<32xf32>
    %326 = vector.multi_reduction <maximumf>, %325, %cst_159 [1] : vector<32x32xf32> to vector<32xf32>
    %327 = vector.shape_cast %326 : vector<32xf32> to vector<32x1xf32>
    %328 = vector.broadcast %327 : vector<32x1xf32> to vector<32x32xf32>
    %329 = arith.subf %325, %328 : vector<32x32xf32>
    %330 = math.exp %329 : vector<32x32xf32>
    %cst_160 = arith.constant dense<0.000000e+00> : vector<32xf32>
    %331 = vector.multi_reduction <add>, %330, %cst_160 [1] : vector<32x32xf32> to vector<32xf32>
    %332 = vector.shape_cast %331 : vector<32xf32> to vector<32x1xf32>
    %333 = vector.broadcast %332 : vector<32x1xf32> to vector<32x32xf32>
    %334 = arith.divf %330, %333 : vector<32x32xf32>
    %cst_161 = arith.constant dense<0.000000e+00> : vector<16x32xf32>
    %335 = tpu.matmul %322, %334, %cst_161 {dimension_numbers = #tpu.dot_dimension_numbers<[1], [0], [0], [1], [0, 0, 1, 1], [], []>} : vector<16x32xf32>, vector<32x32xf32>, vector<16x32xf32> -> vector<16x32xf32>
    %336 = vector.extract_strided_slice %311 {offsets = [0, 32], sizes = [16, 32], strides = [1, 1]} : vector<16x128xf32> to vector<16x32xf32>
    %337 = vector.extract_strided_slice %312 {offsets = [0, 32], sizes = [16, 32], strides = [1, 1]} : vector<16x128xf32> to vector<16x32xf32>
    %338 = vector.extract_strided_slice %319 {offsets = [0, 32], sizes = [16, 32], strides = [1, 1]} : vector<16x128xf32> to vector<16x32xf32>
    %cst_162 = arith.constant dense<0.000000e+00> : vector<32x32xf32>
    %339 = tpu.matmul %337, %336, %cst_162 {dimension_numbers = #tpu.dot_dimension_numbers<[0], [0], [1], [1], [0, 1, 1, 1], [], []>} : vector<16x32xf32>, vector<16x32xf32>, vector<32x32xf32> -> vector<32x32xf32>
    %cst_163 = arith.constant 0.176776692 : f32
    %340 = vector.broadcast %cst_163 : f32 to vector<32x32xf32>
    %341 = arith.mulf %339, %340 : vector<32x32xf32>
    %cst_164 = arith.constant dense<0xFF800000> : vector<32xf32>
    %342 = vector.multi_reduction <maximumf>, %341, %cst_164 [1] : vector<32x32xf32> to vector<32xf32>
    %343 = vector.shape_cast %342 : vector<32xf32> to vector<32x1xf32>
    %344 = vector.broadcast %343 : vector<32x1xf32> to vector<32x32xf32>
    %345 = arith.subf %341, %344 : vector<32x32xf32>
    %346 = math.exp %345 : vector<32x32xf32>
    %cst_165 = arith.constant dense<0.000000e+00> : vector<32xf32>
    %347 = vector.multi_reduction <add>, %346, %cst_165 [1] : vector<32x32xf32> to vector<32xf32>
    %348 = vector.shape_cast %347 : vector<32xf32> to vector<32x1xf32>
    %349 = vector.broadcast %348 : vector<32x1xf32> to vector<32x32xf32>
    %350 = arith.divf %346, %349 : vector<32x32xf32>
    %cst_166 = arith.constant dense<0.000000e+00> : vector<16x32xf32>
    %351 = tpu.matmul %338, %350, %cst_166 {dimension_numbers = #tpu.dot_dimension_numbers<[1], [0], [0], [1], [0, 0, 1, 1], [], []>} : vector<16x32xf32>, vector<32x32xf32>, vector<16x32xf32> -> vector<16x32xf32>
    %352 = vector.extract_strided_slice %311 {offsets = [0, 64], sizes = [16, 32], strides = [1, 1]} : vector<16x128xf32> to vector<16x32xf32>
    %353 = vector.extract_strided_slice %312 {offsets = [0, 64], sizes = [16, 32], strides = [1, 1]} : vector<16x128xf32> to vector<16x32xf32>
    %354 = vector.extract_strided_slice %319 {offsets = [0, 64], sizes = [16, 32], strides = [1, 1]} : vector<16x128xf32> to vector<16x32xf32>
    %cst_167 = arith.constant dense<0.000000e+00> : vector<32x32xf32>
    %355 = tpu.matmul %353, %352, %cst_167 {dimension_numbers = #tpu.dot_dimension_numbers<[0], [0], [1], [1], [0, 1, 1, 1], [], []>} : vector<16x32xf32>, vector<16x32xf32>, vector<32x32xf32> -> vector<32x32xf32>
    %cst_168 = arith.constant 0.176776692 : f32
    %356 = vector.broadcast %cst_168 : f32 to vector<32x32xf32>
    %357 = arith.mulf %355, %356 : vector<32x32xf32>
    %cst_169 = arith.constant dense<0xFF800000> : vector<32xf32>
    %358 = vector.multi_reduction <maximumf>, %357, %cst_169 [1] : vector<32x32xf32> to vector<32xf32>
    %359 = vector.shape_cast %358 : vector<32xf32> to vector<32x1xf32>
    %360 = vector.broadcast %359 : vector<32x1xf32> to vector<32x32xf32>
    %361 = arith.subf %357, %360 : vector<32x32xf32>
    %362 = math.exp %361 : vector<32x32xf32>
    %cst_170 = arith.constant dense<0.000000e+00> : vector<32xf32>
    %363 = vector.multi_reduction <add>, %362, %cst_170 [1] : vector<32x32xf32> to vector<32xf32>
    %364 = vector.shape_cast %363 : vector<32xf32> to vector<32x1xf32>
    %365 = vector.broadcast %364 : vector<32x1xf32> to vector<32x32xf32>
    %366 = arith.divf %362, %365 : vector<32x32xf32>
    %cst_171 = arith.constant dense<0.000000e+00> : vector<16x32xf32>
    %367 = tpu.matmul %354, %366, %cst_171 {dimension_numbers = #tpu.dot_dimension_numbers<[1], [0], [0], [1], [0, 0, 1, 1], [], []>} : vector<16x32xf32>, vector<32x32xf32>, vector<16x32xf32> -> vector<16x32xf32>
    %368 = vector.extract_strided_slice %311 {offsets = [0, 96], sizes = [16, 32], strides = [1, 1]} : vector<16x128xf32> to vector<16x32xf32>
    %369 = vector.extract_strided_slice %312 {offsets = [0, 96], sizes = [16, 32], strides = [1, 1]} : vector<16x128xf32> to vector<16x32xf32>
    %370 = vector.extract_strided_slice %319 {offsets = [0, 96], sizes = [16, 32], strides = [1, 1]} : vector<16x128xf32> to vector<16x32xf32>
    %cst_172 = arith.constant dense<0.000000e+00> : vector<32x32xf32>
    %371 = tpu.matmul %369, %368, %cst_172 {dimension_numbers = #tpu.dot_dimension_numbers<[0], [0], [1], [1], [0, 1, 1, 1], [], []>} : vector<16x32xf32>, vector<16x32xf32>, vector<32x32xf32> -> vector<32x32xf32>
    %cst_173 = arith.constant 0.176776692 : f32
    %372 = vector.broadcast %cst_173 : f32 to vector<32x32xf32>
    %373 = arith.mulf %371, %372 : vector<32x32xf32>
    %cst_174 = arith.constant dense<0xFF800000> : vector<32xf32>
    %374 = vector.multi_reduction <maximumf>, %373, %cst_174 [1] : vector<32x32xf32> to vector<32xf32>
    %375 = vector.shape_cast %374 : vector<32xf32> to vector<32x1xf32>
    %376 = vector.broadcast %375 : vector<32x1xf32> to vector<32x32xf32>
    %377 = arith.subf %373, %376 : vector<32x32xf32>
    %378 = math.exp %377 : vector<32x32xf32>
    %cst_175 = arith.constant dense<0.000000e+00> : vector<32xf32>
    %379 = vector.multi_reduction <add>, %378, %cst_175 [1] : vector<32x32xf32> to vector<32xf32>
    %380 = vector.shape_cast %379 : vector<32xf32> to vector<32x1xf32>
    %381 = vector.broadcast %380 : vector<32x1xf32> to vector<32x32xf32>
    %382 = arith.divf %378, %381 : vector<32x32xf32>
    %cst_176 = arith.constant dense<0.000000e+00> : vector<16x32xf32>
    %383 = tpu.matmul %370, %382, %cst_176 {dimension_numbers = #tpu.dot_dimension_numbers<[1], [0], [0], [1], [0, 0, 1, 1], [], []>} : vector<16x32xf32>, vector<32x32xf32>, vector<16x32xf32> -> vector<16x32xf32>
    %384 = tpu.concatenate %335, %351, %367, %383 in 1 : vector<16x32xf32>, vector<16x32xf32>, vector<16x32xf32>, vector<16x32xf32> -> vector<16x128xf32>
    %c2_177 = arith.constant 2 : index
    %c0_178 = arith.constant 0 : index
    %c0_179 = arith.constant 0 : index
    %385 = vector.load %arg7[%c2_177, %c0_178, %c0_179] : memref<6x128x32xf32, #tpu.memory_space<vmem>>, vector<1x128x32xf32>
    %386 = vector.shape_cast %385 : vector<1x128x32xf32> to vector<128x32xf32>
    %cst_180 = arith.constant dense<0.000000e+00> : vector<16x32xf32>
    %387 = tpu.matmul %384, %386, %cst_180 {dimension_numbers = #tpu.dot_dimension_numbers<[1], [0], [0], [1], [0, 0, 1, 1], [], []>} : vector<16x128xf32>, vector<128x32xf32>, vector<16x32xf32> -> vector<16x32xf32>
    %c2_181 = arith.constant 2 : index
    %c0_182 = arith.constant 0 : index
    %c0_183 = arith.constant 0 : index
    %388 = vector.load %arg8[%c2_181, %c0_182, %c0_183] : memref<6x1x32xf32, #tpu.memory_space<vmem>>, vector<1x1x32xf32>
    %389 = vector.shape_cast %388 : vector<1x1x32xf32> to vector<1x32xf32>
    %390 = vector.broadcast %389 : vector<1x32xf32> to vector<16x32xf32>
    %391 = arith.addf %387, %390 : vector<16x32xf32>
    %c2_184 = arith.constant 2 : index
    %c0_185 = arith.constant 0 : index
    %c0_186 = arith.constant 0 : index
    %392 = vector.load %arg9[%c2_184, %c0_185, %c0_186] : memref<6x1x32xf32, #tpu.memory_space<vmem>>, vector<1x1x32xf32>
    %393 = vector.shape_cast %392 : vector<1x1x32xf32> to vector<1x32xf32>
    %c2_187 = arith.constant 2 : index
    %c0_188 = arith.constant 0 : index
    %c0_189 = arith.constant 0 : index
    %394 = vector.load %arg10[%c2_187, %c0_188, %c0_189] : memref<6x1x32xf32, #tpu.memory_space<vmem>>, vector<1x1x32xf32>
    %395 = vector.shape_cast %394 : vector<1x1x32xf32> to vector<1x32xf32>
    %cst_190 = arith.constant dense<0.000000e+00> : vector<16xf32>
    %396 = vector.multi_reduction <add>, %391, %cst_190 [1] : vector<16x32xf32> to vector<16xf32>
    %397 = vector.shape_cast %396 : vector<16xf32> to vector<16x1xf32>
    %cst_191 = arith.constant 3.200000e+01 : f32
    %398 = vector.broadcast %cst_191 : f32 to vector<16x1xf32>
    %399 = arith.divf %397, %398 : vector<16x1xf32>
    %400 = vector.broadcast %399 : vector<16x1xf32> to vector<16x32xf32>
    %401 = arith.subf %391, %400 : vector<16x32xf32>
    %402 = arith.mulf %401, %401 : vector<16x32xf32>
    %cst_192 = arith.constant dense<0.000000e+00> : vector<16xf32>
    %403 = vector.multi_reduction <add>, %402, %cst_192 [1] : vector<16x32xf32> to vector<16xf32>
    %404 = vector.shape_cast %403 : vector<16xf32> to vector<16x1xf32>
    %cst_193 = arith.constant 3.200000e+01 : f32
    %405 = vector.broadcast %cst_193 : f32 to vector<16x1xf32>
    %406 = arith.divf %404, %405 : vector<16x1xf32>
    %407 = vector.broadcast %399 : vector<16x1xf32> to vector<16x32xf32>
    %408 = arith.subf %391, %407 : vector<16x32xf32>
    %cst_194 = arith.constant 9.99999974E-6 : f32
    %409 = vector.broadcast %cst_194 : f32 to vector<16x1xf32>
    %410 = arith.addf %406, %409 : vector<16x1xf32>
    %411 = math.rsqrt %410 : vector<16x1xf32>
    %412 = vector.broadcast %411 : vector<16x1xf32> to vector<16x32xf32>
    %413 = arith.mulf %408, %412 : vector<16x32xf32>
    %414 = vector.broadcast %393 : vector<1x32xf32> to vector<16x32xf32>
    %415 = arith.mulf %413, %414 : vector<16x32xf32>
    %416 = vector.broadcast %395 : vector<1x32xf32> to vector<16x32xf32>
    %417 = arith.addf %415, %416 : vector<16x32xf32>
    %418 = arith.addf %417, %303 : vector<16x32xf32>
    %c2_195 = arith.constant 2 : index
    %c0_196 = arith.constant 0 : index
    %c0_197 = arith.constant 0 : index
    %419 = vector.load %arg11[%c2_195, %c0_196, %c0_197] : memref<6x32x32xf32, #tpu.memory_space<vmem>>, vector<1x32x32xf32>
    %420 = vector.shape_cast %419 : vector<1x32x32xf32> to vector<32x32xf32>
    %cst_198 = arith.constant dense<0.000000e+00> : vector<16x32xf32>
    %421 = tpu.matmul %418, %420, %cst_198 {dimension_numbers = #tpu.dot_dimension_numbers<[1], [0], [0], [1], [0, 0, 1, 1], [], []>} : vector<16x32xf32>, vector<32x32xf32>, vector<16x32xf32> -> vector<16x32xf32>
    %c2_199 = arith.constant 2 : index
    %c0_200 = arith.constant 0 : index
    %c0_201 = arith.constant 0 : index
    %422 = vector.load %arg12[%c2_199, %c0_200, %c0_201] : memref<6x1x32xf32, #tpu.memory_space<vmem>>, vector<1x1x32xf32>
    %423 = vector.shape_cast %422 : vector<1x1x32xf32> to vector<1x32xf32>
    %424 = vector.broadcast %423 : vector<1x32xf32> to vector<16x32xf32>
    %425 = arith.addf %421, %424 : vector<16x32xf32>
    %c2_202 = arith.constant 2 : index
    %c0_203 = arith.constant 0 : index
    %c0_204 = arith.constant 0 : index
    %426 = vector.load %arg13[%c2_202, %c0_203, %c0_204] : memref<6x1x32xf32, #tpu.memory_space<vmem>>, vector<1x1x32xf32>
    %427 = vector.shape_cast %426 : vector<1x1x32xf32> to vector<1x32xf32>
    %c2_205 = arith.constant 2 : index
    %c0_206 = arith.constant 0 : index
    %c0_207 = arith.constant 0 : index
    %428 = vector.load %arg14[%c2_205, %c0_206, %c0_207] : memref<6x1x32xf32, #tpu.memory_space<vmem>>, vector<1x1x32xf32>
    %429 = vector.shape_cast %428 : vector<1x1x32xf32> to vector<1x32xf32>
    %cst_208 = arith.constant dense<0.000000e+00> : vector<16xf32>
    %430 = vector.multi_reduction <add>, %425, %cst_208 [1] : vector<16x32xf32> to vector<16xf32>
    %431 = vector.shape_cast %430 : vector<16xf32> to vector<16x1xf32>
    %cst_209 = arith.constant 3.200000e+01 : f32
    %432 = vector.broadcast %cst_209 : f32 to vector<16x1xf32>
    %433 = arith.divf %431, %432 : vector<16x1xf32>
    %434 = vector.broadcast %433 : vector<16x1xf32> to vector<16x32xf32>
    %435 = arith.subf %425, %434 : vector<16x32xf32>
    %436 = arith.mulf %435, %435 : vector<16x32xf32>
    %cst_210 = arith.constant dense<0.000000e+00> : vector<16xf32>
    %437 = vector.multi_reduction <add>, %436, %cst_210 [1] : vector<16x32xf32> to vector<16xf32>
    %438 = vector.shape_cast %437 : vector<16xf32> to vector<16x1xf32>
    %cst_211 = arith.constant 3.200000e+01 : f32
    %439 = vector.broadcast %cst_211 : f32 to vector<16x1xf32>
    %440 = arith.divf %438, %439 : vector<16x1xf32>
    %441 = vector.broadcast %433 : vector<16x1xf32> to vector<16x32xf32>
    %442 = arith.subf %425, %441 : vector<16x32xf32>
    %cst_212 = arith.constant 9.99999974E-6 : f32
    %443 = vector.broadcast %cst_212 : f32 to vector<16x1xf32>
    %444 = arith.addf %440, %443 : vector<16x1xf32>
    %445 = math.rsqrt %444 : vector<16x1xf32>
    %446 = vector.broadcast %445 : vector<16x1xf32> to vector<16x32xf32>
    %447 = arith.mulf %442, %446 : vector<16x32xf32>
    %448 = vector.broadcast %427 : vector<1x32xf32> to vector<16x32xf32>
    %449 = arith.mulf %447, %448 : vector<16x32xf32>
    %450 = vector.broadcast %429 : vector<1x32xf32> to vector<16x32xf32>
    %451 = arith.addf %449, %450 : vector<16x32xf32>
    %452 = arith.addf %451, %418 : vector<16x32xf32>
    %c3 = arith.constant 3 : index
    %c0_213 = arith.constant 0 : index
    %c0_214 = arith.constant 0 : index
    %453 = vector.load %arg3[%c3, %c0_213, %c0_214] : memref<6x32x256xf32, #tpu.memory_space<vmem>>, vector<1x32x256xf32>
    %454 = vector.shape_cast %453 : vector<1x32x256xf32> to vector<32x256xf32>
    %cst_215 = arith.constant dense<0.000000e+00> : vector<16x256xf32>
    %455 = tpu.matmul %452, %454, %cst_215 {dimension_numbers = #tpu.dot_dimension_numbers<[1], [0], [0], [1], [0, 0, 1, 1], [], []>} : vector<16x32xf32>, vector<32x256xf32>, vector<16x256xf32> -> vector<16x256xf32>
    %c3_216 = arith.constant 3 : index
    %c0_217 = arith.constant 0 : index
    %c0_218 = arith.constant 0 : index
    %456 = vector.load %arg4[%c3_216, %c0_217, %c0_218] : memref<6x1x256xf32, #tpu.memory_space<vmem>>, vector<1x1x256xf32>
    %457 = vector.shape_cast %456 : vector<1x1x256xf32> to vector<1x256xf32>
    %458 = vector.broadcast %457 : vector<1x256xf32> to vector<16x256xf32>
    %459 = arith.addf %455, %458 : vector<16x256xf32>
    %460 = vector.extract_strided_slice %459 {offsets = [0, 0], sizes = [16, 128], strides = [1, 1]} : vector<16x256xf32> to vector<16x128xf32>
    %461 = vector.extract_strided_slice %459 {offsets = [0, 128], sizes = [16, 128], strides = [1, 1]} : vector<16x256xf32> to vector<16x128xf32>
    %c3_219 = arith.constant 3 : index
    %c0_220 = arith.constant 0 : index
    %c0_221 = arith.constant 0 : index
    %462 = vector.load %arg6[%c3_219, %c0_220, %c0_221] : memref<6x1x128xf32, #tpu.memory_space<vmem>>, vector<1x1x128xf32>
    %463 = vector.shape_cast %462 : vector<1x1x128xf32> to vector<1x128xf32>
    %464 = vector.shape_cast %463 : vector<1x128xf32> to vector<1x128xf32>
    %465 = vector.broadcast %464 : vector<1x128xf32> to vector<16x128xf32>
    %466 = vector.extract_strided_slice %460 {offsets = [0, 0], sizes = [16, 32], strides = [1, 1]} : vector<16x128xf32> to vector<16x32xf32>
    %467 = vector.extract_strided_slice %461 {offsets = [0, 0], sizes = [16, 32], strides = [1, 1]} : vector<16x128xf32> to vector<16x32xf32>
    %468 = vector.extract_strided_slice %465 {offsets = [0, 0], sizes = [16, 32], strides = [1, 1]} : vector<16x128xf32> to vector<16x32xf32>
    %cst_222 = arith.constant dense<0.000000e+00> : vector<32x32xf32>
    %469 = tpu.matmul %467, %466, %cst_222 {dimension_numbers = #tpu.dot_dimension_numbers<[0], [0], [1], [1], [0, 1, 1, 1], [], []>} : vector<16x32xf32>, vector<16x32xf32>, vector<32x32xf32> -> vector<32x32xf32>
    %cst_223 = arith.constant 0.176776692 : f32
    %470 = vector.broadcast %cst_223 : f32 to vector<32x32xf32>
    %471 = arith.mulf %469, %470 : vector<32x32xf32>
    %cst_224 = arith.constant dense<0xFF800000> : vector<32xf32>
    %472 = vector.multi_reduction <maximumf>, %471, %cst_224 [1] : vector<32x32xf32> to vector<32xf32>
    %473 = vector.shape_cast %472 : vector<32xf32> to vector<32x1xf32>
    %474 = vector.broadcast %473 : vector<32x1xf32> to vector<32x32xf32>
    %475 = arith.subf %471, %474 : vector<32x32xf32>
    %476 = math.exp %475 : vector<32x32xf32>
    %cst_225 = arith.constant dense<0.000000e+00> : vector<32xf32>
    %477 = vector.multi_reduction <add>, %476, %cst_225 [1] : vector<32x32xf32> to vector<32xf32>
    %478 = vector.shape_cast %477 : vector<32xf32> to vector<32x1xf32>
    %479 = vector.broadcast %478 : vector<32x1xf32> to vector<32x32xf32>
    %480 = arith.divf %476, %479 : vector<32x32xf32>
    %cst_226 = arith.constant dense<0.000000e+00> : vector<16x32xf32>
    %481 = tpu.matmul %468, %480, %cst_226 {dimension_numbers = #tpu.dot_dimension_numbers<[1], [0], [0], [1], [0, 0, 1, 1], [], []>} : vector<16x32xf32>, vector<32x32xf32>, vector<16x32xf32> -> vector<16x32xf32>
    %482 = vector.extract_strided_slice %460 {offsets = [0, 32], sizes = [16, 32], strides = [1, 1]} : vector<16x128xf32> to vector<16x32xf32>
    %483 = vector.extract_strided_slice %461 {offsets = [0, 32], sizes = [16, 32], strides = [1, 1]} : vector<16x128xf32> to vector<16x32xf32>
    %484 = vector.extract_strided_slice %465 {offsets = [0, 32], sizes = [16, 32], strides = [1, 1]} : vector<16x128xf32> to vector<16x32xf32>
    %cst_227 = arith.constant dense<0.000000e+00> : vector<32x32xf32>
    %485 = tpu.matmul %483, %482, %cst_227 {dimension_numbers = #tpu.dot_dimension_numbers<[0], [0], [1], [1], [0, 1, 1, 1], [], []>} : vector<16x32xf32>, vector<16x32xf32>, vector<32x32xf32> -> vector<32x32xf32>
    %cst_228 = arith.constant 0.176776692 : f32
    %486 = vector.broadcast %cst_228 : f32 to vector<32x32xf32>
    %487 = arith.mulf %485, %486 : vector<32x32xf32>
    %cst_229 = arith.constant dense<0xFF800000> : vector<32xf32>
    %488 = vector.multi_reduction <maximumf>, %487, %cst_229 [1] : vector<32x32xf32> to vector<32xf32>
    %489 = vector.shape_cast %488 : vector<32xf32> to vector<32x1xf32>
    %490 = vector.broadcast %489 : vector<32x1xf32> to vector<32x32xf32>
    %491 = arith.subf %487, %490 : vector<32x32xf32>
    %492 = math.exp %491 : vector<32x32xf32>
    %cst_230 = arith.constant dense<0.000000e+00> : vector<32xf32>
    %493 = vector.multi_reduction <add>, %492, %cst_230 [1] : vector<32x32xf32> to vector<32xf32>
    %494 = vector.shape_cast %493 : vector<32xf32> to vector<32x1xf32>
    %495 = vector.broadcast %494 : vector<32x1xf32> to vector<32x32xf32>
    %496 = arith.divf %492, %495 : vector<32x32xf32>
    %cst_231 = arith.constant dense<0.000000e+00> : vector<16x32xf32>
    %497 = tpu.matmul %484, %496, %cst_231 {dimension_numbers = #tpu.dot_dimension_numbers<[1], [0], [0], [1], [0, 0, 1, 1], [], []>} : vector<16x32xf32>, vector<32x32xf32>, vector<16x32xf32> -> vector<16x32xf32>
    %498 = vector.extract_strided_slice %460 {offsets = [0, 64], sizes = [16, 32], strides = [1, 1]} : vector<16x128xf32> to vector<16x32xf32>
    %499 = vector.extract_strided_slice %461 {offsets = [0, 64], sizes = [16, 32], strides = [1, 1]} : vector<16x128xf32> to vector<16x32xf32>
    %500 = vector.extract_strided_slice %465 {offsets = [0, 64], sizes = [16, 32], strides = [1, 1]} : vector<16x128xf32> to vector<16x32xf32>
    %cst_232 = arith.constant dense<0.000000e+00> : vector<32x32xf32>
    %501 = tpu.matmul %499, %498, %cst_232 {dimension_numbers = #tpu.dot_dimension_numbers<[0], [0], [1], [1], [0, 1, 1, 1], [], []>} : vector<16x32xf32>, vector<16x32xf32>, vector<32x32xf32> -> vector<32x32xf32>
    %cst_233 = arith.constant 0.176776692 : f32
    %502 = vector.broadcast %cst_233 : f32 to vector<32x32xf32>
    %503 = arith.mulf %501, %502 : vector<32x32xf32>
    %cst_234 = arith.constant dense<0xFF800000> : vector<32xf32>
    %504 = vector.multi_reduction <maximumf>, %503, %cst_234 [1] : vector<32x32xf32> to vector<32xf32>
    %505 = vector.shape_cast %504 : vector<32xf32> to vector<32x1xf32>
    %506 = vector.broadcast %505 : vector<32x1xf32> to vector<32x32xf32>
    %507 = arith.subf %503, %506 : vector<32x32xf32>
    %508 = math.exp %507 : vector<32x32xf32>
    %cst_235 = arith.constant dense<0.000000e+00> : vector<32xf32>
    %509 = vector.multi_reduction <add>, %508, %cst_235 [1] : vector<32x32xf32> to vector<32xf32>
    %510 = vector.shape_cast %509 : vector<32xf32> to vector<32x1xf32>
    %511 = vector.broadcast %510 : vector<32x1xf32> to vector<32x32xf32>
    %512 = arith.divf %508, %511 : vector<32x32xf32>
    %cst_236 = arith.constant dense<0.000000e+00> : vector<16x32xf32>
    %513 = tpu.matmul %500, %512, %cst_236 {dimension_numbers = #tpu.dot_dimension_numbers<[1], [0], [0], [1], [0, 0, 1, 1], [], []>} : vector<16x32xf32>, vector<32x32xf32>, vector<16x32xf32> -> vector<16x32xf32>
    %514 = vector.extract_strided_slice %460 {offsets = [0, 96], sizes = [16, 32], strides = [1, 1]} : vector<16x128xf32> to vector<16x32xf32>
    %515 = vector.extract_strided_slice %461 {offsets = [0, 96], sizes = [16, 32], strides = [1, 1]} : vector<16x128xf32> to vector<16x32xf32>
    %516 = vector.extract_strided_slice %465 {offsets = [0, 96], sizes = [16, 32], strides = [1, 1]} : vector<16x128xf32> to vector<16x32xf32>
    %cst_237 = arith.constant dense<0.000000e+00> : vector<32x32xf32>
    %517 = tpu.matmul %515, %514, %cst_237 {dimension_numbers = #tpu.dot_dimension_numbers<[0], [0], [1], [1], [0, 1, 1, 1], [], []>} : vector<16x32xf32>, vector<16x32xf32>, vector<32x32xf32> -> vector<32x32xf32>
    %cst_238 = arith.constant 0.176776692 : f32
    %518 = vector.broadcast %cst_238 : f32 to vector<32x32xf32>
    %519 = arith.mulf %517, %518 : vector<32x32xf32>
    %cst_239 = arith.constant dense<0xFF800000> : vector<32xf32>
    %520 = vector.multi_reduction <maximumf>, %519, %cst_239 [1] : vector<32x32xf32> to vector<32xf32>
    %521 = vector.shape_cast %520 : vector<32xf32> to vector<32x1xf32>
    %522 = vector.broadcast %521 : vector<32x1xf32> to vector<32x32xf32>
    %523 = arith.subf %519, %522 : vector<32x32xf32>
    %524 = math.exp %523 : vector<32x32xf32>
    %cst_240 = arith.constant dense<0.000000e+00> : vector<32xf32>
    %525 = vector.multi_reduction <add>, %524, %cst_240 [1] : vector<32x32xf32> to vector<32xf32>
    %526 = vector.shape_cast %525 : vector<32xf32> to vector<32x1xf32>
    %527 = vector.broadcast %526 : vector<32x1xf32> to vector<32x32xf32>
    %528 = arith.divf %524, %527 : vector<32x32xf32>
    %cst_241 = arith.constant dense<0.000000e+00> : vector<16x32xf32>
    %529 = tpu.matmul %516, %528, %cst_241 {dimension_numbers = #tpu.dot_dimension_numbers<[1], [0], [0], [1], [0, 0, 1, 1], [], []>} : vector<16x32xf32>, vector<32x32xf32>, vector<16x32xf32> -> vector<16x32xf32>
    %530 = tpu.concatenate %481, %497, %513, %529 in 1 : vector<16x32xf32>, vector<16x32xf32>, vector<16x32xf32>, vector<16x32xf32> -> vector<16x128xf32>
    %c3_242 = arith.constant 3 : index
    %c0_243 = arith.constant 0 : index
    %c0_244 = arith.constant 0 : index
    %531 = vector.load %arg7[%c3_242, %c0_243, %c0_244] : memref<6x128x32xf32, #tpu.memory_space<vmem>>, vector<1x128x32xf32>
    %532 = vector.shape_cast %531 : vector<1x128x32xf32> to vector<128x32xf32>
    %cst_245 = arith.constant dense<0.000000e+00> : vector<16x32xf32>
    %533 = tpu.matmul %530, %532, %cst_245 {dimension_numbers = #tpu.dot_dimension_numbers<[1], [0], [0], [1], [0, 0, 1, 1], [], []>} : vector<16x128xf32>, vector<128x32xf32>, vector<16x32xf32> -> vector<16x32xf32>
    %c3_246 = arith.constant 3 : index
    %c0_247 = arith.constant 0 : index
    %c0_248 = arith.constant 0 : index
    %534 = vector.load %arg8[%c3_246, %c0_247, %c0_248] : memref<6x1x32xf32, #tpu.memory_space<vmem>>, vector<1x1x32xf32>
    %535 = vector.shape_cast %534 : vector<1x1x32xf32> to vector<1x32xf32>
    %536 = vector.broadcast %535 : vector<1x32xf32> to vector<16x32xf32>
    %537 = arith.addf %533, %536 : vector<16x32xf32>
    %c3_249 = arith.constant 3 : index
    %c0_250 = arith.constant 0 : index
    %c0_251 = arith.constant 0 : index
    %538 = vector.load %arg9[%c3_249, %c0_250, %c0_251] : memref<6x1x32xf32, #tpu.memory_space<vmem>>, vector<1x1x32xf32>
    %539 = vector.shape_cast %538 : vector<1x1x32xf32> to vector<1x32xf32>
    %c3_252 = arith.constant 3 : index
    %c0_253 = arith.constant 0 : index
    %c0_254 = arith.constant 0 : index
    %540 = vector.load %arg10[%c3_252, %c0_253, %c0_254] : memref<6x1x32xf32, #tpu.memory_space<vmem>>, vector<1x1x32xf32>
    %541 = vector.shape_cast %540 : vector<1x1x32xf32> to vector<1x32xf32>
    %cst_255 = arith.constant dense<0.000000e+00> : vector<16xf32>
    %542 = vector.multi_reduction <add>, %537, %cst_255 [1] : vector<16x32xf32> to vector<16xf32>
    %543 = vector.shape_cast %542 : vector<16xf32> to vector<16x1xf32>
    %cst_256 = arith.constant 3.200000e+01 : f32
    %544 = vector.broadcast %cst_256 : f32 to vector<16x1xf32>
    %545 = arith.divf %543, %544 : vector<16x1xf32>
    %546 = vector.broadcast %545 : vector<16x1xf32> to vector<16x32xf32>
    %547 = arith.subf %537, %546 : vector<16x32xf32>
    %548 = arith.mulf %547, %547 : vector<16x32xf32>
    %cst_257 = arith.constant dense<0.000000e+00> : vector<16xf32>
    %549 = vector.multi_reduction <add>, %548, %cst_257 [1] : vector<16x32xf32> to vector<16xf32>
    %550 = vector.shape_cast %549 : vector<16xf32> to vector<16x1xf32>
    %cst_258 = arith.constant 3.200000e+01 : f32
    %551 = vector.broadcast %cst_258 : f32 to vector<16x1xf32>
    %552 = arith.divf %550, %551 : vector<16x1xf32>
    %553 = vector.broadcast %545 : vector<16x1xf32> to vector<16x32xf32>
    %554 = arith.subf %537, %553 : vector<16x32xf32>
    %cst_259 = arith.constant 9.99999974E-6 : f32
    %555 = vector.broadcast %cst_259 : f32 to vector<16x1xf32>
    %556 = arith.addf %552, %555 : vector<16x1xf32>
    %557 = math.rsqrt %556 : vector<16x1xf32>
    %558 = vector.broadcast %557 : vector<16x1xf32> to vector<16x32xf32>
    %559 = arith.mulf %554, %558 : vector<16x32xf32>
    %560 = vector.broadcast %539 : vector<1x32xf32> to vector<16x32xf32>
    %561 = arith.mulf %559, %560 : vector<16x32xf32>
    %562 = vector.broadcast %541 : vector<1x32xf32> to vector<16x32xf32>
    %563 = arith.addf %561, %562 : vector<16x32xf32>
    %564 = arith.addf %563, %452 : vector<16x32xf32>
    %c3_260 = arith.constant 3 : index
    %c0_261 = arith.constant 0 : index
    %c0_262 = arith.constant 0 : index
    %565 = vector.load %arg11[%c3_260, %c0_261, %c0_262] : memref<6x32x32xf32, #tpu.memory_space<vmem>>, vector<1x32x32xf32>
    %566 = vector.shape_cast %565 : vector<1x32x32xf32> to vector<32x32xf32>
    %cst_263 = arith.constant dense<0.000000e+00> : vector<16x32xf32>
    %567 = tpu.matmul %564, %566, %cst_263 {dimension_numbers = #tpu.dot_dimension_numbers<[1], [0], [0], [1], [0, 0, 1, 1], [], []>} : vector<16x32xf32>, vector<32x32xf32>, vector<16x32xf32> -> vector<16x32xf32>
    %c3_264 = arith.constant 3 : index
    %c0_265 = arith.constant 0 : index
    %c0_266 = arith.constant 0 : index
    %568 = vector.load %arg12[%c3_264, %c0_265, %c0_266] : memref<6x1x32xf32, #tpu.memory_space<vmem>>, vector<1x1x32xf32>
    %569 = vector.shape_cast %568 : vector<1x1x32xf32> to vector<1x32xf32>
    %570 = vector.broadcast %569 : vector<1x32xf32> to vector<16x32xf32>
    %571 = arith.addf %567, %570 : vector<16x32xf32>
    %c3_267 = arith.constant 3 : index
    %c0_268 = arith.constant 0 : index
    %c0_269 = arith.constant 0 : index
    %572 = vector.load %arg13[%c3_267, %c0_268, %c0_269] : memref<6x1x32xf32, #tpu.memory_space<vmem>>, vector<1x1x32xf32>
    %573 = vector.shape_cast %572 : vector<1x1x32xf32> to vector<1x32xf32>
    %c3_270 = arith.constant 3 : index
    %c0_271 = arith.constant 0 : index
    %c0_272 = arith.constant 0 : index
    %574 = vector.load %arg14[%c3_270, %c0_271, %c0_272] : memref<6x1x32xf32, #tpu.memory_space<vmem>>, vector<1x1x32xf32>
    %575 = vector.shape_cast %574 : vector<1x1x32xf32> to vector<1x32xf32>
    %cst_273 = arith.constant dense<0.000000e+00> : vector<16xf32>
    %576 = vector.multi_reduction <add>, %571, %cst_273 [1] : vector<16x32xf32> to vector<16xf32>
    %577 = vector.shape_cast %576 : vector<16xf32> to vector<16x1xf32>
    %cst_274 = arith.constant 3.200000e+01 : f32
    %578 = vector.broadcast %cst_274 : f32 to vector<16x1xf32>
    %579 = arith.divf %577, %578 : vector<16x1xf32>
    %580 = vector.broadcast %579 : vector<16x1xf32> to vector<16x32xf32>
    %581 = arith.subf %571, %580 : vector<16x32xf32>
    %582 = arith.mulf %581, %581 : vector<16x32xf32>
    %cst_275 = arith.constant dense<0.000000e+00> : vector<16xf32>
    %583 = vector.multi_reduction <add>, %582, %cst_275 [1] : vector<16x32xf32> to vector<16xf32>
    %584 = vector.shape_cast %583 : vector<16xf32> to vector<16x1xf32>
    %cst_276 = arith.constant 3.200000e+01 : f32
    %585 = vector.broadcast %cst_276 : f32 to vector<16x1xf32>
    %586 = arith.divf %584, %585 : vector<16x1xf32>
    %587 = vector.broadcast %579 : vector<16x1xf32> to vector<16x32xf32>
    %588 = arith.subf %571, %587 : vector<16x32xf32>
    %cst_277 = arith.constant 9.99999974E-6 : f32
    %589 = vector.broadcast %cst_277 : f32 to vector<16x1xf32>
    %590 = arith.addf %586, %589 : vector<16x1xf32>
    %591 = math.rsqrt %590 : vector<16x1xf32>
    %592 = vector.broadcast %591 : vector<16x1xf32> to vector<16x32xf32>
    %593 = arith.mulf %588, %592 : vector<16x32xf32>
    %594 = vector.broadcast %573 : vector<1x32xf32> to vector<16x32xf32>
    %595 = arith.mulf %593, %594 : vector<16x32xf32>
    %596 = vector.broadcast %575 : vector<1x32xf32> to vector<16x32xf32>
    %597 = arith.addf %595, %596 : vector<16x32xf32>
    %598 = arith.addf %597, %564 : vector<16x32xf32>
    %c4 = arith.constant 4 : index
    %c0_278 = arith.constant 0 : index
    %c0_279 = arith.constant 0 : index
    %599 = vector.load %arg3[%c4, %c0_278, %c0_279] : memref<6x32x256xf32, #tpu.memory_space<vmem>>, vector<1x32x256xf32>
    %600 = vector.shape_cast %599 : vector<1x32x256xf32> to vector<32x256xf32>
    %cst_280 = arith.constant dense<0.000000e+00> : vector<16x256xf32>
    %601 = tpu.matmul %452, %600, %cst_280 {dimension_numbers = #tpu.dot_dimension_numbers<[1], [0], [0], [1], [0, 0, 1, 1], [], []>} : vector<16x32xf32>, vector<32x256xf32>, vector<16x256xf32> -> vector<16x256xf32>
    %c4_281 = arith.constant 4 : index
    %c0_282 = arith.constant 0 : index
    %c0_283 = arith.constant 0 : index
    %602 = vector.load %arg4[%c4_281, %c0_282, %c0_283] : memref<6x1x256xf32, #tpu.memory_space<vmem>>, vector<1x1x256xf32>
    %603 = vector.shape_cast %602 : vector<1x1x256xf32> to vector<1x256xf32>
    %604 = vector.broadcast %603 : vector<1x256xf32> to vector<16x256xf32>
    %605 = arith.addf %601, %604 : vector<16x256xf32>
    %606 = vector.extract_strided_slice %605 {offsets = [0, 0], sizes = [16, 128], strides = [1, 1]} : vector<16x256xf32> to vector<16x128xf32>
    %607 = vector.extract_strided_slice %605 {offsets = [0, 128], sizes = [16, 128], strides = [1, 1]} : vector<16x256xf32> to vector<16x128xf32>
    %c4_284 = arith.constant 4 : index
    %c0_285 = arith.constant 0 : index
    %c0_286 = arith.constant 0 : index
    %608 = vector.load %arg5[%c4_284, %c0_285, %c0_286] : memref<6x32x128xf32, #tpu.memory_space<vmem>>, vector<1x32x128xf32>
    %609 = vector.shape_cast %608 : vector<1x32x128xf32> to vector<32x128xf32>
    %cst_287 = arith.constant dense<0.000000e+00> : vector<16x128xf32>
    %610 = tpu.matmul %598, %609, %cst_287 {dimension_numbers = #tpu.dot_dimension_numbers<[1], [0], [0], [1], [0, 0, 1, 1], [], []>} : vector<16x32xf32>, vector<32x128xf32>, vector<16x128xf32> -> vector<16x128xf32>
    %c4_288 = arith.constant 4 : index
    %c0_289 = arith.constant 0 : index
    %c0_290 = arith.constant 0 : index
    %611 = vector.load %arg6[%c4_288, %c0_289, %c0_290] : memref<6x1x128xf32, #tpu.memory_space<vmem>>, vector<1x1x128xf32>
    %612 = vector.shape_cast %611 : vector<1x1x128xf32> to vector<1x128xf32>
    %613 = vector.broadcast %612 : vector<1x128xf32> to vector<16x128xf32>
    %614 = arith.addf %610, %613 : vector<16x128xf32>
    %615 = vector.extract_strided_slice %606 {offsets = [0, 0], sizes = [16, 32], strides = [1, 1]} : vector<16x128xf32> to vector<16x32xf32>
    %616 = vector.extract_strided_slice %607 {offsets = [0, 0], sizes = [16, 32], strides = [1, 1]} : vector<16x128xf32> to vector<16x32xf32>
    %617 = vector.extract_strided_slice %614 {offsets = [0, 0], sizes = [16, 32], strides = [1, 1]} : vector<16x128xf32> to vector<16x32xf32>
    %cst_291 = arith.constant dense<0.000000e+00> : vector<32x32xf32>
    %618 = tpu.matmul %616, %615, %cst_291 {dimension_numbers = #tpu.dot_dimension_numbers<[0], [0], [1], [1], [0, 1, 1, 1], [], []>} : vector<16x32xf32>, vector<16x32xf32>, vector<32x32xf32> -> vector<32x32xf32>
    %cst_292 = arith.constant 0.176776692 : f32
    %619 = vector.broadcast %cst_292 : f32 to vector<32x32xf32>
    %620 = arith.mulf %618, %619 : vector<32x32xf32>
    %cst_293 = arith.constant dense<0xFF800000> : vector<32xf32>
    %621 = vector.multi_reduction <maximumf>, %620, %cst_293 [1] : vector<32x32xf32> to vector<32xf32>
    %622 = vector.shape_cast %621 : vector<32xf32> to vector<32x1xf32>
    %623 = vector.broadcast %622 : vector<32x1xf32> to vector<32x32xf32>
    %624 = arith.subf %620, %623 : vector<32x32xf32>
    %625 = math.exp %624 : vector<32x32xf32>
    %cst_294 = arith.constant dense<0.000000e+00> : vector<32xf32>
    %626 = vector.multi_reduction <add>, %625, %cst_294 [1] : vector<32x32xf32> to vector<32xf32>
    %627 = vector.shape_cast %626 : vector<32xf32> to vector<32x1xf32>
    %628 = vector.broadcast %627 : vector<32x1xf32> to vector<32x32xf32>
    %629 = arith.divf %625, %628 : vector<32x32xf32>
    %cst_295 = arith.constant dense<0.000000e+00> : vector<16x32xf32>
    %630 = tpu.matmul %617, %629, %cst_295 {dimension_numbers = #tpu.dot_dimension_numbers<[1], [0], [0], [1], [0, 0, 1, 1], [], []>} : vector<16x32xf32>, vector<32x32xf32>, vector<16x32xf32> -> vector<16x32xf32>
    %631 = vector.extract_strided_slice %606 {offsets = [0, 32], sizes = [16, 32], strides = [1, 1]} : vector<16x128xf32> to vector<16x32xf32>
    %632 = vector.extract_strided_slice %607 {offsets = [0, 32], sizes = [16, 32], strides = [1, 1]} : vector<16x128xf32> to vector<16x32xf32>
    %633 = vector.extract_strided_slice %614 {offsets = [0, 32], sizes = [16, 32], strides = [1, 1]} : vector<16x128xf32> to vector<16x32xf32>
    %cst_296 = arith.constant dense<0.000000e+00> : vector<32x32xf32>
    %634 = tpu.matmul %632, %631, %cst_296 {dimension_numbers = #tpu.dot_dimension_numbers<[0], [0], [1], [1], [0, 1, 1, 1], [], []>} : vector<16x32xf32>, vector<16x32xf32>, vector<32x32xf32> -> vector<32x32xf32>
    %cst_297 = arith.constant 0.176776692 : f32
    %635 = vector.broadcast %cst_297 : f32 to vector<32x32xf32>
    %636 = arith.mulf %634, %635 : vector<32x32xf32>
    %cst_298 = arith.constant dense<0xFF800000> : vector<32xf32>
    %637 = vector.multi_reduction <maximumf>, %636, %cst_298 [1] : vector<32x32xf32> to vector<32xf32>
    %638 = vector.shape_cast %637 : vector<32xf32> to vector<32x1xf32>
    %639 = vector.broadcast %638 : vector<32x1xf32> to vector<32x32xf32>
    %640 = arith.subf %636, %639 : vector<32x32xf32>
    %641 = math.exp %640 : vector<32x32xf32>
    %cst_299 = arith.constant dense<0.000000e+00> : vector<32xf32>
    %642 = vector.multi_reduction <add>, %641, %cst_299 [1] : vector<32x32xf32> to vector<32xf32>
    %643 = vector.shape_cast %642 : vector<32xf32> to vector<32x1xf32>
    %644 = vector.broadcast %643 : vector<32x1xf32> to vector<32x32xf32>
    %645 = arith.divf %641, %644 : vector<32x32xf32>
    %cst_300 = arith.constant dense<0.000000e+00> : vector<16x32xf32>
    %646 = tpu.matmul %633, %645, %cst_300 {dimension_numbers = #tpu.dot_dimension_numbers<[1], [0], [0], [1], [0, 0, 1, 1], [], []>} : vector<16x32xf32>, vector<32x32xf32>, vector<16x32xf32> -> vector<16x32xf32>
    %647 = vector.extract_strided_slice %606 {offsets = [0, 64], sizes = [16, 32], strides = [1, 1]} : vector<16x128xf32> to vector<16x32xf32>
    %648 = vector.extract_strided_slice %607 {offsets = [0, 64], sizes = [16, 32], strides = [1, 1]} : vector<16x128xf32> to vector<16x32xf32>
    %649 = vector.extract_strided_slice %614 {offsets = [0, 64], sizes = [16, 32], strides = [1, 1]} : vector<16x128xf32> to vector<16x32xf32>
    %cst_301 = arith.constant dense<0.000000e+00> : vector<32x32xf32>
    %650 = tpu.matmul %648, %647, %cst_301 {dimension_numbers = #tpu.dot_dimension_numbers<[0], [0], [1], [1], [0, 1, 1, 1], [], []>} : vector<16x32xf32>, vector<16x32xf32>, vector<32x32xf32> -> vector<32x32xf32>
    %cst_302 = arith.constant 0.176776692 : f32
    %651 = vector.broadcast %cst_302 : f32 to vector<32x32xf32>
    %652 = arith.mulf %650, %651 : vector<32x32xf32>
    %cst_303 = arith.constant dense<0xFF800000> : vector<32xf32>
    %653 = vector.multi_reduction <maximumf>, %652, %cst_303 [1] : vector<32x32xf32> to vector<32xf32>
    %654 = vector.shape_cast %653 : vector<32xf32> to vector<32x1xf32>
    %655 = vector.broadcast %654 : vector<32x1xf32> to vector<32x32xf32>
    %656 = arith.subf %652, %655 : vector<32x32xf32>
    %657 = math.exp %656 : vector<32x32xf32>
    %cst_304 = arith.constant dense<0.000000e+00> : vector<32xf32>
    %658 = vector.multi_reduction <add>, %657, %cst_304 [1] : vector<32x32xf32> to vector<32xf32>
    %659 = vector.shape_cast %658 : vector<32xf32> to vector<32x1xf32>
    %660 = vector.broadcast %659 : vector<32x1xf32> to vector<32x32xf32>
    %661 = arith.divf %657, %660 : vector<32x32xf32>
    %cst_305 = arith.constant dense<0.000000e+00> : vector<16x32xf32>
    %662 = tpu.matmul %649, %661, %cst_305 {dimension_numbers = #tpu.dot_dimension_numbers<[1], [0], [0], [1], [0, 0, 1, 1], [], []>} : vector<16x32xf32>, vector<32x32xf32>, vector<16x32xf32> -> vector<16x32xf32>
    %663 = vector.extract_strided_slice %606 {offsets = [0, 96], sizes = [16, 32], strides = [1, 1]} : vector<16x128xf32> to vector<16x32xf32>
    %664 = vector.extract_strided_slice %607 {offsets = [0, 96], sizes = [16, 32], strides = [1, 1]} : vector<16x128xf32> to vector<16x32xf32>
    %665 = vector.extract_strided_slice %614 {offsets = [0, 96], sizes = [16, 32], strides = [1, 1]} : vector<16x128xf32> to vector<16x32xf32>
    %cst_306 = arith.constant dense<0.000000e+00> : vector<32x32xf32>
    %666 = tpu.matmul %664, %663, %cst_306 {dimension_numbers = #tpu.dot_dimension_numbers<[0], [0], [1], [1], [0, 1, 1, 1], [], []>} : vector<16x32xf32>, vector<16x32xf32>, vector<32x32xf32> -> vector<32x32xf32>
    %cst_307 = arith.constant 0.176776692 : f32
    %667 = vector.broadcast %cst_307 : f32 to vector<32x32xf32>
    %668 = arith.mulf %666, %667 : vector<32x32xf32>
    %cst_308 = arith.constant dense<0xFF800000> : vector<32xf32>
    %669 = vector.multi_reduction <maximumf>, %668, %cst_308 [1] : vector<32x32xf32> to vector<32xf32>
    %670 = vector.shape_cast %669 : vector<32xf32> to vector<32x1xf32>
    %671 = vector.broadcast %670 : vector<32x1xf32> to vector<32x32xf32>
    %672 = arith.subf %668, %671 : vector<32x32xf32>
    %673 = math.exp %672 : vector<32x32xf32>
    %cst_309 = arith.constant dense<0.000000e+00> : vector<32xf32>
    %674 = vector.multi_reduction <add>, %673, %cst_309 [1] : vector<32x32xf32> to vector<32xf32>
    %675 = vector.shape_cast %674 : vector<32xf32> to vector<32x1xf32>
    %676 = vector.broadcast %675 : vector<32x1xf32> to vector<32x32xf32>
    %677 = arith.divf %673, %676 : vector<32x32xf32>
    %cst_310 = arith.constant dense<0.000000e+00> : vector<16x32xf32>
    %678 = tpu.matmul %665, %677, %cst_310 {dimension_numbers = #tpu.dot_dimension_numbers<[1], [0], [0], [1], [0, 0, 1, 1], [], []>} : vector<16x32xf32>, vector<32x32xf32>, vector<16x32xf32> -> vector<16x32xf32>
    %679 = tpu.concatenate %630, %646, %662, %678 in 1 : vector<16x32xf32>, vector<16x32xf32>, vector<16x32xf32>, vector<16x32xf32> -> vector<16x128xf32>
    %c4_311 = arith.constant 4 : index
    %c0_312 = arith.constant 0 : index
    %c0_313 = arith.constant 0 : index
    %680 = vector.load %arg7[%c4_311, %c0_312, %c0_313] : memref<6x128x32xf32, #tpu.memory_space<vmem>>, vector<1x128x32xf32>
    %681 = vector.shape_cast %680 : vector<1x128x32xf32> to vector<128x32xf32>
    %cst_314 = arith.constant dense<0.000000e+00> : vector<16x32xf32>
    %682 = tpu.matmul %679, %681, %cst_314 {dimension_numbers = #tpu.dot_dimension_numbers<[1], [0], [0], [1], [0, 0, 1, 1], [], []>} : vector<16x128xf32>, vector<128x32xf32>, vector<16x32xf32> -> vector<16x32xf32>
    %c4_315 = arith.constant 4 : index
    %c0_316 = arith.constant 0 : index
    %c0_317 = arith.constant 0 : index
    %683 = vector.load %arg8[%c4_315, %c0_316, %c0_317] : memref<6x1x32xf32, #tpu.memory_space<vmem>>, vector<1x1x32xf32>
    %684 = vector.shape_cast %683 : vector<1x1x32xf32> to vector<1x32xf32>
    %685 = vector.broadcast %684 : vector<1x32xf32> to vector<16x32xf32>
    %686 = arith.addf %682, %685 : vector<16x32xf32>
    %c4_318 = arith.constant 4 : index
    %c0_319 = arith.constant 0 : index
    %c0_320 = arith.constant 0 : index
    %687 = vector.load %arg9[%c4_318, %c0_319, %c0_320] : memref<6x1x32xf32, #tpu.memory_space<vmem>>, vector<1x1x32xf32>
    %688 = vector.shape_cast %687 : vector<1x1x32xf32> to vector<1x32xf32>
    %c4_321 = arith.constant 4 : index
    %c0_322 = arith.constant 0 : index
    %c0_323 = arith.constant 0 : index
    %689 = vector.load %arg10[%c4_321, %c0_322, %c0_323] : memref<6x1x32xf32, #tpu.memory_space<vmem>>, vector<1x1x32xf32>
    %690 = vector.shape_cast %689 : vector<1x1x32xf32> to vector<1x32xf32>
    %cst_324 = arith.constant dense<0.000000e+00> : vector<16xf32>
    %691 = vector.multi_reduction <add>, %686, %cst_324 [1] : vector<16x32xf32> to vector<16xf32>
    %692 = vector.shape_cast %691 : vector<16xf32> to vector<16x1xf32>
    %cst_325 = arith.constant 3.200000e+01 : f32
    %693 = vector.broadcast %cst_325 : f32 to vector<16x1xf32>
    %694 = arith.divf %692, %693 : vector<16x1xf32>
    %695 = vector.broadcast %694 : vector<16x1xf32> to vector<16x32xf32>
    %696 = arith.subf %686, %695 : vector<16x32xf32>
    %697 = arith.mulf %696, %696 : vector<16x32xf32>
    %cst_326 = arith.constant dense<0.000000e+00> : vector<16xf32>
    %698 = vector.multi_reduction <add>, %697, %cst_326 [1] : vector<16x32xf32> to vector<16xf32>
    %699 = vector.shape_cast %698 : vector<16xf32> to vector<16x1xf32>
    %cst_327 = arith.constant 3.200000e+01 : f32
    %700 = vector.broadcast %cst_327 : f32 to vector<16x1xf32>
    %701 = arith.divf %699, %700 : vector<16x1xf32>
    %702 = vector.broadcast %694 : vector<16x1xf32> to vector<16x32xf32>
    %703 = arith.subf %686, %702 : vector<16x32xf32>
    %cst_328 = arith.constant 9.99999974E-6 : f32
    %704 = vector.broadcast %cst_328 : f32 to vector<16x1xf32>
    %705 = arith.addf %701, %704 : vector<16x1xf32>
    %706 = math.rsqrt %705 : vector<16x1xf32>
    %707 = vector.broadcast %706 : vector<16x1xf32> to vector<16x32xf32>
    %708 = arith.mulf %703, %707 : vector<16x32xf32>
    %709 = vector.broadcast %688 : vector<1x32xf32> to vector<16x32xf32>
    %710 = arith.mulf %708, %709 : vector<16x32xf32>
    %711 = vector.broadcast %690 : vector<1x32xf32> to vector<16x32xf32>
    %712 = arith.addf %710, %711 : vector<16x32xf32>
    %713 = arith.addf %712, %452 : vector<16x32xf32>
    %c4_329 = arith.constant 4 : index
    %c0_330 = arith.constant 0 : index
    %c0_331 = arith.constant 0 : index
    %714 = vector.load %arg11[%c4_329, %c0_330, %c0_331] : memref<6x32x32xf32, #tpu.memory_space<vmem>>, vector<1x32x32xf32>
    %715 = vector.shape_cast %714 : vector<1x32x32xf32> to vector<32x32xf32>
    %cst_332 = arith.constant dense<0.000000e+00> : vector<16x32xf32>
    %716 = tpu.matmul %713, %715, %cst_332 {dimension_numbers = #tpu.dot_dimension_numbers<[1], [0], [0], [1], [0, 0, 1, 1], [], []>} : vector<16x32xf32>, vector<32x32xf32>, vector<16x32xf32> -> vector<16x32xf32>
    %c4_333 = arith.constant 4 : index
    %c0_334 = arith.constant 0 : index
    %c0_335 = arith.constant 0 : index
    %717 = vector.load %arg12[%c4_333, %c0_334, %c0_335] : memref<6x1x32xf32, #tpu.memory_space<vmem>>, vector<1x1x32xf32>
    %718 = vector.shape_cast %717 : vector<1x1x32xf32> to vector<1x32xf32>
    %719 = vector.broadcast %718 : vector<1x32xf32> to vector<16x32xf32>
    %720 = arith.addf %716, %719 : vector<16x32xf32>
    %c4_336 = arith.constant 4 : index
    %c0_337 = arith.constant 0 : index
    %c0_338 = arith.constant 0 : index
    %721 = vector.load %arg13[%c4_336, %c0_337, %c0_338] : memref<6x1x32xf32, #tpu.memory_space<vmem>>, vector<1x1x32xf32>
    %722 = vector.shape_cast %721 : vector<1x1x32xf32> to vector<1x32xf32>
    %c4_339 = arith.constant 4 : index
    %c0_340 = arith.constant 0 : index
    %c0_341 = arith.constant 0 : index
    %723 = vector.load %arg14[%c4_339, %c0_340, %c0_341] : memref<6x1x32xf32, #tpu.memory_space<vmem>>, vector<1x1x32xf32>
    %724 = vector.shape_cast %723 : vector<1x1x32xf32> to vector<1x32xf32>
    %cst_342 = arith.constant dense<0.000000e+00> : vector<16xf32>
    %725 = vector.multi_reduction <add>, %720, %cst_342 [1] : vector<16x32xf32> to vector<16xf32>
    %726 = vector.shape_cast %725 : vector<16xf32> to vector<16x1xf32>
    %cst_343 = arith.constant 3.200000e+01 : f32
    %727 = vector.broadcast %cst_343 : f32 to vector<16x1xf32>
    %728 = arith.divf %726, %727 : vector<16x1xf32>
    %729 = vector.broadcast %728 : vector<16x1xf32> to vector<16x32xf32>
    %730 = arith.subf %720, %729 : vector<16x32xf32>
    %731 = arith.mulf %730, %730 : vector<16x32xf32>
    %cst_344 = arith.constant dense<0.000000e+00> : vector<16xf32>
    %732 = vector.multi_reduction <add>, %731, %cst_344 [1] : vector<16x32xf32> to vector<16xf32>
    %733 = vector.shape_cast %732 : vector<16xf32> to vector<16x1xf32>
    %cst_345 = arith.constant 3.200000e+01 : f32
    %734 = vector.broadcast %cst_345 : f32 to vector<16x1xf32>
    %735 = arith.divf %733, %734 : vector<16x1xf32>
    %736 = vector.broadcast %728 : vector<16x1xf32> to vector<16x32xf32>
    %737 = arith.subf %720, %736 : vector<16x32xf32>
    %cst_346 = arith.constant 9.99999974E-6 : f32
    %738 = vector.broadcast %cst_346 : f32 to vector<16x1xf32>
    %739 = arith.addf %735, %738 : vector<16x1xf32>
    %740 = math.rsqrt %739 : vector<16x1xf32>
    %741 = vector.broadcast %740 : vector<16x1xf32> to vector<16x32xf32>
    %742 = arith.mulf %737, %741 : vector<16x32xf32>
    %743 = vector.broadcast %722 : vector<1x32xf32> to vector<16x32xf32>
    %744 = arith.mulf %742, %743 : vector<16x32xf32>
    %745 = vector.broadcast %724 : vector<1x32xf32> to vector<16x32xf32>
    %746 = arith.addf %744, %745 : vector<16x32xf32>
    %747 = arith.addf %746, %713 : vector<16x32xf32>
    %c5 = arith.constant 5 : index
    %c0_347 = arith.constant 0 : index
    %c0_348 = arith.constant 0 : index
    %748 = vector.load %arg3[%c5, %c0_347, %c0_348] : memref<6x32x256xf32, #tpu.memory_space<vmem>>, vector<1x32x256xf32>
    %749 = vector.shape_cast %748 : vector<1x32x256xf32> to vector<32x256xf32>
    %cst_349 = arith.constant dense<0.000000e+00> : vector<16x256xf32>
    %750 = tpu.matmul %452, %749, %cst_349 {dimension_numbers = #tpu.dot_dimension_numbers<[1], [0], [0], [1], [0, 0, 1, 1], [], []>} : vector<16x32xf32>, vector<32x256xf32>, vector<16x256xf32> -> vector<16x256xf32>
    %c5_350 = arith.constant 5 : index
    %c0_351 = arith.constant 0 : index
    %c0_352 = arith.constant 0 : index
    %751 = vector.load %arg4[%c5_350, %c0_351, %c0_352] : memref<6x1x256xf32, #tpu.memory_space<vmem>>, vector<1x1x256xf32>
    %752 = vector.shape_cast %751 : vector<1x1x256xf32> to vector<1x256xf32>
    %753 = vector.broadcast %752 : vector<1x256xf32> to vector<16x256xf32>
    %754 = arith.addf %750, %753 : vector<16x256xf32>
    %755 = vector.extract_strided_slice %754 {offsets = [0, 0], sizes = [16, 128], strides = [1, 1]} : vector<16x256xf32> to vector<16x128xf32>
    %756 = vector.extract_strided_slice %754 {offsets = [0, 128], sizes = [16, 128], strides = [1, 1]} : vector<16x256xf32> to vector<16x128xf32>
    %c5_353 = arith.constant 5 : index
    %c0_354 = arith.constant 0 : index
    %c0_355 = arith.constant 0 : index
    %757 = vector.load %arg5[%c5_353, %c0_354, %c0_355] : memref<6x32x128xf32, #tpu.memory_space<vmem>>, vector<1x32x128xf32>
    %758 = vector.shape_cast %757 : vector<1x32x128xf32> to vector<32x128xf32>
    %cst_356 = arith.constant dense<0.000000e+00> : vector<16x128xf32>
    %759 = tpu.matmul %747, %758, %cst_356 {dimension_numbers = #tpu.dot_dimension_numbers<[1], [0], [0], [1], [0, 0, 1, 1], [], []>} : vector<16x32xf32>, vector<32x128xf32>, vector<16x128xf32> -> vector<16x128xf32>
    %c5_357 = arith.constant 5 : index
    %c0_358 = arith.constant 0 : index
    %c0_359 = arith.constant 0 : index
    %760 = vector.load %arg6[%c5_357, %c0_358, %c0_359] : memref<6x1x128xf32, #tpu.memory_space<vmem>>, vector<1x1x128xf32>
    %761 = vector.shape_cast %760 : vector<1x1x128xf32> to vector<1x128xf32>
    %762 = vector.broadcast %761 : vector<1x128xf32> to vector<16x128xf32>
    %763 = arith.addf %759, %762 : vector<16x128xf32>
    %764 = vector.extract_strided_slice %755 {offsets = [0, 0], sizes = [16, 32], strides = [1, 1]} : vector<16x128xf32> to vector<16x32xf32>
    %765 = vector.extract_strided_slice %756 {offsets = [0, 0], sizes = [16, 32], strides = [1, 1]} : vector<16x128xf32> to vector<16x32xf32>
    %766 = vector.extract_strided_slice %763 {offsets = [0, 0], sizes = [16, 32], strides = [1, 1]} : vector<16x128xf32> to vector<16x32xf32>
    %cst_360 = arith.constant dense<0.000000e+00> : vector<32x32xf32>
    %767 = tpu.matmul %765, %764, %cst_360 {dimension_numbers = #tpu.dot_dimension_numbers<[0], [0], [1], [1], [0, 1, 1, 1], [], []>} : vector<16x32xf32>, vector<16x32xf32>, vector<32x32xf32> -> vector<32x32xf32>
    %cst_361 = arith.constant 0.176776692 : f32
    %768 = vector.broadcast %cst_361 : f32 to vector<32x32xf32>
    %769 = arith.mulf %767, %768 : vector<32x32xf32>
    %cst_362 = arith.constant dense<0xFF800000> : vector<32xf32>
    %770 = vector.multi_reduction <maximumf>, %769, %cst_362 [1] : vector<32x32xf32> to vector<32xf32>
    %771 = vector.shape_cast %770 : vector<32xf32> to vector<32x1xf32>
    %772 = vector.broadcast %771 : vector<32x1xf32> to vector<32x32xf32>
    %773 = arith.subf %769, %772 : vector<32x32xf32>
    %774 = math.exp %773 : vector<32x32xf32>
    %cst_363 = arith.constant dense<0.000000e+00> : vector<32xf32>
    %775 = vector.multi_reduction <add>, %774, %cst_363 [1] : vector<32x32xf32> to vector<32xf32>
    %776 = vector.shape_cast %775 : vector<32xf32> to vector<32x1xf32>
    %777 = vector.broadcast %776 : vector<32x1xf32> to vector<32x32xf32>
    %778 = arith.divf %774, %777 : vector<32x32xf32>
    %cst_364 = arith.constant dense<0.000000e+00> : vector<16x32xf32>
    %779 = tpu.matmul %766, %778, %cst_364 {dimension_numbers = #tpu.dot_dimension_numbers<[1], [0], [0], [1], [0, 0, 1, 1], [], []>} : vector<16x32xf32>, vector<32x32xf32>, vector<16x32xf32> -> vector<16x32xf32>
    %780 = vector.extract_strided_slice %755 {offsets = [0, 32], sizes = [16, 32], strides = [1, 1]} : vector<16x128xf32> to vector<16x32xf32>
    %781 = vector.extract_strided_slice %756 {offsets = [0, 32], sizes = [16, 32], strides = [1, 1]} : vector<16x128xf32> to vector<16x32xf32>
    %782 = vector.extract_strided_slice %763 {offsets = [0, 32], sizes = [16, 32], strides = [1, 1]} : vector<16x128xf32> to vector<16x32xf32>
    %cst_365 = arith.constant dense<0.000000e+00> : vector<32x32xf32>
    %783 = tpu.matmul %781, %780, %cst_365 {dimension_numbers = #tpu.dot_dimension_numbers<[0], [0], [1], [1], [0, 1, 1, 1], [], []>} : vector<16x32xf32>, vector<16x32xf32>, vector<32x32xf32> -> vector<32x32xf32>
    %cst_366 = arith.constant 0.176776692 : f32
    %784 = vector.broadcast %cst_366 : f32 to vector<32x32xf32>
    %785 = arith.mulf %783, %784 : vector<32x32xf32>
    %cst_367 = arith.constant dense<0xFF800000> : vector<32xf32>
    %786 = vector.multi_reduction <maximumf>, %785, %cst_367 [1] : vector<32x32xf32> to vector<32xf32>
    %787 = vector.shape_cast %786 : vector<32xf32> to vector<32x1xf32>
    %788 = vector.broadcast %787 : vector<32x1xf32> to vector<32x32xf32>
    %789 = arith.subf %785, %788 : vector<32x32xf32>
    %790 = math.exp %789 : vector<32x32xf32>
    %cst_368 = arith.constant dense<0.000000e+00> : vector<32xf32>
    %791 = vector.multi_reduction <add>, %790, %cst_368 [1] : vector<32x32xf32> to vector<32xf32>
    %792 = vector.shape_cast %791 : vector<32xf32> to vector<32x1xf32>
    %793 = vector.broadcast %792 : vector<32x1xf32> to vector<32x32xf32>
    %794 = arith.divf %790, %793 : vector<32x32xf32>
    %cst_369 = arith.constant dense<0.000000e+00> : vector<16x32xf32>
    %795 = tpu.matmul %782, %794, %cst_369 {dimension_numbers = #tpu.dot_dimension_numbers<[1], [0], [0], [1], [0, 0, 1, 1], [], []>} : vector<16x32xf32>, vector<32x32xf32>, vector<16x32xf32> -> vector<16x32xf32>
    %796 = vector.extract_strided_slice %755 {offsets = [0, 64], sizes = [16, 32], strides = [1, 1]} : vector<16x128xf32> to vector<16x32xf32>
    %797 = vector.extract_strided_slice %756 {offsets = [0, 64], sizes = [16, 32], strides = [1, 1]} : vector<16x128xf32> to vector<16x32xf32>
    %798 = vector.extract_strided_slice %763 {offsets = [0, 64], sizes = [16, 32], strides = [1, 1]} : vector<16x128xf32> to vector<16x32xf32>
    %cst_370 = arith.constant dense<0.000000e+00> : vector<32x32xf32>
    %799 = tpu.matmul %797, %796, %cst_370 {dimension_numbers = #tpu.dot_dimension_numbers<[0], [0], [1], [1], [0, 1, 1, 1], [], []>} : vector<16x32xf32>, vector<16x32xf32>, vector<32x32xf32> -> vector<32x32xf32>
    %cst_371 = arith.constant 0.176776692 : f32
    %800 = vector.broadcast %cst_371 : f32 to vector<32x32xf32>
    %801 = arith.mulf %799, %800 : vector<32x32xf32>
    %cst_372 = arith.constant dense<0xFF800000> : vector<32xf32>
    %802 = vector.multi_reduction <maximumf>, %801, %cst_372 [1] : vector<32x32xf32> to vector<32xf32>
    %803 = vector.shape_cast %802 : vector<32xf32> to vector<32x1xf32>
    %804 = vector.broadcast %803 : vector<32x1xf32> to vector<32x32xf32>
    %805 = arith.subf %801, %804 : vector<32x32xf32>
    %806 = math.exp %805 : vector<32x32xf32>
    %cst_373 = arith.constant dense<0.000000e+00> : vector<32xf32>
    %807 = vector.multi_reduction <add>, %806, %cst_373 [1] : vector<32x32xf32> to vector<32xf32>
    %808 = vector.shape_cast %807 : vector<32xf32> to vector<32x1xf32>
    %809 = vector.broadcast %808 : vector<32x1xf32> to vector<32x32xf32>
    %810 = arith.divf %806, %809 : vector<32x32xf32>
    %cst_374 = arith.constant dense<0.000000e+00> : vector<16x32xf32>
    %811 = tpu.matmul %798, %810, %cst_374 {dimension_numbers = #tpu.dot_dimension_numbers<[1], [0], [0], [1], [0, 0, 1, 1], [], []>} : vector<16x32xf32>, vector<32x32xf32>, vector<16x32xf32> -> vector<16x32xf32>
    %812 = vector.extract_strided_slice %755 {offsets = [0, 96], sizes = [16, 32], strides = [1, 1]} : vector<16x128xf32> to vector<16x32xf32>
    %813 = vector.extract_strided_slice %756 {offsets = [0, 96], sizes = [16, 32], strides = [1, 1]} : vector<16x128xf32> to vector<16x32xf32>
    %814 = vector.extract_strided_slice %763 {offsets = [0, 96], sizes = [16, 32], strides = [1, 1]} : vector<16x128xf32> to vector<16x32xf32>
    %cst_375 = arith.constant dense<0.000000e+00> : vector<32x32xf32>
    %815 = tpu.matmul %813, %812, %cst_375 {dimension_numbers = #tpu.dot_dimension_numbers<[0], [0], [1], [1], [0, 1, 1, 1], [], []>} : vector<16x32xf32>, vector<16x32xf32>, vector<32x32xf32> -> vector<32x32xf32>
    %cst_376 = arith.constant 0.176776692 : f32
    %816 = vector.broadcast %cst_376 : f32 to vector<32x32xf32>
    %817 = arith.mulf %815, %816 : vector<32x32xf32>
    %cst_377 = arith.constant dense<0xFF800000> : vector<32xf32>
    %818 = vector.multi_reduction <maximumf>, %817, %cst_377 [1] : vector<32x32xf32> to vector<32xf32>
    %819 = vector.shape_cast %818 : vector<32xf32> to vector<32x1xf32>
    %820 = vector.broadcast %819 : vector<32x1xf32> to vector<32x32xf32>
    %821 = arith.subf %817, %820 : vector<32x32xf32>
    %822 = math.exp %821 : vector<32x32xf32>
    %cst_378 = arith.constant dense<0.000000e+00> : vector<32xf32>
    %823 = vector.multi_reduction <add>, %822, %cst_378 [1] : vector<32x32xf32> to vector<32xf32>
    %824 = vector.shape_cast %823 : vector<32xf32> to vector<32x1xf32>
    %825 = vector.broadcast %824 : vector<32x1xf32> to vector<32x32xf32>
    %826 = arith.divf %822, %825 : vector<32x32xf32>
    %cst_379 = arith.constant dense<0.000000e+00> : vector<16x32xf32>
    %827 = tpu.matmul %814, %826, %cst_379 {dimension_numbers = #tpu.dot_dimension_numbers<[1], [0], [0], [1], [0, 0, 1, 1], [], []>} : vector<16x32xf32>, vector<32x32xf32>, vector<16x32xf32> -> vector<16x32xf32>
    %828 = tpu.concatenate %779, %795, %811, %827 in 1 : vector<16x32xf32>, vector<16x32xf32>, vector<16x32xf32>, vector<16x32xf32> -> vector<16x128xf32>
    %c5_380 = arith.constant 5 : index
    %c0_381 = arith.constant 0 : index
    %c0_382 = arith.constant 0 : index
    %829 = vector.load %arg7[%c5_380, %c0_381, %c0_382] : memref<6x128x32xf32, #tpu.memory_space<vmem>>, vector<1x128x32xf32>
    %830 = vector.shape_cast %829 : vector<1x128x32xf32> to vector<128x32xf32>
    %cst_383 = arith.constant dense<0.000000e+00> : vector<16x32xf32>
    %831 = tpu.matmul %828, %830, %cst_383 {dimension_numbers = #tpu.dot_dimension_numbers<[1], [0], [0], [1], [0, 0, 1, 1], [], []>} : vector<16x128xf32>, vector<128x32xf32>, vector<16x32xf32> -> vector<16x32xf32>
    %c5_384 = arith.constant 5 : index
    %c0_385 = arith.constant 0 : index
    %c0_386 = arith.constant 0 : index
    %832 = vector.load %arg8[%c5_384, %c0_385, %c0_386] : memref<6x1x32xf32, #tpu.memory_space<vmem>>, vector<1x1x32xf32>
    %833 = vector.shape_cast %832 : vector<1x1x32xf32> to vector<1x32xf32>
    %834 = vector.broadcast %833 : vector<1x32xf32> to vector<16x32xf32>
    %835 = arith.addf %831, %834 : vector<16x32xf32>
    %c5_387 = arith.constant 5 : index
    %c0_388 = arith.constant 0 : index
    %c0_389 = arith.constant 0 : index
    %836 = vector.load %arg9[%c5_387, %c0_388, %c0_389] : memref<6x1x32xf32, #tpu.memory_space<vmem>>, vector<1x1x32xf32>
    %837 = vector.shape_cast %836 : vector<1x1x32xf32> to vector<1x32xf32>
    %c5_390 = arith.constant 5 : index
    %c0_391 = arith.constant 0 : index
    %c0_392 = arith.constant 0 : index
    %838 = vector.load %arg10[%c5_390, %c0_391, %c0_392] : memref<6x1x32xf32, #tpu.memory_space<vmem>>, vector<1x1x32xf32>
    %839 = vector.shape_cast %838 : vector<1x1x32xf32> to vector<1x32xf32>
    %cst_393 = arith.constant dense<0.000000e+00> : vector<16xf32>
    %840 = vector.multi_reduction <add>, %835, %cst_393 [1] : vector<16x32xf32> to vector<16xf32>
    %841 = vector.shape_cast %840 : vector<16xf32> to vector<16x1xf32>
    %cst_394 = arith.constant 3.200000e+01 : f32
    %842 = vector.broadcast %cst_394 : f32 to vector<16x1xf32>
    %843 = arith.divf %841, %842 : vector<16x1xf32>
    %844 = vector.broadcast %843 : vector<16x1xf32> to vector<16x32xf32>
    %845 = arith.subf %835, %844 : vector<16x32xf32>
    %846 = arith.mulf %845, %845 : vector<16x32xf32>
    %cst_395 = arith.constant dense<0.000000e+00> : vector<16xf32>
    %847 = vector.multi_reduction <add>, %846, %cst_395 [1] : vector<16x32xf32> to vector<16xf32>
    %848 = vector.shape_cast %847 : vector<16xf32> to vector<16x1xf32>
    %cst_396 = arith.constant 3.200000e+01 : f32
    %849 = vector.broadcast %cst_396 : f32 to vector<16x1xf32>
    %850 = arith.divf %848, %849 : vector<16x1xf32>
    %851 = vector.broadcast %843 : vector<16x1xf32> to vector<16x32xf32>
    %852 = arith.subf %835, %851 : vector<16x32xf32>
    %cst_397 = arith.constant 9.99999974E-6 : f32
    %853 = vector.broadcast %cst_397 : f32 to vector<16x1xf32>
    %854 = arith.addf %850, %853 : vector<16x1xf32>
    %855 = math.rsqrt %854 : vector<16x1xf32>
    %856 = vector.broadcast %855 : vector<16x1xf32> to vector<16x32xf32>
    %857 = arith.mulf %852, %856 : vector<16x32xf32>
    %858 = vector.broadcast %837 : vector<1x32xf32> to vector<16x32xf32>
    %859 = arith.mulf %857, %858 : vector<16x32xf32>
    %860 = vector.broadcast %839 : vector<1x32xf32> to vector<16x32xf32>
    %861 = arith.addf %859, %860 : vector<16x32xf32>
    %862 = arith.addf %861, %452 : vector<16x32xf32>
    %c5_398 = arith.constant 5 : index
    %c0_399 = arith.constant 0 : index
    %c0_400 = arith.constant 0 : index
    %863 = vector.load %arg11[%c5_398, %c0_399, %c0_400] : memref<6x32x32xf32, #tpu.memory_space<vmem>>, vector<1x32x32xf32>
    %864 = vector.shape_cast %863 : vector<1x32x32xf32> to vector<32x32xf32>
    %cst_401 = arith.constant dense<0.000000e+00> : vector<16x32xf32>
    %865 = tpu.matmul %862, %864, %cst_401 {dimension_numbers = #tpu.dot_dimension_numbers<[1], [0], [0], [1], [0, 0, 1, 1], [], []>} : vector<16x32xf32>, vector<32x32xf32>, vector<16x32xf32> -> vector<16x32xf32>
    %c5_402 = arith.constant 5 : index
    %c0_403 = arith.constant 0 : index
    %c0_404 = arith.constant 0 : index
    %866 = vector.load %arg12[%c5_402, %c0_403, %c0_404] : memref<6x1x32xf32, #tpu.memory_space<vmem>>, vector<1x1x32xf32>
    %867 = vector.shape_cast %866 : vector<1x1x32xf32> to vector<1x32xf32>
    %868 = vector.broadcast %867 : vector<1x32xf32> to vector<16x32xf32>
    %869 = arith.addf %865, %868 : vector<16x32xf32>
    %c5_405 = arith.constant 5 : index
    %c0_406 = arith.constant 0 : index
    %c0_407 = arith.constant 0 : index
    %870 = vector.load %arg13[%c5_405, %c0_406, %c0_407] : memref<6x1x32xf32, #tpu.memory_space<vmem>>, vector<1x1x32xf32>
    %871 = vector.shape_cast %870 : vector<1x1x32xf32> to vector<1x32xf32>
    %c5_408 = arith.constant 5 : index
    %c0_409 = arith.constant 0 : index
    %c0_410 = arith.constant 0 : index
    %872 = vector.load %arg14[%c5_408, %c0_409, %c0_410] : memref<6x1x32xf32, #tpu.memory_space<vmem>>, vector<1x1x32xf32>
    %873 = vector.shape_cast %872 : vector<1x1x32xf32> to vector<1x32xf32>
    %cst_411 = arith.constant dense<0.000000e+00> : vector<16xf32>
    %874 = vector.multi_reduction <add>, %869, %cst_411 [1] : vector<16x32xf32> to vector<16xf32>
    %875 = vector.shape_cast %874 : vector<16xf32> to vector<16x1xf32>
    %cst_412 = arith.constant 3.200000e+01 : f32
    %876 = vector.broadcast %cst_412 : f32 to vector<16x1xf32>
    %877 = arith.divf %875, %876 : vector<16x1xf32>
    %878 = vector.broadcast %877 : vector<16x1xf32> to vector<16x32xf32>
    %879 = arith.subf %869, %878 : vector<16x32xf32>
    %880 = arith.mulf %879, %879 : vector<16x32xf32>
    %cst_413 = arith.constant dense<0.000000e+00> : vector<16xf32>
    %881 = vector.multi_reduction <add>, %880, %cst_413 [1] : vector<16x32xf32> to vector<16xf32>
    %882 = vector.shape_cast %881 : vector<16xf32> to vector<16x1xf32>
    %cst_414 = arith.constant 3.200000e+01 : f32
    %883 = vector.broadcast %cst_414 : f32 to vector<16x1xf32>
    %884 = arith.divf %882, %883 : vector<16x1xf32>
    %885 = vector.broadcast %877 : vector<16x1xf32> to vector<16x32xf32>
    %886 = arith.subf %869, %885 : vector<16x32xf32>
    %cst_415 = arith.constant 9.99999974E-6 : f32
    %887 = vector.broadcast %cst_415 : f32 to vector<16x1xf32>
    %888 = arith.addf %884, %887 : vector<16x1xf32>
    %889 = math.rsqrt %888 : vector<16x1xf32>
    %890 = vector.broadcast %889 : vector<16x1xf32> to vector<16x32xf32>
    %891 = arith.mulf %886, %890 : vector<16x32xf32>
    %892 = vector.broadcast %871 : vector<1x32xf32> to vector<16x32xf32>
    %893 = arith.mulf %891, %892 : vector<16x32xf32>
    %894 = vector.broadcast %873 : vector<1x32xf32> to vector<16x32xf32>
    %895 = arith.addf %893, %894 : vector<16x32xf32>
    %896 = arith.addf %895, %862 : vector<16x32xf32>
    %c0_416 = arith.constant 0 : index
    %c0_417 = arith.constant 0 : index
    %897 = vector.load %arg15[%c0_416, %c0_417] : memref<16x32xf32, #tpu.memory_space<vmem>>, vector<16x32xf32>
    tpu.vector_store %arg15[%c0_416, %c0_417], %896 {strides = array<i32>} : memref<16x32xf32, #tpu.memory_space<vmem>>, vector<16x32xf32>,
    return
  }
}

</mosaic_0001>

<bundles_post_ra>
// kernel: transformer_forward.1
= control target key start
LH: loop header
LB: loop body
LE: loop exit
PB: predicated region body
PF: predicated region fallthrough
CT: control target
= control target key end

     0   :  { %vm61_vm0 = vcmask 130048   ;;  %v12553_v20 = vmov 0.0   ;;  %vm163_vm1 = vcmask 261120   ;;  %v153_v29 = vlaneseq  ;;  %s12554_s22 = smov 96   ;;  %s12555_s23 = smov 64   ;;  %s14627_s1 = inlined_call_operand.vmem [shape: f32[16,32], index: 1, kind: input, shape index: {}]   ;;  %s14628_s0 = inlined_call_operand.vmem [shape: f32[16,16], index: 0, kind: input, shape index: {}]   ;;  %s14629_s3 = inlined_call_operand.vmem [shape: f32[6,32,256], index: 3, kind: input, shape index: {}]   ;;  %s14630_s5 = inlined_call_operand.vmem [shape: f32[6,32,128], index: 5, kind: input, shape index: {}]   ;;  %s14631_s2 = inlined_call_operand.vmem [shape: f32[1,32], index: 2, kind: input, shape index: {}]   ;;  %s14632_s4 = inlined_call_operand.vmem [shape: f32[6,1,256], index: 4, kind: input, shape index: {}]   ;;  %s14633_s6 = inlined_call_operand.vmem [shape: f32[6,1,128], index: 6, kind: input, shape index: {}]   ;;  %s14634_s7 = inlined_call_operand.vmem [shape: f32[6,128,32], index: 7, kind: input, shape index: {}]   ;;  %s14635_s8 = inlined_call_operand.vmem [shape: f32[6,1,32], index: 8, kind: input, shape index: {}]   ;;  %s14636_s11 = inlined_call_operand.vmem [shape: f32[6,32,32], index: 11, kind: input, shape index: {}]   ;;  %s14637_s9 = inlined_call_operand.vmem [shape: f32[6,1,32], index: 9, kind: input, shape index: {}]   ;;  %s14638_s10 = inlined_call_operand.vmem [shape: f32[6,1,32], index: 10, kind: input, shape index: {}]   ;;  %s14639_s12 = inlined_call_operand.vmem [shape: f32[6,1,32], index: 12, kind: input, shape index: {}]   ;;  %s14640_s13 = inlined_call_operand.vmem [shape: f32[6,1,32], index: 13, kind: input, shape index: {}]   ;;  %s14641_s14 = inlined_call_operand.vmem [shape: f32[6,1,32], index: 14, kind: input, shape index: {}]   ;;  %s14642_s15 = inlined_call_operand.vmem [shape: f32[16,32], index: 15, kind: output, shape index: {}]  }
   0x1   :  { %v52_v0 = vld [vmem:[%s14627_s1] sm:$0xff]  ;;  %v53_v1 = vld [vmem:[%s14627_s1 + $0x8] sm:$0xff]  ;;  %v146_v5 = vld [vmem:[%s14629_s3 + $0x18] sm:$0xff]  ;;  %234 = vmatprep.mubr.f32.mxu1 %v12553_v20  ;;  %s12556_s24 = smov 32   ;;  %vm1437_vm2 = vcmask 523264   ;;  %vm1440_vm3 = vcmask 785408  }
   0x2   :  { %v50_v2 = vld [vmem:[%s14628_s0] sm:$0xff]  ;;  %v11317_v3 = vpack.c.bf16 %v53_v1, %v52_v0  ;;  %v144_v4 = vld [vmem:[%s14629_s3 + $0x8] sm:$0xff]  ;;  %v145_v8 = vld [vmem:[%s14629_s3 + $0x10] sm:$0xff]  ;;  %v154_v30 = vshrl.u32 %v153_v29, 7 }
   0x3   :  { %10479 = vmatprep.mubr.msk.f32.mxu0 %vm61_vm0, %v50_v2  ;;  %v11321_v6 = vpack.c.bf16 %v146_v5, %v144_v4  ;;  %v143_v7 = vld [vmem:[%s14629_s3] sm:$0xff]  ;;  %v51_v10 = vld [vmem:[%s14628_s0 + $0x8] sm:$0xff]  ;;  %v150_v12 = vld [vmem:[%s14629_s3 + $0x38] sm:$0xff] }
   0x4   :  { %11318 = vmatprep.subr.bf16.mxu0 %v11317_v3  ;;  %v11323_v9 = vpack.c.bf16 %v145_v8, %v143_v7  ;;  %v148_v11 = vld [vmem:[%s14629_s3 + $0x28] sm:$0xff]  ;;  %v147_v14 = vld [vmem:[%s14629_s3 + $0x20] sm:$0xff]  ;;  %v149_v15 = vld [vmem:[%s14629_s3 + $0x30] sm:$0xff]  ;;  %v12704_v31 = vsub.s32 1, %v154_v30  ;;  %v12709_v33 = vsub.s32 0, %v154_v30 }
   0x5   :  { %11320 = vmatpush3.bf16.msra.mxu0 %v11317_v3  ;;  %11322 = vmatprep.subr.bf16.mxu1 %v11321_v6  ;;  %v11325_v13 = vpack.c.bf16 %v150_v12, %v148_v11  ;;  %v11327_v16 = vpack.c.bf16 %v149_v15, %v147_v14  ;;  %v247_v17 = vld [vmem:[%s14630_s5] sm:$0xff]  ;;  %v248_v18 = vld [vmem:[%s14630_s5 + $0x8] sm:$0xff]  ;;  %v249_v22 = vld [vmem:[%s14630_s5 + $0x10] sm:$0xff] }
   0x6   :  { %11324 = vmatpush1.bf16.msra.mxu1 %v11323_v9  ;;  %v11329_v19 = vpack.c.bf16 %v248_v18, %v247_v17  ;;  %v9590_v21 = vld [vmem:[%s14631_s2] ss:$0 sm:$0xff]  ;;  %v250_v23 = vld [vmem:[%s14630_s5 + $0x18] sm:$0xff] }
   0x7   :  { %11326 = vmatprep.subr.bf16.mxu1 %v11325_v13  ;;  %v11333_v27 = vpack.c.bf16 %v250_v23, %v249_v22  ;;  %v151_v32 = vld [vmem:[%s14632_s4] sm:$0x3] }
   0x8   :  { %10480 = vmatmul.mubr.msk.f32.vlgmr.msra.gmra.mrb[0].mxu0 %vm61_vm0, %v51_v10  ;;  %v160_v34 = vrot.slane %v151_v32, %v12704_v31  ;;  %v156_v36 = vrot.slane %v151_v32, %v12709_v33  ;;  %v9595_v44 = vld [vmem:[%s14633_s6] ss:$0 sm:$0xff] }
   0xa   :  { %11328 = vmatpush1.bf16.msra.mxu1 %v11327_v16 }
   0xb   :  { %11330 = vmatprep.subr.bf16.mxu1 %v11329_v19 }
  0xdb   :  { %v10481_v24 = vpop.f32.mrb[0].mxu0 }
  0xdc   :  { %v134_v25 = vpop.f32.mrb[1].mxu0  ;;  %v12696_v28 = vadd.f32 %v10481_v24, %v9590_v21 }
  0xdd   :  { %v12691_v26 = vadd.f32 %v9590_v21, %v134_v25 }
  0xdf   :  { %9593 = vmatmul.mubr.msk.f32.vlgmr.msra.gmra.mrb[0].mxu1 %vm163_vm1, %v12691_v26 }
  0xe0   :  { %11332 = vmatpush3.bf16.msra.mxu1 %v11329_v19  ;;  %240 = vmatprep.mubr.f32.mxu1 %v12553_v20 }
  0xe1   :  { %11334 = vmatprep.subr.bf16.mxu1 %v11333_v27 }
  0xe3   :  { %9594 = vmatmul.mubr.msk.f32.gmra.mrb[2].mxu1 %vm163_vm1, %v12696_v28 }
  0xe4   :  { %11336 = vmatpush3.bf16.msra.mxu1 %v11333_v27  ;;  %10490 = vmatprep.mubr.msk.f32.mxu1 %vm163_vm1, %v12691_v26 }
  0xe7   :  { %10491 = vmatmul.mubr.msk.f32.vlgmr.msra.gmra.mrb[4].mxu1 %vm163_vm1, %v12696_v28 }
 0x1b2   :  { %v236_v35 = vpop.f32.mrb[0].mxu1 }
 0x1b3   :  { %v238_v37 = vpop.f32.mrb[1].mxu1  ;;  %v237_v40 = vadd.f32 %v236_v35, %v156_v36 }
 0x1b4   :  { %v12713_v38 = vadd.f32 %v238_v37, %v160_v34 }
 0x1b6   :  { %v242_v39 = vpop.f32.mrb[2].mxu1  ;;  %333 = vxpose.xlu0.b32.start [1/2] (short) (narrow) %v12713_v38, 32 }
 0x1b7   :  { %v243_v41 = vadd.f32 %v242_v39, %v156_v36  ;;  %v244_v42 = vpop.f32.mrb[3].mxu1 }
 0x1b8   :  { %v12716_v43 = vadd.f32 %v244_v42, %v160_v34 }
 0x1b9   :  { %v11337_v45 = vpack.c.bf16 %v243_v41, %v237_v40  ;;  %v12721_v46 = vpack.i.bf16 %v243_v41, %v237_v40 }
 0x1ba   :  { %v10492_v47 = vpop.f32.mrb[4].mxu1  ;;  %334 = vxpose.xlu0.b32.end [2/2] (short) (narrow) %v12716_v43, 32 }
 0x1bb   :  { %v12724_v48 = vadd.f32 %v10492_v47, %v9595_v44  ;;  %v324_v49 = vpop.f32.mrb[5].mxu1  ;;  %11338 = vmatprep.subr.bf16.mxu0 %v11337_v45 }
 0x1bc   :  { %v12726_v50 = vadd.f32 %v9595_v44, %v324_v49  ;;  %11340 = vmatpush3.bf16.msra.mxu0 %v11337_v45 }
 0x1be   :  { %10511 = vmatprep.mubr.msk.f32.mxu1 %vm163_vm1, %v12726_v50 }
 0x236   :  { %v349_v51 = vpop.trf.xlu0 }
 0x237   :  { %10497 = vmatprep.mubr.msk.f32.mxu0 %vm61_vm0, %v349_v51 }
 0x23a   :  { %v350_v52 = vpop.trf.xlu0 }
 0x23b   :  { %10498 = vmatmul.mubr.msk.f32.vlgmr.msra.gmra.mrb[2].mxu0 %vm61_vm0, %v350_v52 }
 0x23e   :  { %v351_v53 = vpop.trf.xlu0 }
 0x23f   :  { %10500 = vmatprep.mubr.msk.f32.mxu0 %vm61_vm0, %v351_v53 }
 0x242   :  { %v352_v54 = vpop.trf.xlu0 }
 0x243   :  { %10501 = vmatmul.mubr.msk.f32.gmra.mrb[4].mxu0 %vm61_vm0, %v352_v54 }
 0x30e   :  { %v10499_v55 = vpop.f32.mrb[2].mxu0 }
 0x30f   :  { %v463_v56 = vmul.f32 0.17677669, %v10499_v55  ;;  %v443_v57 = vpop.f32.mrb[3].mxu0 }
 0x310   :  { %v462_v58 = vmul.f32 0.17677669, %v443_v57 }
 0x311   :  { %v469_v59 = vsel %vm163_vm1, %v463_v56, -inf }
 0x312   :  { %470 = vmax.xlane.f32.xlu1 %v469_v59  ;;  %v466_v60 = vsel %vm163_vm1, %v462_v58, -inf }
 0x316   :  { %467 = vmax.xlane.f32.xlu1 %v466_v60  ;;  %v10502_v61 = vpop.f32.mrb[4].mxu0 }
 0x317   :  { %v465_v62 = vmul.f32 0.17677669, %v10502_v61  ;;  %v453_v63 = vpop.f32.mrb[5].mxu0 }
 0x318   :  { %v464_v0 = vmul.f32 0.17677669, %v453_v63 }
 0x319   :  { %v475_v1 = vsel %vm163_vm1, %v465_v62, -inf }
 0x31a   :  { %476 = vmax.xlane.f32.xlu1 %v475_v1  ;;  %v472_v2 = vsel %vm163_vm1, %v464_v0, -inf }
 0x31b   :  { %473 = vmax.xlane.f32.xlu0 %v472_v2 }
 0x32b   :  { %593 = vrot.lane.b32.xlu1 %v12713_v38, %s12554_s22 }
 0x39f   :  { %v471_v3 = vpop.xlane.xlu1 %470 }
 0x3a0   :  { %v479_v4 = vsub.f32 %v463_v56, %v471_v3 }
 0x3a2   :  { %v484_v5 = vmul.f32 1.442695, %v479_v4 }
 0x3a3   :  { %v468_v6 = vpop.xlane.xlu1 %467 }
 0x3a4   :  { %12121 = vpow2.f32 %v484_v5  ;;  %v478_v7 = vsub.f32 %v462_v58, %v468_v6 }
 0x3a6   :  { %v482_v8 = vmul.f32 1.442695, %v478_v7 }
 0x3a7   :  { %v477_v9 = vpop.xlane.xlu1 %476 }
 0x3a8   :  { %12123 = vpow2.f32 %v482_v8  ;;  %v481_v10 = vsub.f32 %v465_v62, %v477_v9  ;;  %v474_v11 = vpop.xlane.xlu0 %473 }
 0x3a9   :  { %v480_v12 = vsub.f32 %v464_v0, %v474_v11 }
 0x3aa   :  { %v488_v13 = vmul.f32 1.442695, %v481_v10 }
 0x3ab   :  { %v486_v14 = vmul.f32 1.442695, %v480_v12  ;;  %v594_v24 = vpop.permute.xlu1 %593 }
 0x3ac   :  { %12125 = vpow2.f32 %v488_v13 }
 0x3ad   :  { %12127 = vpow2.f32 %v486_v14 }
 0x3ae   :  { %v12122_v15 = vpop.eup %12121 }
 0x3af   :  { %v493_v16 = vsel %vm163_vm1, %v12122_v15, 0.0 }
 0x3b0   :  { %494 = vadd.xlane.f32.xlu1 %v493_v16 }
 0x3b2   :  { %v12124_v17 = vpop.eup %12123 }
 0x3b3   :  { %v490_v18 = vsel %vm163_vm1, %v12124_v17, 0.0 }
 0x3b4   :  { %491 = vadd.xlane.f32.xlu1 %v490_v18 }
 0x3b6   :  { %v12126_v19 = vpop.eup %12125 }
 0x3b7   :  { %v12128_v21 = vpop.eup %12127  ;;  %v499_v22 = vsel %vm163_vm1, %v12126_v19, 0.0 }
 0x3b8   :  { %500 = vadd.xlane.f32.xlu0 %v499_v22  ;;  %v496_v23 = vsel %vm163_vm1, %v12128_v21, 0.0 }
 0x3b9   :  { %497 = vadd.xlane.f32.xlu1 %v496_v23 }
 0x3ca   :  { %11942 = vrot.lane.b32.xlu1 %v12721_v46, %s12554_s22 }
 0x3ce   :  { %595 = vrot.lane.b32.xlu0 %v12716_v43, %s12554_s22 }
 0x3ec   :  { %599 = vxpose.xlu0.b32.start [1/2] (short) (narrow) %v594_v24, 32 }
 0x43d   :  { %v495_v25 = vpop.xlane.xlu1 %494 }
 0x43e   :  { %12129 = vrcp.f32 %v495_v25 }
 0x441   :  { %v492_v27 = vpop.xlane.xlu1 %491 }
 0x442   :  { %12131 = vrcp.f32 %v492_v27 }
 0x445   :  { %v501_v29 = vpop.xlane.xlu0 %500 }
 0x446   :  { %12133 = vrcp.f32 %v501_v29  ;;  %v498_v30 = vpop.xlane.xlu1 %497 }
 0x447   :  { %12135 = vrcp.f32 %v498_v30 }
 0x448   :  { %v12130_v34 = vpop.eup %12129 }
 0x449   :  { %v596_v32 = vpop.permute.xlu0 %595  ;;  %v505_v37 = vmul.f32 %v12130_v34, %v12122_v15 }
 0x44a   :  { %600 = vxpose.xlu0.b32.end [2/2] (short) (narrow) %v596_v32, 32  ;;  %v11943_v39 = vpop.permute.xlu1 %11942 }
 0x44b   :  { %v11945_v45 = vunpack.i.h.bf16 %v11943_v39  ;;  %v11944_v47 = vunpack.i.l.bf16 %v11943_v39 }
 0x44c   :  { %v12132_v35 = vpop.eup %12131 }
 0x44d   :  { %v503_v36 = vmul.f32 %v12132_v35, %v12124_v17  ;;  %v11349_v52 = vpack.c.bf16 %v11945_v45, %v11944_v47 }
 0x44f   :  { %v11341_v40 = vpack.c.bf16 %v505_v37, %v503_v36 }
 0x450   :  { %v12134_v41 = vpop.eup %12133 }
 0x451   :  { %v12136_v42 = vpop.eup %12135  ;;  %11342 = vmatprep.subr.bf16.mxu1 %v11341_v40  ;;  %v509_v44 = vmul.f32 %v12134_v41, %v12126_v19 }
 0x452   :  { %11344 = vmatpush3.bf16.msra.mxu1 %v11341_v40  ;;  %v507_v49 = vmul.f32 %v12136_v42, %v12128_v21 }
 0x454   :  { %v11345_v51 = vpack.c.bf16 %v509_v44, %v507_v49 }
 0x456   :  { %11346 = vmatprep.subr.bf16.mxu1 %v11345_v51 }
 0x457   :  { %11348 = vmatpush3.bf16.msra.mxu1 %v11345_v51 }
 0x458   :  { %11350 = vmatprep.subr.bf16.mxu1 %v11349_v52 }
 0x45a   :  { %10512 = vmatmul.mubr.msk.f32.vlgmr.msra.gmra.mrb[6].mxu1 %vm163_vm1, %v12724_v48 }
 0x45b   :  { %11352 = vmatpush3.bf16.msra.mxu1 %v11349_v52 }
 0x4c6   :  { %v615_v53 = vpop.trf.xlu0 }
 0x4c7   :  { %10518 = vmatprep.mubr.msk.f32.mxu1 %vm61_vm0, %v615_v53 }
 0x4ca   :  { %v616_v54 = vpop.trf.xlu0 }
 0x4cb   :  { %10519 = vmatmul.mubr.msk.f32.vlgmr.msra.gmra.mrb[8].mxu1 %vm61_vm0, %v616_v54 }
 0x4ce   :  { %v617_v55 = vpop.trf.xlu0 }
 0x4cf   :  { %10521 = vmatprep.mubr.msk.f32.mxu1 %vm61_vm0, %v617_v55 }
 0x4d2   :  { %v618_v56 = vpop.trf.xlu0 }
 0x4d3   :  { %10522 = vmatmul.mubr.msk.f32.gmra.mrb[10].mxu1 %vm61_vm0, %v618_v56 }
 0x52d   :  { %v12754_v57 = vpop.f32.mrb[6].mxu1 }
 0x52e   :  { %v12756_v58 = vpop.f32.mrb[7].mxu1 }
 0x59e   :  { %v10520_v59 = vpop.f32.mrb[8].mxu1 }
 0x59f   :  { %v737_v60 = vmul.f32 0.17677669, %v10520_v59  ;;  %v717_v61 = vpop.f32.mrb[9].mxu1 }
 0x5a0   :  { %v736_v62 = vmul.f32 0.17677669, %v717_v61 }
 0x5a1   :  { %v743_v63 = vsel %vm163_vm1, %v737_v60, -inf }
 0x5a2   :  { %744 = vmax.xlane.f32.xlu0 %v743_v63  ;;  %v740_v0 = vsel %vm163_vm1, %v736_v62, -inf }
 0x5a3   :  { %741 = vmax.xlane.f32.xlu1 %v740_v0 }
 0x5a6   :  { %v10523_v1 = vpop.f32.mrb[10].mxu1 }
 0x5a7   :  { %v727_v2 = vpop.f32.mrb[11].mxu1  ;;  %v739_v4 = vmul.f32 0.17677669, %v10523_v1 }
 0x5a8   :  { %v738_v3 = vmul.f32 0.17677669, %v727_v2 }
 0x5a9   :  { %v749_v6 = vsel %vm163_vm1, %v739_v4, -inf }
 0x5aa   :  { %v746_v5 = vsel %vm163_vm1, %v738_v3, -inf }
 0x5ab   :  { %747 = vmax.xlane.f32.xlu1 %v746_v5 }
 0x5af   :  { %750 = vmax.xlane.f32.xlu1 %v749_v6 }
 0x5b8   :  { %869 = vrot.lane.b32.xlu0 %v12716_v43, %s12555_s23 }
 0x5c0   :  { %867 = vrot.lane.b32.xlu1 %v12713_v38, %s12555_s23 }
 0x62f   :  { %v745_v7 = vpop.xlane.xlu0 %744 }
 0x630   :  { %v753_v8 = vsub.f32 %v737_v60, %v745_v7  ;;  %v742_v9 = vpop.xlane.xlu1 %741 }
 0x631   :  { %v752_v10 = vsub.f32 %v736_v62, %v742_v9 }
 0x632   :  { %v758_v11 = vmul.f32 1.442695, %v753_v8 }
 0x633   :  { %v756_v12 = vmul.f32 1.442695, %v752_v10  ;;  %v870_v32 = vpop.permute.xlu0 %869 }
 0x634   :  { %12137 = vpow2.f32 %v758_v11 }
 0x635   :  { %12139 = vpow2.f32 %v756_v12 }
 0x638   :  { %v748_v13 = vpop.xlane.xlu1 %747 }
 0x639   :  { %v754_v14 = vsub.f32 %v738_v3, %v748_v13 }
 0x63b   :  { %v760_v15 = vmul.f32 1.442695, %v754_v14 }
 0x63c   :  { %v751_v16 = vpop.xlane.xlu1 %750 }
 0x63d   :  { %12141 = vpow2.f32 %v760_v15  ;;  %v755_v17 = vsub.f32 %v739_v4, %v751_v16 }
 0x63e   :  { %v12138_v18 = vpop.eup %12137 }
 0x63f   :  { %v762_v19 = vmul.f32 1.442695, %v755_v17  ;;  %v767_v21 = vsel %vm163_vm1, %v12138_v18, 0.0  ;;  %v12140_v22 = vpop.eup %12139 }
 0x640   :  { %768 = vadd.xlane.f32.xlu1 %v767_v21  ;;  %v764_v23 = vsel %vm163_vm1, %v12140_v22, 0.0  ;;  %v868_v30 = vpop.permute.xlu1 %867 }
 0x641   :  { %12143 = vpow2.f32 %v762_v19 }
 0x644   :  { %765 = vadd.xlane.f32.xlu1 %v764_v23 }
 0x647   :  { %v12142_v24 = vpop.eup %12141 }
 0x648   :  { %v770_v25 = vsel %vm163_vm1, %v12142_v24, 0.0 }
 0x649   :  { %771 = vadd.xlane.f32.xlu1 %v770_v25 }
 0x64b   :  { %v12144_v27 = vpop.eup %12143 }
 0x64c   :  { %v773_v29 = vsel %vm163_vm1, %v12144_v27, 0.0 }
 0x64d   :  { %774 = vadd.xlane.f32.xlu0 %v773_v29 }
 0x65a   :  { %11947 = vrot.lane.b32.xlu1 %v12721_v46, %s12555_s23 }
 0x663   :  { %784 = vrot.lane.b32.xlu0 %v12726_v50, %s12554_s22 }
 0x667   :  { %786 = vrot.lane.b32.xlu0 %v12724_v48, %s12554_s22 }
 0x685   :  { %873 = vxpose.xlu0.b32.start [1/2] (short) (narrow) %v868_v30, 32 }
 0x689   :  { %874 = vxpose.xlu0.b32.end [2/2] (short) (narrow) %v870_v32, 32 }
 0x6cd   :  { %v769_v34 = vpop.xlane.xlu1 %768 }
 0x6ce   :  { %12145 = vrcp.f32 %v769_v34 }
 0x6d1   :  { %v766_v35 = vpop.xlane.xlu1 %765 }
 0x6d2   :  { %12147 = vrcp.f32 %v766_v35 }
 0x6d6   :  { %v772_v36 = vpop.xlane.xlu1 %771 }
 0x6d7   :  { %12149 = vrcp.f32 %v772_v36 }
 0x6d8   :  { %v12146_v37 = vpop.eup %12145 }
 0x6d9   :  { %v779_v42 = vmul.f32 %v12146_v37, %v12138_v18 }
 0x6da   :  { %v775_v39 = vpop.xlane.xlu0 %774  ;;  %v11948_v49 = vpop.permute.xlu1 %11947 }
 0x6db   :  { %12151 = vrcp.f32 %v775_v39  ;;  %v11950_v52 = vunpack.i.h.bf16 %v11948_v49  ;;  %v11949_v53 = vunpack.i.l.bf16 %v11948_v49 }
 0x6dc   :  { %v12148_v40 = vpop.eup %12147 }
 0x6dd   :  { %v777_v41 = vmul.f32 %v12148_v40, %v12140_v22  ;;  %v11361_v59 = vpack.c.bf16 %v11950_v52, %v11949_v53 }
 0x6de   :  { %v785_v44 = vpop.permute.xlu0 %784 }
 0x6df   :  { %10532 = vmatprep.mubr.msk.f32.mxu0 %vm163_vm1, %v785_v44  ;;  %v11353_v45 = vpack.c.bf16 %v779_v42, %v777_v41 }
 0x6e1   :  { %11354 = vmatprep.subr.bf16.mxu0 %v11353_v45  ;;  %v12150_v47 = vpop.eup %12149 }
 0x6e2   :  { %11356 = vmatpush3.bf16.msra.mxu0 %v11353_v45  ;;  %v781_v54 = vmul.f32 %v12150_v47, %v12142_v24  ;;  %v787_v60 = vpop.permute.xlu0 %786 }
 0x6e5   :  { %v12152_v51 = vpop.eup %12151 }
 0x6e6   :  { %v783_v55 = vmul.f32 %v12152_v51, %v12144_v27 }
 0x6e8   :  { %v11357_v56 = vpack.c.bf16 %v783_v55, %v781_v54 }
 0x6ea   :  { %11358 = vmatprep.subr.bf16.mxu0 %v11357_v56 }
 0x6eb   :  { %11360 = vmatpush3.bf16.msra.mxu0 %v11357_v56 }
 0x6ec   :  { %11362 = vmatprep.subr.bf16.mxu0 %v11361_v59 }
 0x6ee   :  { %10533 = vmatmul.mubr.msk.f32.vlgmr.msra.gmra.mrb[6].mxu0 %vm163_vm1, %v787_v60 }
 0x6ef   :  { %11364 = vmatpush3.bf16.msra.mxu0 %v11361_v59 }
 0x705   :  { %v889_v61 = vpop.trf.xlu0 }
 0x706   :  { %10539 = vmatprep.mubr.msk.f32.mxu0 %vm61_vm0, %v889_v61 }
 0x709   :  { %v890_v62 = vpop.trf.xlu0 }
 0x70a   :  { %10540 = vmatmul.mubr.msk.f32.vlgmr.msra.gmra.mrb[8].mxu0 %vm61_vm0, %v890_v62 }
 0x70d   :  { %v891_v63 = vpop.trf.xlu0 }
 0x70e   :  { %10542 = vmatprep.mubr.msk.f32.mxu0 %vm61_vm0, %v891_v63 }
 0x711   :  { %v892_v0 = vpop.trf.xlu0 }
 0x712   :  { %10543 = vmatmul.mubr.msk.f32.gmra.mrb[10].mxu0 %vm61_vm0, %v892_v0 }
 0x7c1   :  { %v12782_v1 = vpop.f32.mrb[6].mxu0 }
 0x7c2   :  { %v12784_v2 = vpop.f32.mrb[7].mxu0 }
 0x7c3   :  { %v11956_v3 = vpack.i.bf16 %v12782_v1, %v12784_v2 }
 0x7dd   :  { %v10541_v4 = vpop.f32.mrb[8].mxu0 }
 0x7de   :  { %v1009_v5 = vmul.f32 0.17677669, %v10541_v4  ;;  %v989_v6 = vpop.f32.mrb[9].mxu0 }
 0x7df   :  { %v1008_v7 = vmul.f32 0.17677669, %v989_v6 }
 0x7e0   :  { %v1015_v8 = vsel %vm163_vm1, %v1009_v5, -inf }
 0x7e1   :  { %1016 = vmax.xlane.f32.xlu0 %v1015_v8  ;;  %v1012_v9 = vsel %vm163_vm1, %v1008_v7, -inf }
 0x7e2   :  { %1013 = vmax.xlane.f32.xlu1 %v1012_v9 }
 0x7e5   :  { %v10544_v10 = vpop.f32.mrb[10].mxu0 }
 0x7e6   :  { %v999_v11 = vpop.f32.mrb[11].mxu0  ;;  %v1011_v13 = vmul.f32 0.17677669, %v10544_v10 }
 0x7e7   :  { %v1010_v12 = vmul.f32 0.17677669, %v999_v11 }
 0x7e8   :  { %v1021_v15 = vsel %vm163_vm1, %v1011_v13, -inf }
 0x7e9   :  { %v1018_v14 = vsel %vm163_vm1, %v1010_v12, -inf }
 0x7ea   :  { %1019 = vmax.xlane.f32.xlu1 %v1018_v14 }
 0x7ee   :  { %1022 = vmax.xlane.f32.xlu1 %v1021_v15 }
 0x7f7   :  { %1141 = vrot.lane.b32.xlu0 %v12716_v43, %s12556_s24 }
 0x7ff   :  { %1139 = vrot.lane.b32.xlu1 %v12713_v38, %s12556_s24 }
 0x86e   :  { %v1017_v16 = vpop.xlane.xlu0 %1016 }
 0x86f   :  { %v1025_v17 = vsub.f32 %v1009_v5, %v1017_v16  ;;  %v1014_v18 = vpop.xlane.xlu1 %1013 }
 0x870   :  { %v1024_v19 = vsub.f32 %v1008_v7, %v1014_v18 }
 0x871   :  { %v1030_v21 = vmul.f32 1.442695, %v1025_v17 }
 0x872   :  { %v1028_v22 = vmul.f32 1.442695, %v1024_v19  ;;  %v1142_v41 = vpop.permute.xlu0 %1141 }
 0x873   :  { %12153 = vpow2.f32 %v1030_v21 }
 0x874   :  { %12155 = vpow2.f32 %v1028_v22 }
 0x877   :  { %v1020_v23 = vpop.xlane.xlu1 %1019 }
 0x878   :  { %v1026_v24 = vsub.f32 %v1010_v12, %v1020_v23 }
 0x87a   :  { %v1032_v25 = vmul.f32 1.442695, %v1026_v24 }
 0x87b   :  { %v1023_v27 = vpop.xlane.xlu1 %1022 }
 0x87c   :  { %12157 = vpow2.f32 %v1032_v25  ;;  %v1027_v29 = vsub.f32 %v1011_v13, %v1023_v27 }
 0x87d   :  { %v12154_v30 = vpop.eup %12153 }
 0x87e   :  { %v1034_v32 = vmul.f32 1.442695, %v1027_v29  ;;  %v1039_v43 = vsel %vm163_vm1, %v12154_v30, 0.0  ;;  %v12156_v34 = vpop.eup %12155 }
 0x87f   :  { %1040 = vadd.xlane.f32.xlu1 %v1039_v43  ;;  %v1036_v38 = vsel %vm163_vm1, %v12156_v34, 0.0  ;;  %v1140_v40 = vpop.permute.xlu1 %1139 }
 0x880   :  { %12159 = vpow2.f32 %v1034_v32 }
 0x883   :  { %1037 = vadd.xlane.f32.xlu1 %v1036_v38 }
 0x886   :  { %v12158_v35 = vpop.eup %12157 }
 0x887   :  { %v1042_v36 = vsel %vm163_vm1, %v12158_v35, 0.0 }
 0x888   :  { %1043 = vadd.xlane.f32.xlu1 %v1042_v36 }
 0x88a   :  { %v12160_v37 = vpop.eup %12159 }
 0x88b   :  { %v1045_v39 = vsel %vm163_vm1, %v12160_v37, 0.0 }
 0x88c   :  { %1046 = vadd.xlane.f32.xlu0 %v1045_v39 }
 0x899   :  { %11952 = vrot.lane.b32.xlu1 %v12721_v46, %s12556_s24 }
 0x8a2   :  { %1056 = vrot.lane.b32.xlu0 %v12726_v50, %s12555_s23 }
 0x8a6   :  { %1058 = vrot.lane.b32.xlu0 %v12724_v48, %s12555_s23 }
 0x8c4   :  { %1145 = vxpose.xlu0.b32.start [1/2] (short) (narrow) %v1140_v40, 32 }
 0x8c8   :  { %1146 = vxpose.xlu0.b32.end [2/2] (short) (narrow) %v1142_v41, 32 }
 0x90c   :  { %v1041_v42 = vpop.xlane.xlu1 %1040 }
 0x90d   :  { %12161 = vrcp.f32 %v1041_v42 }
 0x910   :  { %v1038_v44 = vpop.xlane.xlu1 %1037 }
 0x911   :  { %12163 = vrcp.f32 %v1038_v44 }
 0x915   :  { %v1044_v45 = vpop.xlane.xlu1 %1043 }
 0x916   :  { %12165 = vrcp.f32 %v1044_v45 }
 0x917   :  { %v12162_v47 = vpop.eup %12161 }
 0x918   :  { %v1051_v52 = vmul.f32 %v12162_v47, %v12154_v30 }
 0x919   :  { %v1047_v49 = vpop.xlane.xlu0 %1046  ;;  %v11953_v56 = vpop.permute.xlu1 %11952 }
 0x91a   :  { %12167 = vrcp.f32 %v1047_v49  ;;  %v11955_v60 = vunpack.i.h.bf16 %v11953_v56  ;;  %v11954_v61 = vunpack.i.l.bf16 %v11953_v56 }
 0x91b   :  { %v12164_v46 = vpop.eup %12163 }
 0x91c   :  { %v1049_v51 = vmul.f32 %v12164_v46, %v12156_v34  ;;  %v11373_v4 = vpack.c.bf16 %v11955_v60, %v11954_v61 }
 0x91d   :  { %v1057_v53 = vpop.permute.xlu0 %1056 }
 0x91e   :  { %10553 = vmatprep.mubr.msk.f32.mxu1 %vm163_vm1, %v1057_v53  ;;  %v11365_v54 = vpack.c.bf16 %v1051_v52, %v1049_v51 }
 0x920   :  { %11366 = vmatprep.subr.bf16.mxu1 %v11365_v54  ;;  %v12166_v55 = vpop.eup %12165 }
 0x921   :  { %11368 = vmatpush3.bf16.msra.mxu1 %v11365_v54  ;;  %v1053_v62 = vmul.f32 %v12166_v55, %v12158_v35  ;;  %v1059_v5 = vpop.permute.xlu0 %1058 }
 0x924   :  { %v12168_v59 = vpop.eup %12167 }
 0x925   :  { %v1055_v63 = vmul.f32 %v12168_v59, %v12160_v37 }
 0x927   :  { %v11369_v0 = vpack.c.bf16 %v1055_v63, %v1053_v62 }
 0x929   :  { %11370 = vmatprep.subr.bf16.mxu1 %v11369_v0 }
 0x92a   :  { %11372 = vmatpush3.bf16.msra.mxu1 %v11369_v0 }
 0x92b   :  { %11374 = vmatprep.subr.bf16.mxu1 %v11373_v4 }
 0x92d   :  { %10554 = vmatmul.mubr.msk.f32.vlgmr.msra.gmra.mrb[12].mxu1 %vm163_vm1, %v1059_v5  ;;  %v1444_v5 = vld [vmem:[%s14634_s7 + $0x8] sm:$0xff] }
 0x92e   :  { %11376 = vmatpush3.bf16.msra.mxu1 %v11373_v4  ;;  %v1443_v4 = vld [vmem:[%s14634_s7] sm:$0xff] }
 0x944   :  { %v1161_v6 = vpop.trf.xlu0 }
 0x945   :  { %10560 = vmatprep.mubr.msk.f32.mxu1 %vm61_vm0, %v1161_v6  ;;  %v1445_v6 = vld [vmem:[%s14634_s7 + $0x10] sm:$0xff] }
 0x948   :  { %v1162_v7 = vpop.trf.xlu0 }
 0x949   :  { %10561 = vmatmul.mubr.msk.f32.vlgmr.msra.gmra.mrb[14].mxu1 %vm61_vm0, %v1162_v7  ;;  %v11385_v7 = vpack.c.bf16 %v1444_v5, %v1443_v4  ;;  %v1588_v4 = vld [vmem:[%s14636_s11] sm:$0xff]  ;;  %v1589_v5 = vld [vmem:[%s14636_s11 + $0x8] sm:$0xff] }
 0x94b   :  { %11386 = vmatprep.subr.bf16.mxu1 %v11385_v7 }
 0x94c   :  { %v1163_v8 = vpop.trf.xlu0  ;;  %11388 = vmatpush3.bf16.msra.mxu1 %v11385_v7  ;;  %v1590_v7 = vld [vmem:[%s14636_s11 + $0x10] sm:$0xff] }
 0x94d   :  { %10563 = vmatprep.mubr.msk.f32.mxu1 %vm61_vm0, %v1163_v8  ;;  %v1446_v8 = vld [vmem:[%s14634_s7 + $0x18] sm:$0xff] }
 0x950   :  { %v1164_v9 = vpop.trf.xlu0 }
 0x951   :  { %10564 = vmatmul.mubr.msk.f32.gmra.mrb[16].mxu1 %vm61_vm0, %v1164_v9  ;;  %v11389_v9 = vpack.c.bf16 %v1446_v8, %v1445_v6  ;;  %v11417_v6 = vpack.c.bf16 %v1589_v5, %v1588_v4  ;;  %v1591_v8 = vld [vmem:[%s14636_s11 + $0x18] sm:$0xff] }
 0x953   :  { %11390 = vmatprep.subr.bf16.mxu1 %v11389_v9 }
 0x954   :  { %11392 = vmatpush3.bf16.msra.mxu1 %v11389_v9  ;;  %v11421_v9 = vpack.c.bf16 %v1591_v8, %v1590_v7  ;;  %v9628_v7 = vld [vmem:[%s14640_s13] ss:$0 sm:$0xff] }
 0xa00   :  { %v10555_v10 = vpop.f32.mrb[12].mxu1 }
 0xa01   :  { %v1130_v11 = vpop.f32.mrb[13].mxu1 }
 0xa02   :  { %v11961_v12 = vpack.i.bf16 %v10555_v10, %v1130_v11  ;;  %v1447_v10 = vld [vmem:[%s14634_s7 + $0x20] sm:$0xff]  ;;  %v1448_v11 = vld [vmem:[%s14634_s7 + $0x28] sm:$0xff] }
 0xa1c   :  { %v10562_v13 = vpop.f32.mrb[14].mxu1 }
 0xa1d   :  { %v1281_v14 = vmul.f32 0.17677669, %v10562_v13  ;;  %v1261_v15 = vpop.f32.mrb[15].mxu1  ;;  %v1449_v13 = vld [vmem:[%s14634_s7 + $0x30] sm:$0xff] }
 0xa1e   :  { %v1280_v16 = vmul.f32 0.17677669, %v1261_v15 }
 0xa1f   :  { %v1287_v17 = vsel %vm163_vm1, %v1281_v14, -inf }
 0xa20   :  { %1288 = vmax.xlane.f32.xlu0 %v1287_v17  ;;  %v1284_v18 = vsel %vm163_vm1, %v1280_v16, -inf  ;;  %v1452_v17 = vld [vmem:[%s14634_s7 + $0x48] sm:$0xff] }
 0xa21   :  { %1285 = vmax.xlane.f32.xlu1 %v1284_v18 }
 0xa24   :  { %v10565_v19 = vpop.f32.mrb[16].mxu1 }
 0xa25   :  { %v1271_v21 = vpop.f32.mrb[17].mxu1  ;;  %v1283_v23 = vmul.f32 0.17677669, %v10565_v19  ;;  %v1453_v19 = vld [vmem:[%s14634_s7 + $0x50] sm:$0xff] }
 0xa26   :  { %v1282_v22 = vmul.f32 0.17677669, %v1271_v21  ;;  %v1454_v21 = vld [vmem:[%s14634_s7 + $0x58] sm:$0xff] }
 0xa27   :  { %v1293_v25 = vsel %vm163_vm1, %v1283_v23, -inf }
 0xa28   :  { %v1290_v24 = vsel %vm163_vm1, %v1282_v22, -inf }
 0xa29   :  { %1291 = vmax.xlane.f32.xlu1 %v1290_v24  ;;  %v1456_v24 = vld [vmem:[%s14634_s7 + $0x68] sm:$0xff] }
 0xa2d   :  { %1294 = vmax.xlane.f32.xlu1 %v1293_v25 }
 0xa36   :  { %11962 = vrot.lane.b32.xlu0 %v11961_v12, %s12555_s23  ;;  %v11393_v12 = vpack.c.bf16 %v1448_v11, %v1447_v10 }
 0xa38   :  { %11394 = vmatprep.subr.bf16.mxu1 %v11393_v12 }
 0xa39   :  { %11396 = vmatpush3.bf16.msra.mxu1 %v11393_v12 }
 0xa3e   :  { %1328 = vrot.lane.b32.xlu1 %v12726_v50, %s12556_s24 }
 0xaad   :  { %v1289_v27 = vpop.xlane.xlu0 %1288 }
 0xaae   :  { %v1297_v29 = vsub.f32 %v1281_v14, %v1289_v27  ;;  %v1286_v30 = vpop.xlane.xlu1 %1285  ;;  %v1450_v14 = vld [vmem:[%s14634_s7 + $0x38] sm:$0xff]  ;;  %v1457_v27 = vld [vmem:[%s14634_s7 + $0x70] sm:$0xff] }
 0xaaf   :  { %v1296_v32 = vsub.f32 %v1280_v16, %v1286_v30  ;;  %v11397_v15 = vpack.c.bf16 %v1450_v14, %v1449_v13  ;;  %v1451_v16 = vld [vmem:[%s14634_s7 + $0x40] sm:$0xff] }
 0xab0   :  { %v1302_v43 = vmul.f32 1.442695, %v1297_v29  ;;  %v11401_v18 = vpack.c.bf16 %v1452_v17, %v1451_v16  ;;  %v1458_v29 = vld [vmem:[%s14634_s7 + $0x78] sm:$0xff]  ;;  %v9623_v17 = vld [vmem:[%s14637_s9] ss:$0 sm:$0xff] }
 0xab1   :  { %v1300_v34 = vmul.f32 1.442695, %v1296_v32  ;;  %11398 = vmatprep.subr.bf16.mxu1 %v11397_v15  ;;  %v11413_v30 = vpack.c.bf16 %v1458_v29, %v1457_v27 }
 0xab2   :  { %12169 = vpow2.f32 %v1302_v43  ;;  %11400 = vmatpush3.bf16.msra.mxu1 %v11397_v15 }
 0xab3   :  { %12171 = vpow2.f32 %v1300_v34  ;;  %11402 = vmatprep.subr.bf16.mxu1 %v11401_v18 }
 0xab6   :  { %v1292_v38 = vpop.xlane.xlu1 %1291  ;;  %11404 = vmatpush3.bf16.msra.mxu1 %v11401_v18 }
 0xab7   :  { %v1298_v35 = vsub.f32 %v1282_v22, %v1292_v38  ;;  %v11405_v22 = vpack.c.bf16 %v1454_v21, %v1453_v19  ;;  %v9624_v19 = vld [vmem:[%s14638_s10] ss:$0 sm:$0xff] }
 0xab9   :  { %v1304_v40 = vmul.f32 1.442695, %v1298_v35  ;;  %11406 = vmatprep.subr.bf16.mxu1 %v11405_v22 }
 0xaba   :  { %v1295_v36 = vpop.xlane.xlu1 %1294  ;;  %11408 = vmatpush3.bf16.msra.mxu1 %v11405_v22 }
 0xabb   :  { %v1299_v37 = vsub.f32 %v1283_v23, %v1295_v36  ;;  %v1455_v23 = vld [vmem:[%s14634_s7 + $0x60] sm:$0xff] }
 0xabc   :  { %v12170_v39 = vpop.eup %12169  ;;  %v11409_v25 = vpack.c.bf16 %v1456_v24, %v1455_v23 }
 0xabd   :  { %v1306_v41 = vmul.f32 1.442695, %v1299_v37  ;;  %v1311_v42 = vsel %vm163_vm1, %v12170_v39, 0.0  ;;  %v12172_v44 = vpop.eup %12171  ;;  %v11963_v37 = vpop.permute.xlu0 %11962 }
 0xabe   :  { %v1329_v45 = vpop.permute.xlu1 %1328  ;;  %1312 = vadd.xlane.f32.xlu1 %v1311_v42  ;;  %v1308_v50 = vsel %vm163_vm1, %v12172_v44, 0.0  ;;  %11410 = vmatprep.subr.bf16.mxu1 %v11409_v25  ;;  %v11964_v42 = vunpack.i.l.bf16 %v11963_v37 }
 0xabf   :  { %12173 = vpow2.f32 %v1306_v41  ;;  %10574 = vmatprep.mubr.msk.f32.mxu0 %vm163_vm1, %v1329_v45  ;;  %11412 = vmatpush3.bf16.msra.mxu1 %v11409_v25  ;;  %v11965_v41 = vunpack.i.h.bf16 %v11963_v37 }
 0xac0   :  { %12175 = vpow2.f32 %v1304_v40  ;;  %11414 = vmatprep.subr.bf16.mxu1 %v11413_v30 }
 0xac2   :  { %1309 = vadd.xlane.f32.xlu1 %v1308_v50 }
 0xac3   :  { %11416 = vmatpush3.bf16.msra.mxu1 %v11413_v30 }
 0xac9   :  { %v12174_v47 = vpop.eup %12173 }
 0xaca   :  { %v1317_v49 = vsel %vm163_vm1, %v12174_v47, 0.0  ;;  %v12176_v46 = vpop.eup %12175 }
 0xacb   :  { %1318 = vadd.xlane.f32.xlu1 %v1317_v49  ;;  %v1314_v51 = vsel %vm163_vm1, %v12176_v46, 0.0 }
 0xacf   :  { %1315 = vadd.xlane.f32.xlu1 %v1314_v51 }
 0xae0   :  { %1330 = vrot.lane.b32.xlu1 %v12724_v48, %s12556_s24 }
 0xae4   :  { %11957 = vrot.lane.b32.xlu1 %v11956_v3, %s12556_s24 }
 0xb4b   :  { %v1313_v52 = vpop.xlane.xlu1 %1312 }
 0xb4c   :  { %12177 = vrcp.f32 %v1313_v52 }
 0xb4f   :  { %v1310_v53 = vpop.xlane.xlu1 %1309 }
 0xb50   :  { %12179 = vrcp.f32 %v1310_v53 }
 0xb56   :  { %v12178_v54 = vpop.eup %12177 }
 0xb57   :  { %v1323_v60 = vmul.f32 %v12178_v54, %v12170_v39 }
 0xb58   :  { %v1319_v55 = vpop.xlane.xlu1 %1318 }
 0xb59   :  { %12181 = vrcp.f32 %v1319_v55 }
 0xb5a   :  { %v12180_v56 = vpop.eup %12179 }
 0xb5b   :  { %v1321_v59 = vmul.f32 %v12180_v56, %v12172_v44 }
 0xb5c   :  { %v1316_v61 = vpop.xlane.xlu1 %1315 }
 0xb5d   :  { %12183 = vrcp.f32 %v1316_v61  ;;  %v11377_v62 = vpack.c.bf16 %v1323_v60, %v1321_v59 }
 0xb5f   :  { %11378 = vmatprep.subr.bf16.mxu0 %v11377_v62 }
 0xb60   :  { %11380 = vmatpush3.bf16.msra.mxu0 %v11377_v62  ;;  %v1331_v3 = vpop.permute.xlu1 %1330 }
 0xb63   :  { %v12182_v48 = vpop.eup %12181 }
 0xb64   :  { %v1327_v1 = vmul.f32 %v12182_v48, %v12174_v47  ;;  %v11958_v38 = vpop.permute.xlu1 %11957 }
 0xb65   :  { %v11960_v35 = vunpack.i.h.bf16 %v11958_v38  ;;  %v11959_v36 = vunpack.i.l.bf16 %v11958_v38 }
 0xb67   :  { %v12184_v63 = vpop.eup %12183  ;;  %v1436_v39 = vsel %vm163_vm1, %v12754_v57, %v11960_v35  ;;  %v1435_v40 = vsel %vm163_vm1, %v12756_v58, %v11959_v36  ;;  %v9622_v57 = vld [vmem:[%s14635_s8] ss:$0 sm:$0xff] }
 0xb68   :  { %v1325_v0 = vmul.f32 %v12184_v63, %v12176_v46  ;;  %v1438_v47 = vsel %vm1437_vm2, %v1435_v40, %v11964_v42  ;;  %v1439_v49 = vsel %vm1437_vm2, %v1436_v39, %v11965_v41 }
 0xb6a   :  { %v11381_v2 = vpack.c.bf16 %v1327_v1, %v1325_v0 }
 0xb6c   :  { %11382 = vmatprep.subr.bf16.mxu0 %v11381_v2 }
 0xb6d   :  { %11384 = vmatpush3.bf16.msra.mxu0 %v11381_v2 }
 0xb6e   :  { %11418 = vmatprep.subr.bf16.mxu0 %v11417_v6 }
 0xb70   :  { %10575 = vmatmul.mubr.msk.f32.vlgmr.msra.gmra.mrb[12].mxu0 %vm163_vm1, %v1331_v3 }
 0xb71   :  { %11420 = vmatpush3.bf16.msra.mxu0 %v11417_v6 }
 0xb72   :  { %11422 = vmatprep.subr.bf16.mxu0 %v11421_v9 }
 0xb75   :  { %11424 = vmatpush3.bf16.msra.mxu0 %v11421_v9 }
 0xc43   :  { %v10576_v32 = vpop.f32.mrb[12].mxu0 }
 0xc44   :  { %v1402_v43 = vpop.f32.mrb[13].mxu0 }
 0xc45   :  { %v11966_v34 = vpack.i.bf16 %v10576_v32, %v1402_v43  ;;  %v9625_v32 = vld [vmem:[%s14639_s12] ss:$0 sm:$0xff] }
 0xc47   :  { %11967 = vrot.lane.b32.xlu1 %v11966_v34, %s12554_s22 }
 0xcb9   :  { %v11968_v44 = vpop.permute.xlu1 %11967 }
 0xcba   :  { %v11970_v45 = vunpack.i.h.bf16 %v11968_v44  ;;  %v11969_v50 = vunpack.i.l.bf16 %v11968_v44 }
 0xcbc   :  { %v1441_v46 = vsel %vm1440_vm3, %v1438_v47, %v11969_v50  ;;  %v1442_v51 = vsel %vm1440_vm3, %v1439_v49, %v11970_v45  ;;  %v9631_v49 = vld [vmem:[%s14629_s3 + $0x48] sm:$0xff] }
 0xcbd   :  { %10609 = vmatprep.mubr.f32.mxu1 %v1441_v46  ;;  %v9633_v46 = vld [vmem:[%s14629_s3 + $0x58] sm:$0xff] }
 0xcbe   :  { %10610 = vmatmul.mubr.f32.vlgmr.msra.gmra.mrb[18].mxu1 %v1442_v51  ;;  %v11425_v51 = vpack.c.bf16 %v9633_v46, %v9631_v49 }
 0xcc0   :  { %11426 = vmatprep.subr.bf16.mxu0 %v11425_v51 }
 0xd91   :  { %v10611_v58 = vpop.f32.mrb[18].mxu1 }
 0xd92   :  { %v1538_v52 = vadd.f32 %v10611_v58, %v9622_v57  ;;  %v1532_v53 = vpop.f32.mrb[19].mxu1  ;;  %v9632_v58 = vld [vmem:[%s14629_s3 + $0x50] sm:$0xff] }
 0xd93   :  { %v1533_v54 = vadd.f32 %v9622_v57, %v1532_v53  ;;  %v9630_v57 = vld [vmem:[%s14629_s3 + $0x40] sm:$0xff]  ;;  %v9635_v53 = vld [vmem:[%s14629_s3 + $0x68] sm:$0xff] }
 0xd94   :  { %v1546_v55 = vsel %vm163_vm1, %v1538_v52, 0.0 }
 0xd95   :  { %1547 = vadd.xlane.f32.xlu0 %v1546_v55  ;;  %v1543_v56 = vsel %vm163_vm1, %v1533_v54, 0.0 }
 0xd96   :  { %1544 = vadd.xlane.f32.xlu1 %v1543_v56  ;;  %v9634_v56 = vld [vmem:[%s14629_s3 + $0x60] sm:$0xff] }
 0xe22   :  { %v1548_v59 = vpop.xlane.xlu0 %1547 }
 0xe23   :  { %v1551_v60 = vmul.f32 0.03125, %v1548_v59  ;;  %v1545_v61 = vpop.xlane.xlu1 %1544  ;;  %v9636_v59 = vld [vmem:[%s14629_s3 + $0x70] sm:$0xff] }
 0xe24   :  { %v1550_v62 = vmul.f32 0.03125, %v1545_v61  ;;  %v9641_v61 = vld [vmem:[%s14630_s5 + $0x20] sm:$0xff] }
 0xe25   :  { %v1553_v48 = vsub.f32 %v1538_v52, %v1551_v60  ;;  %v11427_v52 = vpack.c.bf16 %v9632_v58, %v9630_v57  ;;  %v11431_v60 = vpack.c.bf16 %v9636_v59, %v9634_v56 }
 0xe26   :  { %v1552_v63 = vsub.f32 %v1533_v54, %v1550_v62  ;;  %v9637_v54 = vld [vmem:[%s14629_s3 + $0x78] sm:$0xff]  ;;  %v9642_v62 = vld [vmem:[%s14630_s5 + $0x28] sm:$0xff] }
 0xe27   :  { %v1555_v2 = vmul.f32 %v1553_v48, %v1553_v48  ;;  %v11429_v55 = vpack.c.bf16 %v9637_v54, %v9635_v53 }
 0xe28   :  { %v1554_v0 = vmul.f32 %v1552_v63, %v1552_v63 }
 0xe29   :  { %v1559_v3 = vsel %vm163_vm1, %v1555_v2, 0.0 }
 0xe2a   :  { %v1556_v1 = vsel %vm163_vm1, %v1554_v0, 0.0 }
 0xe2b   :  { %1557 = vadd.xlane.f32.xlu1 %v1556_v1 }
 0xe2f   :  { %1560 = vadd.xlane.f32.xlu1 %v1559_v3 }
 0xeb8   :  { %v1558_v10 = vpop.xlane.xlu1 %1557 }
 0xeb9   :  { %v1562_v11 = vmul.f32 0.03125, %v1558_v10  ;;  %v9629_v10 = vld [vmem:[%s14641_s14] ss:$0 sm:$0xff] }
 0xebb   :  { %v1564_v12 = vadd.f32 1e-05, %v1562_v11 }
 0xebc   :  { %v1561_v13 = vpop.xlane.xlu1 %1560 }
 0xebd   :  { %12185 = vrsqrt.f32 %v1564_v12  ;;  %v1563_v14 = vmul.f32 0.03125, %v1561_v13  ;;  %v9643_v13 = vld [vmem:[%s14630_s5 + $0x30] sm:$0xff] }
 0xebf   :  { %v1565_v15 = vadd.f32 1e-05, %v1563_v14  ;;  %v9644_v14 = vld [vmem:[%s14630_s5 + $0x38] sm:$0xff] }
 0xec1   :  { %12187 = vrsqrt.f32 %v1565_v15 }
 0xec7   :  { %v12186_v16 = vpop.eup %12185 }
 0xec8   :  { %v1568_v18 = vmul.f32 %v12186_v16, %v1552_v63 }
 0xeca   :  { %v1576_v21 = vmul.f32 %v9623_v17, %v1568_v18  ;;  %v11437_v18 = vpack.c.bf16 %v9644_v14, %v9643_v13 }
 0xecb   :  { %v12188_v22 = vpop.eup %12187 }
 0xecc   :  { %v1569_v23 = vmul.f32 %v12188_v22, %v1553_v48  ;;  %v1584_v24 = vadd.f32 %v9624_v19, %v1576_v21  ;;  %v11433_v48 = vpack.c.bf16 %v9642_v62, %v9641_v61  ;;  %v9638_v21 = vld [vmem:[%s14632_s4 + $0x2] sm:$0x3] }
 0xecd   :  { %v1745_v22 = vrot.slane %v9638_v21, %v12704_v31 }
 0xece   :  { %v1577_v25 = vmul.f32 %v9623_v17, %v1569_v23  ;;  %v12914_v27 = vadd.f32 %v1584_v24, %v12691_v26  ;;  %v1741_v24 = vrot.slane %v9638_v21, %v12709_v33 }
 0xed0   :  { %v1585_v29 = vadd.f32 %v9624_v19, %v1577_v25  ;;  %10620 = vmatprep.mubr.msk.f32.mxu0 %vm163_vm1, %v12914_v27 }
 0xed2   :  { %v12919_v30 = vadd.f32 %v1585_v29, %v12696_v28 }
 0xed4   :  { %10621 = vmatmul.mubr.msk.f32.vlgmr.msra.gmra.mrb[14].mxu0 %vm163_vm1, %v12919_v30 }
 0xed5   :  { %1818 = vmatprep.mubr.f32.mxu0 %v12553_v20  ;;  %11428 = vmatpush1.bf16.msra.mxu0 %v11427_v52 }
 0xed6   :  { %11430 = vmatprep.subr.bf16.mxu0 %v11429_v55 }
 0xed9   :  { %11432 = vmatpush1.bf16.msra.mxu0 %v11431_v60 }
 0xeda   :  { %11434 = vmatprep.subr.bf16.mxu0 %v11433_v48 }
 0xfa7   :  { %v10622_v43 = vpop.f32.mrb[14].mxu0 }
 0xfa8   :  { %v1677_v34 = vadd.f32 %v10622_v43, %v9625_v32  ;;  %v1671_v26 = vpop.f32.mrb[15].mxu0 }
 0xfa9   :  { %v1672_v38 = vadd.f32 %v9625_v32, %v1671_v26  ;;  %v9646_v26 = vld [vmem:[%s14633_s6 + $0x1] ss:$0 sm:$0xff] }
 0xfaa   :  { %v1685_v35 = vsel %vm163_vm1, %v1677_v34, 0.0 }
 0xfab   :  { %1686 = vadd.xlane.f32.xlu0 %v1685_v35  ;;  %v1682_v36 = vsel %vm163_vm1, %v1672_v38, 0.0 }
 0xfac   :  { %1683 = vadd.xlane.f32.xlu1 %v1682_v36 }
0x1038   :  { %v1687_v28 = vpop.xlane.xlu0 %1686 }
0x1039   :  { %v1689_v37 = vmul.f32 0.03125, %v1687_v28  ;;  %v1684_v39 = vpop.xlane.xlu1 %1683 }
0x103a   :  { %v1688_v40 = vmul.f32 0.03125, %v1684_v39 }
0x103b   :  { %v1691_v41 = vsub.f32 %v1677_v34, %v1689_v37 }
0x103c   :  { %v1690_v42 = vsub.f32 %v1672_v38, %v1688_v40 }
0x103d   :  { %v1693_v44 = vmul.f32 %v1691_v41, %v1691_v41 }
0x103e   :  { %v1692_v45 = vmul.f32 %v1690_v42, %v1690_v42 }
0x103f   :  { %v1697_v50 = vsel %vm163_vm1, %v1693_v44, 0.0 }
0x1040   :  { %1698 = vadd.xlane.f32.xlu0 %v1697_v50  ;;  %v1694_v47 = vsel %vm163_vm1, %v1692_v45, 0.0 }
0x1041   :  { %1695 = vadd.xlane.f32.xlu1 %v1694_v47 }
0x10cd   :  { %v1699_v63 = vpop.xlane.xlu0 %1698 }
0x10ce   :  { %v1701_v0 = vmul.f32 0.03125, %v1699_v63  ;;  %v1696_v1 = vpop.xlane.xlu1 %1695 }
0x10cf   :  { %v1700_v2 = vmul.f32 0.03125, %v1696_v1 }
0x10d0   :  { %v1703_v3 = vadd.f32 1e-05, %v1701_v0 }
0x10d1   :  { %v1702_v4 = vadd.f32 1e-05, %v1700_v2 }
0x10d2   :  { %12189 = vrsqrt.f32 %v1703_v3 }
0x10d3   :  { %12191 = vrsqrt.f32 %v1702_v4 }
0x10dc   :  { %v12190_v5 = vpop.eup %12189 }
0x10dd   :  { %v12192_v6 = vpop.eup %12191  ;;  %v1707_v8 = vmul.f32 %v12190_v5, %v1691_v41 }
0x10de   :  { %v1706_v9 = vmul.f32 %v12192_v6, %v1690_v42 }
0x10df   :  { %v1715_v12 = vmul.f32 %v9628_v7, %v1707_v8 }
0x10e0   :  { %v1714_v11 = vmul.f32 %v9628_v7, %v1706_v9 }
0x10e1   :  { %v1723_v17 = vadd.f32 %v9629_v10, %v1715_v12 }
0x10e2   :  { %v1722_v15 = vadd.f32 %v9629_v10, %v1714_v11 }
0x10e3   :  { %v12980_v19 = vadd.f32 %v1723_v17, %v12919_v30 }
0x10e4   :  { %v12974_v16 = vadd.f32 %v1722_v15, %v12914_v27 }
0x10e6   :  { %9639 = vmatmul.mubr.msk.f32.vlgmr.msra.gmra.mrb[16].mxu0 %vm163_vm1, %v12974_v16 }
0x10e7   :  { %11436 = vmatpush3.bf16.msra.mxu0 %v11433_v48  ;;  %1824 = vmatprep.mubr.f32.mxu0 %v12553_v20 }
0x10e8   :  { %11438 = vmatprep.subr.bf16.mxu0 %v11437_v18 }
0x10ea   :  { %9640 = vmatmul.mubr.msk.f32.gmra.mrb[18].mxu0 %vm163_vm1, %v12980_v19 }
0x10eb   :  { %11440 = vmatpush3.bf16.msra.mxu0 %v11437_v18  ;;  %10631 = vmatprep.mubr.msk.f32.mxu0 %vm163_vm1, %v12974_v16 }
0x10ee   :  { %10632 = vmatmul.mubr.msk.f32.vlgmr.msra.gmra.mrb[20].mxu0 %vm163_vm1, %v12980_v19 }
0x11b9   :  { %v1820_v23 = vpop.f32.mrb[16].mxu0 }
0x11ba   :  { %v1822_v25 = vpop.f32.mrb[17].mxu0  ;;  %v1821_v30 = vadd.f32 %v1820_v23, %v1741_v24 }
0x11bb   :  { %v12993_v27 = vadd.f32 %v1822_v25, %v1745_v22 }
0x11bd   :  { %v1826_v29 = vpop.f32.mrb[18].mxu0  ;;  %2179 = vrot.lane.b32.xlu1 %v12993_v27, %s12554_s22 }
0x11be   :  { %v1827_v32 = vadd.f32 %v1826_v29, %v1741_v24  ;;  %v1828_v43 = vpop.f32.mrb[19].mxu0 }
0x11bf   :  { %v12997_v34 = vadd.f32 %v1828_v43, %v1745_v22 }
0x11c0   :  { %v13002_v38 = vpack.i.bf16 %v1827_v32, %v1821_v30  ;;  %v11441_v35 = vpack.c.bf16 %v1827_v32, %v1821_v30 }
0x11c1   :  { %v10633_v36 = vpop.f32.mrb[20].mxu0  ;;  %2181 = vrot.lane.b32.xlu0 %v12997_v34, %s12554_s22 }
0x11c2   :  { %v13006_v28 = vadd.f32 %v10633_v36, %v9646_v26  ;;  %v1910_v37 = vpop.f32.mrb[21].mxu0  ;;  %11972 = vrot.lane.b32.xlu1 %v13002_v38, %s12554_s22  ;;  %11442 = vmatprep.subr.bf16.mxu0 %v11441_v35 }
0x11c3   :  { %11444 = vmatpush3.bf16.msra.mxu0 %v11441_v35  ;;  %v13015_v46 = vadd.f32 %v9646_v26, %v1910_v37 }
0x11eb   :  { %1919 = vxpose.xlu1.b32.start [1/2] (short) (narrow) %v12993_v27, 32 }
0x11ef   :  { %1920 = vxpose.xlu1.b32.end [2/2] (short) (narrow) %v12997_v34, 32 }
0x122f   :  { %v2180_v39 = vpop.permute.xlu1 %2179 }
0x1230   :  { %2185 = vxpose.xlu0.b32.start [1/2] (short) (narrow) %v2180_v39, 32 }
0x1233   :  { %v2182_v40 = vpop.permute.xlu0 %2181 }
0x1234   :  { %2186 = vxpose.xlu0.b32.end [2/2] (short) (narrow) %v2182_v40, 32  ;;  %v11973_v41 = vpop.permute.xlu1 %11972 }
0x1235   :  { %v11975_v42 = vunpack.i.h.bf16 %v11973_v41  ;;  %v11974_v44 = vunpack.i.l.bf16 %v11973_v41 }
0x1237   :  { %v11453_v45 = vpack.c.bf16 %v11975_v42, %v11974_v44 }
0x1239   :  { %11454 = vmatprep.subr.bf16.mxu1 %v11453_v45 }
0x123a   :  { %11456 = vmatpush3.bf16.msra.mxu1 %v11453_v45 }
0x126b   :  { %v1935_v50 = vpop.trf.xlu1 }
0x126c   :  { %10638 = vmatprep.mubr.msk.f32.mxu0 %vm61_vm0, %v1935_v50 }
0x126f   :  { %v1936_v47 = vpop.trf.xlu1 }
0x1270   :  { %10639 = vmatmul.mubr.msk.f32.vlgmr.msra.gmra.mrb[22].mxu0 %vm61_vm0, %v1936_v47 }
0x1273   :  { %v1937_v49 = vpop.trf.xlu1 }
0x1274   :  { %10641 = vmatprep.mubr.msk.f32.mxu0 %vm61_vm0, %v1937_v49 }
0x1277   :  { %v1938_v51 = vpop.trf.xlu1 }
0x1278   :  { %10642 = vmatmul.mubr.msk.f32.gmra.mrb[24].mxu0 %vm61_vm0, %v1938_v51 }
0x1279   :  { %10652 = vmatprep.mubr.msk.f32.mxu0 %vm163_vm1, %v13015_v46 }
0x12b0   :  { %v2201_v57 = vpop.trf.xlu0 }
0x12b1   :  { %10659 = vmatprep.mubr.msk.f32.mxu1 %vm61_vm0, %v2201_v57 }
0x12b4   :  { %v2202_v58 = vpop.trf.xlu0 }
0x12b5   :  { %10660 = vmatmul.mubr.msk.f32.vlgmr.msra.gmra.mrb[20].mxu1 %vm61_vm0, %v2202_v58 }
0x12b8   :  { %v2203_v52 = vpop.trf.xlu0 }
0x12b9   :  { %10662 = vmatprep.mubr.msk.f32.mxu1 %vm61_vm0, %v2203_v52 }
0x12bc   :  { %v2204_v53 = vpop.trf.xlu0 }
0x12bd   :  { %10663 = vmatmul.mubr.msk.f32.gmra.mrb[22].mxu1 %vm61_vm0, %v2204_v53 }
0x1343   :  { %v10640_v54 = vpop.f32.mrb[22].mxu0 }
0x1344   :  { %v2049_v55 = vmul.f32 0.17677669, %v10640_v54  ;;  %v2029_v56 = vpop.f32.mrb[23].mxu0 }
0x1345   :  { %v2048_v59 = vmul.f32 0.17677669, %v2029_v56 }
0x1346   :  { %v2055_v60 = vsel %vm163_vm1, %v2049_v55, -inf }
0x1347   :  { %2056 = vmax.xlane.f32.xlu1 %v2055_v60  ;;  %v2052_v61 = vsel %vm163_vm1, %v2048_v59, -inf }
0x1348   :  { %2053 = vmax.xlane.f32.xlu0 %v2052_v61 }
0x134b   :  { %v10643_v62 = vpop.f32.mrb[24].mxu0 }
0x134c   :  { %v2051_v48 = vmul.f32 0.17677669, %v10643_v62  ;;  %v2039_v63 = vpop.f32.mrb[25].mxu0 }
0x134d   :  { %v2050_v0 = vmul.f32 0.17677669, %v2039_v63 }
0x134e   :  { %v2061_v1 = vsel %vm163_vm1, %v2051_v48, -inf }
0x134f   :  { %2062 = vmax.xlane.f32.xlu1 %v2061_v1  ;;  %v2058_v2 = vsel %vm163_vm1, %v2050_v0, -inf }
0x1350   :  { %2059 = vmax.xlane.f32.xlu0 %v2058_v2 }
0x1388   :  { %v10661_v3 = vpop.f32.mrb[20].mxu1 }
0x1389   :  { %v2323_v4 = vmul.f32 0.17677669, %v10661_v3  ;;  %v2303_v5 = vpop.f32.mrb[21].mxu1 }
0x138a   :  { %v2322_v6 = vmul.f32 0.17677669, %v2303_v5 }
0x138b   :  { %v2329_v7 = vsel %vm163_vm1, %v2323_v4, -inf }
0x138c   :  { %2330 = vmax.xlane.f32.xlu1 %v2329_v7  ;;  %v2326_v8 = vsel %vm163_vm1, %v2322_v6, -inf }
0x138d   :  { %2327 = vmax.xlane.f32.xlu0 %v2326_v8 }
0x1390   :  { %v10664_v9 = vpop.f32.mrb[22].mxu1 }
0x1391   :  { %v2325_v10 = vmul.f32 0.17677669, %v10664_v9  ;;  %v2313_v11 = vpop.f32.mrb[23].mxu1 }
0x1392   :  { %v2324_v12 = vmul.f32 0.17677669, %v2313_v11 }
0x1393   :  { %v2335_v13 = vsel %vm163_vm1, %v2325_v10, -inf }
0x1394   :  { %2336 = vmax.xlane.f32.xlu1 %v2335_v13  ;;  %v2332_v14 = vsel %vm163_vm1, %v2324_v12, -inf }
0x1395   :  { %2333 = vmax.xlane.f32.xlu0 %v2332_v14 }
0x13a5   :  { %2725 = vrot.lane.b32.xlu1 %v12993_v27, %s12556_s24 }
0x13a9   :  { %2727 = vrot.lane.b32.xlu1 %v12997_v34, %s12556_s24 }
0x13ab   :  { %2453 = vrot.lane.b32.xlu0 %v12993_v27, %s12555_s23 }
0x13af   :  { %2455 = vrot.lane.b32.xlu0 %v12997_v34, %s12555_s23 }
0x13b3   :  { %11977 = vrot.lane.b32.xlu0 %v13002_v38, %s12555_s23 }
0x13b7   :  { %11982 = vrot.lane.b32.xlu0 %v13002_v38, %s12556_s24 }
0x13d4   :  { %v2057_v15 = vpop.xlane.xlu1 %2056 }
0x13d5   :  { %v2065_v17 = vsub.f32 %v2049_v55, %v2057_v15  ;;  %v2054_v18 = vpop.xlane.xlu0 %2053 }
0x13d6   :  { %v2064_v21 = vsub.f32 %v2048_v59, %v2054_v18 }
0x13d7   :  { %v2070_v22 = vmul.f32 1.442695, %v2065_v17 }
0x13d8   :  { %v2068_v23 = vmul.f32 1.442695, %v2064_v21 }
0x13d9   :  { %12193 = vpow2.f32 %v2070_v22 }
0x13da   :  { %12195 = vpow2.f32 %v2068_v23 }
0x13dc   :  { %v2063_v24 = vpop.xlane.xlu1 %2062 }
0x13dd   :  { %v2067_v25 = vsub.f32 %v2051_v48, %v2063_v24  ;;  %v2060_v27 = vpop.xlane.xlu0 %2059 }
0x13de   :  { %v2066_v29 = vsub.f32 %v2050_v0, %v2060_v27 }
0x13df   :  { %v2074_v30 = vmul.f32 1.442695, %v2067_v25 }
0x13e0   :  { %v2072_v32 = vmul.f32 1.442695, %v2066_v29 }
0x13e1   :  { %12197 = vpow2.f32 %v2074_v30 }
0x13e2   :  { %12199 = vpow2.f32 %v2072_v32 }
0x13e3   :  { %v12194_v43 = vpop.eup %12193 }
0x13e4   :  { %v12196_v34 = vpop.eup %12195  ;;  %v2079_v26 = vsel %vm163_vm1, %v12194_v43, 0.0 }
0x13e5   :  { %2080 = vadd.xlane.f32.xlu1 %v2079_v26  ;;  %v2076_v38 = vsel %vm163_vm1, %v12196_v34, 0.0 }
0x13e6   :  { %2077 = vadd.xlane.f32.xlu0 %v2076_v38 }
0x13eb   :  { %v13046_v35 = vpop.eup %12197 }
0x13ec   :  { %v13048_v36 = vpop.eup %12199  ;;  %v2085_v37 = vsel %vm163_vm1, %v13046_v35, 0.0 }
0x13ed   :  { %2086 = vadd.xlane.f32.xlu0 %v2085_v37  ;;  %v2082_v39 = vsel %vm163_vm1, %v13048_v36, 0.0 }
0x13ee   :  { %2083 = vadd.xlane.f32.xlu1 %v2082_v39 }
0x1419   :  { %v2331_v40 = vpop.xlane.xlu1 %2330 }
0x141a   :  { %v2339_v41 = vsub.f32 %v2323_v4, %v2331_v40  ;;  %v2328_v42 = vpop.xlane.xlu0 %2327 }
0x141b   :  { %v2338_v44 = vsub.f32 %v2322_v6, %v2328_v42 }
0x141c   :  { %v2344_v45 = vmul.f32 1.442695, %v2339_v41 }
0x141d   :  { %v2342_v50 = vmul.f32 1.442695, %v2338_v44 }
0x141e   :  { %12201 = vpow2.f32 %v2344_v45 }
0x141f   :  { %12203 = vpow2.f32 %v2342_v50 }
0x1421   :  { %v2337_v47 = vpop.xlane.xlu1 %2336 }
0x1422   :  { %v2341_v49 = vsub.f32 %v2325_v10, %v2337_v47  ;;  %v2334_v51 = vpop.xlane.xlu0 %2333 }
0x1423   :  { %v2340_v57 = vsub.f32 %v2324_v12, %v2334_v51 }
0x1424   :  { %v2348_v58 = vmul.f32 1.442695, %v2341_v49 }
0x1425   :  { %v2346_v52 = vmul.f32 1.442695, %v2340_v57  ;;  %v2726_v48 = vpop.permute.xlu1 %2725 }
0x1426   :  { %12205 = vpow2.f32 %v2348_v58  ;;  %v2454_v63 = vpop.permute.xlu0 %2453 }
0x1427   :  { %12207 = vpow2.f32 %v2346_v52 }
0x1428   :  { %v12202_v53 = vpop.eup %12201 }
0x1429   :  { %v12204_v54 = vpop.eup %12203  ;;  %v2353_v55 = vsel %vm163_vm1, %v12202_v53, 0.0  ;;  %v2728_v0 = vpop.permute.xlu1 %2727 }
0x142a   :  { %2354 = vadd.xlane.f32.xlu1 %v2353_v55  ;;  %v2350_v56 = vsel %vm163_vm1, %v12204_v54, 0.0  ;;  %v2456_v1 = vpop.permute.xlu0 %2455 }
0x142b   :  { %2351 = vadd.xlane.f32.xlu0 %v2350_v56 }
0x142e   :  { %v11978_v2 = vpop.permute.xlu0 %11977 }
0x142f   :  { %v11980_v17 = vunpack.i.h.bf16 %v11978_v2  ;;  %v11979_v18 = vunpack.i.l.bf16 %v11978_v2 }
0x1430   :  { %v13056_v59 = vpop.eup %12205 }
0x1431   :  { %v2359_v60 = vsel %vm163_vm1, %v13056_v59, 0.0  ;;  %v13060_v61 = vpop.eup %12207  ;;  %v11465_v23 = vpack.c.bf16 %v11980_v17, %v11979_v18 }
0x1432   :  { %2360 = vadd.xlane.f32.xlu1 %v2359_v60  ;;  %v2356_v62 = vsel %vm163_vm1, %v13060_v61, 0.0  ;;  %v11983_v3 = vpop.permute.xlu0 %11982 }
0x1433   :  { %v11985_v37 = vunpack.i.h.bf16 %v11983_v3  ;;  %v11984_v39 = vunpack.i.l.bf16 %v11983_v3 }
0x1435   :  { %v11477_v44 = vpack.c.bf16 %v11985_v37, %v11984_v39 }
0x1436   :  { %2357 = vadd.xlane.f32.xlu1 %v2356_v62 }
0x1441   :  { %2372 = vrot.lane.b32.xlu0 %v13006_v28, %s12554_s22 }
0x1447   :  { %2370 = vrot.lane.b32.xlu1 %v13015_v46, %s12554_s22 }
0x145f   :  { %2731 = vxpose.xlu0.b32.start [1/2] (short) (narrow) %v2726_v48, 32 }
0x1463   :  { %2732 = vxpose.xlu0.b32.end [2/2] (short) (narrow) %v2728_v0, 32 }
0x1470   :  { %2459 = vxpose.xlu1.b32.start [1/2] (short) (narrow) %v2454_v63, 32 }
0x1472   :  { %v2081_v4 = vpop.xlane.xlu1 %2080 }
0x1473   :  { %12209 = vrcp.f32 %v2081_v4  ;;  %v2078_v5 = vpop.xlane.xlu0 %2077 }
0x1474   :  { %12211 = vrcp.f32 %v2078_v5  ;;  %2460 = vxpose.xlu1.b32.end [2/2] (short) (narrow) %v2456_v1, 32 }
0x147a   :  { %v2087_v6 = vpop.xlane.xlu0 %2086 }
0x147b   :  { %12213 = vrcp.f32 %v2087_v6  ;;  %v2084_v7 = vpop.xlane.xlu1 %2083 }
0x147c   :  { %12215 = vrcp.f32 %v2084_v7 }
0x147d   :  { %v12210_v8 = vpop.eup %12209 }
0x147e   :  { %v12212_v9 = vpop.eup %12211  ;;  %v2091_v10 = vmul.f32 %v12210_v8, %v12194_v43 }
0x147f   :  { %v2089_v11 = vmul.f32 %v12212_v9, %v12196_v34 }
0x1481   :  { %v11445_v12 = vpack.c.bf16 %v2091_v10, %v2089_v11 }
0x1483   :  { %11446 = vmatprep.subr.bf16.mxu0 %v11445_v12 }
0x1484   :  { %11448 = vmatpush3.bf16.msra.mxu0 %v11445_v12 }
0x1485   :  { %v12214_v13 = vpop.eup %12213 }
0x1486   :  { %v12216_v14 = vpop.eup %12215  ;;  %v2095_v15 = vmul.f32 %v12214_v13, %v13046_v35 }
0x1487   :  { %v2093_v21 = vmul.f32 %v12216_v14, %v13048_v36 }
0x1489   :  { %v11449_v22 = vpack.c.bf16 %v2095_v15, %v2093_v21 }
0x148b   :  { %11450 = vmatprep.subr.bf16.mxu0 %v11449_v22 }
0x148c   :  { %11452 = vmatpush3.bf16.msra.mxu0 %v11449_v22 }
0x148d   :  { %11466 = vmatprep.subr.bf16.mxu0 %v11465_v23 }
0x148f   :  { %10653 = vmatmul.mubr.msk.f32.vlgmr.msra.gmra.mrb[26].mxu0 %vm163_vm1, %v13006_v28 }
0x1490   :  { %11468 = vmatpush3.bf16.msra.mxu0 %v11465_v23 }
0x14b7   :  { %v2355_v24 = vpop.xlane.xlu1 %2354 }
0x14b8   :  { %12217 = vrcp.f32 %v2355_v24  ;;  %v2352_v25 = vpop.xlane.xlu0 %2351 }
0x14b9   :  { %12219 = vrcp.f32 %v2352_v25 }
0x14bc   :  { %v2373_v45 = vpop.permute.xlu0 %2372 }
0x14bf   :  { %v2361_v27 = vpop.xlane.xlu1 %2360 }
0x14c0   :  { %12221 = vrcp.f32 %v2361_v27 }
0x14c2   :  { %v12218_v29 = vpop.eup %12217 }
0x14c3   :  { %v12220_v30 = vpop.eup %12219  ;;  %v2358_v32 = vpop.xlane.xlu1 %2357  ;;  %v2365_v43 = vmul.f32 %v12218_v29, %v12202_v53 }
0x14c4   :  { %12223 = vrcp.f32 %v2358_v32  ;;  %v2363_v34 = vmul.f32 %v12220_v30, %v12204_v54 }
0x14c6   :  { %v11457_v26 = vpack.c.bf16 %v2365_v43, %v2363_v34 }
0x14c7   :  { %v2371_v38 = vpop.permute.xlu1 %2370 }
0x14c8   :  { %11458 = vmatprep.subr.bf16.mxu1 %v11457_v26  ;;  %10673 = vmatprep.mubr.msk.f32.mxu1 %vm163_vm1, %v2371_v38 }
0x14c9   :  { %11460 = vmatpush3.bf16.msra.mxu1 %v11457_v26 }
0x14ca   :  { %v12222_v35 = vpop.eup %12221 }
0x14cb   :  { %v2369_v41 = vmul.f32 %v12222_v35, %v13056_v59 }
0x14ce   :  { %v12224_v36 = vpop.eup %12223 }
0x14cf   :  { %v2367_v40 = vmul.f32 %v12224_v36, %v13060_v61 }
0x14d1   :  { %v11461_v42 = vpack.c.bf16 %v2369_v41, %v2367_v40 }
0x14d3   :  { %11462 = vmatprep.subr.bf16.mxu1 %v11461_v42 }
0x14d4   :  { %11464 = vmatpush3.bf16.msra.mxu1 %v11461_v42 }
0x14d5   :  { %11478 = vmatprep.subr.bf16.mxu1 %v11477_v44 }
0x14d7   :  { %10674 = vmatmul.mubr.msk.f32.vlgmr.msra.gmra.mrb[24].mxu1 %vm163_vm1, %v2373_v45 }
0x14d8   :  { %11480 = vmatpush3.bf16.msra.mxu1 %v11477_v44 }
0x14df   :  { %v2747_v50 = vpop.trf.xlu0 }
0x14e0   :  { %10701 = vmatprep.mubr.msk.f32.mxu1 %vm61_vm0, %v2747_v50 }
0x14e3   :  { %v2748_v47 = vpop.trf.xlu0 }
0x14e4   :  { %10702 = vmatmul.mubr.msk.f32.vlgmr.msra.gmra.mrb[26].mxu1 %vm61_vm0, %v2748_v47 }
0x14e7   :  { %v2749_v49 = vpop.trf.xlu0 }
0x14e8   :  { %10704 = vmatprep.mubr.msk.f32.mxu1 %vm61_vm0, %v2749_v49 }
0x14eb   :  { %v2750_v51 = vpop.trf.xlu0 }
0x14ec   :  { %10705 = vmatmul.mubr.msk.f32.gmra.mrb[28].mxu1 %vm61_vm0, %v2750_v51 }
0x14f0   :  { %v2475_v57 = vpop.trf.xlu1 }
0x14f1   :  { %10680 = vmatprep.mubr.msk.f32.mxu0 %vm61_vm0, %v2475_v57 }
0x14f4   :  { %v2476_v58 = vpop.trf.xlu1 }
0x14f5   :  { %10681 = vmatmul.mubr.msk.f32.vlgmr.msra.gmra.mrb[28].mxu0 %vm61_vm0, %v2476_v58 }
0x14f8   :  { %v2477_v52 = vpop.trf.xlu1 }
0x14f9   :  { %10683 = vmatprep.mubr.msk.f32.mxu0 %vm61_vm0, %v2477_v52 }
0x14fc   :  { %v2478_v53 = vpop.trf.xlu1 }
0x14fd   :  { %10684 = vmatmul.mubr.msk.f32.gmra.mrb[30].mxu0 %vm61_vm0, %v2478_v53 }
0x1562   :  { %v13084_v54 = vpop.f32.mrb[26].mxu0 }
0x1563   :  { %v13086_v55 = vpop.f32.mrb[27].mxu0 }
0x15aa   :  { %v13088_v56 = vpop.f32.mrb[24].mxu1 }
0x15ab   :  { %v13090_v59 = vpop.f32.mrb[25].mxu1 }
0x15ac   :  { %v11986_v60 = vpack.i.bf16 %v13088_v56, %v13090_v59 }
0x15b7   :  { %v10703_v61 = vpop.f32.mrb[26].mxu1 }
0x15b8   :  { %v2847_v62 = vpop.f32.mrb[27].mxu1  ;;  %v2867_v10 = vmul.f32 0.17677669, %v10703_v61 }
0x15b9   :  { %v2866_v12 = vmul.f32 0.17677669, %v2847_v62 }
0x15ba   :  { %v2873_v17 = vsel %vm163_vm1, %v2867_v10, -inf }
0x15bb   :  { %v2870_v18 = vsel %vm163_vm1, %v2866_v12, -inf }
0x15bf   :  { %v10706_v48 = vpop.f32.mrb[28].mxu1 }
0x15c0   :  { %v2857_v63 = vpop.f32.mrb[29].mxu1  ;;  %v2869_v14 = vmul.f32 0.17677669, %v10706_v48 }
0x15c1   :  { %v2868_v15 = vmul.f32 0.17677669, %v2857_v63 }
0x15c2   :  { %v2879_v21 = vsel %vm163_vm1, %v2869_v14, -inf }
0x15c3   :  { %v2876_v22 = vsel %vm163_vm1, %v2868_v15, -inf }
0x15c8   :  { %v10682_v0 = vpop.f32.mrb[28].mxu0 }
0x15c9   :  { %v2595_v1 = vmul.f32 0.17677669, %v10682_v0  ;;  %v2575_v2 = vpop.f32.mrb[29].mxu0 }
0x15ca   :  { %v2594_v3 = vmul.f32 0.17677669, %v2575_v2 }
0x15cb   :  { %v2601_v4 = vsel %vm163_vm1, %v2595_v1, -inf }
0x15cc   :  { %2602 = vmax.xlane.f32.xlu1 %v2601_v4  ;;  %v2598_v5 = vsel %vm163_vm1, %v2594_v3, -inf }
0x15cd   :  { %2599 = vmax.xlane.f32.xlu0 %v2598_v5 }
0x15d0   :  { %v10685_v6 = vpop.f32.mrb[30].mxu0 }
0x15d1   :  { %v2597_v7 = vmul.f32 0.17677669, %v10685_v6  ;;  %v2585_v8 = vpop.f32.mrb[31].mxu0 }
0x15d2   :  { %v2596_v9 = vmul.f32 0.17677669, %v2585_v8 }
0x15d3   :  { %v2607_v11 = vsel %vm163_vm1, %v2597_v7, -inf }
0x15d4   :  { %2608 = vmax.xlane.f32.xlu1 %v2607_v11  ;;  %v2604_v13 = vsel %vm163_vm1, %v2596_v9, -inf }
0x15d5   :  { %2605 = vmax.xlane.f32.xlu0 %v2604_v13 }
0x15d8   :  { %2874 = vmax.xlane.f32.xlu1 %v2873_v17 }
0x15d9   :  { %2871 = vmax.xlane.f32.xlu0 %v2870_v18 }
0x15dc   :  { %2880 = vmax.xlane.f32.xlu1 %v2879_v21 }
0x15dd   :  { %2877 = vmax.xlane.f32.xlu0 %v2876_v22 }
0x1659   :  { %v2603_v23 = vpop.xlane.xlu1 %2602 }
0x165a   :  { %v2611_v24 = vsub.f32 %v2595_v1, %v2603_v23  ;;  %v2600_v25 = vpop.xlane.xlu0 %2599 }
0x165b   :  { %v2610_v27 = vsub.f32 %v2594_v3, %v2600_v25 }
0x165c   :  { %v2616_v29 = vmul.f32 1.442695, %v2611_v24 }
0x165d   :  { %v2614_v30 = vmul.f32 1.442695, %v2610_v27 }
0x165e   :  { %12225 = vpow2.f32 %v2616_v29 }
0x165f   :  { %12227 = vpow2.f32 %v2614_v30 }
0x1661   :  { %v2609_v32 = vpop.xlane.xlu1 %2608 }
0x1662   :  { %v2613_v43 = vsub.f32 %v2597_v7, %v2609_v32  ;;  %v2606_v34 = vpop.xlane.xlu0 %2605 }
0x1663   :  { %v2612_v26 = vsub.f32 %v2596_v9, %v2606_v34 }
0x1664   :  { %v2620_v38 = vmul.f32 1.442695, %v2613_v43 }
0x1665   :  { %v2618_v35 = vmul.f32 1.442695, %v2612_v26  ;;  %v2875_v36 = vpop.xlane.xlu1 %2874 }
0x1666   :  { %12229 = vpow2.f32 %v2620_v38  ;;  %v2883_v37 = vsub.f32 %v2867_v10, %v2875_v36  ;;  %v2872_v39 = vpop.xlane.xlu0 %2871 }
0x1667   :  { %12231 = vpow2.f32 %v2618_v35  ;;  %v2882_v40 = vsub.f32 %v2866_v12, %v2872_v39 }
0x1668   :  { %v12226_v41 = vpop.eup %12225  ;;  %v2888_v42 = vmul.f32 1.442695, %v2883_v37 }
0x1669   :  { %v12228_v44 = vpop.eup %12227  ;;  %v2886_v45 = vmul.f32 1.442695, %v2882_v40  ;;  %v2881_v50 = vpop.xlane.xlu1 %2880  ;;  %v2625_v47 = vsel %vm163_vm1, %v12226_v41, 0.0  ;;  %v9673_v40 = vld [vmem:[%s14634_s7 + $0x80] sm:$0xff] }
0x166a   :  { %12233 = vpow2.f32 %v2888_v42  ;;  %v2885_v49 = vsub.f32 %v2869_v14, %v2881_v50  ;;  %2626 = vadd.xlane.f32.xlu1 %v2625_v47  ;;  %v2878_v51 = vpop.xlane.xlu0 %2877  ;;  %v2622_v57 = vsel %vm163_vm1, %v12228_v44, 0.0  ;;  %v9675_v42 = vld [vmem:[%s14634_s7 + $0x90] sm:$0xff]  ;;  %v9677_v47 = vld [vmem:[%s14634_s7 + $0xa0] sm:$0xff] }
0x166b   :  { %12235 = vpow2.f32 %v2886_v45  ;;  %v2884_v58 = vsub.f32 %v2868_v15, %v2878_v51  ;;  %2623 = vadd.xlane.f32.xlu0 %v2622_v57  ;;  %v9676_v45 = vld [vmem:[%s14634_s7 + $0x98] sm:$0xff]  ;;  %v9679_v57 = vld [vmem:[%s14634_s7 + $0xb0] sm:$0xff] }
0x166c   :  { %v2892_v52 = vmul.f32 1.442695, %v2885_v49  ;;  %v11493_v50 = vpack.c.bf16 %v9676_v45, %v9675_v42  ;;  %v9678_v49 = vld [vmem:[%s14634_s7 + $0xa8] sm:$0xff] }
0x166d   :  { %v2890_v53 = vmul.f32 1.442695, %v2884_v58  ;;  %v11497_v51 = vpack.c.bf16 %v9678_v49, %v9677_v47  ;;  %v9680_v58 = vld [vmem:[%s14634_s7 + $0xb8] sm:$0xff]  ;;  %v9696_v45 = vld [vmem:[%s14636_s11 + $0x28] sm:$0xff]  ;;  %v9697_v47 = vld [vmem:[%s14636_s11 + $0x30] sm:$0xff] }
0x166e   :  { %12237 = vpow2.f32 %v2892_v52  ;;  %v11501_v52 = vpack.c.bf16 %v9680_v58, %v9679_v57  ;;  %v9698_v49 = vld [vmem:[%s14636_s11 + $0x38] sm:$0xff] }
0x166f   :  { %12239 = vpow2.f32 %v2890_v53  ;;  %v9681_v53 = vld [vmem:[%s14634_s7 + $0xc0] sm:$0xff] }
0x1670   :  { %v12230_v61 = vpop.eup %12229 }
0x1671   :  { %v12232_v62 = vpop.eup %12231  ;;  %v2631_v48 = vsel %vm163_vm1, %v12230_v61, 0.0 }
0x1672   :  { %2632 = vadd.xlane.f32.xlu1 %v2631_v48  ;;  %v2628_v63 = vsel %vm163_vm1, %v12232_v62, 0.0  ;;  %v9683_v48 = vld [vmem:[%s14634_s7 + $0xd0] sm:$0xff] }
0x1673   :  { %2629 = vadd.xlane.f32.xlu0 %v2628_v63  ;;  %v9684_v63 = vld [vmem:[%s14634_s7 + $0xd8] sm:$0xff] }
0x1674   :  { %v12234_v0 = vpop.eup %12233 }
0x1675   :  { %v12236_v1 = vpop.eup %12235  ;;  %v2897_v2 = vsel %vm163_vm1, %v12234_v0, 0.0 }
0x1676   :  { %2898 = vadd.xlane.f32.xlu1 %v2897_v2  ;;  %v2894_v3 = vsel %vm163_vm1, %v12236_v1, 0.0  ;;  %v9686_v2 = vld [vmem:[%s14634_s7 + $0xe8] sm:$0xff] }
0x1677   :  { %2895 = vadd.xlane.f32.xlu0 %v2894_v3 }
0x1678   :  { %v12238_v4 = vpop.eup %12237 }
0x1679   :  { %v12240_v5 = vpop.eup %12239  ;;  %v2903_v6 = vsel %vm163_vm1, %v12238_v4, 0.0 }
0x167a   :  { %2904 = vadd.xlane.f32.xlu1 %v2903_v6  ;;  %v2900_v7 = vsel %vm163_vm1, %v12240_v5, 0.0 }
0x167b   :  { %2901 = vadd.xlane.f32.xlu0 %v2900_v7 }
0x168b   :  { %2644 = vrot.lane.b32.xlu1 %v13006_v28, %s12555_s23 }
0x168f   :  { %2914 = vrot.lane.b32.xlu1 %v13015_v46, %s12556_s24 }
0x1691   :  { %2642 = vrot.lane.b32.xlu0 %v13015_v46, %s12555_s23 }
0x1693   :  { %11987 = vrot.lane.b32.xlu1 %v11986_v60, %s12556_s24 }
0x1695   :  { %2916 = vrot.lane.b32.xlu0 %v13006_v28, %s12556_s24 }
0x16f7   :  { %v2627_v8 = vpop.xlane.xlu1 %2626 }
0x16f8   :  { %12241 = vrcp.f32 %v2627_v8  ;;  %v2624_v9 = vpop.xlane.xlu0 %2623 }
0x16f9   :  { %12243 = vrcp.f32 %v2624_v9 }
0x16ff   :  { %v2633_v10 = vpop.xlane.xlu1 %2632 }
0x1700   :  { %12245 = vrcp.f32 %v2633_v10  ;;  %v2630_v11 = vpop.xlane.xlu0 %2629 }
0x1701   :  { %12247 = vrcp.f32 %v2630_v11 }
0x1702   :  { %v12242_v12 = vpop.eup %12241 }
0x1703   :  { %v12244_v13 = vpop.eup %12243  ;;  %v2899_v14 = vpop.xlane.xlu1 %2898  ;;  %v2637_v46 = vmul.f32 %v12242_v12, %v12226_v41  ;;  %v9674_v41 = vld [vmem:[%s14634_s7 + $0x88] sm:$0xff] }
0x1704   :  { %12249 = vrcp.f32 %v2899_v14  ;;  %v2896_v15 = vpop.xlane.xlu0 %2895  ;;  %v2635_v17 = vmul.f32 %v12244_v13, %v12228_v44  ;;  %v11489_v44 = vpack.c.bf16 %v9674_v41, %v9673_v40 }
0x1705   :  { %12251 = vrcp.f32 %v2896_v15 }
0x1706   :  { %v11469_v56 = vpack.c.bf16 %v2637_v46, %v2635_v17 }
0x1707   :  { %v2905_v59 = vpop.xlane.xlu1 %2904 }
0x1708   :  { %12253 = vrcp.f32 %v2905_v59  ;;  %11470 = vmatprep.subr.bf16.mxu0 %v11469_v56  ;;  %v2902_v28 = vpop.xlane.xlu0 %2901 }
0x1709   :  { %12255 = vrcp.f32 %v2902_v28  ;;  %11472 = vmatpush3.bf16.msra.mxu0 %v11469_v56 }
0x170a   :  { %v12246_v60 = vpop.eup %12245 }
0x170b   :  { %v12248_v18 = vpop.eup %12247  ;;  %v2645_v21 = vpop.permute.xlu1 %2644  ;;  %v2641_v22 = vmul.f32 %v12246_v60, %v12230_v61  ;;  %v9682_v61 = vld [vmem:[%s14634_s7 + $0xc8] sm:$0xff] }
0x170c   :  { %v2643_v23 = vpop.permute.xlu0 %2642  ;;  %v2639_v24 = vmul.f32 %v12248_v18, %v12232_v62  ;;  %v11505_v62 = vpack.c.bf16 %v9682_v61, %v9681_v53 }
0x170d   :  { %10694 = vmatprep.mubr.msk.f32.mxu0 %vm163_vm1, %v2643_v23 }
0x170e   :  { %v12250_v25 = vpop.eup %12249  ;;  %v11473_v27 = vpack.c.bf16 %v2641_v22, %v2639_v24 }
0x170f   :  { %v12252_v29 = vpop.eup %12251  ;;  %v2915_v30 = vpop.permute.xlu1 %2914  ;;  %v2909_v32 = vmul.f32 %v12250_v25, %v12234_v0  ;;  %v11509_v0 = vpack.c.bf16 %v9684_v63, %v9683_v48  ;;  %v9693_v63 = vld [vmem:[%s14637_s9 + $0x1] ss:$0 sm:$0xff] }
0x1710   :  { %11474 = vmatprep.subr.bf16.mxu0 %v11473_v27  ;;  %10715 = vmatprep.mubr.msk.f32.mxu1 %vm163_vm1, %v2915_v30  ;;  %v2907_v43 = vmul.f32 %v12252_v29, %v12236_v1  ;;  %v2917_v39 = vpop.permute.xlu0 %2916  ;;  %v9685_v1 = vld [vmem:[%s14634_s7 + $0xe0] sm:$0xff] }
0x1711   :  { %11476 = vmatpush3.bf16.msra.mxu0 %v11473_v27  ;;  %v11513_v3 = vpack.c.bf16 %v9686_v2, %v9685_v1  ;;  %v9690_v27 = vld [vmem:[%s14635_s8 + $0x1] ss:$0 sm:$0xff] }
0x1712   :  { %v12254_v34 = vpop.eup %12253  ;;  %v11481_v26 = vpack.c.bf16 %v2909_v32, %v2907_v43  ;;  %11490 = vmatprep.subr.bf16.mxu0 %v11489_v44  ;;  %v9694_v1 = vld [vmem:[%s14638_s10 + $0x1] ss:$0 sm:$0xff] }
0x1713   :  { %v12256_v38 = vpop.eup %12255  ;;  %v2913_v35 = vmul.f32 %v12254_v34, %v12238_v4  ;;  %v9687_v4 = vld [vmem:[%s14634_s7 + $0xf0] sm:$0xff]  ;;  %v11988_v13 = vpop.permute.xlu1 %11987 }
0x1714   :  { %10695 = vmatmul.mubr.msk.f32.vlgmr.msra.gmra.mrb[32].mxu0 %vm163_vm1, %v2645_v21  ;;  %11482 = vmatprep.subr.bf16.mxu1 %v11481_v26  ;;  %v2911_v36 = vmul.f32 %v12256_v38, %v12240_v5  ;;  %v9688_v5 = vld [vmem:[%s14634_s7 + $0xf8] sm:$0xff]  ;;  %v11990_v46 = vunpack.i.h.bf16 %v11988_v13  ;;  %v11989_v15 = vunpack.i.l.bf16 %v11988_v13 }
0x1715   :  { %11484 = vmatpush3.bf16.msra.mxu1 %v11481_v26  ;;  %11492 = vmatpush3.bf16.msra.mxu0 %v11489_v44  ;;  %v11517_v6 = vpack.c.bf16 %v9688_v5, %v9687_v4  ;;  %v9695_v44 = vld [vmem:[%s14636_s11 + $0x20] sm:$0xff] }
0x1716   :  { %v11485_v37 = vpack.c.bf16 %v2913_v35, %v2911_v36  ;;  %11494 = vmatprep.subr.bf16.mxu0 %v11493_v50  ;;  %v3021_v18 = vsel %vm163_vm1, %v13086_v55, %v11989_v15  ;;  %v3022_v21 = vsel %vm163_vm1, %v13084_v54, %v11990_v46 }
0x1718   :  { %11486 = vmatprep.subr.bf16.mxu1 %v11485_v37 }
0x1719   :  { %11488 = vmatpush3.bf16.msra.mxu1 %v11485_v37  ;;  %11496 = vmatpush3.bf16.msra.mxu0 %v11493_v50  ;;  %v11521_v50 = vpack.c.bf16 %v9696_v45, %v9695_v44 }
0x171a   :  { %11498 = vmatprep.subr.bf16.mxu0 %v11497_v51 }
0x171b   :  { %11522 = vmatprep.subr.bf16.mxu1 %v11521_v50 }
0x171c   :  { %10716 = vmatmul.mubr.msk.f32.vlgmr.msra.gmra.mrb[30].mxu1 %vm163_vm1, %v2917_v39 }
0x171d   :  { %11500 = vmatpush3.bf16.msra.mxu0 %v11497_v51  ;;  %11524 = vmatpush3.bf16.msra.mxu1 %v11521_v50  ;;  %v11525_v51 = vpack.c.bf16 %v9698_v49, %v9697_v47  ;;  %v9705_v47 = vld [vmem:[%s14640_s13 + $0x1] ss:$0 sm:$0xff] }
0x171e   :  { %11502 = vmatprep.subr.bf16.mxu0 %v11501_v52 }
0x171f   :  { %11526 = vmatprep.subr.bf16.mxu1 %v11525_v51 }
0x1721   :  { %11504 = vmatpush3.bf16.msra.mxu0 %v11501_v52  ;;  %11528 = vmatpush3.bf16.msra.mxu1 %v11525_v51 }
0x1722   :  { %11506 = vmatprep.subr.bf16.mxu0 %v11505_v62 }
0x1725   :  { %11508 = vmatpush3.bf16.msra.mxu0 %v11505_v62 }
0x1726   :  { %11510 = vmatprep.subr.bf16.mxu0 %v11509_v0 }
0x1729   :  { %11512 = vmatpush3.bf16.msra.mxu0 %v11509_v0 }
0x172a   :  { %11514 = vmatprep.subr.bf16.mxu0 %v11513_v3 }
0x172d   :  { %11516 = vmatpush3.bf16.msra.mxu0 %v11513_v3 }
0x172e   :  { %11518 = vmatprep.subr.bf16.mxu0 %v11517_v6 }
0x1731   :  { %11520 = vmatpush3.bf16.msra.mxu0 %v11517_v6 }
0x17e7   :  { %v10696_v7 = vpop.f32.mrb[32].mxu0 }
0x17e8   :  { %v2716_v8 = vpop.f32.mrb[33].mxu0 }
0x17e9   :  { %v11991_v9 = vpack.i.bf16 %v10696_v7, %v2716_v8 }
0x17eb   :  { %11992 = vrot.lane.b32.xlu0 %v11991_v9, %s12555_s23 }
0x17ef   :  { %v10717_v10 = vpop.f32.mrb[30].mxu1 }
0x17f0   :  { %v2988_v11 = vpop.f32.mrb[31].mxu1 }
0x17f1   :  { %v11996_v12 = vpack.i.bf16 %v10717_v10, %v2988_v11  ;;  %v9700_v10 = vld [vmem:[%s14639_s12 + $0x1] ss:$0 sm:$0xff] }
0x17f3   :  { %11997 = vrot.lane.b32.xlu1 %v11996_v12, %s12554_s22 }
0x185d   :  { %v11993_v14 = vpop.permute.xlu0 %11992 }
0x185e   :  { %v11995_v17 = vunpack.i.h.bf16 %v11993_v14  ;;  %v11994_v56 = vunpack.i.l.bf16 %v11993_v14 }
0x1860   :  { %v3023_v22 = vsel %vm1437_vm2, %v3021_v18, %v11994_v56  ;;  %v3024_v23 = vsel %vm1437_vm2, %v3022_v21, %v11995_v17 }
0x1865   :  { %v11998_v59 = vpop.permute.xlu1 %11997 }
0x1866   :  { %v12000_v28 = vunpack.i.h.bf16 %v11998_v59  ;;  %v11999_v60 = vunpack.i.l.bf16 %v11998_v59 }
0x1868   :  { %v3025_v24 = vsel %vm1440_vm3, %v3023_v22, %v11999_v60  ;;  %v3026_v25 = vsel %vm1440_vm3, %v3024_v23, %v12000_v28  ;;  %v9708_v23 = vld [vmem:[%s14629_s3 + $0x88] sm:$0xff] }
0x1869   :  { %10750 = vmatprep.mubr.f32.mxu0 %v3025_v24  ;;  %v9710_v24 = vld [vmem:[%s14629_s3 + $0x98] sm:$0xff] }
0x186a   :  { %10751 = vmatmul.mubr.f32.vlgmr.msra.gmra.mrb[34].mxu0 %v3026_v25  ;;  %v11529_v25 = vpack.c.bf16 %v9710_v24, %v9708_v23 }
0x186c   :  { %11530 = vmatprep.subr.bf16.mxu1 %v11529_v25 }
0x193d   :  { %v10752_v29 = vpop.f32.mrb[34].mxu0 }
0x193e   :  { %v3124_v30 = vadd.f32 %v10752_v29, %v9690_v27  ;;  %v3118_v55 = vpop.f32.mrb[35].mxu0  ;;  %v9709_v29 = vld [vmem:[%s14629_s3 + $0x90] sm:$0xff] }
0x193f   :  { %v3119_v32 = vadd.f32 %v9690_v27, %v3118_v55  ;;  %v9707_v27 = vld [vmem:[%s14629_s3 + $0x80] sm:$0xff]  ;;  %v9712_v55 = vld [vmem:[%s14629_s3 + $0xa8] sm:$0xff] }
0x1940   :  { %v3134_v54 = vsel %vm163_vm1, %v3124_v30, 0.0 }
0x1941   :  { %3135 = vadd.xlane.f32.xlu1 %v3134_v54  ;;  %v3131_v43 = vsel %vm163_vm1, %v3119_v32, 0.0 }
0x1942   :  { %3132 = vadd.xlane.f32.xlu0 %v3131_v43  ;;  %v9711_v43 = vld [vmem:[%s14629_s3 + $0xa0] sm:$0xff] }
0x19ce   :  { %v3136_v34 = vpop.xlane.xlu1 %3135 }
0x19cf   :  { %v3138_v26 = vmul.f32 0.03125, %v3136_v34  ;;  %v3133_v38 = vpop.xlane.xlu0 %3132  ;;  %v9713_v34 = vld [vmem:[%s14629_s3 + $0xb0] sm:$0xff] }
0x19d0   :  { %v3137_v35 = vmul.f32 0.03125, %v3133_v38  ;;  %v9718_v38 = vld [vmem:[%s14630_s5 + $0x40] sm:$0xff] }
0x19d1   :  { %v3140_v36 = vsub.f32 %v3124_v30, %v3138_v26  ;;  %v11531_v30 = vpack.c.bf16 %v9709_v29, %v9707_v27  ;;  %v11535_v26 = vpack.c.bf16 %v9713_v34, %v9711_v43 }
0x19d2   :  { %v3139_v37 = vsub.f32 %v3119_v32, %v3137_v35  ;;  %v9714_v32 = vld [vmem:[%s14629_s3 + $0xb8] sm:$0xff]  ;;  %v9719_v35 = vld [vmem:[%s14630_s5 + $0x48] sm:$0xff] }
0x19d3   :  { %v3142_v41 = vmul.f32 %v3140_v36, %v3140_v36  ;;  %v11533_v54 = vpack.c.bf16 %v9714_v32, %v9712_v55 }
0x19d4   :  { %v3141_v39 = vmul.f32 %v3139_v37, %v3139_v37 }
0x19d5   :  { %v3146_v42 = vsel %vm163_vm1, %v3142_v41, 0.0 }
0x19d6   :  { %v3143_v40 = vsel %vm163_vm1, %v3141_v39, 0.0 }
0x19d7   :  { %3144 = vadd.xlane.f32.xlu0 %v3143_v40 }
0x19db   :  { %3147 = vadd.xlane.f32.xlu0 %v3146_v42 }
0x1a64   :  { %v3145_v57 = vpop.xlane.xlu0 %3144 }
0x1a65   :  { %v3149_v58 = vmul.f32 0.03125, %v3145_v57  ;;  %v9706_v57 = vld [vmem:[%s14641_s14 + $0x1] ss:$0 sm:$0xff] }
0x1a67   :  { %v3151_v52 = vadd.f32 1e-05, %v3149_v58 }
0x1a68   :  { %v3148_v53 = vpop.xlane.xlu0 %3147 }
0x1a69   :  { %12257 = vrsqrt.f32 %v3151_v52  ;;  %v3150_v61 = vmul.f32 0.03125, %v3148_v53  ;;  %v9720_v53 = vld [vmem:[%s14630_s5 + $0x50] sm:$0xff] }
0x1a6b   :  { %v3152_v62 = vadd.f32 1e-05, %v3150_v61  ;;  %v9721_v61 = vld [vmem:[%s14630_s5 + $0x58] sm:$0xff] }
0x1a6d   :  { %12259 = vrsqrt.f32 %v3152_v62 }
0x1a73   :  { %v12258_v48 = vpop.eup %12257 }
0x1a74   :  { %v3155_v0 = vmul.f32 %v12258_v48, %v3139_v37 }
0x1a76   :  { %v3163_v2 = vmul.f32 %v9693_v63, %v3155_v0  ;;  %v11541_v0 = vpack.c.bf16 %v9721_v61, %v9720_v53 }
0x1a77   :  { %v12260_v3 = vpop.eup %12259 }
0x1a78   :  { %v3156_v4 = vmul.f32 %v12260_v3, %v3140_v36  ;;  %v3171_v5 = vadd.f32 %v9694_v1, %v3163_v2  ;;  %v11537_v36 = vpack.c.bf16 %v9719_v35, %v9718_v38  ;;  %v9715_v2 = vld [vmem:[%s14632_s4 + $0x4] sm:$0x3] }
0x1a79   :  { %v3336_v3 = vrot.slane %v9715_v2, %v12704_v31 }
0x1a7a   :  { %v3164_v6 = vmul.f32 %v9693_v63, %v3156_v4  ;;  %v13210_v7 = vadd.f32 %v3171_v5, %v12974_v16  ;;  %v3332_v5 = vrot.slane %v9715_v2, %v12709_v33 }
0x1a7c   :  { %v3172_v8 = vadd.f32 %v9694_v1, %v3164_v6  ;;  %10761 = vmatprep.mubr.msk.f32.mxu1 %vm163_vm1, %v13210_v7 }
0x1a7e   :  { %v13215_v9 = vadd.f32 %v3172_v8, %v12980_v19 }
0x1a80   :  { %10762 = vmatmul.mubr.msk.f32.vlgmr.msra.gmra.mrb[32].mxu1 %vm163_vm1, %v13215_v9 }
0x1a81   :  { %3409 = vmatprep.mubr.f32.mxu1 %v12553_v20  ;;  %11532 = vmatpush1.bf16.msra.mxu1 %v11531_v30 }
0x1a82   :  { %11534 = vmatprep.subr.bf16.mxu1 %v11533_v54 }
0x1a85   :  { %11536 = vmatpush1.bf16.msra.mxu1 %v11535_v26 }
0x1a86   :  { %11538 = vmatprep.subr.bf16.mxu1 %v11537_v36 }
0x1b53   :  { %v10763_v11 = vpop.f32.mrb[32].mxu1 }
0x1b54   :  { %v3266_v12 = vadd.f32 %v10763_v11, %v9700_v10  ;;  %v3260_v16 = vpop.f32.mrb[33].mxu1 }
0x1b55   :  { %v3261_v13 = vadd.f32 %v9700_v10, %v3260_v16  ;;  %v9723_v16 = vld [vmem:[%s14633_s6 + $0x2] ss:$0 sm:$0xff] }
0x1b56   :  { %v3276_v14 = vsel %vm163_vm1, %v3266_v12, 0.0 }
0x1b57   :  { %3277 = vadd.xlane.f32.xlu0 %v3276_v14  ;;  %v3273_v46 = vsel %vm163_vm1, %v3261_v13, 0.0 }
0x1b58   :  { %3274 = vadd.xlane.f32.xlu1 %v3273_v46 }
0x1be4   :  { %v3278_v19 = vpop.xlane.xlu0 %3277 }
0x1be5   :  { %v3280_v15 = vmul.f32 0.03125, %v3278_v19  ;;  %v3275_v17 = vpop.xlane.xlu1 %3274 }
0x1be6   :  { %v3279_v56 = vmul.f32 0.03125, %v3275_v17 }
0x1be7   :  { %v3282_v59 = vsub.f32 %v3266_v12, %v3280_v15 }
0x1be8   :  { %v3281_v28 = vsub.f32 %v3261_v13, %v3279_v56 }
0x1be9   :  { %v3284_v60 = vmul.f32 %v3282_v59, %v3282_v59 }
0x1bea   :  { %v3283_v18 = vmul.f32 %v3281_v28, %v3281_v28 }
0x1beb   :  { %v3288_v21 = vsel %vm163_vm1, %v3284_v60, 0.0 }
0x1bec   :  { %3289 = vadd.xlane.f32.xlu0 %v3288_v21  ;;  %v3285_v22 = vsel %vm163_vm1, %v3283_v18, 0.0 }
0x1bed   :  { %3286 = vadd.xlane.f32.xlu1 %v3285_v22 }
0x1c79   :  { %v3290_v37 = vpop.xlane.xlu0 %3289 }
0x1c7a   :  { %v3292_v39 = vmul.f32 0.03125, %v3290_v37  ;;  %v3287_v40 = vpop.xlane.xlu1 %3286 }
0x1c7b   :  { %v3291_v41 = vmul.f32 0.03125, %v3287_v40 }
0x1c7c   :  { %v3294_v42 = vadd.f32 1e-05, %v3292_v39 }
0x1c7d   :  { %v3293_v44 = vadd.f32 1e-05, %v3291_v41 }
0x1c7e   :  { %12261 = vrsqrt.f32 %v3294_v42 }
0x1c7f   :  { %12263 = vrsqrt.f32 %v3293_v44 }
0x1c88   :  { %v12262_v45 = vpop.eup %12261 }
0x1c89   :  { %v12264_v50 = vpop.eup %12263  ;;  %v3298_v49 = vmul.f32 %v12262_v45, %v3282_v59 }
0x1c8a   :  { %v3297_v51 = vmul.f32 %v12264_v50, %v3281_v28 }
0x1c8b   :  { %v3306_v52 = vmul.f32 %v9705_v47, %v3298_v49 }
0x1c8c   :  { %v3305_v58 = vmul.f32 %v9705_v47, %v3297_v51 }
0x1c8d   :  { %v3314_v63 = vadd.f32 %v9706_v57, %v3306_v52 }
0x1c8e   :  { %v3313_v62 = vadd.f32 %v9706_v57, %v3305_v58 }
0x1c8f   :  { %v13276_v1 = vadd.f32 %v3314_v63, %v13215_v9 }
0x1c90   :  { %v13270_v48 = vadd.f32 %v3313_v62, %v13210_v7 }
0x1c92   :  { %9716 = vmatmul.mubr.msk.f32.vlgmr.msra.gmra.mrb[34].mxu1 %vm163_vm1, %v13270_v48 }
0x1c93   :  { %11540 = vmatpush3.bf16.msra.mxu1 %v11537_v36  ;;  %3415 = vmatprep.mubr.f32.mxu1 %v12553_v20 }
0x1c94   :  { %11542 = vmatprep.subr.bf16.mxu1 %v11541_v0 }
0x1c96   :  { %9717 = vmatmul.mubr.msk.f32.gmra.mrb[36].mxu1 %vm163_vm1, %v13276_v1 }
0x1c97   :  { %11544 = vmatpush3.bf16.msra.mxu1 %v11541_v0  ;;  %10772 = vmatprep.mubr.msk.f32.mxu1 %vm163_vm1, %v13270_v48 }
0x1c9a   :  { %10773 = vmatmul.mubr.msk.f32.vlgmr.msra.gmra.mrb[38].mxu1 %vm163_vm1, %v13276_v1 }
0x1d65   :  { %v3411_v4 = vpop.f32.mrb[34].mxu1 }
0x1d66   :  { %v3413_v6 = vpop.f32.mrb[35].mxu1  ;;  %v3412_v9 = vadd.f32 %v3411_v4, %v3332_v5 }
0x1d67   :  { %v3414_v7 = vadd.f32 %v3413_v6, %v3336_v3 }
0x1d69   :  { %v3417_v8 = vpop.f32.mrb[36].mxu1  ;;  %3770 = vrot.lane.b32.xlu1 %v3414_v7, %s12554_s22 }
0x1d6a   :  { %v3418_v10 = vadd.f32 %v3417_v8, %v3332_v5  ;;  %v3419_v11 = vpop.f32.mrb[37].mxu1 }
0x1d6b   :  { %v3420_v12 = vadd.f32 %v3419_v11, %v3336_v3 }
0x1d6c   :  { %v11545_v13 = vpack.c.bf16 %v3418_v10, %v3412_v9  ;;  %v12006_v14 = vpack.i.bf16 %v3418_v10, %v3412_v9 }
0x1d6d   :  { %v10774_v46 = vpop.f32.mrb[38].mxu1  ;;  %3772 = vrot.lane.b32.xlu0 %v3420_v12, %s12554_s22  ;;  %4044 = vrot.lane.b32.xlu1 %v3414_v7, %s12555_s23 }
0x1d6e   :  { %v13295_v19 = vadd.f32 %v10774_v46, %v9723_v16  ;;  %v3501_v15 = vpop.f32.mrb[39].mxu1  ;;  %11546 = vmatprep.subr.bf16.mxu1 %v11545_v13 }
0x1d6f   :  { %v13297_v17 = vadd.f32 %v9723_v16, %v3501_v15  ;;  %11548 = vmatpush3.bf16.msra.mxu1 %v11545_v13 }
0x1d71   :  { %10793 = vmatprep.mubr.msk.f32.mxu0 %vm163_vm1, %v13297_v17  ;;  %4316 = vrot.lane.b32.xlu0 %v3414_v7, %s12556_s24 }
0x1d72   :  { %12007 = vrot.lane.b32.xlu1 %v12006_v14, %s12555_s23 }
0x1d75   :  { %12002 = vrot.lane.b32.xlu0 %v12006_v14, %s12554_s22 }
0x1d76   :  { %4046 = vrot.lane.b32.xlu1 %v3420_v12, %s12555_s23 }
0x1d79   :  { %12012 = vrot.lane.b32.xlu0 %v12006_v14, %s12556_s24 }
0x1d7a   :  { %4318 = vrot.lane.b32.xlu1 %v3420_v12, %s12556_s24 }
0x1da3   :  { %3510 = vxpose.xlu1.b32.start [1/2] (short) (narrow) %v3414_v7, 32 }
0x1da7   :  { %3511 = vxpose.xlu1.b32.end [2/2] (short) (narrow) %v3420_v12, 32 }
0x1ddb   :  { %v3771_v56 = vpop.permute.xlu1 %3770 }
0x1ddc   :  { %3776 = vxpose.xlu0.b32.start [1/2] (short) (narrow) %v3771_v56, 32 }
0x1ddf   :  { %v3773_v59 = vpop.permute.xlu0 %3772  ;;  %v4045_v28 = vpop.permute.xlu1 %4044 }
0x1de0   :  { %3777 = vxpose.xlu0.b32.end [2/2] (short) (narrow) %v3773_v59, 32 }
0x1de3   :  { %v4317_v60 = vpop.permute.xlu0 %4316 }
0x1de4   :  { %v12008_v18 = vpop.permute.xlu1 %12007  ;;  %4322 = vxpose.xlu1.b32.start [1/2] (short) (narrow) %v4317_v60, 32 }
0x1de5   :  { %v12010_v30 = vunpack.i.h.bf16 %v12008_v18  ;;  %v12009_v55 = vunpack.i.l.bf16 %v12008_v18 }
0x1de7   :  { %v12003_v21 = vpop.permute.xlu0 %12002  ;;  %v11569_v54 = vpack.c.bf16 %v12010_v30, %v12009_v55 }
0x1de8   :  { %v4047_v22 = vpop.permute.xlu1 %4046  ;;  %v12005_v23 = vunpack.i.h.bf16 %v12003_v21  ;;  %v12004_v24 = vunpack.i.l.bf16 %v12003_v21 }
0x1de9   :  { %4050 = vxpose.xlu0.b32.start [1/2] (short) (narrow) %v4045_v28, 32 }
0x1dea   :  { %v11557_v25 = vpack.c.bf16 %v12005_v23, %v12004_v24 }
0x1deb   :  { %v12013_v26 = vpop.permute.xlu0 %12012 }
0x1dec   :  { %v4319_v27 = vpop.permute.xlu1 %4318  ;;  %11558 = vmatprep.subr.bf16.mxu1 %v11557_v25  ;;  %v12015_v35 = vunpack.i.h.bf16 %v12013_v26  ;;  %v12014_v36 = vunpack.i.l.bf16 %v12013_v26 }
0x1ded   :  { %4323 = vxpose.xlu1.b32.end [2/2] (short) (narrow) %v4319_v27, 32  ;;  %4051 = vxpose.xlu0.b32.end [2/2] (short) (narrow) %v4047_v22, 32 }
0x1dee   :  { %v11581_v39 = vpack.c.bf16 %v12015_v35, %v12014_v36 }
0x1e23   :  { %v3526_v29 = vpop.trf.xlu1 }
0x1e24   :  { %10779 = vmatprep.mubr.msk.f32.mxu1 %vm61_vm0, %v3526_v29 }
0x1e27   :  { %v3527_v32 = vpop.trf.xlu1 }
0x1e28   :  { %10780 = vmatmul.mubr.msk.f32.vlgmr.msra.gmra.mrb[40].mxu1 %vm61_vm0, %v3527_v32 }
0x1e29   :  { %11560 = vmatpush3.bf16.msra.mxu1 %v11557_v25 }
0x1e2a   :  { %11570 = vmatprep.subr.bf16.mxu1 %v11569_v54 }
0x1e2b   :  { %v3528_v43 = vpop.trf.xlu1 }
0x1e2c   :  { %10782 = vmatprep.mubr.msk.f32.mxu1 %vm61_vm0, %v3528_v43 }
0x1e2f   :  { %v3529_v34 = vpop.trf.xlu1 }
0x1e30   :  { %10783 = vmatmul.mubr.msk.f32.gmra.mrb[42].mxu1 %vm61_vm0, %v3529_v34 }
0x1e5c   :  { %v3792_v38 = vpop.trf.xlu0 }
0x1e5d   :  { %10800 = vmatprep.mubr.msk.f32.mxu1 %vm61_vm0, %v3792_v38 }
0x1e60   :  { %v3793_v37 = vpop.trf.xlu0 }
0x1e61   :  { %10801 = vmatmul.mubr.msk.f32.vlgmr.msra.gmra.mrb[44].mxu1 %vm61_vm0, %v3793_v37 }
0x1e62   :  { %11572 = vmatpush3.bf16.msra.mxu1 %v11569_v54 }
0x1e63   :  { %11582 = vmatprep.subr.bf16.mxu1 %v11581_v39 }
0x1e64   :  { %v3794_v40 = vpop.trf.xlu0 }
0x1e65   :  { %10803 = vmatprep.mubr.msk.f32.mxu1 %vm61_vm0, %v3794_v40 }
0x1e68   :  { %v3795_v41 = vpop.trf.xlu0 }
0x1e69   :  { %10804 = vmatmul.mubr.msk.f32.gmra.mrb[46].mxu1 %vm61_vm0, %v3795_v41  ;;  %v4338_v44 = vpop.trf.xlu1 }
0x1e6c   :  { %v4066_v42 = vpop.trf.xlu0 }
0x1e6d   :  { %10821 = vmatprep.mubr.msk.f32.mxu1 %vm61_vm0, %v4066_v42  ;;  %v4339_v50 = vpop.trf.xlu1 }
0x1e70   :  { %v4067_v45 = vpop.trf.xlu0 }
0x1e71   :  { %10822 = vmatmul.mubr.msk.f32.vlgmr.msra.gmra.mrb[48].mxu1 %vm61_vm0, %v4067_v45  ;;  %v4340_v51 = vpop.trf.xlu1 }
0x1e72   :  { %11584 = vmatpush3.bf16.msra.mxu1 %v11581_v39 }
0x1e74   :  { %v4068_v47 = vpop.trf.xlu0 }
0x1e75   :  { %10824 = vmatprep.mubr.msk.f32.mxu1 %vm61_vm0, %v4068_v47  ;;  %v4341_v57 = vpop.trf.xlu1 }
0x1e78   :  { %v4069_v49 = vpop.trf.xlu0 }
0x1e79   :  { %10825 = vmatmul.mubr.msk.f32.gmra.mrb[50].mxu1 %vm61_vm0, %v4069_v49 }
0x1e7a   :  { %10842 = vmatprep.mubr.msk.f32.mxu1 %vm61_vm0, %v4338_v44 }
0x1e7d   :  { %10843 = vmatmul.mubr.msk.f32.vlgmr.msra.gmra.mrb[52].mxu1 %vm61_vm0, %v4339_v50 }
0x1e7e   :  { %10845 = vmatprep.mubr.msk.f32.mxu1 %vm61_vm0, %v4340_v51 }
0x1e81   :  { %10846 = vmatmul.mubr.msk.f32.gmra.mrb[54].mxu1 %vm61_vm0, %v4341_v57 }
0x1efb   :  { %v10781_v58 = vpop.f32.mrb[40].mxu1 }
0x1efc   :  { %v13323_v52 = vmul.f32 0.17677669, %v10781_v58  ;;  %v3620_v53 = vpop.f32.mrb[41].mxu1 }
0x1efd   :  { %v13325_v61 = vmul.f32 0.17677669, %v3620_v53 }
0x1efe   :  { %v3646_v62 = vsel %vm163_vm1, %v13323_v52, -inf }
0x1eff   :  { %3647 = vmax.xlane.f32.xlu1 %v3646_v62  ;;  %v3643_v63 = vsel %vm163_vm1, %v13325_v61, -inf }
0x1f00   :  { %3644 = vmax.xlane.f32.xlu0 %v3643_v63 }
0x1f03   :  { %v10784_v0 = vpop.f32.mrb[42].mxu1 }
0x1f04   :  { %v13331_v2 = vmul.f32 0.17677669, %v10784_v0  ;;  %v3630_v3 = vpop.f32.mrb[43].mxu1 }
0x1f05   :  { %v13333_v4 = vmul.f32 0.17677669, %v3630_v3 }
0x1f06   :  { %v3652_v5 = vsel %vm163_vm1, %v13331_v2, -inf }
0x1f07   :  { %3653 = vmax.xlane.f32.xlu1 %v3652_v5  ;;  %v3649_v6 = vsel %vm163_vm1, %v13333_v4, -inf }
0x1f08   :  { %3650 = vmax.xlane.f32.xlu0 %v3649_v6 }
0x1f34   :  { %v10802_v7 = vpop.f32.mrb[44].mxu1 }
0x1f35   :  { %v13339_v8 = vmul.f32 0.17677669, %v10802_v7  ;;  %v3894_v9 = vpop.f32.mrb[45].mxu1 }
0x1f36   :  { %v13341_v10 = vmul.f32 0.17677669, %v3894_v9 }
0x1f37   :  { %v3920_v11 = vsel %vm163_vm1, %v13339_v8, -inf }
0x1f38   :  { %3921 = vmax.xlane.f32.xlu1 %v3920_v11  ;;  %v3917_v12 = vsel %vm163_vm1, %v13341_v10, -inf }
0x1f39   :  { %3918 = vmax.xlane.f32.xlu0 %v3917_v12 }
0x1f3c   :  { %v10805_v16 = vpop.f32.mrb[46].mxu1 }
0x1f3d   :  { %v13347_v13 = vmul.f32 0.17677669, %v10805_v16  ;;  %v3904_v14 = vpop.f32.mrb[47].mxu1 }
0x1f3e   :  { %v13349_v46 = vmul.f32 0.17677669, %v3904_v14 }
0x1f3f   :  { %v3926_v15 = vsel %vm163_vm1, %v13347_v13, -inf }
0x1f40   :  { %3927 = vmax.xlane.f32.xlu1 %v3926_v15  ;;  %v3923_v56 = vsel %vm163_vm1, %v13349_v46, -inf }
0x1f41   :  { %3924 = vmax.xlane.f32.xlu0 %v3923_v56 }
0x1f44   :  { %v10823_v59 = vpop.f32.mrb[48].mxu1 }
0x1f45   :  { %v13355_v28 = vmul.f32 0.17677669, %v10823_v59  ;;  %v4166_v60 = vpop.f32.mrb[49].mxu1 }
0x1f46   :  { %v13357_v18 = vmul.f32 0.17677669, %v4166_v60 }
0x1f47   :  { %v4192_v21 = vsel %vm163_vm1, %v13355_v28, -inf }
0x1f48   :  { %4193 = vmax.xlane.f32.xlu1 %v4192_v21  ;;  %v4189_v22 = vsel %vm163_vm1, %v13357_v18, -inf }
0x1f49   :  { %4190 = vmax.xlane.f32.xlu0 %v4189_v22 }
0x1f4c   :  { %v10826_v23 = vpop.f32.mrb[50].mxu1 }
0x1f4d   :  { %v13363_v24 = vmul.f32 0.17677669, %v10826_v23  ;;  %v4176_v25 = vpop.f32.mrb[51].mxu1 }
0x1f4e   :  { %v13365_v27 = vmul.f32 0.17677669, %v4176_v25 }
0x1f4f   :  { %v4198_v29 = vsel %vm163_vm1, %v13363_v24, -inf }
0x1f50   :  { %4199 = vmax.xlane.f32.xlu1 %v4198_v29  ;;  %v10844_v30 = vpop.f32.mrb[52].mxu1  ;;  %v4195_v55 = vsel %vm163_vm1, %v13365_v27, -inf }
0x1f51   :  { %v13371_v32 = vmul.f32 0.17677669, %v10844_v30  ;;  %v4438_v54 = vpop.f32.mrb[53].mxu1  ;;  %4196 = vmax.xlane.f32.xlu0 %v4195_v55 }
0x1f52   :  { %v13373_v43 = vmul.f32 0.17677669, %v4438_v54 }
0x1f53   :  { %v4464_v34 = vsel %vm163_vm1, %v13371_v32, -inf }
0x1f54   :  { %4465 = vmax.xlane.f32.xlu1 %v4464_v34  ;;  %v10847_v26 = vpop.f32.mrb[54].mxu1  ;;  %v4461_v38 = vsel %vm163_vm1, %v13373_v43, -inf }
0x1f55   :  { %v13379_v35 = vmul.f32 0.17677669, %v10847_v26  ;;  %v4448_v36 = vpop.f32.mrb[55].mxu1  ;;  %4462 = vmax.xlane.f32.xlu0 %v4461_v38 }
0x1f56   :  { %v13381_v37 = vmul.f32 0.17677669, %v4448_v36 }
0x1f57   :  { %v4470_v39 = vsel %vm163_vm1, %v13379_v35, -inf }
0x1f58   :  { %4471 = vmax.xlane.f32.xlu1 %v4470_v39  ;;  %v4467_v40 = vsel %vm163_vm1, %v13381_v37, -inf }
0x1f59   :  { %4468 = vmax.xlane.f32.xlu0 %v4467_v40 }
0x1f69   :  { %3963 = vrot.lane.b32.xlu1 %v13295_v19, %s12554_s22 }
0x1f6d   :  { %4233 = vrot.lane.b32.xlu1 %v13297_v17, %s12555_s23 }
0x1f6f   :  { %3961 = vrot.lane.b32.xlu0 %v13297_v17, %s12554_s22 }
0x1f8c   :  { %v3648_v41 = vpop.xlane.xlu1 %3647 }
0x1f8d   :  { %v3656_v42 = vsub.f32 %v13323_v52, %v3648_v41  ;;  %v3645_v44 = vpop.xlane.xlu0 %3644 }
0x1f8e   :  { %v3655_v45 = vsub.f32 %v13325_v61, %v3645_v44 }
0x1f8f   :  { %v3661_v50 = vmul.f32 1.442695, %v3656_v42 }
0x1f90   :  { %v3659_v47 = vmul.f32 1.442695, %v3655_v45 }
0x1f91   :  { %12265 = vpow2.f32 %v3661_v50 }
0x1f92   :  { %12267 = vpow2.f32 %v3659_v47 }
0x1f94   :  { %v3654_v49 = vpop.xlane.xlu1 %3653 }
0x1f95   :  { %v3658_v51 = vsub.f32 %v13331_v2, %v3654_v49  ;;  %v3651_v57 = vpop.xlane.xlu0 %3650 }
0x1f96   :  { %v3657_v58 = vsub.f32 %v13333_v4, %v3651_v57 }
0x1f97   :  { %v3665_v53 = vmul.f32 1.442695, %v3658_v51 }
0x1f98   :  { %v3663_v62 = vmul.f32 1.442695, %v3657_v58 }
0x1f99   :  { %12269 = vpow2.f32 %v3665_v53 }
0x1f9a   :  { %12271 = vpow2.f32 %v3663_v62 }
0x1f9b   :  { %v13397_v63 = vpop.eup %12265 }
0x1f9c   :  { %v13399_v52 = vpop.eup %12267  ;;  %v3670_v61 = vsel %vm163_vm1, %v13397_v63, 0.0 }
0x1f9d   :  { %3671 = vadd.xlane.f32.xlu1 %v3670_v61  ;;  %v3667_v0 = vsel %vm163_vm1, %v13399_v52, 0.0 }
0x1f9e   :  { %3668 = vadd.xlane.f32.xlu0 %v3667_v0 }
0x1fa3   :  { %v13405_v2 = vpop.eup %12269 }
0x1fa4   :  { %v13407_v3 = vpop.eup %12271  ;;  %v3676_v4 = vsel %vm163_vm1, %v13405_v2, 0.0 }
0x1fa5   :  { %3677 = vadd.xlane.f32.xlu1 %v3676_v4  ;;  %v3673_v5 = vsel %vm163_vm1, %v13407_v3, 0.0 }
0x1fa6   :  { %3674 = vadd.xlane.f32.xlu0 %v3673_v5 }
0x1fc5   :  { %v3922_v6 = vpop.xlane.xlu1 %3921 }
0x1fc6   :  { %v3930_v7 = vsub.f32 %v13339_v8, %v3922_v6  ;;  %v3919_v9 = vpop.xlane.xlu0 %3918 }
0x1fc7   :  { %v3929_v11 = vsub.f32 %v13341_v10, %v3919_v9 }
0x1fc8   :  { %v3935_v12 = vmul.f32 1.442695, %v3930_v7 }
0x1fc9   :  { %v3933_v16 = vmul.f32 1.442695, %v3929_v11 }
0x1fca   :  { %12273 = vpow2.f32 %v3935_v12 }
0x1fcb   :  { %12275 = vpow2.f32 %v3933_v16 }
0x1fcd   :  { %v3928_v14 = vpop.xlane.xlu1 %3927 }
0x1fce   :  { %v3932_v15 = vsub.f32 %v13347_v13, %v3928_v14  ;;  %v3925_v56 = vpop.xlane.xlu0 %3924 }
0x1fcf   :  { %v3931_v59 = vsub.f32 %v13349_v46, %v3925_v56 }
0x1fd0   :  { %v3939_v60 = vmul.f32 1.442695, %v3932_v15 }
0x1fd1   :  { %v3937_v21 = vmul.f32 1.442695, %v3931_v59 }
0x1fd2   :  { %12277 = vpow2.f32 %v3939_v60 }
0x1fd3   :  { %12279 = vpow2.f32 %v3937_v21 }
0x1fd4   :  { %v13417_v22 = vpop.eup %12273 }
0x1fd5   :  { %v13419_v8 = vpop.eup %12275  ;;  %v4194_v23 = vpop.xlane.xlu1 %4193  ;;  %v3944_v10 = vsel %vm163_vm1, %v13417_v22, 0.0 }
0x1fd6   :  { %v4202_v25 = vsub.f32 %v13355_v28, %v4194_v23  ;;  %3945 = vadd.xlane.f32.xlu1 %v3944_v10  ;;  %v4191_v29 = vpop.xlane.xlu0 %4190  ;;  %v3941_v13 = vsel %vm163_vm1, %v13419_v8, 0.0 }
0x1fd7   :  { %v4201_v46 = vsub.f32 %v13357_v18, %v4191_v29  ;;  %3942 = vadd.xlane.f32.xlu0 %v3941_v13 }
0x1fd8   :  { %v4207_v30 = vmul.f32 1.442695, %v4202_v25 }
0x1fd9   :  { %v4205_v55 = vmul.f32 1.442695, %v4201_v46 }
0x1fda   :  { %12281 = vpow2.f32 %v4207_v30 }
0x1fdb   :  { %12283 = vpow2.f32 %v4205_v55 }
0x1fdc   :  { %v13427_v54 = vpop.eup %12277 }
0x1fdd   :  { %v13429_v34 = vpop.eup %12279  ;;  %v4200_v26 = vpop.xlane.xlu1 %4199  ;;  %v3950_v28 = vsel %vm163_vm1, %v13427_v54, 0.0 }
0x1fde   :  { %v4204_v38 = vsub.f32 %v13363_v24, %v4200_v26  ;;  %3951 = vadd.xlane.f32.xlu1 %v3950_v28  ;;  %v4197_v36 = vpop.xlane.xlu0 %4196  ;;  %v3947_v18 = vsel %vm163_vm1, %v13429_v34, 0.0 }
0x1fdf   :  { %v4203_v39 = vsub.f32 %v13365_v27, %v4197_v36  ;;  %3948 = vadd.xlane.f32.xlu0 %v3947_v18 }
0x1fe0   :  { %v4211_v40 = vmul.f32 1.442695, %v4204_v38 }
0x1fe1   :  { %v4209_v41 = vmul.f32 1.442695, %v4203_v39  ;;  %v4466_v42 = vpop.xlane.xlu1 %4465 }
0x1fe2   :  { %12285 = vpow2.f32 %v4211_v40  ;;  %v4474_v44 = vsub.f32 %v13371_v32, %v4466_v42  ;;  %v4463_v45 = vpop.xlane.xlu0 %4462 }
0x1fe3   :  { %12287 = vpow2.f32 %v4209_v41  ;;  %v4473_v50 = vsub.f32 %v13373_v43, %v4463_v45 }
0x1fe4   :  { %v13439_v47 = vpop.eup %12281  ;;  %v4479_v24 = vmul.f32 1.442695, %v4474_v44 }
0x1fe5   :  { %v13441_v49 = vpop.eup %12283  ;;  %v4477_v51 = vmul.f32 1.442695, %v4473_v50  ;;  %v4472_v57 = vpop.xlane.xlu1 %4471  ;;  %v4216_v27 = vsel %vm163_vm1, %v13439_v47, 0.0 }
0x1fe6   :  { %12289 = vpow2.f32 %v4479_v24  ;;  %v4476_v58 = vsub.f32 %v13379_v35, %v4472_v57  ;;  %4217 = vadd.xlane.f32.xlu1 %v4216_v27  ;;  %v4469_v53 = vpop.xlane.xlu0 %4468  ;;  %v4213_v32 = vsel %vm163_vm1, %v13441_v49, 0.0 }
0x1fe7   :  { %12291 = vpow2.f32 %v4477_v51  ;;  %v4475_v43 = vsub.f32 %v13381_v37, %v4469_v53  ;;  %4214 = vadd.xlane.f32.xlu0 %v4213_v32 }
0x1fe8   :  { %v4483_v62 = vmul.f32 1.442695, %v4476_v58 }
0x1fe9   :  { %v4481_v61 = vmul.f32 1.442695, %v4475_v43  ;;  %v3964_v15 = vpop.permute.xlu1 %3963 }
0x1fea   :  { %12293 = vpow2.f32 %v4483_v62  ;;  %v3962_v59 = vpop.permute.xlu0 %3961 }
0x1feb   :  { %12295 = vpow2.f32 %v4481_v61 }
0x1fec   :  { %v13449_v0 = vpop.eup %12285 }
0x1fed   :  { %v13451_v4 = vpop.eup %12287  ;;  %v4222_v35 = vsel %vm163_vm1, %v13449_v0, 0.0  ;;  %v13479_v56 = vpop.permute.xlu1 %4233 }
0x1fee   :  { %4223 = vadd.xlane.f32.xlu1 %v4222_v35  ;;  %v4219_v5 = vsel %vm163_vm1, %v13451_v4, 0.0 }
0x1fef   :  { %4220 = vadd.xlane.f32.xlu0 %v4219_v5 }
0x1ff0   :  { %v13457_v6 = vpop.eup %12289 }
0x1ff1   :  { %v13459_v37 = vpop.eup %12291  ;;  %v4488_v7 = vsel %vm163_vm1, %v13457_v6, 0.0 }
0x1ff2   :  { %4489 = vadd.xlane.f32.xlu1 %v4488_v7  ;;  %v4485_v9 = vsel %vm163_vm1, %v13459_v37, 0.0 }
0x1ff3   :  { %4486 = vadd.xlane.f32.xlu0 %v4485_v9 }
0x1ff4   :  { %v13465_v11 = vpop.eup %12293 }
0x1ff5   :  { %v13467_v12 = vpop.eup %12295  ;;  %v4494_v16 = vsel %vm163_vm1, %v13465_v11, 0.0 }
0x1ff6   :  { %4495 = vadd.xlane.f32.xlu1 %v4494_v16  ;;  %v4491_v14 = vsel %vm163_vm1, %v13467_v12, 0.0 }
0x1ff7   :  { %4492 = vadd.xlane.f32.xlu0 %v4491_v14 }
0x2007   :  { %4505 = vrot.lane.b32.xlu1 %v13297_v17, %s12556_s24 }
0x200d   :  { %4235 = vrot.lane.b32.xlu0 %v13295_v19, %s12555_s23 }
0x2011   :  { %4507 = vrot.lane.b32.xlu0 %v13295_v19, %s12556_s24 }
0x202a   :  { %v3672_v60 = vpop.xlane.xlu1 %3671 }
0x202b   :  { %12297 = vrcp.f32 %v3672_v60  ;;  %v3669_v21 = vpop.xlane.xlu0 %3668 }
0x202c   :  { %12299 = vrcp.f32 %v3669_v21 }
0x2032   :  { %v3678_v23 = vpop.xlane.xlu1 %3677 }
0x2033   :  { %12301 = vrcp.f32 %v3678_v23  ;;  %v3675_v10 = vpop.xlane.xlu0 %3674 }
0x2034   :  { %12303 = vrcp.f32 %v3675_v10 }
0x2035   :  { %v12298_v25 = vpop.eup %12297 }
0x2036   :  { %v12300_v17 = vpop.eup %12299  ;;  %v3682_v29 = vmul.f32 %v12298_v25, %v13397_v63 }
0x2037   :  { %v3680_v13 = vmul.f32 %v12300_v17, %v13399_v52  ;;  %v9752_v17 = vld [vmem:[%s14634_s7 + $0x110] sm:$0xff] }
0x2039   :  { %v11549_v46 = vpack.c.bf16 %v3682_v29, %v3680_v13  ;;  %v9753_v29 = vld [vmem:[%s14634_s7 + $0x118] sm:$0xff] }
0x203a   :  { %v11597_v13 = vpack.c.bf16 %v9753_v29, %v9752_v17 }
0x203b   :  { %11550 = vmatprep.subr.bf16.mxu0 %v11549_v46 }
0x203c   :  { %11552 = vmatpush3.bf16.msra.mxu0 %v11549_v46  ;;  %v9754_v46 = vld [vmem:[%s14634_s7 + $0x120] sm:$0xff] }
0x203d   :  { %v12302_v30 = vpop.eup %12301 }
0x203e   :  { %v12304_v55 = vpop.eup %12303  ;;  %v3686_v26 = vmul.f32 %v12302_v30, %v13405_v2  ;;  %v9755_v30 = vld [vmem:[%s14634_s7 + $0x128] sm:$0xff] }
0x203f   :  { %v3684_v28 = vmul.f32 %v12304_v55, %v13407_v3  ;;  %v9756_v55 = vld [vmem:[%s14634_s7 + $0x130] sm:$0xff] }
0x2041   :  { %v11553_v38 = vpack.c.bf16 %v3686_v26, %v3684_v28  ;;  %v11601_v26 = vpack.c.bf16 %v9755_v30, %v9754_v46  ;;  %v9757_v28 = vld [vmem:[%s14634_s7 + $0x138] sm:$0xff]  ;;  %v9772_v46 = vld [vmem:[%s14636_s11 + $0x40] sm:$0xff]  ;;  %v9773_v30 = vld [vmem:[%s14636_s11 + $0x48] sm:$0xff] }
0x2043   :  { %11554 = vmatprep.subr.bf16.mxu0 %v11553_v38 }
0x2044   :  { %11556 = vmatpush3.bf16.msra.mxu0 %v11553_v38  ;;  %v11605_v38 = vpack.c.bf16 %v9757_v28, %v9756_v55  ;;  %v11625_v55 = vpack.c.bf16 %v9773_v30, %v9772_v46  ;;  %v9775_v28 = vld [vmem:[%s14636_s11 + $0x58] sm:$0xff]  ;;  %v9782_v46 = vld [vmem:[%s14640_s13 + $0x2] ss:$0 sm:$0xff] }
0x2047   :  { %10794 = vmatmul.mubr.msk.f32.vlgmr.msra.gmra.mrb[36].mxu0 %vm163_vm1, %v13295_v19 }
0x2048   :  { %10814 = vmatprep.mubr.msk.f32.mxu0 %vm163_vm1, %v3962_v59 }
0x2063   :  { %v3946_v63 = vpop.xlane.xlu1 %3945 }
0x2064   :  { %12305 = vrcp.f32 %v3946_v63  ;;  %v3943_v52 = vpop.xlane.xlu0 %3942  ;;  %v9758_v63 = vld [vmem:[%s14634_s7 + $0x140] sm:$0xff] }
0x2065   :  { %12307 = vrcp.f32 %v3943_v52  ;;  %v9759_v52 = vld [vmem:[%s14634_s7 + $0x148] sm:$0xff] }
0x206b   :  { %v3952_v36 = vpop.xlane.xlu1 %3951 }
0x206c   :  { %12309 = vrcp.f32 %v3952_v36  ;;  %v3949_v18 = vpop.xlane.xlu0 %3948  ;;  %v11609_v36 = vpack.c.bf16 %v9759_v52, %v9758_v63 }
0x206d   :  { %12311 = vrcp.f32 %v3949_v18 }
0x206e   :  { %v12306_v39 = vpop.eup %12305 }
0x206f   :  { %v12308_v2 = vpop.eup %12307  ;;  %v3956_v3 = vmul.f32 %v12306_v39, %v13417_v22 }
0x2070   :  { %v3954_v40 = vmul.f32 %v12308_v2, %v13419_v8 }
0x2072   :  { %v11561_v41 = vpack.c.bf16 %v3956_v3, %v3954_v40  ;;  %v9760_v3 = vld [vmem:[%s14634_s7 + $0x150] sm:$0xff]  ;;  %v9761_v40 = vld [vmem:[%s14634_s7 + $0x158] sm:$0xff] }
0x2073   :  { %v4218_v42 = vpop.xlane.xlu1 %4217 }
0x2074   :  { %12313 = vrcp.f32 %v4218_v42  ;;  %11562 = vmatprep.subr.bf16.mxu0 %v11561_v41  ;;  %v4215_v19 = vpop.xlane.xlu0 %4214  ;;  %v9762_v42 = vld [vmem:[%s14634_s7 + $0x160] sm:$0xff] }
0x2075   :  { %12315 = vrcp.f32 %v4215_v19  ;;  %11564 = vmatpush3.bf16.msra.mxu0 %v11561_v41  ;;  %v11613_v41 = vpack.c.bf16 %v9761_v40, %v9760_v3  ;;  %v9763_v19 = vld [vmem:[%s14634_s7 + $0x168] sm:$0xff]  ;;  %v9770_v40 = vld [vmem:[%s14637_s9 + $0x2] ss:$0 sm:$0xff] }
0x2076   :  { %v12310_v44 = vpop.eup %12309 }
0x2077   :  { %v12312_v45 = vpop.eup %12311  ;;  %v3960_v50 = vmul.f32 %v12310_v44, %v13427_v54  ;;  %v11617_v44 = vpack.c.bf16 %v9763_v19, %v9762_v42  ;;  %v9771_v42 = vld [vmem:[%s14638_s10 + $0x2] ss:$0 sm:$0xff] }
0x2078   :  { %v3958_v24 = vmul.f32 %v12312_v45, %v13429_v34  ;;  %v9764_v45 = vld [vmem:[%s14634_s7 + $0x170] sm:$0xff] }
0x207a   :  { %v11565_v51 = vpack.c.bf16 %v3960_v50, %v3958_v24  ;;  %v9765_v50 = vld [vmem:[%s14634_s7 + $0x178] sm:$0xff] }
0x207b   :  { %v4224_v57 = vpop.xlane.xlu1 %4223  ;;  %v11621_v24 = vpack.c.bf16 %v9765_v50, %v9764_v45 }
0x207c   :  { %12317 = vrcp.f32 %v4224_v57  ;;  %11566 = vmatprep.subr.bf16.mxu0 %v11565_v51  ;;  %v4221_v22 = vpop.xlane.xlu0 %4220 }
0x207d   :  { %12319 = vrcp.f32 %v4221_v22  ;;  %11568 = vmatpush3.bf16.msra.mxu0 %v11565_v51 }
0x207e   :  { %v12314_v8 = vpop.eup %12313 }
0x207f   :  { %v12316_v27 = vpop.eup %12315  ;;  %v4490_v58 = vpop.xlane.xlu1 %4489  ;;  %v4228_v53 = vmul.f32 %v12314_v8, %v13439_v47 }
0x2080   :  { %12321 = vrcp.f32 %v4490_v58  ;;  %10815 = vmatmul.mubr.msk.f32.vlgmr.msra.gmra.mrb[38].mxu0 %vm163_vm1, %v3964_v15  ;;  %v4487_v32 = vpop.xlane.xlu0 %4486  ;;  %v4226_v54 = vmul.f32 %v12316_v27, %v13441_v49 }
0x2081   :  { %12323 = vrcp.f32 %v4487_v32  ;;  %10835 = vmatprep.mubr.msk.f32.mxu0 %vm163_vm1, %v13479_v56 }
0x2082   :  { %v11573_v34 = vpack.c.bf16 %v4228_v53, %v4226_v54 }
0x2083   :  { %v4496_v43 = vpop.xlane.xlu1 %4495 }
0x2084   :  { %12325 = vrcp.f32 %v4496_v43  ;;  %11574 = vmatprep.subr.bf16.mxu0 %v11573_v34  ;;  %v4493_v62 = vpop.xlane.xlu0 %4492 }
0x2085   :  { %12327 = vrcp.f32 %v4493_v62  ;;  %11576 = vmatpush3.bf16.msra.mxu0 %v11573_v34 }
0x2086   :  { %v12318_v61 = vpop.eup %12317 }
0x2087   :  { %v12320_v35 = vpop.eup %12319  ;;  %v4232_v47 = vmul.f32 %v12318_v61, %v13449_v0  ;;  %v4506_v23 = vpop.permute.xlu1 %4505 }
0x2088   :  { %v4230_v5 = vmul.f32 %v12320_v35, %v13451_v4  ;;  %v4236_v60 = vpop.permute.xlu0 %4235 }
0x208a   :  { %v12322_v7 = vpop.eup %12321  ;;  %v11577_v9 = vpack.c.bf16 %v4232_v47, %v4230_v5 }
0x208b   :  { %v12324_v49 = vpop.eup %12323  ;;  %v4500_v16 = vmul.f32 %v12322_v7, %v13457_v6 }
0x208c   :  { %11578 = vmatprep.subr.bf16.mxu0 %v11577_v9  ;;  %v4498_v14 = vmul.f32 %v12324_v49, %v13459_v37  ;;  %v4508_v6 = vpop.permute.xlu0 %4507  ;;  %v9750_v37 = vld [vmem:[%s14634_s7 + $0x100] sm:$0xff] }
0x208d   :  { %11580 = vmatpush3.bf16.msra.mxu0 %v11577_v9 }
0x208e   :  { %v12326_v15 = vpop.eup %12325  ;;  %v11585_v56 = vpack.c.bf16 %v4500_v16, %v4498_v14 }
0x208f   :  { %v12328_v59 = vpop.eup %12327  ;;  %v4504_v21 = vmul.f32 %v12326_v15, %v13465_v11  ;;  %v9751_v11 = vld [vmem:[%s14634_s7 + $0x108] sm:$0xff]  ;;  %v9767_v15 = vld [vmem:[%s14635_s8 + $0x2] ss:$0 sm:$0xff] }
0x2090   :  { %10836 = vmatmul.mubr.msk.f32.vlgmr.msra.gmra.mrb[40].mxu0 %vm163_vm1, %v4236_v60  ;;  %11586 = vmatprep.subr.bf16.mxu0 %v11585_v56  ;;  %v4502_v0 = vmul.f32 %v12328_v59, %v13467_v12  ;;  %v11593_v10 = vpack.c.bf16 %v9751_v11, %v9750_v37 }
0x2091   :  { %11588 = vmatpush3.bf16.msra.mxu0 %v11585_v56  ;;  %10856 = vmatprep.mubr.msk.f32.mxu0 %vm163_vm1, %v4506_v23 }
0x2092   :  { %v11589_v4 = vpack.c.bf16 %v4504_v21, %v4502_v0  ;;  %11594 = vmatprep.subr.bf16.mxu1 %v11593_v10 }
0x2093   :  { %11596 = vmatpush3.bf16.msra.mxu1 %v11593_v10 }
0x2094   :  { %11590 = vmatprep.subr.bf16.mxu0 %v11589_v4  ;;  %11598 = vmatprep.subr.bf16.mxu1 %v11597_v13 }
0x2095   :  { %11592 = vmatpush3.bf16.msra.mxu0 %v11589_v4 }
0x2096   :  { %11626 = vmatprep.subr.bf16.mxu0 %v11625_v55 }
0x2097   :  { %11600 = vmatpush3.bf16.msra.mxu1 %v11597_v13 }
0x2098   :  { %10857 = vmatmul.mubr.msk.f32.vlgmr.msra.gmra.mrb[42].mxu0 %vm163_vm1, %v4508_v6  ;;  %11602 = vmatprep.subr.bf16.mxu1 %v11601_v26 }
0x2099   :  { %11628 = vmatpush3.bf16.msra.mxu0 %v11625_v55 }
0x209b   :  { %11604 = vmatpush3.bf16.msra.mxu1 %v11601_v26  ;;  %v9774_v26 = vld [vmem:[%s14636_s11 + $0x50] sm:$0xff] }
0x209c   :  { %11606 = vmatprep.subr.bf16.mxu1 %v11605_v38 }
0x209f   :  { %11608 = vmatpush3.bf16.msra.mxu1 %v11605_v38  ;;  %v11629_v38 = vpack.c.bf16 %v9775_v28, %v9774_v26  ;;  %v9783_v26 = vld [vmem:[%s14641_s14 + $0x2] ss:$0 sm:$0xff] }
0x20a0   :  { %11610 = vmatprep.subr.bf16.mxu1 %v11609_v36 }
0x20a1   :  { %11630 = vmatprep.subr.bf16.mxu0 %v11629_v38 }
0x20a2   :  { %11632 = vmatpush3.bf16.msra.mxu0 %v11629_v38 }
0x20a3   :  { %11612 = vmatpush3.bf16.msra.mxu1 %v11609_v36 }
0x20a4   :  { %11614 = vmatprep.subr.bf16.mxu1 %v11613_v41 }
0x20a7   :  { %11616 = vmatpush3.bf16.msra.mxu1 %v11613_v41 }
0x20a8   :  { %11618 = vmatprep.subr.bf16.mxu1 %v11617_v44 }
0x20ab   :  { %11620 = vmatpush3.bf16.msra.mxu1 %v11617_v44 }
0x20ac   :  { %11622 = vmatprep.subr.bf16.mxu1 %v11621_v24 }
0x20af   :  { %11624 = vmatpush3.bf16.msra.mxu1 %v11621_v24 }
0x211a   :  { %v10795_v12 = vpop.f32.mrb[36].mxu0 }
0x211b   :  { %v3759_v25 = vpop.f32.mrb[37].mxu0 }
0x2153   :  { %v10816_v18 = vpop.f32.mrb[38].mxu0 }
0x2154   :  { %v4035_v39 = vpop.f32.mrb[39].mxu0 }
0x2155   :  { %v12016_v2 = vpack.i.bf16 %v10816_v18, %v4035_v39 }
0x2157   :  { %12017 = vrot.lane.b32.xlu1 %v12016_v2, %s12556_s24 }
0x2163   :  { %v10837_v51 = vpop.f32.mrb[40].mxu0 }
0x2164   :  { %v4307_v57 = vpop.f32.mrb[41].mxu0 }
0x2165   :  { %v12021_v22 = vpack.i.bf16 %v10837_v51, %v4307_v57 }
0x2167   :  { %12022 = vrot.lane.b32.xlu0 %v12021_v22, %s12555_s23 }
0x216b   :  { %v10858_v8 = vpop.f32.mrb[42].mxu0 }
0x216c   :  { %v4579_v27 = vpop.f32.mrb[43].mxu0 }
0x216d   :  { %v12026_v58 = vpack.i.bf16 %v10858_v8, %v4579_v27  ;;  %v9777_v8 = vld [vmem:[%s14639_s12 + $0x2] ss:$0 sm:$0xff] }
0x216f   :  { %12027 = vrot.lane.b32.xlu1 %v12026_v58, %s12554_s22 }
0x21c9   :  { %v12018_v53 = vpop.permute.xlu1 %12017 }
0x21ca   :  { %v12020_v54 = vunpack.i.h.bf16 %v12018_v53  ;;  %v12019_v34 = vunpack.i.l.bf16 %v12018_v53 }
0x21cc   :  { %v4613_v35 = vsel %vm163_vm1, %v10795_v12, %v12020_v54  ;;  %v4612_v7 = vsel %vm163_vm1, %v3759_v25, %v12019_v34 }
0x21d9   :  { %v12023_v32 = vpop.permute.xlu0 %12022 }
0x21da   :  { %v12025_v43 = vunpack.i.h.bf16 %v12023_v32  ;;  %v12024_v62 = vunpack.i.l.bf16 %v12023_v32 }
0x21dc   :  { %v4615_v9 = vsel %vm1437_vm2, %v4613_v35, %v12025_v43  ;;  %v4614_v49 = vsel %vm1437_vm2, %v4612_v7, %v12024_v62 }
0x21e1   :  { %v12028_v61 = vpop.permute.xlu1 %12027 }
0x21e2   :  { %v12030_v47 = vunpack.i.h.bf16 %v12028_v61  ;;  %v12029_v5 = vunpack.i.l.bf16 %v12028_v61 }
0x21e4   :  { %v4616_v16 = vsel %vm1440_vm3, %v4614_v49, %v12029_v5  ;;  %v4617_v14 = vsel %vm1440_vm3, %v4615_v9, %v12030_v47  ;;  %v9785_v49 = vld [vmem:[%s14629_s3 + $0xc8] sm:$0xff] }
0x21e5   :  { %10891 = vmatprep.mubr.f32.mxu1 %v4616_v16  ;;  %v9787_v16 = vld [vmem:[%s14629_s3 + $0xd8] sm:$0xff] }
0x21e6   :  { %10892 = vmatmul.mubr.f32.vlgmr.msra.gmra.mrb[56].mxu1 %v4617_v14  ;;  %v11633_v14 = vpack.c.bf16 %v9787_v16, %v9785_v49 }
0x21e8   :  { %11634 = vmatprep.subr.bf16.mxu0 %v11633_v14 }
0x22b9   :  { %v10893_v56 = vpop.f32.mrb[56].mxu1 }
0x22ba   :  { %v4715_v59 = vadd.f32 %v10893_v56, %v9767_v15  ;;  %v4709_v60 = vpop.f32.mrb[57].mxu1  ;;  %v9786_v56 = vld [vmem:[%s14629_s3 + $0xd0] sm:$0xff] }
0x22bb   :  { %v4710_v21 = vadd.f32 %v9767_v15, %v4709_v60  ;;  %v9784_v15 = vld [vmem:[%s14629_s3 + $0xc0] sm:$0xff]  ;;  %v9789_v60 = vld [vmem:[%s14629_s3 + $0xe8] sm:$0xff] }
0x22bc   :  { %v4725_v23 = vsel %vm163_vm1, %v4715_v59, 0.0 }
0x22bd   :  { %4726 = vadd.xlane.f32.xlu1 %v4725_v23  ;;  %v4722_v0 = vsel %vm163_vm1, %v4710_v21, 0.0 }
0x22be   :  { %4723 = vadd.xlane.f32.xlu0 %v4722_v0  ;;  %v9788_v0 = vld [vmem:[%s14629_s3 + $0xe0] sm:$0xff] }
0x234a   :  { %v4727_v4 = vpop.xlane.xlu1 %4726 }
0x234b   :  { %v4729_v6 = vmul.f32 0.03125, %v4727_v4  ;;  %v4724_v37 = vpop.xlane.xlu0 %4723  ;;  %v9790_v4 = vld [vmem:[%s14629_s3 + $0xf0] sm:$0xff] }
0x234c   :  { %v4728_v11 = vmul.f32 0.03125, %v4724_v37 }
0x234d   :  { %v4731_v10 = vsub.f32 %v4715_v59, %v4729_v6  ;;  %v11635_v59 = vpack.c.bf16 %v9786_v56, %v9784_v15  ;;  %v11639_v6 = vpack.c.bf16 %v9790_v4, %v9788_v0 }
0x234e   :  { %v4730_v12 = vsub.f32 %v4710_v21, %v4728_v11  ;;  %v9791_v21 = vld [vmem:[%s14629_s3 + $0xf8] sm:$0xff] }
0x234f   :  { %v4733_v29 = vmul.f32 %v4731_v10, %v4731_v10  ;;  %v11637_v23 = vpack.c.bf16 %v9791_v21, %v9789_v60 }
0x2350   :  { %v4732_v25 = vmul.f32 %v4730_v12, %v4730_v12 }
0x2351   :  { %v4737_v13 = vsel %vm163_vm1, %v4733_v29, 0.0 }
0x2352   :  { %v4734_v17 = vsel %vm163_vm1, %v4732_v25, 0.0 }
0x2353   :  { %4735 = vadd.xlane.f32.xlu0 %v4734_v17 }
0x2357   :  { %4738 = vadd.xlane.f32.xlu0 %v4737_v13 }
0x23e0   :  { %v4736_v63 = vpop.xlane.xlu0 %4735 }
0x23e1   :  { %v4740_v52 = vmul.f32 0.03125, %v4736_v63 }
0x23e3   :  { %v4742_v36 = vadd.f32 1e-05, %v4740_v52 }
0x23e4   :  { %v4739_v18 = vpop.xlane.xlu0 %4738 }
0x23e5   :  { %12329 = vrsqrt.f32 %v4742_v36  ;;  %v4741_v39 = vmul.f32 0.03125, %v4739_v18 }
0x23e7   :  { %v4743_v2 = vadd.f32 1e-05, %v4741_v39  ;;  %v9792_v39 = vld [vmem:[%s14632_s4 + $0x6] sm:$0x3] }
0x23e9   :  { %12331 = vrsqrt.f32 %v4743_v2  ;;  %v4927_v2 = vrot.slane %v9792_v39, %v12704_v31 }
0x23ef   :  { %v12330_v3 = vpop.eup %12329 }
0x23f0   :  { %v4746_v41 = vmul.f32 %v12330_v3, %v4730_v12 }
0x23f2   :  { %v4754_v19 = vmul.f32 %v9770_v40, %v4746_v41 }
0x23f3   :  { %v12332_v44 = vpop.eup %12331 }
0x23f4   :  { %v4747_v45 = vmul.f32 %v12332_v44, %v4731_v10  ;;  %v4762_v50 = vadd.f32 %v9771_v42, %v4754_v19 }
0x23f6   :  { %v4755_v24 = vmul.f32 %v9770_v40, %v4747_v45  ;;  %v4764_v51 = vadd.f32 %v4762_v50, %v13270_v48  ;;  %v4923_v40 = vrot.slane %v9792_v39, %v12709_v33 }
0x23f8   :  { %v4763_v57 = vadd.f32 %v9771_v42, %v4755_v24  ;;  %10902 = vmatprep.mubr.msk.f32.mxu0 %vm163_vm1, %v4764_v51 }
0x23fa   :  { %v4765_v22 = vadd.f32 %v4763_v57, %v13276_v1 }
0x23fc   :  { %10903 = vmatmul.mubr.msk.f32.vlgmr.msra.gmra.mrb[44].mxu0 %vm163_vm1, %v4765_v22 }
0x23fd   :  { %5000 = vmatprep.mubr.f32.mxu0 %v12553_v20  ;;  %11636 = vmatpush1.bf16.msra.mxu0 %v11635_v59 }
0x23fe   :  { %11638 = vmatprep.subr.bf16.mxu0 %v11637_v23 }
0x2401   :  { %11640 = vmatpush1.bf16.msra.mxu0 %v11639_v6 }
0x24cf   :  { %v10904_v27 = vpop.f32.mrb[44].mxu0 }
0x24d0   :  { %v4857_v58 = vadd.f32 %v10904_v27, %v9777_v8  ;;  %v4851_v53 = vpop.f32.mrb[45].mxu0 }
0x24d1   :  { %v4852_v32 = vadd.f32 %v9777_v8, %v4851_v53 }
0x24d2   :  { %v4867_v54 = vsel %vm163_vm1, %v4857_v58, 0.0 }
0x24d3   :  { %4868 = vadd.xlane.f32.xlu0 %v4867_v54  ;;  %v4864_v48 = vsel %vm163_vm1, %v4852_v32, 0.0 }
0x24d4   :  { %4865 = vadd.xlane.f32.xlu1 %v4864_v48 }
0x2560   :  { %v4869_v34 = vpop.xlane.xlu0 %4868 }
0x2561   :  { %v4871_v1 = vmul.f32 0.03125, %v4869_v34  ;;  %v4866_v43 = vpop.xlane.xlu1 %4865 }
0x2562   :  { %v4870_v62 = vmul.f32 0.03125, %v4866_v43 }
0x2563   :  { %v4873_v61 = vsub.f32 %v4857_v58, %v4871_v1 }
0x2564   :  { %v4872_v35 = vsub.f32 %v4852_v32, %v4870_v62 }
0x2565   :  { %v4875_v47 = vmul.f32 %v4873_v61, %v4873_v61 }
0x2566   :  { %v4874_v5 = vmul.f32 %v4872_v35, %v4872_v35 }
0x2567   :  { %v4879_v7 = vsel %vm163_vm1, %v4875_v47, 0.0 }
0x2568   :  { %4880 = vadd.xlane.f32.xlu0 %v4879_v7  ;;  %v4876_v9 = vsel %vm163_vm1, %v4874_v5, 0.0 }
0x2569   :  { %4877 = vadd.xlane.f32.xlu1 %v4876_v9 }
0x25f5   :  { %v4881_v37 = vpop.xlane.xlu0 %4880 }
0x25f6   :  { %v4883_v11 = vmul.f32 0.03125, %v4881_v37  ;;  %v4878_v10 = vpop.xlane.xlu1 %4877 }
0x25f7   :  { %v4882_v12 = vmul.f32 0.03125, %v4878_v10 }
0x25f8   :  { %v4885_v25 = vadd.f32 1e-05, %v4883_v11 }
0x25f9   :  { %v4884_v17 = vadd.f32 1e-05, %v4882_v12 }
0x25fa   :  { %12333 = vrsqrt.f32 %v4885_v25 }
0x25fb   :  { %12335 = vrsqrt.f32 %v4884_v17 }
0x2604   :  { %v12334_v29 = vpop.eup %12333 }
0x2605   :  { %v12336_v13 = vpop.eup %12335  ;;  %v4889_v30 = vmul.f32 %v12334_v29, %v4873_v61 }
0x2606   :  { %v4888_v55 = vmul.f32 %v12336_v13, %v4872_v35 }
0x2607   :  { %v4897_v28 = vmul.f32 %v9782_v46, %v4889_v30 }
0x2608   :  { %v4896_v38 = vmul.f32 %v9782_v46, %v4888_v55  ;;  %v13687_v46 = vld [vmem:[%s14633_s6 + $0x3] ss:$0 sm:$0xff] }
0x2609   :  { %v4905_v52 = vadd.f32 %v9783_v26, %v4897_v28 }
0x260a   :  { %v4904_v63 = vadd.f32 %v9783_v26, %v4896_v38 }
0x260b   :  { %v13635_v18 = vadd.f32 %v4905_v52, %v4765_v22 }
0x260c   :  { %v13630_v36 = vadd.f32 %v4904_v63, %v4764_v51 }
0x260e   :  { %9793 = vmatmul.mubr.msk.f32.vlgmr.msra.gmra.mrb[46].mxu0 %vm163_vm1, %v13630_v36 }
0x260f   :  { %5006 = vmatprep.mubr.f32.mxu0 %v12553_v20 }
0x2612   :  { %9794 = vmatmul.mubr.msk.f32.gmra.mrb[48].mxu0 %vm163_vm1, %v13635_v18 }
0x26e1   :  { %v5002_v3 = vpop.f32.mrb[46].mxu0 }
0x26e2   :  { %v5004_v41 = vpop.f32.mrb[47].mxu0  ;;  %v5003_v44 = vadd.f32 %v5002_v3, %v4923_v40 }
0x26e3   :  { %v13644_v42 = vadd.f32 %v5004_v41, %v4927_v2 }
0x26e5   :  { %v5008_v19 = vpop.f32.mrb[48].mxu0  ;;  %5276 = vrot.lane.b32.xlu1 %v13644_v42, %s12554_s22 }
0x26e6   :  { %v5009_v45 = vadd.f32 %v5008_v19, %v4923_v40  ;;  %v5010_v50 = vpop.f32.mrb[49].mxu0 }
0x26e7   :  { %v13648_v24 = vadd.f32 %v5010_v50, %v4927_v2 }
0x26e8   :  { %v13650_v51 = vpack.i.bf16 %v5009_v45, %v5003_v44  ;;  %v11641_v57 = vpack.c.bf16 %v5009_v45, %v5003_v44 }
0x26e9   :  { %5278 = vrot.lane.b32.xlu0 %v13648_v24, %s12554_s22 }
0x26ea   :  { %12032 = vrot.lane.b32.xlu1 %v13650_v51, %s12554_s22  ;;  %11642 = vmatprep.subr.bf16.mxu0 %v11641_v57 }
0x26eb   :  { %11644 = vmatpush3.bf16.msra.mxu0 %v11641_v57 }
0x2713   :  { %5020 = vxpose.xlu1.b32.start [1/2] (short) (narrow) %v13644_v42, 32 }
0x2717   :  { %5021 = vxpose.xlu1.b32.end [2/2] (short) (narrow) %v13648_v24, 32 }
0x2757   :  { %v5277_v22 = vpop.permute.xlu1 %5276 }
0x2758   :  { %5282 = vxpose.xlu0.b32.start [1/2] (short) (narrow) %v5277_v22, 32 }
0x275b   :  { %v5279_v8 = vpop.permute.xlu0 %5278 }
0x275c   :  { %5283 = vxpose.xlu0.b32.end [2/2] (short) (narrow) %v5279_v8, 32  ;;  %v12033_v27 = vpop.permute.xlu1 %12032 }
0x275d   :  { %v12035_v58 = vunpack.i.h.bf16 %v12033_v27  ;;  %v12034_v53 = vunpack.i.l.bf16 %v12033_v27 }
0x275f   :  { %v11653_v32 = vpack.c.bf16 %v12035_v58, %v12034_v53 }
0x2761   :  { %11654 = vmatprep.subr.bf16.mxu1 %v11653_v32 }
0x2762   :  { %11656 = vmatpush3.bf16.msra.mxu1 %v11653_v32 }
0x2793   :  { %v5036_v54 = vpop.trf.xlu1 }
0x2794   :  { %10909 = vmatprep.mubr.msk.f32.mxu0 %vm61_vm0, %v5036_v54 }
0x2797   :  { %v5037_v48 = vpop.trf.xlu1 }
0x2798   :  { %10910 = vmatmul.mubr.msk.f32.vlgmr.msra.gmra.mrb[50].mxu0 %vm61_vm0, %v5037_v48 }
0x279b   :  { %v5038_v34 = vpop.trf.xlu1 }
0x279c   :  { %10912 = vmatprep.mubr.msk.f32.mxu0 %vm61_vm0, %v5038_v34 }
0x279f   :  { %v5039_v1 = vpop.trf.xlu1 }
0x27a0   :  { %10913 = vmatmul.mubr.msk.f32.gmra.mrb[52].mxu0 %vm61_vm0, %v5039_v1 }
0x27a1   :  { %10923 = vmatprep.mubr.msk.f32.mxu0 %vm163_vm1, %v13687_v46 }
0x27d8   :  { %v5298_v43 = vpop.trf.xlu0 }
0x27d9   :  { %10930 = vmatprep.mubr.msk.f32.mxu1 %vm61_vm0, %v5298_v43 }
0x27dc   :  { %v5299_v62 = vpop.trf.xlu0 }
0x27dd   :  { %10931 = vmatmul.mubr.msk.f32.vlgmr.msra.gmra.mrb[58].mxu1 %vm61_vm0, %v5299_v62 }
0x27e0   :  { %v5300_v61 = vpop.trf.xlu0 }
0x27e1   :  { %10933 = vmatprep.mubr.msk.f32.mxu1 %vm61_vm0, %v5300_v61 }
0x27e4   :  { %v5301_v35 = vpop.trf.xlu0 }
0x27e5   :  { %10934 = vmatmul.mubr.msk.f32.gmra.mrb[60].mxu1 %vm61_vm0, %v5301_v35 }
0x286b   :  { %v10911_v47 = vpop.f32.mrb[50].mxu0 }
0x286c   :  { %v5150_v5 = vmul.f32 0.17677669, %v10911_v47  ;;  %v5130_v7 = vpop.f32.mrb[51].mxu0 }
0x286d   :  { %v5149_v9 = vmul.f32 0.17677669, %v5130_v7 }
0x286e   :  { %v5156_v49 = vsel %vm163_vm1, %v5150_v5, -inf }
0x286f   :  { %5157 = vmax.xlane.f32.xlu1 %v5156_v49  ;;  %v5153_v16 = vsel %vm163_vm1, %v5149_v9, -inf }
0x2870   :  { %5154 = vmax.xlane.f32.xlu0 %v5153_v16 }
0x2873   :  { %v10914_v14 = vpop.f32.mrb[52].mxu0 }
0x2874   :  { %v5152_v15 = vmul.f32 0.17677669, %v10914_v14  ;;  %v5140_v56 = vpop.f32.mrb[53].mxu0 }
0x2875   :  { %v5151_v59 = vmul.f32 0.17677669, %v5140_v56 }
0x2876   :  { %v5162_v60 = vsel %vm163_vm1, %v5152_v15, -inf }
0x2877   :  { %5163 = vmax.xlane.f32.xlu1 %v5162_v60  ;;  %v5159_v21 = vsel %vm163_vm1, %v5151_v59, -inf }
0x2878   :  { %5160 = vmax.xlane.f32.xlu0 %v5159_v21 }
0x28b0   :  { %v10932_v23 = vpop.f32.mrb[58].mxu1 }
0x28b1   :  { %v5420_v0 = vmul.f32 0.17677669, %v10932_v23  ;;  %v5400_v4 = vpop.f32.mrb[59].mxu1 }
0x28b2   :  { %v5419_v6 = vmul.f32 0.17677669, %v5400_v4 }
0x28b3   :  { %v5426_v37 = vsel %vm163_vm1, %v5420_v0, -inf }
0x28b4   :  { %5427 = vmax.xlane.f32.xlu1 %v5426_v37  ;;  %v5423_v11 = vsel %vm163_vm1, %v5419_v6, -inf }
0x28b5   :  { %5424 = vmax.xlane.f32.xlu0 %v5423_v11 }
0x28b8   :  { %v10935_v10 = vpop.f32.mrb[60].mxu1 }
0x28b9   :  { %v5422_v12 = vmul.f32 0.17677669, %v10935_v10  ;;  %v5410_v25 = vpop.f32.mrb[61].mxu1 }
0x28ba   :  { %v5421_v17 = vmul.f32 0.17677669, %v5410_v25 }
0x28bb   :  { %v5432_v29 = vsel %vm163_vm1, %v5422_v12, -inf }
0x28bc   :  { %5433 = vmax.xlane.f32.xlu1 %v5432_v29  ;;  %v5429_v13 = vsel %vm163_vm1, %v5421_v17, -inf }
0x28bd   :  { %5430 = vmax.xlane.f32.xlu0 %v5429_v13 }
0x28cd   :  { %5814 = vrot.lane.b32.xlu1 %v13644_v42, %s12556_s24 }
0x28d1   :  { %5816 = vrot.lane.b32.xlu1 %v13648_v24, %s12556_s24 }
0x28d3   :  { %5546 = vrot.lane.b32.xlu0 %v13644_v42, %s12555_s23 }
0x28d7   :  { %5548 = vrot.lane.b32.xlu0 %v13648_v24, %s12555_s23 }
0x28db   :  { %12037 = vrot.lane.b32.xlu0 %v13650_v51, %s12555_s23 }
0x28fc   :  { %v5158_v30 = vpop.xlane.xlu1 %5157 }
0x28fd   :  { %v5166_v55 = vsub.f32 %v5150_v5, %v5158_v30  ;;  %v5155_v26 = vpop.xlane.xlu0 %5154 }
0x28fe   :  { %v5165_v28 = vsub.f32 %v5149_v9, %v5155_v26 }
0x28ff   :  { %v5171_v38 = vmul.f32 1.442695, %v5166_v55 }
0x2900   :  { %v5169_v63 = vmul.f32 1.442695, %v5165_v28 }
0x2901   :  { %12337 = vpow2.f32 %v5171_v38 }
0x2902   :  { %12339 = vpow2.f32 %v5169_v63 }
0x2904   :  { %v5164_v52 = vpop.xlane.xlu1 %5163 }
0x2905   :  { %v5168_v39 = vsub.f32 %v5152_v15, %v5164_v52  ;;  %v5161_v2 = vpop.xlane.xlu0 %5160 }
0x2906   :  { %v5167_v3 = vsub.f32 %v5151_v59, %v5161_v2 }
0x2907   :  { %v5175_v40 = vmul.f32 1.442695, %v5168_v39 }
0x2908   :  { %v5173_v41 = vmul.f32 1.442695, %v5167_v3 }
0x2909   :  { %12341 = vpow2.f32 %v5175_v40 }
0x290a   :  { %12343 = vpow2.f32 %v5173_v41 }
0x290b   :  { %v12338_v42 = vpop.eup %12337 }
0x290c   :  { %v12340_v19 = vpop.eup %12339  ;;  %v5180_v44 = vsel %vm163_vm1, %v12338_v42, 0.0 }
0x290d   :  { %5181 = vadd.xlane.f32.xlu1 %v5180_v44  ;;  %v5177_v45 = vsel %vm163_vm1, %v12340_v19, 0.0 }
0x290e   :  { %5178 = vadd.xlane.f32.xlu0 %v5177_v45 }
0x2913   :  { %v12342_v50 = vpop.eup %12341 }
0x2914   :  { %v13693_v24 = vpop.eup %12343  ;;  %v5186_v57 = vsel %vm163_vm1, %v12342_v50, 0.0 }
0x2915   :  { %5187 = vadd.xlane.f32.xlu0 %v5186_v57  ;;  %v5183_v22 = vsel %vm163_vm1, %v13693_v24, 0.0 }
0x2916   :  { %5184 = vadd.xlane.f32.xlu1 %v5183_v22 }
0x2941   :  { %v5428_v8 = vpop.xlane.xlu1 %5427 }
0x2942   :  { %v5436_v27 = vsub.f32 %v5420_v0, %v5428_v8  ;;  %v5425_v58 = vpop.xlane.xlu0 %5424 }
0x2943   :  { %v5435_v53 = vsub.f32 %v5419_v6, %v5425_v58 }
0x2944   :  { %v5441_v32 = vmul.f32 1.442695, %v5436_v27 }
0x2945   :  { %v5439_v54 = vmul.f32 1.442695, %v5435_v53 }
0x2946   :  { %12345 = vpow2.f32 %v5441_v32 }
0x2947   :  { %12347 = vpow2.f32 %v5439_v54 }
0x2949   :  { %v5434_v48 = vpop.xlane.xlu1 %5433 }
0x294a   :  { %v5438_v34 = vsub.f32 %v5422_v12, %v5434_v48  ;;  %v5431_v1 = vpop.xlane.xlu0 %5430 }
0x294b   :  { %v5437_v43 = vsub.f32 %v5421_v17, %v5431_v1 }
0x294c   :  { %v5445_v62 = vmul.f32 1.442695, %v5438_v34 }
0x294d   :  { %v5443_v61 = vmul.f32 1.442695, %v5437_v43  ;;  %v5815_v59 = vpop.permute.xlu1 %5814 }
0x294e   :  { %12349 = vpow2.f32 %v5445_v62  ;;  %v5547_v15 = vpop.permute.xlu0 %5546 }
0x294f   :  { %12351 = vpow2.f32 %v5443_v61 }
0x2950   :  { %v12346_v35 = vpop.eup %12345 }
0x2951   :  { %v12348_v47 = vpop.eup %12347  ;;  %v5450_v5 = vsel %vm163_vm1, %v12346_v35, 0.0  ;;  %v5817_v60 = vpop.permute.xlu1 %5816 }
0x2952   :  { %5451 = vadd.xlane.f32.xlu1 %v5450_v5  ;;  %v5447_v7 = vsel %vm163_vm1, %v12348_v47, 0.0  ;;  %v5549_v56 = vpop.permute.xlu0 %5548 }
0x2953   :  { %5448 = vadd.xlane.f32.xlu0 %v5447_v7 }
0x2956   :  { %v12038_v21 = vpop.permute.xlu0 %12037 }
0x2957   :  { %v12040_v13 = vunpack.i.h.bf16 %v12038_v21  ;;  %v12039_v30 = vunpack.i.l.bf16 %v12038_v21 }
0x2958   :  { %v13700_v9 = vpop.eup %12349 }
0x2959   :  { %v5456_v49 = vsel %vm163_vm1, %v13700_v9, 0.0  ;;  %v13704_v16 = vpop.eup %12351  ;;  %v11665_v28 = vpack.c.bf16 %v12040_v13, %v12039_v30 }
0x295a   :  { %5457 = vadd.xlane.f32.xlu1 %v5456_v49  ;;  %v5453_v14 = vsel %vm163_vm1, %v13704_v16, 0.0 }
0x295e   :  { %5454 = vadd.xlane.f32.xlu1 %v5453_v14 }
0x2969   :  { %12042 = vrot.lane.b32.xlu0 %v13650_v51, %s12556_s24 }
0x296f   :  { %5467 = vrot.lane.b32.xlu1 %v13687_v46, %s12554_s22 }
0x2987   :  { %5552 = vxpose.xlu0.b32.start [1/2] (short) (narrow) %v5547_v15, 32 }
0x298b   :  { %5553 = vxpose.xlu0.b32.end [2/2] (short) (narrow) %v5549_v56, 32 }
0x2998   :  { %5820 = vxpose.xlu1.b32.start [1/2] (short) (narrow) %v5815_v59, 32 }
0x299a   :  { %v5182_v23 = vpop.xlane.xlu1 %5181 }
0x299b   :  { %12353 = vrcp.f32 %v5182_v23  ;;  %v5179_v0 = vpop.xlane.xlu0 %5178 }
0x299c   :  { %12355 = vrcp.f32 %v5179_v0  ;;  %5821 = vxpose.xlu1.b32.end [2/2] (short) (narrow) %v5817_v60, 32 }
0x29a2   :  { %v5188_v4 = vpop.xlane.xlu0 %5187 }
0x29a3   :  { %12357 = vrcp.f32 %v5188_v4  ;;  %v5185_v6 = vpop.xlane.xlu1 %5184 }
0x29a4   :  { %12359 = vrcp.f32 %v5185_v6 }
0x29a5   :  { %v12354_v51 = vpop.eup %12353 }
0x29a6   :  { %v12356_v37 = vpop.eup %12355  ;;  %v5192_v11 = vmul.f32 %v12354_v51, %v12338_v42 }
0x29a7   :  { %v5190_v10 = vmul.f32 %v12356_v37, %v12340_v19 }
0x29a9   :  { %v11645_v12 = vpack.c.bf16 %v5192_v11, %v5190_v10 }
0x29ab   :  { %11646 = vmatprep.subr.bf16.mxu0 %v11645_v12 }
0x29ac   :  { %11648 = vmatpush3.bf16.msra.mxu0 %v11645_v12 }
0x29ad   :  { %v12358_v25 = vpop.eup %12357 }
0x29ae   :  { %v12360_v17 = vpop.eup %12359  ;;  %v5196_v29 = vmul.f32 %v12358_v25, %v12342_v50 }
0x29af   :  { %v5194_v55 = vmul.f32 %v12360_v17, %v13693_v24 }
0x29b1   :  { %v11649_v26 = vpack.c.bf16 %v5196_v29, %v5194_v55 }
0x29b3   :  { %11650 = vmatprep.subr.bf16.mxu0 %v11649_v26 }
0x29b4   :  { %11652 = vmatpush3.bf16.msra.mxu0 %v11649_v26 }
0x29b5   :  { %11666 = vmatprep.subr.bf16.mxu0 %v11665_v28 }
0x29b7   :  { %10924 = vmatmul.mubr.msk.f32.vlgmr.msra.gmra.mrb[54].mxu0 %vm163_vm1, %v13687_v46 }
0x29b8   :  { %11668 = vmatpush3.bf16.msra.mxu0 %v11665_v28 }
0x29df   :  { %v5452_v38 = vpop.xlane.xlu1 %5451 }
0x29e0   :  { %12361 = vrcp.f32 %v5452_v38  ;;  %v5449_v63 = vpop.xlane.xlu0 %5448 }
0x29e1   :  { %12363 = vrcp.f32 %v5449_v63 }
0x29e4   :  { %v12043_v45 = vpop.permute.xlu0 %12042 }
0x29e5   :  { %v12045_v24 = vunpack.i.h.bf16 %v12043_v45  ;;  %v12044_v57 = vunpack.i.l.bf16 %v12043_v45 }
0x29e7   :  { %v5458_v52 = vpop.xlane.xlu1 %5457  ;;  %v11677_v58 = vpack.c.bf16 %v12045_v24, %v12044_v57 }
0x29e8   :  { %12365 = vrcp.f32 %v5458_v52 }
0x29ea   :  { %v12362_v39 = vpop.eup %12361 }
0x29eb   :  { %v12364_v2 = vpop.eup %12363  ;;  %v5455_v3 = vpop.xlane.xlu1 %5454  ;;  %v5462_v40 = vmul.f32 %v12362_v39, %v12346_v35 }
0x29ec   :  { %12367 = vrcp.f32 %v5455_v3  ;;  %v5460_v41 = vmul.f32 %v12364_v2, %v12348_v47 }
0x29ee   :  { %v11657_v42 = vpack.c.bf16 %v5462_v40, %v5460_v41 }
0x29ef   :  { %v5468_v19 = vpop.permute.xlu1 %5467 }
0x29f0   :  { %11658 = vmatprep.subr.bf16.mxu1 %v11657_v42  ;;  %10944 = vmatprep.mubr.msk.f32.mxu1 %vm163_vm1, %v5468_v19 }
0x29f1   :  { %11660 = vmatpush3.bf16.msra.mxu1 %v11657_v42 }
0x29f2   :  { %v12366_v44 = vpop.eup %12365 }
0x29f3   :  { %v5466_v8 = vmul.f32 %v12366_v44, %v13700_v9 }
0x29f6   :  { %v12368_v50 = vpop.eup %12367 }
0x29f7   :  { %v5464_v22 = vmul.f32 %v12368_v50, %v13704_v16 }
0x29f9   :  { %v11661_v27 = vpack.c.bf16 %v5466_v8, %v5464_v22 }
0x29fb   :  { %11662 = vmatprep.subr.bf16.mxu1 %v11661_v27 }
0x29fc   :  { %11664 = vmatpush3.bf16.msra.mxu1 %v11661_v27 }
0x29fd   :  { %11678 = vmatprep.subr.bf16.mxu1 %v11677_v58 }
0x29ff   :  { %10945 = vmatmul.mubr.msk.f32.vlgmr.msra.gmra.mrb[62].mxu1 %vm163_vm1, %v5468_v19 }
0x2a00   :  { %11680 = vmatpush3.bf16.msra.mxu1 %v11677_v58 }
0x2a07   :  { %v5568_v53 = vpop.trf.xlu0 }
0x2a08   :  { %10951 = vmatprep.mubr.msk.f32.mxu0 %vm61_vm0, %v5568_v53 }
0x2a0b   :  { %v5569_v32 = vpop.trf.xlu0 }
0x2a0c   :  { %10952 = vmatmul.mubr.msk.f32.vlgmr.msra.gmra.mrb[56].mxu0 %vm61_vm0, %v5569_v32 }
0x2a0f   :  { %v5570_v54 = vpop.trf.xlu0 }
0x2a10   :  { %10954 = vmatprep.mubr.msk.f32.mxu0 %vm61_vm0, %v5570_v54 }
0x2a13   :  { %v5571_v48 = vpop.trf.xlu0 }
0x2a14   :  { %10955 = vmatmul.mubr.msk.f32.gmra.mrb[58].mxu0 %vm61_vm0, %v5571_v48 }
0x2a18   :  { %v5836_v34 = vpop.trf.xlu1 }
0x2a19   :  { %10972 = vmatprep.mubr.msk.f32.mxu1 %vm61_vm0, %v5836_v34 }
0x2a1c   :  { %v5837_v1 = vpop.trf.xlu1 }
0x2a1d   :  { %10973 = vmatmul.mubr.msk.f32.vlgmr.msra.gmra.mrb[64].mxu1 %vm61_vm0, %v5837_v1 }
0x2a20   :  { %v5838_v43 = vpop.trf.xlu1 }
0x2a21   :  { %10975 = vmatprep.mubr.msk.f32.mxu1 %vm61_vm0, %v5838_v43 }
0x2a24   :  { %v5839_v62 = vpop.trf.xlu1 }
0x2a25   :  { %10976 = vmatmul.mubr.msk.f32.gmra.mrb[66].mxu1 %vm61_vm0, %v5839_v62 }
0x2a8a   :  { %v13727_v61 = vpop.f32.mrb[54].mxu0 }
0x2a8b   :  { %v13729_v35 = vpop.f32.mrb[55].mxu0 }
0x2ad2   :  { %v13731_v47 = vpop.f32.mrb[62].mxu1 }
0x2ad3   :  { %v13733_v5 = vpop.f32.mrb[63].mxu1 }
0x2ad4   :  { %v12046_v7 = vpack.i.bf16 %v13731_v47, %v13733_v5 }
0x2adf   :  { %v10953_v9 = vpop.f32.mrb[56].mxu0 }
0x2ae0   :  { %v5688_v49 = vmul.f32 0.17677669, %v10953_v9  ;;  %v5668_v16 = vpop.f32.mrb[57].mxu0 }
0x2ae1   :  { %v5687_v14 = vmul.f32 0.17677669, %v5668_v16 }
0x2ae2   :  { %v5694_v15 = vsel %vm163_vm1, %v5688_v49, -inf }
0x2ae3   :  { %5695 = vmax.xlane.f32.xlu1 %v5694_v15  ;;  %v5691_v56 = vsel %vm163_vm1, %v5687_v14, -inf }
0x2ae4   :  { %5692 = vmax.xlane.f32.xlu0 %v5691_v56 }
0x2ae7   :  { %v10956_v59 = vpop.f32.mrb[58].mxu0 }
0x2ae8   :  { %v5690_v60 = vmul.f32 0.17677669, %v10956_v59  ;;  %v5678_v21 = vpop.f32.mrb[59].mxu0 }
0x2ae9   :  { %v5689_v23 = vmul.f32 0.17677669, %v5678_v21 }
0x2aea   :  { %v5700_v0 = vsel %vm163_vm1, %v5690_v60, -inf }
0x2aeb   :  { %5701 = vmax.xlane.f32.xlu0 %v5700_v0  ;;  %v5697_v4 = vsel %vm163_vm1, %v5689_v23, -inf }
0x2aec   :  { %5698 = vmax.xlane.f32.xlu1 %v5697_v4 }
0x2af0   :  { %v10974_v6 = vpop.f32.mrb[64].mxu1 }
0x2af1   :  { %v5956_v51 = vmul.f32 0.17677669, %v10974_v6  ;;  %v5936_v37 = vpop.f32.mrb[65].mxu1 }
0x2af2   :  { %v5955_v11 = vmul.f32 0.17677669, %v5936_v37 }
0x2af3   :  { %v5962_v10 = vsel %vm163_vm1, %v5956_v51, -inf }
0x2af4   :  { %5963 = vmax.xlane.f32.xlu0 %v5962_v10  ;;  %v5959_v12 = vsel %vm163_vm1, %v5955_v11, -inf }
0x2af8   :  { %v10977_v25 = vpop.f32.mrb[66].mxu1  ;;  %5960 = vmax.xlane.f32.xlu0 %v5959_v12 }
0x2af9   :  { %v5958_v17 = vmul.f32 0.17677669, %v10977_v25  ;;  %v5946_v29 = vpop.f32.mrb[67].mxu1 }
0x2afa   :  { %v5957_v13 = vmul.f32 0.17677669, %v5946_v29 }
0x2afb   :  { %v5968_v30 = vsel %vm163_vm1, %v5958_v17, -inf }
0x2afc   :  { %5969 = vmax.xlane.f32.xlu0 %v5968_v30  ;;  %v5965_v55 = vsel %vm163_vm1, %v5957_v13, -inf }
0x2afd   :  { %5966 = vmax.xlane.f32.xlu1 %v5965_v55 }
0x2b70   :  { %v5696_v26 = vpop.xlane.xlu1 %5695 }
0x2b71   :  { %v5704_v28 = vsub.f32 %v5688_v49, %v5696_v26  ;;  %v5693_v38 = vpop.xlane.xlu0 %5692 }
0x2b72   :  { %v5703_v63 = vsub.f32 %v5687_v14, %v5693_v38 }
0x2b73   :  { %v5709_v52 = vmul.f32 1.442695, %v5704_v28 }
0x2b74   :  { %v5707_v39 = vmul.f32 1.442695, %v5703_v63 }
0x2b75   :  { %12369 = vpow2.f32 %v5709_v52 }
0x2b76   :  { %12371 = vpow2.f32 %v5707_v39 }
0x2b78   :  { %v5702_v2 = vpop.xlane.xlu0 %5701 }
0x2b79   :  { %v5706_v3 = vsub.f32 %v5690_v60, %v5702_v2  ;;  %v5699_v40 = vpop.xlane.xlu1 %5698 }
0x2b7a   :  { %v5705_v41 = vsub.f32 %v5689_v23, %v5699_v40 }
0x2b7b   :  { %v5713_v42 = vmul.f32 1.442695, %v5706_v3 }
0x2b7c   :  { %v5711_v19 = vmul.f32 1.442695, %v5705_v41 }
0x2b7d   :  { %12373 = vpow2.f32 %v5713_v42 }
0x2b7e   :  { %12375 = vpow2.f32 %v5711_v19 }
0x2b7f   :  { %v12370_v44 = vpop.eup %12369 }
0x2b80   :  { %v12372_v45 = vpop.eup %12371  ;;  %v5718_v50 = vsel %vm163_vm1, %v12370_v44, 0.0 }
0x2b81   :  { %5719 = vadd.xlane.f32.xlu0 %v5718_v50  ;;  %v5964_v24 = vpop.xlane.xlu0 %5963  ;;  %v5715_v57 = vsel %vm163_vm1, %v12372_v45, 0.0  ;;  %v9822_v50 = vld [vmem:[%s14634_s7 + $0x188] sm:$0xff] }
0x2b82   :  { %v5972_v22 = vsub.f32 %v5956_v51, %v5964_v24  ;;  %5716 = vadd.xlane.f32.xlu1 %v5715_v57  ;;  %v9823_v24 = vld [vmem:[%s14634_s7 + $0x190] sm:$0xff] }
0x2b84   :  { %v5977_v8 = vmul.f32 1.442695, %v5972_v22  ;;  %v9824_v22 = vld [vmem:[%s14634_s7 + $0x198] sm:$0xff] }
0x2b85   :  { %v5961_v27 = vpop.xlane.xlu0 %5960 }
0x2b86   :  { %12377 = vpow2.f32 %v5977_v8  ;;  %v5971_v58 = vsub.f32 %v5955_v11, %v5961_v27  ;;  %v11693_v8 = vpack.c.bf16 %v9824_v22, %v9823_v24  ;;  %v9825_v27 = vld [vmem:[%s14634_s7 + $0x1a0] sm:$0xff]  ;;  %v9844_v22 = vld [vmem:[%s14636_s11 + $0x68] sm:$0xff] }
0x2b87   :  { %v12374_v53 = vpop.eup %12373 }
0x2b88   :  { %v12376_v32 = vpop.eup %12375  ;;  %v5975_v54 = vmul.f32 1.442695, %v5971_v58  ;;  %v5724_v48 = vsel %vm163_vm1, %v12374_v53, 0.0  ;;  %v9826_v58 = vld [vmem:[%s14634_s7 + $0x1a8] sm:$0xff] }
0x2b89   :  { %5725 = vadd.xlane.f32.xlu0 %v5724_v48  ;;  %v5970_v34 = vpop.xlane.xlu0 %5969  ;;  %v5721_v1 = vsel %vm163_vm1, %v12376_v32, 0.0 }
0x2b8a   :  { %12379 = vpow2.f32 %v5975_v54  ;;  %v5974_v43 = vsub.f32 %v5958_v17, %v5970_v34  ;;  %5722 = vadd.xlane.f32.xlu1 %v5721_v1  ;;  %v5967_v62 = vpop.xlane.xlu1 %5966  ;;  %v9828_v54 = vld [vmem:[%s14634_s7 + $0x1b8] sm:$0xff]  ;;  %v9829_v34 = vld [vmem:[%s14634_s7 + $0x1c0] sm:$0xff]  ;;  %v9830_v1 = vld [vmem:[%s14634_s7 + $0x1c8] sm:$0xff] }
0x2b8b   :  { %v5973_v9 = vsub.f32 %v5957_v13, %v5967_v62  ;;  %v11705_v62 = vpack.c.bf16 %v9830_v1, %v9829_v34 }
0x2b8c   :  { %v5981_v49 = vmul.f32 1.442695, %v5974_v43  ;;  %v9831_v43 = vld [vmem:[%s14634_s7 + $0x1d0] sm:$0xff] }
0x2b8d   :  { %v5979_v16 = vmul.f32 1.442695, %v5973_v9  ;;  %v9832_v9 = vld [vmem:[%s14634_s7 + $0x1d8] sm:$0xff] }
0x2b8e   :  { %12381 = vpow2.f32 %v5981_v49  ;;  %v11709_v49 = vpack.c.bf16 %v9832_v9, %v9831_v43 }
0x2b8f   :  { %12383 = vpow2.f32 %v5979_v16  ;;  %v9833_v16 = vld [vmem:[%s14634_s7 + $0x1e0] sm:$0xff] }
0x2b90   :  { %v12378_v14 = vpop.eup %12377 }
0x2b91   :  { %v5986_v15 = vsel %vm163_vm1, %v12378_v14, 0.0 }
0x2b92   :  { %5987 = vadd.xlane.f32.xlu0 %v5986_v15 }
0x2b94   :  { %v12380_v56 = vpop.eup %12379 }
0x2b95   :  { %v5983_v59 = vsel %vm163_vm1, %v12380_v56, 0.0 }
0x2b96   :  { %5984 = vadd.xlane.f32.xlu1 %v5983_v59 }
0x2b98   :  { %v12382_v60 = vpop.eup %12381 }
0x2b99   :  { %v12384_v21 = vpop.eup %12383  ;;  %v5992_v23 = vsel %vm163_vm1, %v12382_v60, 0.0 }
0x2b9a   :  { %5993 = vadd.xlane.f32.xlu0 %v5992_v23  ;;  %v5989_v0 = vsel %vm163_vm1, %v12384_v21, 0.0  ;;  %v9836_v23 = vld [vmem:[%s14634_s7 + $0x1f8] sm:$0xff] }
0x2b9b   :  { %5990 = vadd.xlane.f32.xlu1 %v5989_v0 }
0x2bac   :  { %5735 = vrot.lane.b32.xlu1 %v13687_v46, %s12555_s23 }
0x2bb0   :  { %12047 = vrot.lane.b32.xlu1 %v12046_v7, %s12556_s24  ;;  %6003 = vrot.lane.b32.xlu0 %v13687_v46, %s12556_s24 }
0x2c0e   :  { %v5720_v4 = vpop.xlane.xlu0 %5719 }
0x2c0f   :  { %12385 = vrcp.f32 %v5720_v4  ;;  %v5717_v6 = vpop.xlane.xlu1 %5716 }
0x2c10   :  { %12387 = vrcp.f32 %v5717_v6 }
0x2c16   :  { %v5726_v51 = vpop.xlane.xlu0 %5725 }
0x2c17   :  { %12389 = vrcp.f32 %v5726_v51  ;;  %v5723_v37 = vpop.xlane.xlu1 %5722 }
0x2c18   :  { %12391 = vrcp.f32 %v5723_v37 }
0x2c19   :  { %v12386_v11 = vpop.eup %12385 }
0x2c1a   :  { %v12388_v10 = vpop.eup %12387  ;;  %v5730_v12 = vmul.f32 %v12386_v11, %v12370_v44 }
0x2c1b   :  { %v5728_v25 = vmul.f32 %v12388_v10, %v12372_v45  ;;  %v9821_v45 = vld [vmem:[%s14634_s7 + $0x180] sm:$0xff] }
0x2c1c   :  { %v11689_v57 = vpack.c.bf16 %v9822_v50, %v9821_v45 }
0x2c1d   :  { %v11669_v17 = vpack.c.bf16 %v5730_v12, %v5728_v25 }
0x2c1f   :  { %v5988_v29 = vpop.xlane.xlu0 %5987  ;;  %11670 = vmatprep.subr.bf16.mxu0 %v11669_v17 }
0x2c20   :  { %11672 = vmatpush3.bf16.msra.mxu0 %v11669_v17  ;;  %12393 = vrcp.f32 %v5988_v29 }
0x2c21   :  { %v12390_v47 = vpop.eup %12389 }
0x2c22   :  { %v12392_v5 = vpop.eup %12391  ;;  %v5734_v46 = vmul.f32 %v12390_v47, %v12374_v53  ;;  %v11697_v53 = vpack.c.bf16 %v9826_v58, %v9825_v27  ;;  %v9845_v27 = vld [vmem:[%s14636_s11 + $0x70] sm:$0xff]  ;;  %v9846_v58 = vld [vmem:[%s14636_s11 + $0x78] sm:$0xff] }
0x2c23   :  { %v5985_v7 = vpop.xlane.xlu1 %5984  ;;  %v5732_v13 = vmul.f32 %v12392_v5, %v12376_v32  ;;  %v9827_v32 = vld [vmem:[%s14634_s7 + $0x1b0] sm:$0xff] }
0x2c24   :  { %12395 = vrcp.f32 %v5985_v7  ;;  %v11701_v48 = vpack.c.bf16 %v9828_v54, %v9827_v32  ;;  %v9856_v32 = vld [vmem:[%s14629_s3 + $0x108] sm:$0xff]  ;;  %v9858_v54 = vld [vmem:[%s14629_s3 + $0x118] sm:$0xff] }
0x2c25   :  { %v11673_v30 = vpack.c.bf16 %v5734_v46, %v5732_v13 }
0x2c27   :  { %v5994_v55 = vpop.xlane.xlu0 %5993  ;;  %11674 = vmatprep.subr.bf16.mxu0 %v11673_v30 }
0x2c28   :  { %12397 = vrcp.f32 %v5994_v55  ;;  %11676 = vmatpush3.bf16.msra.mxu0 %v11673_v30  ;;  %v5991_v26 = vpop.xlane.xlu1 %5990 }
0x2c29   :  { %12399 = vrcp.f32 %v5991_v26  ;;  %11690 = vmatprep.subr.bf16.mxu0 %v11689_v57 }
0x2c2a   :  { %v12394_v38 = vpop.eup %12393 }
0x2c2b   :  { %v6004_v28 = vpop.permute.xlu0 %6003  ;;  %v5998_v2 = vmul.f32 %v12394_v38, %v12378_v14  ;;  %v9834_v14 = vld [vmem:[%s14634_s7 + $0x1e8] sm:$0xff] }
0x2c2c   :  { %v5736_v63 = vpop.permute.xlu1 %5735  ;;  %10986 = vmatprep.mubr.msk.f32.mxu1 %vm163_vm1, %v6004_v28  ;;  %v11713_v15 = vpack.c.bf16 %v9834_v14, %v9833_v16  ;;  %v9841_v14 = vld [vmem:[%s14637_s9 + $0x3] ss:$0 sm:$0xff] }
0x2c2d   :  { %10965 = vmatprep.mubr.msk.f32.mxu0 %vm163_vm1, %v5736_v63 }
0x2c2e   :  { %v12396_v52 = vpop.eup %12395  ;;  %10966 = vmatmul.mubr.msk.f32.vlgmr.msra.gmra.mrb[60].mxu0 %vm163_vm1, %v5736_v63 }
0x2c2f   :  { %v5996_v39 = vmul.f32 %v12396_v52, %v12380_v56  ;;  %11692 = vmatpush3.bf16.msra.mxu0 %v11689_v57  ;;  %v9843_v57 = vld [vmem:[%s14636_s11 + $0x60] sm:$0xff] }
0x2c30   :  { %11694 = vmatprep.subr.bf16.mxu0 %v11693_v8  ;;  %v12048_v37 = vpop.permute.xlu1 %12047 }
0x2c31   :  { %v11681_v3 = vpack.c.bf16 %v5998_v2, %v5996_v39  ;;  %v12050_v10 = vunpack.i.h.bf16 %v12048_v37  ;;  %v12049_v12 = vunpack.i.l.bf16 %v12048_v37  ;;  %v9860_v37 = vld [vmem:[%s14629_s3 + $0x128] sm:$0xff] }
0x2c32   :  { %v12398_v40 = vpop.eup %12397 }
0x2c33   :  { %v12400_v41 = vpop.eup %12399  ;;  %11682 = vmatprep.subr.bf16.mxu1 %v11681_v3  ;;  %v6002_v42 = vmul.f32 %v12398_v40, %v12382_v60  ;;  %11696 = vmatpush3.bf16.msra.mxu0 %v11693_v8  ;;  %v6107_v47 = vsel %vm163_vm1, %v13727_v61, %v12050_v10  ;;  %v6106_v7 = vsel %vm163_vm1, %v13729_v35, %v12049_v12 }
0x2c34   :  { %11684 = vmatpush3.bf16.msra.mxu1 %v11681_v3  ;;  %v6000_v19 = vmul.f32 %v12400_v41, %v12384_v21  ;;  %11698 = vmatprep.subr.bf16.mxu0 %v11697_v53  ;;  %v9835_v21 = vld [vmem:[%s14634_s7 + $0x1f0] sm:$0xff]  ;;  %v11721_v8 = vpack.c.bf16 %v9844_v22, %v9843_v57 }
0x2c35   :  { %v11717_v0 = vpack.c.bf16 %v9836_v23, %v9835_v21 }
0x2c36   :  { %v11685_v44 = vpack.c.bf16 %v6002_v42, %v6000_v19 }
0x2c37   :  { %11700 = vmatpush3.bf16.msra.mxu0 %v11697_v53  ;;  %v11725_v53 = vpack.c.bf16 %v9846_v58, %v9845_v27 }
0x2c38   :  { %11686 = vmatprep.subr.bf16.mxu1 %v11685_v44  ;;  %11702 = vmatprep.subr.bf16.mxu0 %v11701_v48 }
0x2c39   :  { %11688 = vmatpush3.bf16.msra.mxu1 %v11685_v44 }
0x2c3a   :  { %11722 = vmatprep.subr.bf16.mxu1 %v11721_v8 }
0x2c3b   :  { %11704 = vmatpush3.bf16.msra.mxu0 %v11701_v48  ;;  %v11729_v48 = vpack.c.bf16 %v9858_v54, %v9856_v32 }
0x2c3c   :  { %10987 = vmatmul.mubr.msk.f32.vlgmr.msra.gmra.mrb[68].mxu1 %vm163_vm1, %v6004_v28  ;;  %11706 = vmatprep.subr.bf16.mxu0 %v11705_v62  ;;  %v9838_v28 = vld [vmem:[%s14635_s8 + $0x3] ss:$0 sm:$0xff] }
0x2c3d   :  { %11724 = vmatpush3.bf16.msra.mxu1 %v11721_v8 }
0x2c3e   :  { %11726 = vmatprep.subr.bf16.mxu1 %v11725_v53 }
0x2c3f   :  { %11708 = vmatpush3.bf16.msra.mxu0 %v11705_v62 }
0x2c40   :  { %11710 = vmatprep.subr.bf16.mxu0 %v11709_v49 }
0x2c41   :  { %11728 = vmatpush3.bf16.msra.mxu1 %v11725_v53 }
0x2c42   :  { %11730 = vmatprep.subr.bf16.mxu1 %v11729_v48 }
0x2c43   :  { %11712 = vmatpush3.bf16.msra.mxu0 %v11709_v49 }
0x2c44   :  { %11714 = vmatprep.subr.bf16.mxu0 %v11713_v15 }
0x2c47   :  { %11716 = vmatpush3.bf16.msra.mxu0 %v11713_v15 }
0x2c48   :  { %11718 = vmatprep.subr.bf16.mxu0 %v11717_v0 }
0x2c4b   :  { %11720 = vmatpush3.bf16.msra.mxu0 %v11717_v0 }
0x2d01   :  { %v10967_v56 = vpop.f32.mrb[60].mxu0 }
0x2d02   :  { %v5805_v59 = vpop.f32.mrb[61].mxu0 }
0x2d03   :  { %v12051_v60 = vpack.i.bf16 %v10967_v56, %v5805_v59 }
0x2d05   :  { %12052 = vrot.lane.b32.xlu1 %v12051_v60, %s12555_s23  ;;  %v9842_v60 = vld [vmem:[%s14638_s10 + $0x3] ss:$0 sm:$0xff] }
0x2d0f   :  { %v10988_v4 = vpop.f32.mrb[68].mxu1 }
0x2d10   :  { %v6073_v6 = vpop.f32.mrb[69].mxu1 }
0x2d11   :  { %v12056_v51 = vpack.i.bf16 %v10988_v4, %v6073_v6  ;;  %v9855_v4 = vld [vmem:[%s14629_s3 + $0x100] sm:$0xff]  ;;  %v9857_v6 = vld [vmem:[%s14629_s3 + $0x110] sm:$0xff] }
0x2d12   :  { %v11731_v12 = vpack.c.bf16 %v9857_v6, %v9855_v4 }
0x2d13   :  { %12057 = vrot.lane.b32.xlu0 %v12056_v51, %s12554_s22 }
0x2d77   :  { %v12053_v11 = vpop.permute.xlu1 %12052 }
0x2d78   :  { %v12055_v25 = vunpack.i.h.bf16 %v12053_v11  ;;  %v12054_v17 = vunpack.i.l.bf16 %v12053_v11  ;;  %v9862_v11 = vld [vmem:[%s14629_s3 + $0x138] sm:$0xff] }
0x2d7a   :  { %v6108_v13 = vsel %vm1437_vm2, %v6106_v7, %v12054_v17  ;;  %v6109_v30 = vsel %vm1437_vm2, %v6107_v47, %v12055_v25  ;;  %v11733_v17 = vpack.c.bf16 %v9862_v11, %v9860_v37  ;;  %v9861_v47 = vld [vmem:[%s14629_s3 + $0x130] sm:$0xff]  ;;  %v9867_v7 = vld [vmem:[%s14630_s5 + $0x88] sm:$0xff]  ;;  %v9853_v37 = vld [vmem:[%s14640_s13 + $0x3] ss:$0 sm:$0xff] }
0x2d85   :  { %v12058_v29 = vpop.permute.xlu0 %12057 }
0x2d86   :  { %v12060_v5 = vunpack.i.h.bf16 %v12058_v29  ;;  %v12059_v46 = vunpack.i.l.bf16 %v12058_v29  ;;  %v9859_v29 = vld [vmem:[%s14629_s3 + $0x120] sm:$0xff] }
0x2d88   :  { %v6110_v55 = vsel %vm1440_vm3, %v6108_v13, %v12059_v46  ;;  %v6111_v26 = vsel %vm1440_vm3, %v6109_v30, %v12060_v5  ;;  %v11735_v5 = vpack.c.bf16 %v9861_v47, %v9859_v29  ;;  %v9866_v46 = vld [vmem:[%s14630_s5 + $0x80] sm:$0xff]  ;;  %v9868_v30 = vld [vmem:[%s14630_s5 + $0x90] sm:$0xff] }
0x2d89   :  { %11021 = vmatprep.mubr.f32.mxu0 %v6110_v55  ;;  %v11737_v13 = vpack.c.bf16 %v9867_v7, %v9866_v46  ;;  %v9869_v55 = vld [vmem:[%s14630_s5 + $0x98] sm:$0xff] }
0x2d8a   :  { %11022 = vmatmul.mubr.f32.vlgmr.msra.gmra.mrb[62].mxu0 %v6111_v26  ;;  %v11741_v26 = vpack.c.bf16 %v9869_v55, %v9868_v30 }
0x2e5d   :  { %v11023_v61 = vpop.f32.mrb[62].mxu0 }
0x2e5e   :  { %v6209_v38 = vadd.f32 %v11023_v61, %v9838_v28  ;;  %v6203_v63 = vpop.f32.mrb[63].mxu0 }
0x2e5f   :  { %v6204_v52 = vadd.f32 %v9838_v28, %v6203_v63  ;;  %v9848_v28 = vld [vmem:[%s14639_s12 + $0x3] ss:$0 sm:$0xff] }
0x2e60   :  { %v6219_v35 = vsel %vm163_vm1, %v6209_v38, 0.0 }
0x2e61   :  { %6220 = vadd.xlane.f32.xlu0 %v6219_v35  ;;  %v6216_v39 = vsel %vm163_vm1, %v6204_v52, 0.0 }
0x2e62   :  { %6217 = vadd.xlane.f32.xlu1 %v6216_v39 }
0x2eee   :  { %v6221_v2 = vpop.xlane.xlu0 %6220 }
0x2eef   :  { %v6223_v3 = vmul.f32 0.03125, %v6221_v2  ;;  %v6218_v40 = vpop.xlane.xlu1 %6217  ;;  %v9863_v2 = vld [vmem:[%s14632_s4 + $0x8] sm:$0x3] }
0x2ef0   :  { %v6222_v41 = vmul.f32 0.03125, %v6218_v40  ;;  %v6417_v40 = vrot.slane %v9863_v2, %v12709_v33 }
0x2ef1   :  { %v6225_v42 = vsub.f32 %v6209_v38, %v6223_v3 }
0x2ef2   :  { %v6224_v19 = vsub.f32 %v6204_v52, %v6222_v41 }
0x2ef3   :  { %v6227_v44 = vmul.f32 %v6225_v42, %v6225_v42 }
0x2ef4   :  { %v6226_v45 = vmul.f32 %v6224_v19, %v6224_v19 }
0x2ef5   :  { %v6231_v50 = vsel %vm163_vm1, %v6227_v44, 0.0 }
0x2ef6   :  { %6232 = vadd.xlane.f32.xlu1 %v6231_v50  ;;  %v6228_v24 = vsel %vm163_vm1, %v6226_v45, 0.0  ;;  %v6421_v50 = vrot.slane %v9863_v2, %v12704_v31 }
0x2ef7   :  { %6229 = vadd.xlane.f32.xlu0 %v6228_v24 }
0x2f83   :  { %v6233_v34 = vpop.xlane.xlu1 %6232 }
0x2f84   :  { %v6235_v1 = vmul.f32 0.03125, %v6233_v34  ;;  %v6230_v43 = vpop.xlane.xlu0 %6229 }
0x2f85   :  { %v6234_v62 = vmul.f32 0.03125, %v6230_v43 }
0x2f86   :  { %v6237_v9 = vadd.f32 1e-05, %v6235_v1 }
0x2f87   :  { %v6236_v49 = vadd.f32 1e-05, %v6234_v62 }
0x2f88   :  { %12401 = vrsqrt.f32 %v6237_v9 }
0x2f89   :  { %12403 = vrsqrt.f32 %v6236_v49 }
0x2f92   :  { %v12402_v16 = vpop.eup %12401 }
0x2f93   :  { %v12404_v15 = vpop.eup %12403  ;;  %v6241_v56 = vmul.f32 %v12402_v16, %v6225_v42 }
0x2f94   :  { %v6240_v59 = vmul.f32 %v12404_v15, %v6224_v19 }
0x2f95   :  { %v6249_v21 = vmul.f32 %v9841_v14, %v6241_v56 }
0x2f96   :  { %v6248_v23 = vmul.f32 %v9841_v14, %v6240_v59 }
0x2f97   :  { %v6257_v0 = vadd.f32 %v9842_v60, %v6249_v21 }
0x2f98   :  { %v6256_v51 = vadd.f32 %v9842_v60, %v6248_v23 }
0x2f99   :  { %v13870_v25 = vadd.f32 %v6257_v0, %v13635_v18 }
0x2f9a   :  { %v13867_v10 = vadd.f32 %v6256_v51, %v13630_v36 }
0x2f9c   :  { %11032 = vmatprep.mubr.msk.f32.mxu1 %vm163_vm1, %v13867_v10 }
0x2f9d   :  { %11033 = vmatmul.mubr.msk.f32.vlgmr.msra.gmra.mrb[70].mxu1 %vm163_vm1, %v13870_v25 }
0x2f9e   :  { %11732 = vmatpush1.bf16.msra.mxu1 %v11731_v12  ;;  %6488 = vmatprep.mubr.f32.mxu1 %v12553_v20 }
0x2f9f   :  { %11734 = vmatprep.subr.bf16.mxu1 %v11733_v17  ;;  %v9854_v17 = vld [vmem:[%s14641_s14 + $0x3] ss:$0 sm:$0xff] }
0x2fa2   :  { %11736 = vmatpush1.bf16.msra.mxu1 %v11735_v5 }
0x2fa3   :  { %11738 = vmatprep.subr.bf16.mxu1 %v11737_v13 }
0x2fa5   :  { %9864 = vmatmul.mubr.msk.f32.vlgmr.msra.gmra.mrb[72].mxu1 %vm163_vm1, %v13630_v36 }
0x2fa6   :  { %6494 = vmatprep.mubr.f32.mxu1 %v12553_v20  ;;  %11740 = vmatpush3.bf16.msra.mxu1 %v11737_v13 }
0x2fa7   :  { %11742 = vmatprep.subr.bf16.mxu1 %v11741_v26 }
0x2fa9   :  { %9865 = vmatmul.mubr.msk.f32.gmra.mrb[74].mxu1 %vm163_vm1, %v13635_v18 }
0x2faa   :  { %11744 = vmatpush3.bf16.msra.mxu1 %v11741_v26 }
0x3070   :  { %v11034_v61 = vpop.f32.mrb[70].mxu1 }
0x3071   :  { %v6351_v38 = vadd.f32 %v11034_v61, %v9848_v28  ;;  %v6345_v63 = vpop.f32.mrb[71].mxu1 }
0x3072   :  { %v6346_v52 = vadd.f32 %v9848_v28, %v6345_v63 }
0x3073   :  { %v6361_v35 = vsel %vm163_vm1, %v6351_v38, 0.0 }
0x3074   :  { %6362 = vadd.xlane.f32.xlu1 %v6361_v35  ;;  %v6358_v39 = vsel %vm163_vm1, %v6346_v52, 0.0 }
0x3075   :  { %6359 = vadd.xlane.f32.xlu0 %v6358_v39 }
0x3078   :  { %v6490_v3 = vpop.f32.mrb[72].mxu1 }
0x3079   :  { %v6492_v41 = vpop.f32.mrb[73].mxu1  ;;  %v6491_v19 = vadd.f32 %v6490_v3, %v6417_v40 }
0x307a   :  { %v6493_v22 = vadd.f32 %v6492_v41, %v6421_v50 }
0x307c   :  { %v6496_v42 = vpop.f32.mrb[74].mxu1 }
0x307d   :  { %v6497_v44 = vadd.f32 %v6496_v42, %v6417_v40  ;;  %v6498_v45 = vpop.f32.mrb[75].mxu1 }
0x307e   :  { %v6499_v8 = vadd.f32 %v6498_v45, %v6421_v50 }
0x307f   :  { %v13910_v24 = vpack.c.bf16 %v6497_v44, %v6491_v19  ;;  %v12061_v57 = vpack.i.bf16 %v6497_v44, %v6491_v19 }
0x3081   :  { %11746 = vmatprep.subr.bf16.mxu1 %v13910_v24 }
0x3085   :  { %7129 = vrot.lane.b32.xlu1 %v6493_v22, %s12555_s23 }
0x3089   :  { %7401 = vrot.lane.b32.xlu1 %v6493_v22, %s12556_s24 }
0x308b   :  { %6855 = vrot.lane.b32.xlu0 %v6493_v22, %s12554_s22 }
0x308d   :  { %12062 = vrot.lane.b32.xlu1 %v12061_v57, %s12554_s22 }
0x308f   :  { %7131 = vrot.lane.b32.xlu0 %v6499_v8, %s12555_s23 }
0x3091   :  { %6857 = vrot.lane.b32.xlu1 %v6499_v8, %s12554_s22 }
0x3093   :  { %7403 = vrot.lane.b32.xlu0 %v6499_v8, %s12556_s24 }
0x3101   :  { %v6363_v27 = vpop.xlane.xlu1 %6362 }
0x3102   :  { %v6365_v58 = vmul.f32 0.03125, %v6363_v27  ;;  %v6360_v53 = vpop.xlane.xlu0 %6359 }
0x3103   :  { %v6364_v32 = vmul.f32 0.03125, %v6360_v53 }
0x3104   :  { %v6367_v54 = vsub.f32 %v6351_v38, %v6365_v58 }
0x3105   :  { %v6366_v48 = vsub.f32 %v6346_v52, %v6364_v32  ;;  %v7130_v9 = vpop.permute.xlu1 %7129  ;;  %v9871_v32 = vld [vmem:[%s14633_s6 + $0x4] ss:$0 sm:$0xff] }
0x3106   :  { %v6369_v34 = vmul.f32 %v6367_v54, %v6367_v54  ;;  %v6856_v14 = vpop.permute.xlu0 %6855 }
0x3107   :  { %v6368_v1 = vmul.f32 %v6366_v48, %v6366_v48 }
0x3108   :  { %v6373_v43 = vsel %vm163_vm1, %v6369_v34, 0.0 }
0x3109   :  { %6374 = vadd.xlane.f32.xlu1 %v6373_v43  ;;  %v6370_v62 = vsel %vm163_vm1, %v6368_v1, 0.0  ;;  %v7402_v49 = vpop.permute.xlu1 %7401 }
0x310a   :  { %6371 = vadd.xlane.f32.xlu0 %v6370_v62  ;;  %v7132_v56 = vpop.permute.xlu0 %7131 }
0x310d   :  { %v12063_v16 = vpop.permute.xlu1 %12062 }
0x310e   :  { %v7404_v59 = vpop.permute.xlu0 %7403  ;;  %v12065_v13 = vunpack.i.h.bf16 %v12063_v16  ;;  %v12064_v30 = vunpack.i.l.bf16 %v12063_v16 }
0x3110   :  { %v11757_v28 = vpack.c.bf16 %v12065_v13, %v12064_v30 }
0x3111   :  { %v6858_v15 = vpop.permute.xlu1 %6857 }
0x311a   :  { %12072 = vrot.lane.b32.xlu1 %v12061_v57, %s12556_s24 }
0x3120   :  { %12067 = vrot.lane.b32.xlu0 %v12061_v57, %s12555_s23 }
0x313e   :  { %6595 = vxpose.xlu0.b32.start [1/2] (short) (narrow) %v6493_v22, 32 }
0x3142   :  { %6596 = vxpose.xlu0.b32.end [2/2] (short) (narrow) %v6499_v8, 32 }
0x3143   :  { %6861 = vxpose.xlu1.b32.start [1/2] (short) (narrow) %v6856_v14, 32 }
0x3147   :  { %6862 = vxpose.xlu1.b32.end [2/2] (short) (narrow) %v6858_v15, 32 }
0x314b   :  { %7135 = vxpose.xlu0.b32.start [1/2] (short) (narrow) %v7130_v9, 32 }
0x314f   :  { %7136 = vxpose.xlu0.b32.end [2/2] (short) (narrow) %v7132_v56, 32 }
0x3150   :  { %7407 = vxpose.xlu1.b32.start [1/2] (short) (narrow) %v7402_v49, 32 }
0x3154   :  { %7408 = vxpose.xlu1.b32.end [2/2] (short) (narrow) %v7404_v59, 32 }
0x3196   :  { %v6375_v60 = vpop.xlane.xlu1 %6374 }
0x3197   :  { %v6377_v21 = vmul.f32 0.03125, %v6375_v60  ;;  %v6372_v23 = vpop.xlane.xlu0 %6371 }
0x3198   :  { %v6376_v0 = vmul.f32 0.03125, %v6372_v23 }
0x3199   :  { %v6379_v4 = vadd.f32 1e-05, %v6377_v21 }
0x319a   :  { %v6378_v6 = vadd.f32 1e-05, %v6376_v0  ;;  %v12073_v63 = vpop.permute.xlu1 %12072 }
0x319b   :  { %12405 = vrsqrt.f32 %v6379_v4  ;;  %v12068_v61 = vpop.permute.xlu0 %12067  ;;  %v12075_v41 = vunpack.i.h.bf16 %v12073_v63  ;;  %v12074_v42 = vunpack.i.l.bf16 %v12073_v63 }
0x319c   :  { %12407 = vrsqrt.f32 %v6378_v6  ;;  %v12070_v52 = vunpack.i.h.bf16 %v12068_v61  ;;  %v12069_v35 = vunpack.i.l.bf16 %v12068_v61 }
0x319d   :  { %v11781_v45 = vpack.c.bf16 %v12075_v41, %v12074_v42 }
0x31a5   :  { %v12406_v51 = vpop.eup %12405 }
0x31a6   :  { %v12408_v11 = vpop.eup %12407  ;;  %v6383_v12 = vmul.f32 %v12406_v51, %v6367_v54 }
0x31a7   :  { %v6382_v29 = vmul.f32 %v12408_v11, %v6366_v48 }
0x31a8   :  { %v6391_v47 = vmul.f32 %v9853_v37, %v6383_v12 }
0x31a9   :  { %v6390_v5 = vmul.f32 %v9853_v37, %v6382_v29 }
0x31aa   :  { %v6399_v46 = vadd.f32 %v9854_v17, %v6391_v47 }
0x31ab   :  { %v6398_v7 = vadd.f32 %v9854_v17, %v6390_v5 }
0x31ac   :  { %v6401_v26 = vadd.f32 %v6399_v46, %v13870_v25 }
0x31ad   :  { %v6400_v55 = vadd.f32 %v6398_v7, %v13867_v10  ;;  %v11769_v10 = vpack.c.bf16 %v12070_v52, %v12069_v35 }
0x31af   :  { %11043 = vmatprep.mubr.msk.f32.mxu1 %vm163_vm1, %v6400_v55 }
0x31b0   :  { %11044 = vmatmul.mubr.msk.f32.vlgmr.msra.gmra.mrb[76].mxu1 %vm163_vm1, %v6401_v26 }
0x31b1   :  { %11748 = vmatpush3.bf16.msra.mxu1 %v13910_v24 }
0x31b2   :  { %11758 = vmatprep.subr.bf16.mxu1 %v11757_v28 }
0x31be   :  { %v6611_v38 = vpop.trf.xlu0 }
0x31bf   :  { %11050 = vmatprep.mubr.msk.f32.mxu1 %vm61_vm0, %v6611_v38 }
0x31c2   :  { %v6612_v39 = vpop.trf.xlu0 }
0x31c3   :  { %11051 = vmatmul.mubr.msk.f32.vlgmr.msra.gmra.mrb[78].mxu1 %vm61_vm0, %v6612_v39  ;;  %v6877_v25 = vpop.trf.xlu1 }
0x31c4   :  { %11760 = vmatpush3.bf16.msra.mxu1 %v11757_v28 }
0x31c5   :  { %11770 = vmatprep.subr.bf16.mxu1 %v11769_v10 }
0x31c6   :  { %v6613_v2 = vpop.trf.xlu0 }
0x31c7   :  { %11053 = vmatprep.mubr.msk.f32.mxu1 %vm61_vm0, %v6613_v2  ;;  %v6878_v3 = vpop.trf.xlu1 }
0x31ca   :  { %v6614_v40 = vpop.trf.xlu0 }
0x31cb   :  { %11054 = vmatmul.mubr.msk.f32.gmra.mrb[80].mxu1 %vm61_vm0, %v6614_v40  ;;  %v6879_v19 = vpop.trf.xlu1 }
0x31cc   :  { %11071 = vmatprep.mubr.msk.f32.mxu1 %vm61_vm0, %v6877_v25 }
0x31ce   :  { %v7151_v44 = vpop.trf.xlu0 }
0x31cf   :  { %11072 = vmatmul.mubr.msk.f32.vlgmr.msra.gmra.mrb[82].mxu1 %vm61_vm0, %v6878_v3  ;;  %v6880_v50 = vpop.trf.xlu1 }
0x31d0   :  { %11772 = vmatpush3.bf16.msra.mxu1 %v11769_v10  ;;  %11074 = vmatprep.mubr.msk.f32.mxu1 %vm61_vm0, %v6879_v19 }
0x31d1   :  { %11782 = vmatprep.subr.bf16.mxu1 %v11781_v45 }
0x31d2   :  { %v7152_v24 = vpop.trf.xlu0 }
0x31d3   :  { %11075 = vmatmul.mubr.msk.f32.gmra.mrb[84].mxu1 %vm61_vm0, %v6880_v50  ;;  %v7423_v57 = vpop.trf.xlu1 }
0x31d4   :  { %11092 = vmatprep.mubr.msk.f32.mxu1 %vm61_vm0, %v7151_v44 }
0x31d6   :  { %v7153_v22 = vpop.trf.xlu0 }
0x31d7   :  { %11093 = vmatmul.mubr.msk.f32.vlgmr.msra.gmra.mrb[86].mxu1 %vm61_vm0, %v7152_v24  ;;  %v7424_v8 = vpop.trf.xlu1 }
0x31d8   :  { %11784 = vmatpush3.bf16.msra.mxu1 %v11781_v45  ;;  %11095 = vmatprep.mubr.msk.f32.mxu1 %vm61_vm0, %v7153_v22 }
0x31da   :  { %v7154_v27 = vpop.trf.xlu0 }
0x31db   :  { %11096 = vmatmul.mubr.msk.f32.gmra.mrb[88].mxu1 %vm61_vm0, %v7154_v27  ;;  %v7425_v58 = vpop.trf.xlu1 }
0x31dc   :  { %11113 = vmatprep.mubr.msk.f32.mxu1 %vm61_vm0, %v7423_v57 }
0x31df   :  { %11114 = vmatmul.mubr.msk.f32.vlgmr.msra.gmra.mrb[90].mxu1 %vm61_vm0, %v7424_v8  ;;  %v7426_v53 = vpop.trf.xlu1 }
0x31e0   :  { %11116 = vmatprep.mubr.msk.f32.mxu1 %vm61_vm0, %v7425_v58 }
0x31e3   :  { %11117 = vmatmul.mubr.msk.f32.gmra.mrb[92].mxu1 %vm61_vm0, %v7426_v53 }
0x3283   :  { %v11045_v54 = vpop.f32.mrb[76].mxu1 }
0x3284   :  { %v13954_v48 = vadd.f32 %v11045_v54, %v9871_v32  ;;  %v6586_v34 = vpop.f32.mrb[77].mxu1 }
0x3285   :  { %v13956_v1 = vadd.f32 %v9871_v32, %v6586_v34 }
0x3287   :  { %11064 = vmatprep.mubr.msk.f32.mxu0 %vm163_vm1, %v13956_v1 }
0x3296   :  { %v11052_v43 = vpop.f32.mrb[78].mxu1 }
0x3297   :  { %v13960_v62 = vmul.f32 0.17677669, %v11052_v43  ;;  %v6705_v9 = vpop.f32.mrb[79].mxu1 }
0x3298   :  { %v13962_v49 = vmul.f32 0.17677669, %v6705_v9 }
0x3299   :  { %v6731_v16 = vsel %vm163_vm1, %v13960_v62, -inf }
0x329a   :  { %6732 = vmax.xlane.f32.xlu1 %v6731_v16  ;;  %v6728_v14 = vsel %vm163_vm1, %v13962_v49, -inf }
0x329b   :  { %6729 = vmax.xlane.f32.xlu0 %v6728_v14 }
0x329e   :  { %v11055_v15 = vpop.f32.mrb[80].mxu1 }
0x329f   :  { %v13968_v56 = vmul.f32 0.17677669, %v11055_v15  ;;  %v6715_v59 = vpop.f32.mrb[81].mxu1 }
0x32a0   :  { %v13970_v60 = vmul.f32 0.17677669, %v6715_v59 }
0x32a1   :  { %v6737_v21 = vsel %vm163_vm1, %v13968_v56, -inf }
0x32a2   :  { %6738 = vmax.xlane.f32.xlu0 %v6737_v21  ;;  %v11073_v23 = vpop.f32.mrb[82].mxu1  ;;  %v6734_v51 = vsel %vm163_vm1, %v13970_v60, -inf }
0x32a3   :  { %v6979_v0 = vpop.f32.mrb[83].mxu1  ;;  %v13976_v6 = vmul.f32 0.17677669, %v11073_v23 }
0x32a4   :  { %v13974_v4 = vmul.f32 0.17677669, %v6979_v0 }
0x32a5   :  { %v7005_v47 = vsel %vm163_vm1, %v13976_v6, -inf }
0x32a6   :  { %v11076_v37 = vpop.f32.mrb[84].mxu1  ;;  %6735 = vmax.xlane.f32.xlu0 %v6734_v51  ;;  %v7002_v11 = vsel %vm163_vm1, %v13974_v4, -inf }
0x32a7   :  { %v13982_v12 = vmul.f32 0.17677669, %v11076_v37  ;;  %7003 = vmax.xlane.f32.xlu1 %v7002_v11  ;;  %v6989_v17 = vpop.f32.mrb[85].mxu1 }
0x32a8   :  { %v13984_v29 = vmul.f32 0.17677669, %v6989_v17 }
0x32a9   :  { %v7011_v13 = vsel %vm163_vm1, %v13982_v12, -inf }
0x32aa   :  { %7006 = vmax.xlane.f32.xlu0 %v7005_v47  ;;  %v11094_v5 = vpop.f32.mrb[86].mxu1  ;;  %v7008_v46 = vsel %vm163_vm1, %v13984_v29, -inf }
0x32ab   :  { %7009 = vmax.xlane.f32.xlu1 %v7008_v46  ;;  %v7251_v7 = vpop.f32.mrb[87].mxu1  ;;  %v13994_v55 = vmul.f32 0.17677669, %v11094_v5 }
0x32ac   :  { %v13992_v30 = vmul.f32 0.17677669, %v7251_v7 }
0x32ad   :  { %v7277_v52 = vsel %vm163_vm1, %v13994_v55, -inf }
0x32ae   :  { %7012 = vmax.xlane.f32.xlu0 %v7011_v13  ;;  %v11097_v26 = vpop.f32.mrb[88].mxu1  ;;  %v7274_v28 = vsel %vm163_vm1, %v13992_v30, -inf }
0x32af   :  { %v13998_v61 = vmul.f32 0.17677669, %v11097_v26  ;;  %7275 = vmax.xlane.f32.xlu1 %v7274_v28  ;;  %v7261_v38 = vpop.f32.mrb[89].mxu1 }
0x32b0   :  { %v14000_v63 = vmul.f32 0.17677669, %v7261_v38 }
0x32b1   :  { %v7283_v2 = vsel %vm163_vm1, %v13998_v61, -inf }
0x32b2   :  { %7278 = vmax.xlane.f32.xlu0 %v7277_v52  ;;  %v11115_v35 = vpop.f32.mrb[90].mxu1  ;;  %v7280_v39 = vsel %vm163_vm1, %v14000_v63, -inf }
0x32b3   :  { %v14006_v10 = vmul.f32 0.17677669, %v11115_v35  ;;  %v7523_v25 = vpop.f32.mrb[91].mxu1  ;;  %7281 = vmax.xlane.f32.xlu1 %v7280_v39 }
0x32b4   :  { %v14010_v3 = vmul.f32 0.17677669, %v7523_v25 }
0x32b5   :  { %v7549_v42 = vsel %vm163_vm1, %v14006_v10, -inf }
0x32b6   :  { %7284 = vmax.xlane.f32.xlu0 %v7283_v2  ;;  %v7546_v40 = vsel %vm163_vm1, %v14010_v3, -inf  ;;  %v11118_v41 = vpop.f32.mrb[92].mxu1 }
0x32b7   :  { %7547 = vmax.xlane.f32.xlu1 %v7546_v40  ;;  %v14016_v19 = vmul.f32 0.17677669, %v11118_v41  ;;  %v7533_v44 = vpop.f32.mrb[93].mxu1 }
0x32b8   :  { %v14022_v50 = vmul.f32 0.17677669, %v7533_v44 }
0x32b9   :  { %v7555_v45 = vsel %vm163_vm1, %v14016_v19, -inf }
0x32ba   :  { %7550 = vmax.xlane.f32.xlu0 %v7549_v42  ;;  %v7552_v24 = vsel %vm163_vm1, %v14022_v50, -inf }
0x32be   :  { %7556 = vmax.xlane.f32.xlu0 %v7555_v45 }
0x32c8   :  { %7046 = vrot.lane.b32.xlu1 %v13956_v1, %s12554_s22 }
0x32ec   :  { %7553 = vmax.xlane.f32.xlu1 %v7552_v24 }
0x3327   :  { %v6733_v57 = vpop.xlane.xlu1 %6732 }
0x3328   :  { %v6741_v22 = vsub.f32 %v13960_v62, %v6733_v57  ;;  %v6730_v8 = vpop.xlane.xlu0 %6729 }
0x3329   :  { %v6740_v27 = vsub.f32 %v13962_v49, %v6730_v8 }
0x332a   :  { %v6746_v58 = vmul.f32 1.442695, %v6741_v22 }
0x332b   :  { %v6744_v53 = vmul.f32 1.442695, %v6740_v27 }
0x332c   :  { %12409 = vpow2.f32 %v6746_v58 }
0x332d   :  { %12411 = vpow2.f32 %v6744_v53 }
0x332f   :  { %v6739_v32 = vpop.xlane.xlu0 %6738 }
0x3330   :  { %v6743_v54 = vsub.f32 %v13968_v56, %v6739_v32 }
0x3332   :  { %v6750_v34 = vmul.f32 1.442695, %v6743_v54 }
0x3333   :  { %v6736_v43 = vpop.xlane.xlu0 %6735 }
0x3334   :  { %12413 = vpow2.f32 %v6750_v34  ;;  %v6742_v9 = vsub.f32 %v13970_v60, %v6736_v43  ;;  %v7004_v16 = vpop.xlane.xlu1 %7003 }
0x3335   :  { %v7014_v14 = vsub.f32 %v13974_v4, %v7004_v16 }
0x3336   :  { %v14031_v15 = vpop.eup %12409  ;;  %v6748_v62 = vmul.f32 1.442695, %v6742_v9 }
0x3337   :  { %v14033_v59 = vpop.eup %12411  ;;  %v7018_v49 = vmul.f32 1.442695, %v7014_v14  ;;  %v7007_v21 = vpop.xlane.xlu0 %7006  ;;  %v6755_v23 = vsel %vm163_vm1, %v14031_v15, 0.0 }
0x3338   :  { %12415 = vpow2.f32 %v6748_v62  ;;  %v7015_v56 = vsub.f32 %v13976_v6, %v7007_v21  ;;  %v7010_v0 = vpop.xlane.xlu1 %7009  ;;  %6756 = vadd.xlane.f32.xlu0 %v6755_v23  ;;  %v6752_v60 = vsel %vm163_vm1, %v14033_v59, 0.0 }
0x3339   :  { %v7016_v4 = vsub.f32 %v13984_v29, %v7010_v0  ;;  %6753 = vadd.xlane.f32.xlu1 %v6752_v60  ;;  %12417 = vpow2.f32 %v7018_v49 }
0x333a   :  { %v7020_v51 = vmul.f32 1.442695, %v7015_v56 }
0x333b   :  { %v7022_v37 = vmul.f32 1.442695, %v7016_v4  ;;  %v7013_v11 = vpop.xlane.xlu0 %7012 }
0x333c   :  { %12419 = vpow2.f32 %v7020_v51  ;;  %v7017_v17 = vsub.f32 %v13982_v12, %v7013_v11  ;;  %v7276_v47 = vpop.xlane.xlu1 %7275 }
0x333d   :  { %v7286_v5 = vsub.f32 %v13992_v30, %v7276_v47  ;;  %12421 = vpow2.f32 %v7022_v37 }
0x333e   :  { %v14043_v46 = vpop.eup %12413  ;;  %v7024_v6 = vmul.f32 1.442695, %v7017_v17 }
0x333f   :  { %v7290_v7 = vmul.f32 1.442695, %v7286_v5  ;;  %v7279_v13 = vpop.xlane.xlu0 %7278  ;;  %v6761_v29 = vsel %vm163_vm1, %v14043_v46, 0.0 }
0x3340   :  { %12423 = vpow2.f32 %v7024_v6  ;;  %v7287_v26 = vsub.f32 %v13994_v55, %v7279_v13  ;;  %6762 = vadd.xlane.f32.xlu0 %v6761_v29  ;;  %v7282_v28 = vpop.xlane.xlu1 %7281 }
0x3341   :  { %v7288_v38 = vsub.f32 %v14000_v63, %v7282_v28  ;;  %12425 = vpow2.f32 %v7290_v7 }
0x3342   :  { %v14049_v12 = vpop.eup %12415  ;;  %v7292_v30 = vmul.f32 1.442695, %v7287_v26 }
0x3343   :  { %v7294_v52 = vmul.f32 1.442695, %v7288_v38  ;;  %v7285_v35 = vpop.xlane.xlu0 %7284  ;;  %v6758_v39 = vsel %vm163_vm1, %v14049_v12, 0.0  ;;  %v14053_v25 = vpop.eup %12417 }
0x3344   :  { %12427 = vpow2.f32 %v7292_v30  ;;  %v7289_v2 = vsub.f32 %v13998_v61, %v7285_v35  ;;  %6759 = vadd.xlane.f32.xlu1 %v6758_v39  ;;  %v7548_v55 = vpop.xlane.xlu1 %7547  ;;  %v7026_v24 = vsel %vm163_vm1, %v14053_v25, 0.0 }
0x3345   :  { %v7558_v40 = vsub.f32 %v14010_v3, %v7548_v55  ;;  %12429 = vpow2.f32 %v7294_v52 }
0x3346   :  { %v14057_v41 = vpop.eup %12419  ;;  %v7296_v63 = vmul.f32 1.442695, %v7289_v2 }
0x3347   :  { %v7562_v42 = vmul.f32 1.442695, %v7558_v40  ;;  %v7551_v44 = vpop.xlane.xlu0 %7550  ;;  %v7029_v45 = vsel %vm163_vm1, %v14057_v41, 0.0  ;;  %v14063_v57 = vpop.eup %12421 }
0x3348   :  { %12431 = vpow2.f32 %v7296_v63  ;;  %v7559_v61 = vsub.f32 %v14006_v10, %v7551_v44  ;;  %7030 = vadd.xlane.f32.xlu0 %v7029_v45  ;;  %7027 = vadd.xlane.f32.xlu1 %v7026_v24  ;;  %v7032_v58 = vsel %vm163_vm1, %v14063_v57, 0.0  ;;  %v7047_v60 = vpop.permute.xlu1 %7046 }
0x3349   :  { %12433 = vpow2.f32 %v7562_v42 }
0x334a   :  { %v14066_v3 = vpop.eup %12423  ;;  %v7564_v22 = vmul.f32 1.442695, %v7559_v61 }
0x334b   :  { %v7557_v8 = vpop.xlane.xlu0 %7556  ;;  %v7035_v27 = vsel %vm163_vm1, %v14066_v3, 0.0  ;;  %v14072_v53 = vpop.eup %12425 }
0x334c   :  { %12435 = vpow2.f32 %v7564_v22  ;;  %v7561_v32 = vsub.f32 %v14016_v19, %v7557_v8  ;;  %7036 = vadd.xlane.f32.xlu0 %v7035_v27  ;;  %7033 = vadd.xlane.f32.xlu1 %v7032_v58  ;;  %v7298_v43 = vsel %vm163_vm1, %v14072_v53, 0.0 }
0x334e   :  { %v14075_v10 = vpop.eup %12427  ;;  %v7568_v54 = vmul.f32 1.442695, %v7561_v32 }
0x334f   :  { %v7301_v34 = vsel %vm163_vm1, %v14075_v10, 0.0  ;;  %v14081_v9 = vpop.eup %12429 }
0x3350   :  { %12437 = vpow2.f32 %v7568_v54  ;;  %7302 = vadd.xlane.f32.xlu0 %v7301_v34  ;;  %7299 = vadd.xlane.f32.xlu1 %v7298_v43  ;;  %v7304_v14 = vsel %vm163_vm1, %v14081_v9, 0.0 }
0x3352   :  { %v14083_v16 = vpop.eup %12431 }
0x3353   :  { %v7307_v19 = vsel %vm163_vm1, %v14083_v16, 0.0  ;;  %v14089_v62 = vpop.eup %12433 }
0x3354   :  { %7308 = vadd.xlane.f32.xlu0 %v7307_v19  ;;  %7305 = vadd.xlane.f32.xlu1 %v7304_v14  ;;  %v7570_v23 = vsel %vm163_vm1, %v14089_v62, 0.0 }
0x3356   :  { %v14091_v49 = vpop.eup %12435 }
0x3357   :  { %v7573_v21 = vsel %vm163_vm1, %v14091_v49, 0.0 }
0x3358   :  { %7574 = vadd.xlane.f32.xlu0 %v7573_v21  ;;  %7571 = vadd.xlane.f32.xlu1 %v7570_v23 }
0x335a   :  { %v14097_v56 = vpop.eup %12437 }
0x335b   :  { %v7579_v0 = vsel %vm163_vm1, %v14097_v56, 0.0 }
0x335c   :  { %7580 = vadd.xlane.f32.xlu0 %v7579_v0 }
0x3369   :  { %7318 = vrot.lane.b32.xlu1 %v13956_v1, %s12555_s23 }
0x336d   :  { %7320 = vrot.lane.b32.xlu1 %v13954_v48, %s12555_s23 }
0x3372   :  { %7048 = vrot.lane.b32.xlu0 %v13954_v48, %s12554_s22 }
0x3376   :  { %7590 = vrot.lane.b32.xlu0 %v13956_v1, %s12556_s24 }
0x3379   :  { %v7554_v4 = vpop.xlane.xlu1 %7553 }
0x337a   :  { %v7560_v51 = vsub.f32 %v14022_v50, %v7554_v4 }
0x337c   :  { %v7566_v37 = vmul.f32 1.442695, %v7560_v51 }
0x337e   :  { %12439 = vpow2.f32 %v7566_v37 }
0x3388   :  { %v14110_v11 = vpop.eup %12439 }
0x3389   :  { %v7576_v17 = vsel %vm163_vm1, %v14110_v11, 0.0 }
0x3391   :  { %7577 = vadd.xlane.f32.xlu1 %v7576_v17 }
0x33a2   :  { %7592 = vrot.lane.b32.xlu1 %v13954_v48, %s12556_s24 }
0x33c5   :  { %v6757_v47 = vpop.xlane.xlu0 %6756 }
0x33c6   :  { %12441 = vrcp.f32 %v6757_v47  ;;  %v6754_v5 = vpop.xlane.xlu1 %6753 }
0x33c7   :  { %12443 = vrcp.f32 %v6754_v5 }
0x33cd   :  { %v6763_v6 = vpop.xlane.xlu0 %6762 }
0x33ce   :  { %12445 = vrcp.f32 %v6763_v6 }
0x33d0   :  { %v12442_v1 = vpop.eup %12441 }
0x33d1   :  { %v12444_v7 = vpop.eup %12443  ;;  %v6760_v50 = vpop.xlane.xlu1 %6759  ;;  %v6767_v13 = vmul.f32 %v12442_v1, %v14031_v15 }
0x33d2   :  { %12447 = vrcp.f32 %v6760_v50  ;;  %v6765_v29 = vmul.f32 %v12444_v7, %v14033_v59 }
0x33d4   :  { %v11749_v26 = vpack.c.bf16 %v6767_v13, %v6765_v29 }
0x33d5   :  { %v7031_v28 = vpop.xlane.xlu0 %7030  ;;  %v7028_v38 = vpop.xlane.xlu1 %7027 }
0x33d6   :  { %12449 = vrcp.f32 %v7031_v28  ;;  %11750 = vmatprep.subr.bf16.mxu0 %v11749_v26 }
0x33d7   :  { %12451 = vrcp.f32 %v7028_v38  ;;  %11752 = vmatpush3.bf16.msra.mxu0 %v11749_v26  ;;  %v9898_v26 = vld [vmem:[%s14634_s7 + $0x200] sm:$0xff] }
0x33d8   :  { %v12446_v35 = vpop.eup %12445 }
0x33d9   :  { %v7037_v30 = vpop.xlane.xlu0 %7036  ;;  %v7034_v52 = vpop.xlane.xlu1 %7033  ;;  %v6771_v40 = vmul.f32 %v12446_v35, %v14043_v46  ;;  %v9902_v35 = vld [vmem:[%s14634_s7 + $0x220] sm:$0xff] }
0x33da   :  { %12453 = vrcp.f32 %v7037_v30  ;;  %v9901_v30 = vld [vmem:[%s14634_s7 + $0x218] sm:$0xff] }
0x33db   :  { %12455 = vrcp.f32 %v7034_v52 }
0x33dc   :  { %v12448_v39 = vpop.eup %12447 }
0x33dd   :  { %v7303_v2 = vpop.xlane.xlu0 %7302  ;;  %v7300_v55 = vpop.xlane.xlu1 %7299  ;;  %v6769_v15 = vmul.f32 %v12448_v39, %v14049_v12  ;;  %v9903_v39 = vld [vmem:[%s14634_s7 + $0x228] sm:$0xff] }
0x33de   :  { %12457 = vrcp.f32 %v7303_v2  ;;  %v11801_v2 = vpack.c.bf16 %v9903_v39, %v9902_v35  ;;  %v9922_v35 = vld [vmem:[%s14636_s11 + $0x90] sm:$0xff]  ;;  %v9923_v39 = vld [vmem:[%s14636_s11 + $0x98] sm:$0xff] }
0x33df   :  { %12459 = vrcp.f32 %v7300_v55  ;;  %v11753_v59 = vpack.c.bf16 %v6771_v40, %v6769_v15  ;;  %v9904_v55 = vld [vmem:[%s14634_s7 + $0x230] sm:$0xff]  ;;  %v9905_v15 = vld [vmem:[%s14634_s7 + $0x238] sm:$0xff] }
0x33e0   :  { %v12450_v63 = vpop.eup %12449 }
0x33e1   :  { %v12452_v42 = vpop.eup %12451  ;;  %v7309_v44 = vpop.xlane.xlu0 %7308  ;;  %11754 = vmatprep.subr.bf16.mxu0 %v11753_v59  ;;  %v7041_v24 = vmul.f32 %v12450_v63, %v14057_v41 }
0x33e2   :  { %v7306_v45 = vpop.xlane.xlu1 %7305  ;;  %12461 = vrcp.f32 %v7309_v44  ;;  %11756 = vmatpush3.bf16.msra.mxu0 %v11753_v59  ;;  %v7039_v61 = vmul.f32 %v12452_v42, %v14053_v25  ;;  %v11805_v42 = vpack.c.bf16 %v9905_v15, %v9904_v55  ;;  %v9906_v44 = vld [vmem:[%s14634_s7 + $0x240] sm:$0xff]  ;;  %v9933_v55 = vld [vmem:[%s14629_s3 + $0x148] sm:$0xff]  ;;  %v9935_v15 = vld [vmem:[%s14629_s3 + $0x158] sm:$0xff] }
0x33e3   :  { %12463 = vrcp.f32 %v7306_v45  ;;  %v9907_v45 = vld [vmem:[%s14634_s7 + $0x248] sm:$0xff] }
0x33e4   :  { %v12454_v22 = vpop.eup %12453  ;;  %v11761_v8 = vpack.c.bf16 %v7041_v24, %v7039_v61  ;;  %v11809_v24 = vpack.c.bf16 %v9907_v45, %v9906_v44  ;;  %v9908_v61 = vld [vmem:[%s14634_s7 + $0x250] sm:$0xff] }
0x33e5   :  { %v12456_v12 = vpop.eup %12455  ;;  %v7575_v27 = vpop.xlane.xlu0 %7574  ;;  %11065 = vmatmul.mubr.msk.f32.vlgmr.msra.gmra.mrb[64].mxu0 %vm163_vm1, %v13954_v48  ;;  %v7045_v58 = vmul.f32 %v12454_v22, %v14066_v3  ;;  %v9909_v22 = vld [vmem:[%s14634_s7 + $0x258] sm:$0xff] }
0x33e6   :  { %v7572_v46 = vpop.xlane.xlu1 %7571  ;;  %12465 = vrcp.f32 %v7575_v27  ;;  %11762 = vmatprep.subr.bf16.mxu0 %v11761_v8  ;;  %11085 = vmatprep.mubr.msk.f32.mxu0 %vm163_vm1, %v7047_v60  ;;  %v7043_v41 = vmul.f32 %v12456_v12, %v14063_v57  ;;  %v9910_v12 = vld [vmem:[%s14634_s7 + $0x260] sm:$0xff]  ;;  %v9911_v27 = vld [vmem:[%s14634_s7 + $0x268] sm:$0xff] }
0x33e7   :  { %12467 = vrcp.f32 %v7572_v46  ;;  %11764 = vmatpush3.bf16.msra.mxu0 %v11761_v8  ;;  %v11813_v8 = vpack.c.bf16 %v9909_v22, %v9908_v61  ;;  %v11817_v46 = vpack.c.bf16 %v9911_v27, %v9910_v12  ;;  %v9918_v22 = vld [vmem:[%s14637_s9 + $0x4] ss:$0 sm:$0xff] }
0x33e8   :  { %v12458_v25 = vpop.eup %12457  ;;  %v11765_v32 = vpack.c.bf16 %v7045_v58, %v7043_v41  ;;  %v9912_v58 = vld [vmem:[%s14634_s7 + $0x270] sm:$0xff]  ;;  %v9913_v41 = vld [vmem:[%s14634_s7 + $0x278] sm:$0xff] }
0x33e9   :  { %v12460_v54 = vpop.eup %12459  ;;  %v7581_v34 = vpop.xlane.xlu0 %7580  ;;  %v7313_v43 = vmul.f32 %v12458_v25, %v14075_v10  ;;  %v11821_v25 = vpack.c.bf16 %v9913_v41, %v9912_v58 }
0x33ea   :  { %11766 = vmatprep.subr.bf16.mxu0 %v11765_v32  ;;  %v7311_v48 = vmul.f32 %v12460_v54, %v14072_v53  ;;  %v7319_v0 = vpop.permute.xlu1 %7318  ;;  %12469 = vrcp.f32 %v7581_v34 }
0x33eb   :  { %11768 = vmatpush3.bf16.msra.mxu0 %v11765_v32 }
0x33ec   :  { %v12462_v19 = vpop.eup %12461  ;;  %v11773_v3 = vpack.c.bf16 %v7313_v43, %v7311_v48 }
0x33ed   :  { %v12464_v14 = vpop.eup %12463  ;;  %v7049_v21 = vpop.permute.xlu0 %7048  ;;  %v7317_v23 = vmul.f32 %v12462_v19, %v14083_v16 }
0x33ee   :  { %11774 = vmatprep.subr.bf16.mxu0 %v11773_v3  ;;  %11086 = vmatmul.mubr.msk.f32.vlgmr.msra.gmra.mrb[66].mxu0 %vm163_vm1, %v7049_v21  ;;  %v7315_v57 = vmul.f32 %v12464_v14, %v14081_v9  ;;  %v7321_v16 = vpop.permute.xlu1 %7320 }
0x33ef   :  { %11776 = vmatpush3.bf16.msra.mxu0 %v11773_v3  ;;  %11106 = vmatprep.mubr.msk.f32.mxu0 %vm163_vm1, %v7319_v0 }
0x33f0   :  { %v12466_v10 = vpop.eup %12465  ;;  %v11777_v60 = vpack.c.bf16 %v7317_v23, %v7315_v57 }
0x33f1   :  { %v12468_v4 = vpop.eup %12467  ;;  %v7585_v53 = vmul.f32 %v12466_v10, %v14091_v49  ;;  %v7591_v17 = vpop.permute.xlu0 %7590 }
0x33f2   :  { %11778 = vmatprep.subr.bf16.mxu0 %v11777_v60  ;;  %v7583_v51 = vmul.f32 %v12468_v4, %v14089_v62 }
0x33f3   :  { %11780 = vmatpush3.bf16.msra.mxu0 %v11777_v60 }
0x33f4   :  { %v11785_v37 = vpack.c.bf16 %v7585_v53, %v7583_v51  ;;  %v12470_v47 = vpop.eup %12469 }
0x33f5   :  { %v7589_v6 = vmul.f32 %v12470_v47, %v14097_v56  ;;  %v9900_v56 = vld [vmem:[%s14634_s7 + $0x210] sm:$0xff] }
0x33f6   :  { %11107 = vmatmul.mubr.msk.f32.vlgmr.msra.gmra.mrb[68].mxu0 %vm163_vm1, %v7321_v16  ;;  %11786 = vmatprep.subr.bf16.mxu0 %v11785_v37  ;;  %v11797_v52 = vpack.c.bf16 %v9901_v30, %v9900_v56  ;;  %v9915_v16 = vld [vmem:[%s14635_s8 + $0x4] ss:$0 sm:$0xff]  ;;  %v9921_v30 = vld [vmem:[%s14636_s11 + $0x88] sm:$0xff] }
0x33f7   :  { %11788 = vmatpush3.bf16.msra.mxu0 %v11785_v37  ;;  %11127 = vmatprep.mubr.msk.f32.mxu0 %vm163_vm1, %v7591_v17 }
0x341e   :  { %v7578_v9 = vpop.xlane.xlu1 %7577 }
0x341f   :  { %12471 = vrcp.f32 %v7578_v9 }
0x3422   :  { %v7593_v1 = vpop.permute.xlu1 %7592 }
0x3429   :  { %v12472_v5 = vpop.eup %12471 }
0x342a   :  { %v7587_v49 = vmul.f32 %v12472_v5, %v14110_v11  ;;  %v9899_v11 = vld [vmem:[%s14634_s7 + $0x208] sm:$0xff] }
0x342b   :  { %v11793_v38 = vpack.c.bf16 %v9899_v11, %v9898_v26 }
0x342c   :  { %v11789_v62 = vpack.c.bf16 %v7589_v6, %v7587_v49 }
0x342d   :  { %11794 = vmatprep.subr.bf16.mxu1 %v11793_v38 }
0x342e   :  { %11790 = vmatprep.subr.bf16.mxu0 %v11789_v62  ;;  %11796 = vmatpush3.bf16.msra.mxu1 %v11793_v38  ;;  %v9920_v38 = vld [vmem:[%s14636_s11 + $0x80] sm:$0xff] }
0x342f   :  { %11792 = vmatpush3.bf16.msra.mxu0 %v11789_v62  ;;  %11798 = vmatprep.subr.bf16.mxu1 %v11797_v52 }
0x3432   :  { %11128 = vmatmul.mubr.msk.f32.vlgmr.msra.gmra.mrb[70].mxu0 %vm163_vm1, %v7593_v1  ;;  %11800 = vmatpush3.bf16.msra.mxu1 %v11797_v52  ;;  %v11825_v52 = vpack.c.bf16 %v9921_v30, %v9920_v38 }
0x3433   :  { %11802 = vmatprep.subr.bf16.mxu1 %v11801_v2 }
0x3434   :  { %11826 = vmatprep.subr.bf16.mxu0 %v11825_v52 }
0x3435   :  { %11828 = vmatpush3.bf16.msra.mxu0 %v11825_v52 }
0x3436   :  { %11804 = vmatpush3.bf16.msra.mxu1 %v11801_v2  ;;  %v11829_v2 = vpack.c.bf16 %v9923_v39, %v9922_v35 }
0x3437   :  { %11806 = vmatprep.subr.bf16.mxu1 %v11805_v42 }
0x3438   :  { %11830 = vmatprep.subr.bf16.mxu0 %v11829_v2 }
0x3439   :  { %11832 = vmatpush3.bf16.msra.mxu0 %v11829_v2 }
0x343a   :  { %11808 = vmatpush3.bf16.msra.mxu1 %v11805_v42 }
0x343b   :  { %11810 = vmatprep.subr.bf16.mxu1 %v11809_v24 }
0x343e   :  { %11812 = vmatpush3.bf16.msra.mxu1 %v11809_v24 }
0x343f   :  { %11814 = vmatprep.subr.bf16.mxu1 %v11813_v8 }
0x3442   :  { %11816 = vmatpush3.bf16.msra.mxu1 %v11813_v8 }
0x3443   :  { %11818 = vmatprep.subr.bf16.mxu1 %v11817_v46 }
0x3446   :  { %11820 = vmatpush3.bf16.msra.mxu1 %v11817_v46  ;;  %v9919_v46 = vld [vmem:[%s14638_s10 + $0x4] ss:$0 sm:$0xff] }
0x3447   :  { %11822 = vmatprep.subr.bf16.mxu1 %v11821_v25 }
0x344a   :  { %11824 = vmatpush3.bf16.msra.mxu1 %v11821_v25 }
0x34b8   :  { %v11066_v7 = vpop.f32.mrb[64].mxu0 }
0x34b9   :  { %v14140_v50 = vpop.f32.mrb[65].mxu0 }
0x34c1   :  { %v11087_v13 = vpop.f32.mrb[66].mxu0 }
0x34c2   :  { %v7120_v29 = vpop.f32.mrb[67].mxu0 }
0x34c3   :  { %v12076_v28 = vpack.i.bf16 %v11087_v13, %v7120_v29 }
0x34c5   :  { %12077 = vrot.lane.b32.xlu0 %v12076_v28, %s12556_s24 }
0x34c9   :  { %v11108_v40 = vpop.f32.mrb[68].mxu0 }
0x34ca   :  { %v7392_v59 = vpop.f32.mrb[69].mxu0 }
0x34cb   :  { %v12081_v63 = vpack.i.bf16 %v11108_v40, %v7392_v59  ;;  %v11833_v40 = vpack.c.bf16 %v9935_v15, %v9933_v55 }
0x34cd   :  { %12082 = vrot.lane.b32.xlu1 %v12081_v63, %s12555_s23  ;;  %11834 = vmatprep.subr.bf16.mxu0 %v11833_v40 }
0x3505   :  { %v11129_v32 = vpop.f32.mrb[70].mxu0 }
0x3506   :  { %v7664_v54 = vpop.f32.mrb[71].mxu0 }
0x3507   :  { %v12086_v34 = vpack.i.bf16 %v11129_v32, %v7664_v54  ;;  %v9932_v32 = vld [vmem:[%s14629_s3 + $0x140] sm:$0xff]  ;;  %v9934_v54 = vld [vmem:[%s14629_s3 + $0x150] sm:$0xff] }
0x3509   :  { %12087 = vrot.lane.b32.xlu0 %v12086_v34, %s12554_s22 }
0x3537   :  { %v12078_v43 = vpop.permute.xlu0 %12077 }
0x3538   :  { %v12080_v19 = vunpack.i.h.bf16 %v12078_v43  ;;  %v12079_v3 = vunpack.i.l.bf16 %v12078_v43  ;;  %v9937_v43 = vld [vmem:[%s14629_s3 + $0x168] sm:$0xff] }
0x353a   :  { %v7698_v0 = vsel %vm163_vm1, %v11066_v7, %v12080_v19  ;;  %v7697_v60 = vsel %vm163_vm1, %v14140_v50, %v12079_v3  ;;  %v11835_v3 = vpack.c.bf16 %v9934_v54, %v9932_v32  ;;  %v9930_v32 = vld [vmem:[%s14640_s13 + $0x4] ss:$0 sm:$0xff] }
0x353f   :  { %v12083_v48 = vpop.permute.xlu1 %12082 }
0x3540   :  { %v12085_v14 = vunpack.i.h.bf16 %v12083_v48  ;;  %v12084_v21 = vunpack.i.l.bf16 %v12083_v48  ;;  %v9939_v48 = vld [vmem:[%s14629_s3 + $0x178] sm:$0xff] }
0x3542   :  { %v7700_v4 = vsel %vm1437_vm2, %v7698_v0, %v12085_v14  ;;  %v7699_v53 = vsel %vm1437_vm2, %v7697_v60, %v12084_v21  ;;  %v11837_v21 = vpack.c.bf16 %v9939_v48, %v9937_v43  ;;  %v9938_v0 = vld [vmem:[%s14629_s3 + $0x170] sm:$0xff]  ;;  %v9944_v60 = vld [vmem:[%s14630_s5 + $0xa8] sm:$0xff]  ;;  %v9931_v48 = vld [vmem:[%s14641_s14 + $0x4] ss:$0 sm:$0xff] }
0x357b   :  { %v12088_v23 = vpop.permute.xlu0 %12087 }
0x357c   :  { %v12090_v57 = vunpack.i.h.bf16 %v12088_v23  ;;  %v12089_v10 = vunpack.i.l.bf16 %v12088_v23  ;;  %v9936_v23 = vld [vmem:[%s14629_s3 + $0x160] sm:$0xff] }
0x357e   :  { %v7701_v51 = vsel %vm1440_vm3, %v7699_v53, %v12089_v10  ;;  %v7702_v37 = vsel %vm1440_vm3, %v7700_v4, %v12090_v57  ;;  %v11839_v57 = vpack.c.bf16 %v9938_v0, %v9936_v23  ;;  %v9943_v10 = vld [vmem:[%s14630_s5 + $0xa0] sm:$0xff]  ;;  %v9945_v53 = vld [vmem:[%s14630_s5 + $0xb0] sm:$0xff] }
0x357f   :  { %11162 = vmatprep.mubr.f32.mxu1 %v7701_v51  ;;  %v11841_v4 = vpack.c.bf16 %v9944_v60, %v9943_v10 }
0x3580   :  { %11163 = vmatmul.mubr.f32.vlgmr.msra.gmra.mrb[94].mxu1 %v7702_v37  ;;  %v9925_v37 = vld [vmem:[%s14639_s12 + $0x4] ss:$0 sm:$0xff] }
0x3653   :  { %v11164_v17 = vpop.f32.mrb[94].mxu1 }
0x3654   :  { %v7800_v9 = vadd.f32 %v11164_v17, %v9915_v16  ;;  %v7794_v47 = vpop.f32.mrb[95].mxu1 }
0x3655   :  { %v7795_v5 = vadd.f32 %v9915_v16, %v7794_v47 }
0x3656   :  { %v7810_v49 = vsel %vm163_vm1, %v7800_v9, 0.0 }
0x3657   :  { %7811 = vadd.xlane.f32.xlu0 %v7810_v49  ;;  %v7807_v6 = vsel %vm163_vm1, %v7795_v5, 0.0 }
0x3658   :  { %7808 = vadd.xlane.f32.xlu1 %v7807_v6  ;;  %v9940_v6 = vld [vmem:[%s14632_s4 + $0xa] sm:$0x3] }
0x36e4   :  { %v7812_v62 = vpop.xlane.xlu0 %7811 }
0x36e5   :  { %v7814_v1 = vmul.f32 0.03125, %v7812_v62  ;;  %v7809_v7 = vpop.xlane.xlu1 %7808 }
0x36e6   :  { %v7813_v50 = vmul.f32 0.03125, %v7809_v7 }
0x36e7   :  { %v7816_v13 = vsub.f32 %v7800_v9, %v7814_v1  ;;  %v8008_v1 = vrot.slane %v9940_v6, %v12709_v33 }
0x36e8   :  { %v7815_v29 = vsub.f32 %v7795_v5, %v7813_v50 }
0x36e9   :  { %v7818_v26 = vmul.f32 %v7816_v13, %v7816_v13 }
0x36ea   :  { %v7817_v11 = vmul.f32 %v7815_v29, %v7815_v29 }
0x36eb   :  { %v7822_v56 = vsel %vm163_vm1, %v7818_v26, 0.0 }
0x36ec   :  { %7823 = vadd.xlane.f32.xlu1 %v7822_v56  ;;  %v7819_v28 = vsel %vm163_vm1, %v7817_v11, 0.0  ;;  %v8012_v11 = vrot.slane %v9940_v6, %v12704_v31 }
0x36ed   :  { %7820 = vadd.xlane.f32.xlu0 %v7819_v28 }
0x3779   :  { %v7824_v59 = vpop.xlane.xlu1 %7823 }
0x377a   :  { %v7826_v63 = vmul.f32 0.03125, %v7824_v59  ;;  %v7821_v42 = vpop.xlane.xlu0 %7820 }
0x377b   :  { %v7825_v44 = vmul.f32 0.03125, %v7821_v42 }
0x377c   :  { %v7828_v45 = vadd.f32 1e-05, %v7826_v63 }
0x377d   :  { %v7827_v24 = vadd.f32 1e-05, %v7825_v44 }
0x377e   :  { %12473 = vrsqrt.f32 %v7828_v45 }
0x377f   :  { %12475 = vrsqrt.f32 %v7827_v24 }
0x3788   :  { %v12474_v61 = vpop.eup %12473 }
0x3789   :  { %v12476_v8 = vpop.eup %12475  ;;  %v7832_v12 = vmul.f32 %v12474_v61, %v7816_v13 }
0x378a   :  { %v7831_v27 = vmul.f32 %v12476_v8, %v7815_v29 }
0x378b   :  { %v7840_v58 = vmul.f32 %v9918_v22, %v7832_v12 }
0x378c   :  { %v7839_v41 = vmul.f32 %v9918_v22, %v7831_v27 }
0x378d   :  { %v7848_v25 = vadd.f32 %v9919_v46, %v7840_v58 }
0x378e   :  { %v7847_v34 = vadd.f32 %v9919_v46, %v7839_v41 }
0x378f   :  { %v14247_v14 = vadd.f32 %v7848_v25, %v13635_v18 }
0x3790   :  { %v14244_v19 = vadd.f32 %v7847_v34, %v13630_v36 }
0x3792   :  { %11173 = vmatprep.mubr.msk.f32.mxu0 %vm163_vm1, %v14244_v19 }
0x3793   :  { %11174 = vmatmul.mubr.msk.f32.vlgmr.msra.gmra.mrb[72].mxu0 %vm163_vm1, %v14247_v14 }
0x3794   :  { %11836 = vmatpush1.bf16.msra.mxu0 %v11835_v3  ;;  %8079 = vmatprep.mubr.f32.mxu0 %v12553_v20 }
0x3795   :  { %11838 = vmatprep.subr.bf16.mxu0 %v11837_v21 }
0x3798   :  { %11840 = vmatpush1.bf16.msra.mxu0 %v11839_v57 }
0x3799   :  { %11842 = vmatprep.subr.bf16.mxu0 %v11841_v4 }
0x379b   :  { %9941 = vmatmul.mubr.msk.f32.vlgmr.msra.gmra.mrb[74].mxu0 %vm163_vm1, %v13630_v36 }
0x379c   :  { %8085 = vmatprep.mubr.f32.mxu0 %v12553_v20  ;;  %11844 = vmatpush3.bf16.msra.mxu0 %v11841_v4  ;;  %v9946_v20 = vld [vmem:[%s14630_s5 + $0xb8] sm:$0xff] }
0x379d   :  { %v11845_v51 = vpack.c.bf16 %v9946_v20, %v9945_v53 }
0x379f   :  { %9942 = vmatmul.mubr.msk.f32.gmra.mrb[76].mxu0 %vm163_vm1, %v13635_v18  ;;  %11846 = vmatprep.subr.bf16.mxu0 %v11845_v51 }
0x37a0   :  { %11848 = vmatpush3.bf16.msra.mxu0 %v11845_v51 }
0x3866   :  { %v11175_v16 = vpop.f32.mrb[72].mxu0 }
0x3867   :  { %v7942_v17 = vadd.f32 %v11175_v16, %v9925_v37  ;;  %v7936_v9 = vpop.f32.mrb[73].mxu0 }
0x3868   :  { %v7937_v47 = vadd.f32 %v9925_v37, %v7936_v9 }
0x3869   :  { %v7952_v5 = vsel %vm163_vm1, %v7942_v17, 0.0 }
0x386a   :  { %7953 = vadd.xlane.f32.xlu1 %v7952_v5  ;;  %v7949_v49 = vsel %vm163_vm1, %v7937_v47, 0.0 }
0x386b   :  { %7950 = vadd.xlane.f32.xlu0 %v7949_v49 }
0x386e   :  { %v8081_v62 = vpop.f32.mrb[74].mxu0 }
0x386f   :  { %v8083_v7 = vpop.f32.mrb[75].mxu0  ;;  %v8082_v13 = vadd.f32 %v8081_v62, %v8008_v1 }
0x3870   :  { %v8084_v38 = vadd.f32 %v8083_v7, %v8012_v11 }
0x3872   :  { %v8087_v50 = vpop.f32.mrb[76].mxu0 }
0x3873   :  { %v8088_v29 = vadd.f32 %v8087_v50, %v8008_v1  ;;  %v8089_v26 = vpop.f32.mrb[77].mxu0 }
0x3874   :  { %v8090_v33 = vadd.f32 %v8089_v26, %v8012_v11 }
0x3875   :  { %v14287_v56 = vpack.c.bf16 %v8088_v29, %v8082_v13  ;;  %v12091_v28 = vpack.i.bf16 %v8088_v29, %v8082_v13 }
0x3877   :  { %11850 = vmatprep.subr.bf16.mxu0 %v14287_v56 }
0x387b   :  { %8720 = vrot.lane.b32.xlu1 %v8084_v38, %s12555_s23 }
0x387f   :  { %8992 = vrot.lane.b32.xlu1 %v8084_v38, %s12556_s24 }
0x3881   :  { %8446 = vrot.lane.b32.xlu0 %v8084_v38, %s12554_s22 }
0x3883   :  { %12092 = vrot.lane.b32.xlu1 %v12091_v28, %s12554_s22 }
0x3885   :  { %8722 = vrot.lane.b32.xlu0 %v8090_v33, %s12555_s23 }
0x3887   :  { %8448 = vrot.lane.b32.xlu1 %v8090_v33, %s12554_s22 }
0x3889   :  { %8994 = vrot.lane.b32.xlu0 %v8090_v33, %s12556_s24 }
0x38f7   :  { %v7954_v31 = vpop.xlane.xlu1 %7953 }
0x38f8   :  { %v7956_v30 = vmul.f32 0.03125, %v7954_v31  ;;  %v7951_v52 = vpop.xlane.xlu0 %7950  ;;  %v9948_v31 = vld [vmem:[%s14633_s6 + $0x5] ss:$0 sm:$0xff] }
0x38f9   :  { %v7955_v35 = vmul.f32 0.03125, %v7951_v52 }
0x38fa   :  { %v7958_v39 = vsub.f32 %v7942_v17, %v7956_v30 }
0x38fb   :  { %v7957_v2 = vsub.f32 %v7937_v47, %v7955_v35  ;;  %v8721_v63 = vpop.permute.xlu1 %8720 }
0x38fc   :  { %v7960_v55 = vmul.f32 %v7958_v39, %v7958_v39  ;;  %v8447_v45 = vpop.permute.xlu0 %8446 }
0x38fd   :  { %v7959_v15 = vmul.f32 %v7957_v2, %v7957_v2 }
0x38fe   :  { %v7964_v40 = vsel %vm163_vm1, %v7960_v55, 0.0 }
0x38ff   :  { %7965 = vadd.xlane.f32.xlu1 %v7964_v40  ;;  %v7961_v59 = vsel %vm163_vm1, %v7959_v15, 0.0  ;;  %v8993_v42 = vpop.permute.xlu1 %8992 }
0x3900   :  { %7962 = vadd.xlane.f32.xlu0 %v7961_v59  ;;  %v8723_v61 = vpop.permute.xlu0 %8722 }
0x3903   :  { %v12093_v44 = vpop.permute.xlu1 %12092 }
0x3904   :  { %v8995_v22 = vpop.permute.xlu0 %8994  ;;  %v12095_v57 = vunpack.i.h.bf16 %v12093_v44  ;;  %v12094_v10 = vunpack.i.l.bf16 %v12093_v44 }
0x3906   :  { %v11861_v53 = vpack.c.bf16 %v12095_v57, %v12094_v10 }
0x3907   :  { %v8449_v24 = vpop.permute.xlu1 %8448 }
0x3910   :  { %12102 = vrot.lane.b32.xlu1 %v12091_v28, %s12556_s24 }
0x3916   :  { %12097 = vrot.lane.b32.xlu0 %v12091_v28, %s12555_s23 }
0x3934   :  { %8186 = vxpose.xlu0.b32.start [1/2] (short) (narrow) %v8084_v38, 32 }
0x3938   :  { %8187 = vxpose.xlu0.b32.end [2/2] (short) (narrow) %v8090_v33, 32 }
0x3939   :  { %8452 = vxpose.xlu1.b32.start [1/2] (short) (narrow) %v8447_v45, 32 }
0x393d   :  { %8453 = vxpose.xlu1.b32.end [2/2] (short) (narrow) %v8449_v24, 32 }
0x3941   :  { %8726 = vxpose.xlu0.b32.start [1/2] (short) (narrow) %v8721_v63, 32 }
0x3945   :  { %8727 = vxpose.xlu0.b32.end [2/2] (short) (narrow) %v8723_v61, 32 }
0x3946   :  { %8998 = vxpose.xlu1.b32.start [1/2] (short) (narrow) %v8993_v42, 32 }
0x394a   :  { %8999 = vxpose.xlu1.b32.end [2/2] (short) (narrow) %v8995_v22, 32 }
0x398c   :  { %v7966_v8 = vpop.xlane.xlu1 %7965 }
0x398d   :  { %v7968_v12 = vmul.f32 0.03125, %v7966_v8  ;;  %v7963_v27 = vpop.xlane.xlu0 %7962 }
0x398e   :  { %v7967_v46 = vmul.f32 0.03125, %v7963_v27 }
0x398f   :  { %v7970_v58 = vadd.f32 1e-05, %v7968_v12 }
0x3990   :  { %v7969_v41 = vadd.f32 1e-05, %v7967_v46  ;;  %v12103_v37 = vpop.permute.xlu1 %12102 }
0x3991   :  { %12477 = vrsqrt.f32 %v7970_v58  ;;  %v12098_v20 = vpop.permute.xlu0 %12097  ;;  %v12105_v6 = vunpack.i.h.bf16 %v12103_v37  ;;  %v12104_v62 = vunpack.i.l.bf16 %v12103_v37 }
0x3992   :  { %12479 = vrsqrt.f32 %v7969_v41  ;;  %v12100_v16 = vunpack.i.h.bf16 %v12098_v20  ;;  %v12099_v17 = vunpack.i.l.bf16 %v12098_v20 }
0x3993   :  { %v11885_v50 = vpack.c.bf16 %v12105_v6, %v12104_v62 }
0x3994   :  { %v11873_v47 = vpack.c.bf16 %v12100_v16, %v12099_v17 }
0x399b   :  { %v12478_v25 = vpop.eup %12477 }
0x399c   :  { %v12480_v54 = vpop.eup %12479  ;;  %v7974_v34 = vmul.f32 %v12478_v25, %v7958_v39 }
0x399d   :  { %v7973_v43 = vmul.f32 %v12480_v54, %v7957_v2 }
0x399e   :  { %v7982_v3 = vmul.f32 %v9930_v32, %v7974_v34 }
0x399f   :  { %v7981_v21 = vmul.f32 %v9930_v32, %v7973_v43 }
0x39a0   :  { %v7990_v23 = vadd.f32 %v9931_v48, %v7982_v3 }
0x39a1   :  { %v7989_v0 = vadd.f32 %v9931_v48, %v7981_v21 }
0x39a2   :  { %v7992_v4 = vadd.f32 %v7990_v23, %v14247_v14 }
0x39a3   :  { %v7991_v60 = vadd.f32 %v7989_v0, %v14244_v19 }
0x39a5   :  { %11184 = vmatprep.mubr.msk.f32.mxu0 %vm163_vm1, %v7991_v60 }
0x39a6   :  { %11185 = vmatmul.mubr.msk.f32.vlgmr.msra.gmra.mrb[78].mxu0 %vm163_vm1, %v7992_v4 }
0x39a7   :  { %11852 = vmatpush3.bf16.msra.mxu0 %v14287_v56 }
0x39a8   :  { %11862 = vmatprep.subr.bf16.mxu0 %v11861_v53 }
0x39b4   :  { %v8202_v51 = vpop.trf.xlu0 }
0x39b5   :  { %11191 = vmatprep.mubr.msk.f32.mxu0 %vm61_vm0, %v8202_v51 }
0x39b8   :  { %v8203_v9 = vpop.trf.xlu0 }
0x39b9   :  { %11192 = vmatmul.mubr.msk.f32.vlgmr.msra.gmra.mrb[80].mxu0 %vm61_vm0, %v8203_v9  ;;  %v8468_v19 = vpop.trf.xlu1 }
0x39ba   :  { %11864 = vmatpush3.bf16.msra.mxu0 %v11861_v53 }
0x39bb   :  { %11874 = vmatprep.subr.bf16.mxu0 %v11873_v47 }
0x39bc   :  { %v8204_v14 = vpop.trf.xlu0 }
0x39bd   :  { %11194 = vmatprep.mubr.msk.f32.mxu0 %vm61_vm0, %v8204_v14  ;;  %v8469_v5 = vpop.trf.xlu1 }
0x39c0   :  { %v8205_v49 = vpop.trf.xlu0 }
0x39c1   :  { %11195 = vmatmul.mubr.msk.f32.gmra.mrb[82].mxu0 %vm61_vm0, %v8205_v49  ;;  %v8470_v1 = vpop.trf.xlu1 }
0x39c2   :  { %11212 = vmatprep.mubr.msk.f32.mxu0 %vm61_vm0, %v8468_v19 }
0x39c4   :  { %v8742_v7 = vpop.trf.xlu0 }
0x39c5   :  { %11213 = vmatmul.mubr.msk.f32.vlgmr.msra.gmra.mrb[84].mxu0 %vm61_vm0, %v8469_v5  ;;  %v8471_v13 = vpop.trf.xlu1 }
0x39c6   :  { %11876 = vmatpush3.bf16.msra.mxu0 %v11873_v47  ;;  %11215 = vmatprep.mubr.msk.f32.mxu0 %vm61_vm0, %v8470_v1 }
0x39c7   :  { %11886 = vmatprep.subr.bf16.mxu0 %v11885_v50 }
0x39c8   :  { %v8743_v29 = vpop.trf.xlu0 }
0x39c9   :  { %11216 = vmatmul.mubr.msk.f32.gmra.mrb[86].mxu0 %vm61_vm0, %v8471_v13  ;;  %v9014_v26 = vpop.trf.xlu1 }
0x39ca   :  { %11233 = vmatprep.mubr.msk.f32.mxu0 %vm61_vm0, %v8742_v7 }
0x39cc   :  { %v8744_v11 = vpop.trf.xlu0 }
0x39cd   :  { %11234 = vmatmul.mubr.msk.f32.vlgmr.msra.gmra.mrb[88].mxu0 %vm61_vm0, %v8743_v29  ;;  %v9015_v56 = vpop.trf.xlu1 }
0x39ce   :  { %11888 = vmatpush3.bf16.msra.mxu0 %v11885_v50  ;;  %11236 = vmatprep.mubr.msk.f32.mxu0 %vm61_vm0, %v8744_v11 }
0x39d0   :  { %v8745_v28 = vpop.trf.xlu0 }
0x39d1   :  { %11237 = vmatmul.mubr.msk.f32.gmra.mrb[90].mxu0 %vm61_vm0, %v8745_v28  ;;  %v9016_v38 = vpop.trf.xlu1 }
0x39d2   :  { %11254 = vmatprep.mubr.msk.f32.mxu0 %vm61_vm0, %v9014_v26 }
0x39d5   :  { %11255 = vmatmul.mubr.msk.f32.vlgmr.msra.gmra.mrb[92].mxu0 %vm61_vm0, %v9015_v56  ;;  %v9017_v33 = vpop.trf.xlu1 }
0x39d6   :  { %11257 = vmatprep.mubr.msk.f32.mxu0 %vm61_vm0, %v9016_v38 }
0x39d9   :  { %11258 = vmatmul.mubr.msk.f32.gmra.mrb[94].mxu0 %vm61_vm0, %v9017_v33 }
0x3a79   :  { %v11186_v30 = vpop.f32.mrb[78].mxu0 }
0x3a7a   :  { %v14331_v52 = vadd.f32 %v11186_v30, %v9948_v31  ;;  %v8177_v35 = vpop.f32.mrb[79].mxu0 }
0x3a7b   :  { %v14333_v39 = vadd.f32 %v9948_v31, %v8177_v35 }
0x3a7d   :  { %11205 = vmatprep.mubr.msk.f32.mxu1 %vm163_vm1, %v14333_v39 }
0x3a8c   :  { %v11193_v2 = vpop.f32.mrb[80].mxu0 }
0x3a8d   :  { %v14337_v55 = vmul.f32 0.17677669, %v11193_v2  ;;  %v8296_v15 = vpop.f32.mrb[81].mxu0 }
0x3a8e   :  { %v14339_v40 = vmul.f32 0.17677669, %v8296_v15 }
0x3a8f   :  { %v8322_v59 = vsel %vm163_vm1, %v14337_v55, -inf }
0x3a90   :  { %8323 = vmax.xlane.f32.xlu1 %v8322_v59  ;;  %v8319_v63 = vsel %vm163_vm1, %v14339_v40, -inf }
0x3a91   :  { %8320 = vmax.xlane.f32.xlu0 %v8319_v63 }
0x3a94   :  { %v11196_v42 = vpop.f32.mrb[82].mxu0 }
0x3a95   :  { %v14345_v44 = vmul.f32 0.17677669, %v11196_v42  ;;  %v8306_v45 = vpop.f32.mrb[83].mxu0 }
0x3a96   :  { %v14347_v24 = vmul.f32 0.17677669, %v8306_v45 }
0x3a97   :  { %v8328_v61 = vsel %vm163_vm1, %v14345_v44, -inf }
0x3a98   :  { %8329 = vmax.xlane.f32.xlu0 %v8328_v61  ;;  %v11214_v22 = vpop.f32.mrb[84].mxu0  ;;  %v8325_v46 = vsel %vm163_vm1, %v14347_v24, -inf }
0x3a99   :  { %v8570_v8 = vpop.f32.mrb[85].mxu0  ;;  %v14353_v27 = vmul.f32 0.17677669, %v11214_v22 }
0x3a9a   :  { %v14351_v12 = vmul.f32 0.17677669, %v8570_v8 }
0x3a9b   :  { %v8596_v34 = vsel %vm163_vm1, %v14353_v27, -inf }
0x3a9c   :  { %v11217_v58 = vpop.f32.mrb[86].mxu0  ;;  %8326 = vmax.xlane.f32.xlu0 %v8325_v46  ;;  %v8593_v41 = vsel %vm163_vm1, %v14351_v12, -inf }
0x3a9d   :  { %v14359_v25 = vmul.f32 0.17677669, %v11217_v58  ;;  %8594 = vmax.xlane.f32.xlu1 %v8593_v41  ;;  %v8580_v32 = vpop.f32.mrb[87].mxu0 }
0x3a9e   :  { %v14361_v54 = vmul.f32 0.17677669, %v8580_v32 }
0x3a9f   :  { %v8602_v21 = vsel %vm163_vm1, %v14359_v25, -inf }
0x3aa0   :  { %8597 = vmax.xlane.f32.xlu0 %v8596_v34  ;;  %v11235_v43 = vpop.f32.mrb[88].mxu0  ;;  %v8599_v48 = vsel %vm163_vm1, %v14361_v54, -inf }
0x3aa1   :  { %8600 = vmax.xlane.f32.xlu1 %v8599_v48  ;;  %v8842_v3 = vpop.f32.mrb[89].mxu0  ;;  %v14371_v0 = vmul.f32 0.17677669, %v11235_v43 }
0x3aa2   :  { %v14369_v23 = vmul.f32 0.17677669, %v8842_v3 }
0x3aa3   :  { %v8868_v20 = vsel %vm163_vm1, %v14371_v0, -inf }
0x3aa4   :  { %8603 = vmax.xlane.f32.xlu0 %v8602_v21  ;;  %v11238_v57 = vpop.f32.mrb[90].mxu0  ;;  %v8865_v10 = vsel %vm163_vm1, %v14369_v23, -inf }
0x3aa5   :  { %v14375_v60 = vmul.f32 0.17677669, %v11238_v57  ;;  %8866 = vmax.xlane.f32.xlu1 %v8865_v10  ;;  %v8852_v4 = vpop.f32.mrb[91].mxu0 }
0x3aa6   :  { %v14377_v53 = vmul.f32 0.17677669, %v8852_v4 }
0x3aa7   :  { %v8874_v9 = vsel %vm163_vm1, %v14375_v60, -inf }
0x3aa8   :  { %8869 = vmax.xlane.f32.xlu0 %v8868_v20  ;;  %v11256_v51 = vpop.f32.mrb[92].mxu0  ;;  %v8871_v37 = vsel %vm163_vm1, %v14377_v53, -inf }
0x3aa9   :  { %v14383_v16 = vmul.f32 0.17677669, %v11256_v51  ;;  %v9114_v17 = vpop.f32.mrb[93].mxu0  ;;  %8872 = vmax.xlane.f32.xlu1 %v8871_v37 }
0x3aaa   :  { %v14387_v47 = vmul.f32 0.17677669, %v9114_v17 }
0x3aab   :  { %v9140_v5 = vsel %vm163_vm1, %v14383_v16, -inf }
0x3aac   :  { %8875 = vmax.xlane.f32.xlu0 %v8874_v9  ;;  %v9137_v19 = vsel %vm163_vm1, %v14387_v47, -inf  ;;  %v11259_v14 = vpop.f32.mrb[94].mxu0 }
0x3aad   :  { %9138 = vmax.xlane.f32.xlu1 %v9137_v19  ;;  %v14393_v49 = vmul.f32 0.17677669, %v11259_v14  ;;  %v9124_v6 = vpop.f32.mrb[95].mxu0 }
0x3aae   :  { %v14399_v1 = vmul.f32 0.17677669, %v9124_v6 }
0x3aaf   :  { %v9146_v62 = vsel %vm163_vm1, %v14393_v49, -inf }
0x3ab0   :  { %9141 = vmax.xlane.f32.xlu0 %v9140_v5  ;;  %v9143_v7 = vsel %vm163_vm1, %v14399_v1, -inf }
0x3ab4   :  { %9147 = vmax.xlane.f32.xlu0 %v9146_v62 }
0x3abe   :  { %8637 = vrot.lane.b32.xlu1 %v14333_v39, %s12554_s22 }
0x3ae2   :  { %9144 = vmax.xlane.f32.xlu1 %v9143_v7 }
0x3b1d   :  { %v8324_v50 = vpop.xlane.xlu1 %8323 }
0x3b1e   :  { %v8332_v13 = vsub.f32 %v14337_v55, %v8324_v50  ;;  %v8321_v29 = vpop.xlane.xlu0 %8320 }
0x3b1f   :  { %v8331_v26 = vsub.f32 %v14339_v40, %v8321_v29 }
0x3b20   :  { %v8337_v11 = vmul.f32 1.442695, %v8332_v13 }
0x3b21   :  { %v8335_v56 = vmul.f32 1.442695, %v8331_v26 }
0x3b22   :  { %12481 = vpow2.f32 %v8337_v11 }
0x3b23   :  { %12483 = vpow2.f32 %v8335_v56 }
0x3b25   :  { %v8330_v28 = vpop.xlane.xlu0 %8329 }
0x3b26   :  { %v8334_v38 = vsub.f32 %v14345_v44, %v8330_v28 }
0x3b28   :  { %v8341_v33 = vmul.f32 1.442695, %v8334_v38 }
0x3b29   :  { %v8327_v31 = vpop.xlane.xlu0 %8326 }
0x3b2a   :  { %12485 = vpow2.f32 %v8341_v33  ;;  %v8333_v30 = vsub.f32 %v14347_v24, %v8327_v31  ;;  %v8595_v35 = vpop.xlane.xlu1 %8594 }
0x3b2b   :  { %v8605_v2 = vsub.f32 %v14351_v12, %v8595_v35 }
0x3b2c   :  { %v14408_v15 = vpop.eup %12481  ;;  %v8339_v55 = vmul.f32 1.442695, %v8333_v30 }
0x3b2d   :  { %v14410_v59 = vpop.eup %12483  ;;  %v8609_v40 = vmul.f32 1.442695, %v8605_v2  ;;  %v8598_v63 = vpop.xlane.xlu0 %8597  ;;  %v8346_v42 = vsel %vm163_vm1, %v14408_v15, 0.0 }
0x3b2e   :  { %12487 = vpow2.f32 %v8339_v55  ;;  %v8606_v44 = vsub.f32 %v14353_v27, %v8598_v63  ;;  %v8601_v45 = vpop.xlane.xlu1 %8600  ;;  %8347 = vadd.xlane.f32.xlu0 %v8346_v42  ;;  %v8343_v24 = vsel %vm163_vm1, %v14410_v59, 0.0 }
0x3b2f   :  { %v8607_v61 = vsub.f32 %v14361_v54, %v8601_v45  ;;  %8344 = vadd.xlane.f32.xlu1 %v8343_v24  ;;  %12489 = vpow2.f32 %v8609_v40 }
0x3b30   :  { %v8611_v22 = vmul.f32 1.442695, %v8606_v44 }
0x3b31   :  { %v8613_v8 = vmul.f32 1.442695, %v8607_v61  ;;  %v8604_v12 = vpop.xlane.xlu0 %8603 }
0x3b32   :  { %12491 = vpow2.f32 %v8611_v22  ;;  %v8608_v46 = vsub.f32 %v14359_v25, %v8604_v12  ;;  %v8867_v58 = vpop.xlane.xlu1 %8866 }
0x3b33   :  { %v8877_v41 = vsub.f32 %v14369_v23, %v8867_v58  ;;  %12493 = vpow2.f32 %v8613_v8 }
0x3b34   :  { %v14420_v32 = vpop.eup %12485  ;;  %v8615_v27 = vmul.f32 1.442695, %v8608_v46 }
0x3b35   :  { %v8881_v34 = vmul.f32 1.442695, %v8877_v41  ;;  %v8870_v43 = vpop.xlane.xlu0 %8869  ;;  %v8352_v54 = vsel %vm163_vm1, %v14420_v32, 0.0 }
0x3b36   :  { %12495 = vpow2.f32 %v8615_v27  ;;  %v8878_v48 = vsub.f32 %v14371_v0, %v8870_v43  ;;  %8353 = vadd.xlane.f32.xlu0 %v8352_v54  ;;  %v8873_v3 = vpop.xlane.xlu1 %8872 }
0x3b37   :  { %v8879_v21 = vsub.f32 %v14377_v53, %v8873_v3  ;;  %12497 = vpow2.f32 %v8881_v34 }
0x3b38   :  { %v14426_v25 = vpop.eup %12487  ;;  %v8883_v23 = vmul.f32 1.442695, %v8878_v48 }
0x3b39   :  { %v8885_v57 = vmul.f32 1.442695, %v8879_v21  ;;  %v8876_v10 = vpop.xlane.xlu0 %8875  ;;  %v8349_v4 = vsel %vm163_vm1, %v14426_v25, 0.0  ;;  %v14430_v20 = vpop.eup %12489 }
0x3b3a   :  { %12499 = vpow2.f32 %v8883_v23  ;;  %v8880_v51 = vsub.f32 %v14375_v60, %v8876_v10  ;;  %8350 = vadd.xlane.f32.xlu1 %v8349_v4  ;;  %v9139_v0 = vpop.xlane.xlu1 %9138  ;;  %v8617_v5 = vsel %vm163_vm1, %v14430_v20, 0.0 }
0x3b3b   :  { %v9149_v37 = vsub.f32 %v14387_v47, %v9139_v0  ;;  %12501 = vpow2.f32 %v8885_v57 }
0x3b3c   :  { %v14434_v17 = vpop.eup %12491  ;;  %v8887_v53 = vmul.f32 1.442695, %v8880_v51 }
0x3b3d   :  { %v9153_v9 = vmul.f32 1.442695, %v9149_v37  ;;  %v9142_v19 = vpop.xlane.xlu0 %9141  ;;  %v8620_v14 = vsel %vm163_vm1, %v14434_v17, 0.0  ;;  %v14440_v6 = vpop.eup %12493 }
0x3b3e   :  { %12503 = vpow2.f32 %v8887_v53  ;;  %v9150_v60 = vsub.f32 %v14383_v16, %v9142_v19  ;;  %8621 = vadd.xlane.f32.xlu0 %v8620_v14  ;;  %8618 = vadd.xlane.f32.xlu1 %v8617_v5  ;;  %v8623_v13 = vsel %vm163_vm1, %v14440_v6, 0.0  ;;  %v8638_v42 = vpop.permute.xlu1 %8637 }
0x3b3f   :  { %12505 = vpow2.f32 %v9153_v9 }
0x3b40   :  { %v14443_v47 = vpop.eup %12495  ;;  %v9155_v62 = vmul.f32 1.442695, %v9150_v60 }
0x3b41   :  { %v9148_v7 = vpop.xlane.xlu0 %9147  ;;  %v8626_v50 = vsel %vm163_vm1, %v14443_v47, 0.0  ;;  %v14449_v29 = vpop.eup %12497 }
0x3b42   :  { %12507 = vpow2.f32 %v9155_v62  ;;  %v9152_v26 = vsub.f32 %v14393_v49, %v9148_v7  ;;  %8627 = vadd.xlane.f32.xlu0 %v8626_v50  ;;  %8624 = vadd.xlane.f32.xlu1 %v8623_v13  ;;  %v8889_v28 = vsel %vm163_vm1, %v14449_v29, 0.0 }
0x3b44   :  { %v14452_v16 = vpop.eup %12499  ;;  %v9159_v11 = vmul.f32 1.442695, %v9152_v26 }
0x3b45   :  { %v8892_v56 = vsel %vm163_vm1, %v14452_v16, 0.0  ;;  %v14458_v38 = vpop.eup %12501 }
0x3b46   :  { %12509 = vpow2.f32 %v9159_v11  ;;  %8893 = vadd.xlane.f32.xlu0 %v8892_v56  ;;  %8890 = vadd.xlane.f32.xlu1 %v8889_v28  ;;  %v8895_v31 = vsel %vm163_vm1, %v14458_v38, 0.0 }
0x3b48   :  { %v14460_v33 = vpop.eup %12503 }
0x3b49   :  { %v8898_v49 = vsel %vm163_vm1, %v14460_v33, 0.0  ;;  %v14466_v30 = vpop.eup %12505 }
0x3b4a   :  { %8899 = vadd.xlane.f32.xlu0 %v8898_v49  ;;  %8896 = vadd.xlane.f32.xlu1 %v8895_v31  ;;  %v9161_v55 = vsel %vm163_vm1, %v14466_v30, 0.0 }
0x3b4c   :  { %v14468_v35 = vpop.eup %12507 }
0x3b4d   :  { %v9164_v2 = vsel %vm163_vm1, %v14468_v35, 0.0 }
0x3b4e   :  { %9165 = vadd.xlane.f32.xlu0 %v9164_v2  ;;  %9162 = vadd.xlane.f32.xlu1 %v9161_v55 }
0x3b50   :  { %v14474_v40 = vpop.eup %12509 }
0x3b51   :  { %v9170_v63 = vsel %vm163_vm1, %v14474_v40, 0.0 }
0x3b52   :  { %9171 = vadd.xlane.f32.xlu0 %v9170_v63 }
0x3b5f   :  { %8909 = vrot.lane.b32.xlu1 %v14333_v39, %s12555_s23 }
0x3b63   :  { %8911 = vrot.lane.b32.xlu1 %v14331_v52, %s12555_s23 }
0x3b68   :  { %8639 = vrot.lane.b32.xlu0 %v14331_v52, %s12554_s22 }
0x3b6c   :  { %9181 = vrot.lane.b32.xlu0 %v14333_v39, %s12556_s24 }
0x3b6f   :  { %v9145_v44 = vpop.xlane.xlu1 %9144 }
0x3b70   :  { %v9151_v45 = vsub.f32 %v14399_v1, %v9145_v44 }
0x3b72   :  { %v9157_v24 = vmul.f32 1.442695, %v9151_v45 }
0x3b74   :  { %12511 = vpow2.f32 %v9157_v24 }
0x3b7e   :  { %v14487_v61 = vpop.eup %12511 }
0x3b7f   :  { %v9167_v22 = vsel %vm163_vm1, %v14487_v61, 0.0 }
0x3b87   :  { %9168 = vadd.xlane.f32.xlu1 %v9167_v22 }
0x3b98   :  { %9183 = vrot.lane.b32.xlu1 %v14331_v52, %s12556_s24 }
0x3bbb   :  { %v8348_v8 = vpop.xlane.xlu0 %8347 }
0x3bbc   :  { %12513 = vrcp.f32 %v8348_v8  ;;  %v8345_v12 = vpop.xlane.xlu1 %8344 }
0x3bbd   :  { %12515 = vrcp.f32 %v8345_v12 }
0x3bc3   :  { %v8354_v46 = vpop.xlane.xlu0 %8353 }
0x3bc4   :  { %12517 = vrcp.f32 %v8354_v46 }
0x3bc6   :  { %v12514_v39 = vpop.eup %12513 }
0x3bc7   :  { %v12516_v58 = vpop.eup %12515  ;;  %v8351_v1 = vpop.xlane.xlu1 %8350  ;;  %v8358_v41 = vmul.f32 %v12514_v39, %v14408_v15 }
0x3bc8   :  { %12519 = vrcp.f32 %v8351_v1  ;;  %v8356_v27 = vmul.f32 %v12516_v58, %v14410_v59  ;;  %v9975_v1 = vld [vmem:[%s14634_s7 + $0x280] sm:$0xff] }
0x3bca   :  { %v11853_v34 = vpack.c.bf16 %v8358_v41, %v8356_v27 }
0x3bcb   :  { %v8622_v43 = vpop.xlane.xlu0 %8621  ;;  %v8619_v54 = vpop.xlane.xlu1 %8618 }
0x3bcc   :  { %12521 = vrcp.f32 %v8622_v43  ;;  %11854 = vmatprep.subr.bf16.mxu1 %v11853_v34 }
0x3bcd   :  { %12523 = vrcp.f32 %v8619_v54  ;;  %11856 = vmatpush3.bf16.msra.mxu1 %v11853_v34  ;;  %v9978_v34 = vld [vmem:[%s14634_s7 + $0x298] sm:$0xff]  ;;  %v9979_v54 = vld [vmem:[%s14634_s7 + $0x2a0] sm:$0xff] }
0x3bce   :  { %v12518_v21 = vpop.eup %12517 }
0x3bcf   :  { %v8628_v48 = vpop.xlane.xlu0 %8627  ;;  %v8625_v3 = vpop.xlane.xlu1 %8624  ;;  %v8362_v4 = vmul.f32 %v12518_v21, %v14420_v32  ;;  %v9981_v21 = vld [vmem:[%s14634_s7 + $0x2b0] sm:$0xff] }
0x3bd0   :  { %12525 = vrcp.f32 %v8628_v48  ;;  %v9980_v48 = vld [vmem:[%s14634_s7 + $0x2a8] sm:$0xff] }
0x3bd1   :  { %12527 = vrcp.f32 %v8625_v3  ;;  %v11905_v3 = vpack.c.bf16 %v9980_v48, %v9979_v54 }
0x3bd2   :  { %v12520_v23 = vpop.eup %12519 }
0x3bd3   :  { %v8894_v57 = vpop.xlane.xlu0 %8893  ;;  %v8891_v10 = vpop.xlane.xlu1 %8890  ;;  %v8360_v15 = vmul.f32 %v12520_v23, %v14426_v25  ;;  %v9982_v23 = vld [vmem:[%s14634_s7 + $0x2b8] sm:$0xff] }
0x3bd4   :  { %12529 = vrcp.f32 %v8894_v57 }
0x3bd5   :  { %12531 = vrcp.f32 %v8891_v10  ;;  %v11857_v59 = vpack.c.bf16 %v8362_v4, %v8360_v15  ;;  %v11909_v4 = vpack.c.bf16 %v9982_v23, %v9981_v21 }
0x3bd6   :  { %v12522_v51 = vpop.eup %12521 }
0x3bd7   :  { %v12524_v0 = vpop.eup %12523  ;;  %v8900_v37 = vpop.xlane.xlu0 %8899  ;;  %11858 = vmatprep.subr.bf16.mxu1 %v11857_v59  ;;  %v8632_v9 = vmul.f32 %v12522_v51, %v14434_v17  ;;  %v9984_v51 = vld [vmem:[%s14634_s7 + $0x2c8] sm:$0xff] }
0x3bd8   :  { %v8897_v53 = vpop.xlane.xlu1 %8896  ;;  %12533 = vrcp.f32 %v8900_v37  ;;  %11860 = vmatpush3.bf16.msra.mxu1 %v11857_v59  ;;  %v8630_v19 = vmul.f32 %v12524_v0, %v14430_v20  ;;  %v9983_v59 = vld [vmem:[%s14634_s7 + $0x2c0] sm:$0xff]  ;;  %v9985_v37 = vld [vmem:[%s14634_s7 + $0x2d0] sm:$0xff] }
0x3bd9   :  { %12535 = vrcp.f32 %v8897_v53  ;;  %v11913_v0 = vpack.c.bf16 %v9984_v51, %v9983_v59  ;;  %v9986_v53 = vld [vmem:[%s14634_s7 + $0x2d8] sm:$0xff] }
0x3bda   :  { %v12526_v14 = vpop.eup %12525  ;;  %v11865_v5 = vpack.c.bf16 %v8632_v9, %v8630_v19  ;;  %v11917_v9 = vpack.c.bf16 %v9986_v53, %v9985_v37  ;;  %v9987_v19 = vld [vmem:[%s14634_s7 + $0x2e0] sm:$0xff] }
0x3bdb   :  { %v12528_v25 = vpop.eup %12527  ;;  %v9166_v60 = vpop.xlane.xlu0 %9165  ;;  %11206 = vmatmul.mubr.msk.f32.vlgmr.msra.gmra.mrb[96].mxu1 %vm163_vm1, %v14331_v52  ;;  %v8636_v62 = vmul.f32 %v12526_v14, %v14443_v47  ;;  %v9988_v14 = vld [vmem:[%s14634_s7 + $0x2e8] sm:$0xff] }
0x3bdc   :  { %v9163_v32 = vpop.xlane.xlu1 %9162  ;;  %12537 = vrcp.f32 %v9166_v60  ;;  %11866 = vmatprep.subr.bf16.mxu1 %v11865_v5  ;;  %11226 = vmatprep.mubr.msk.f32.mxu1 %vm163_vm1, %v8638_v42  ;;  %v8634_v17 = vmul.f32 %v12528_v25, %v14440_v6  ;;  %v9989_v25 = vld [vmem:[%s14634_s7 + $0x2f0] sm:$0xff]  ;;  %v9990_v60 = vld [vmem:[%s14634_s7 + $0x2f8] sm:$0xff] }
0x3bdd   :  { %12539 = vrcp.f32 %v9163_v32  ;;  %11868 = vmatpush3.bf16.msra.mxu1 %v11865_v5  ;;  %v11921_v5 = vpack.c.bf16 %v9988_v14, %v9987_v19  ;;  %v11925_v32 = vpack.c.bf16 %v9990_v60, %v9989_v25  ;;  %v10002_v25 = vld [vmem:[%s14639_s12 + $0x5] ss:$0 sm:$0xff] }
0x3bde   :  { %v12530_v20 = vpop.eup %12529  ;;  %v11869_v7 = vpack.c.bf16 %v8636_v62, %v8634_v17 }
0x3bdf   :  { %v12532_v50 = vpop.eup %12531  ;;  %v9172_v13 = vpop.xlane.xlu0 %9171  ;;  %v8904_v26 = vmul.f32 %v12530_v20, %v14452_v16 }
0x3be0   :  { %11870 = vmatprep.subr.bf16.mxu1 %v11869_v7  ;;  %v8902_v52 = vmul.f32 %v12532_v50, %v14449_v29  ;;  %v8910_v31 = vpop.permute.xlu1 %8909  ;;  %12541 = vrcp.f32 %v9172_v13 }
0x3be1   :  { %11872 = vmatpush3.bf16.msra.mxu1 %v11869_v7 }
0x3be2   :  { %v12534_v11 = vpop.eup %12533  ;;  %v11877_v47 = vpack.c.bf16 %v8904_v26, %v8902_v52 }
0x3be3   :  { %v12536_v56 = vpop.eup %12535  ;;  %v8640_v28 = vpop.permute.xlu0 %8639  ;;  %v8908_v49 = vmul.f32 %v12534_v11, %v14460_v33 }
0x3be4   :  { %11878 = vmatprep.subr.bf16.mxu1 %v11877_v47  ;;  %11227 = vmatmul.mubr.msk.f32.vlgmr.msra.gmra.mrb[98].mxu1 %vm163_vm1, %v8640_v28  ;;  %v8906_v6 = vmul.f32 %v12536_v56, %v14458_v38  ;;  %v8912_v33 = vpop.permute.xlu1 %8911 }
0x3be5   :  { %11880 = vmatpush3.bf16.msra.mxu1 %v11877_v47  ;;  %11247 = vmatprep.mubr.msk.f32.mxu1 %vm163_vm1, %v8910_v31 }
0x3be6   :  { %v12538_v16 = vpop.eup %12537  ;;  %v11881_v2 = vpack.c.bf16 %v8908_v49, %v8906_v6 }
0x3be7   :  { %v12540_v55 = vpop.eup %12539  ;;  %v9176_v29 = vmul.f32 %v12538_v16, %v14468_v35  ;;  %v9182_v44 = vpop.permute.xlu0 %9181 }
0x3be8   :  { %11882 = vmatprep.subr.bf16.mxu1 %v11881_v2  ;;  %v9174_v63 = vmul.f32 %v12540_v55, %v14466_v30 }
0x3be9   :  { %11884 = vmatpush3.bf16.msra.mxu1 %v11881_v2 }
0x3bea   :  { %v11889_v42 = vpack.c.bf16 %v9176_v29, %v9174_v63  ;;  %v12542_v45 = vpop.eup %12541  ;;  %v9992_v29 = vld [vmem:[%s14635_s8 + $0x5] ss:$0 sm:$0xff] }
0x3beb   :  { %v9180_v22 = vmul.f32 %v12542_v45, %v14474_v40  ;;  %v9977_v40 = vld [vmem:[%s14634_s7 + $0x290] sm:$0xff] }
0x3bec   :  { %11248 = vmatmul.mubr.msk.f32.vlgmr.msra.gmra.mrb[100].mxu1 %vm163_vm1, %v8912_v33  ;;  %11890 = vmatprep.subr.bf16.mxu1 %v11889_v42  ;;  %v11901_v43 = vpack.c.bf16 %v9978_v34, %v9977_v40  ;;  %v9998_v40 = vld [vmem:[%s14636_s11 + $0xa8] sm:$0xff]  ;;  %v10000_v34 = vld [vmem:[%s14636_s11 + $0xb8] sm:$0xff] }
0x3bed   :  { %11892 = vmatpush3.bf16.msra.mxu1 %v11889_v42  ;;  %11268 = vmatprep.mubr.msk.f32.mxu1 %vm163_vm1, %v9182_v44 }
0x3c14   :  { %v9169_v38 = vpop.xlane.xlu1 %9168 }
0x3c15   :  { %12543 = vrcp.f32 %v9169_v38 }
0x3c18   :  { %v9184_v8 = vpop.permute.xlu1 %9183 }
0x3c1f   :  { %v12544_v24 = vpop.eup %12543 }
0x3c20   :  { %v9178_v35 = vmul.f32 %v12544_v24, %v14487_v61  ;;  %v9976_v61 = vld [vmem:[%s14634_s7 + $0x288] sm:$0xff] }
0x3c21   :  { %v11897_v27 = vpack.c.bf16 %v9976_v61, %v9975_v1  ;;  %v9997_v61 = vld [vmem:[%s14636_s11 + $0xa0] sm:$0xff] }
0x3c22   :  { %v11893_v30 = vpack.c.bf16 %v9180_v22, %v9178_v35 }
0x3c23   :  { %11898 = vmatprep.subr.bf16.mxu0 %v11897_v27 }
0x3c24   :  { %11894 = vmatprep.subr.bf16.mxu1 %v11893_v30  ;;  %11900 = vmatpush3.bf16.msra.mxu0 %v11897_v27  ;;  %v11929_v27 = vpack.c.bf16 %v9998_v40, %v9997_v61 }
0x3c25   :  { %11896 = vmatpush3.bf16.msra.mxu1 %v11893_v30  ;;  %11902 = vmatprep.subr.bf16.mxu0 %v11901_v43 }
0x3c26   :  { %11930 = vmatprep.subr.bf16.mxu1 %v11929_v27 }
0x3c28   :  { %11269 = vmatmul.mubr.msk.f32.vlgmr.msra.gmra.mrb[102].mxu1 %vm163_vm1, %v9184_v8  ;;  %11904 = vmatpush3.bf16.msra.mxu0 %v11901_v43 }
0x3c29   :  { %11906 = vmatprep.subr.bf16.mxu0 %v11905_v3  ;;  %11932 = vmatpush3.bf16.msra.mxu1 %v11929_v27 }
0x3c2c   :  { %11908 = vmatpush3.bf16.msra.mxu0 %v11905_v3 }
0x3c2d   :  { %11910 = vmatprep.subr.bf16.mxu0 %v11909_v4 }
0x3c30   :  { %11912 = vmatpush3.bf16.msra.mxu0 %v11909_v4 }
0x3c31   :  { %11914 = vmatprep.subr.bf16.mxu0 %v11913_v0 }
0x3c34   :  { %11916 = vmatpush3.bf16.msra.mxu0 %v11913_v0  ;;  %v9996_v0 = vld [vmem:[%s14638_s10 + $0x5] ss:$0 sm:$0xff] }
0x3c35   :  { %11918 = vmatprep.subr.bf16.mxu0 %v11917_v9 }
0x3c38   :  { %11920 = vmatpush3.bf16.msra.mxu0 %v11917_v9 }
0x3c39   :  { %11922 = vmatprep.subr.bf16.mxu0 %v11921_v5 }
0x3c3c   :  { %11924 = vmatpush3.bf16.msra.mxu0 %v11921_v5 }
0x3c3d   :  { %11926 = vmatprep.subr.bf16.mxu0 %v11925_v32 }
0x3c40   :  { %11928 = vmatpush3.bf16.msra.mxu0 %v11925_v32 }
0x3cae   :  { %v11207_v12 = vpop.f32.mrb[96].mxu1 }
0x3caf   :  { %v14517_v46 = vpop.f32.mrb[97].mxu1 }
0x3cb7   :  { %v11228_v39 = vpop.f32.mrb[98].mxu1 }
0x3cb8   :  { %v8711_v58 = vpop.f32.mrb[99].mxu1 }
0x3cb9   :  { %v12106_v41 = vpack.i.bf16 %v11228_v39, %v8711_v58 }
0x3cbb   :  { %12107 = vrot.lane.b32.xlu0 %v12106_v41, %s12556_s24  ;;  %v9999_v41 = vld [vmem:[%s14636_s11 + $0xb0] sm:$0xff] }
0x3cbc   :  { %v11933_v43 = vpack.c.bf16 %v10000_v34, %v9999_v41 }
0x3cbe   :  { %11934 = vmatprep.subr.bf16.mxu1 %v11933_v43 }
0x3cbf   :  { %v11249_v57 = vpop.f32.mrb[100].mxu1  ;;  %11936 = vmatpush3.bf16.msra.mxu1 %v11933_v43 }
0x3cc0   :  { %v8983_v10 = vpop.f32.mrb[101].mxu1 }
0x3cc1   :  { %v12111_v15 = vpack.i.bf16 %v11249_v57, %v8983_v10 }
0x3cc3   :  { %12112 = vrot.lane.b32.xlu1 %v12111_v15, %s12555_s23  ;;  %v9995_v15 = vld [vmem:[%s14637_s9 + $0x5] ss:$0 sm:$0xff] }
0x3cfb   :  { %v11270_v62 = vpop.f32.mrb[102].mxu1 }
0x3cfc   :  { %v9255_v17 = vpop.f32.mrb[103].mxu1 }
0x3cfd   :  { %v12116_v20 = vpack.i.bf16 %v11270_v62, %v9255_v17 }
0x3cff   :  { %12117 = vrot.lane.b32.xlu0 %v12116_v20, %s12554_s22 }
0x3d2d   :  { %v12108_v7 = vpop.permute.xlu0 %12107 }
0x3d2e   :  { %v12110_v13 = vunpack.i.h.bf16 %v12108_v7  ;;  %v12109_v26 = vunpack.i.l.bf16 %v12108_v7 }
0x3d30   :  { %v9289_v56 = vsel %vm163_vm1, %v11207_v12, %v12110_v13  ;;  %v9288_v31 = vsel %vm163_vm1, %v14517_v46, %v12109_v26 }
0x3d35   :  { %v12113_v50 = vpop.permute.xlu1 %12112 }
0x3d36   :  { %v12115_v52 = vunpack.i.h.bf16 %v12113_v50  ;;  %v12114_v11 = vunpack.i.l.bf16 %v12113_v50 }
0x3d38   :  { %v9291_v6 = vsel %vm1437_vm2, %v9289_v56, %v12115_v52  ;;  %v9290_v16 = vsel %vm1437_vm2, %v9288_v31, %v12114_v11 }
0x3d71   :  { %v12118_v47 = vpop.permute.xlu0 %12117 }
0x3d72   :  { %v12120_v28 = vunpack.i.h.bf16 %v12118_v47  ;;  %v12119_v49 = vunpack.i.l.bf16 %v12118_v47 }
0x3d74   :  { %v9292_v2 = vsel %vm1440_vm3, %v9290_v16, %v12119_v49  ;;  %v9293_v55 = vsel %vm1440_vm3, %v9291_v6, %v12120_v28 }
0x3d75   :  { %11303 = vmatprep.mubr.f32.mxu0 %v9292_v2 }
0x3d76   :  { %11304 = vmatmul.mubr.f32.vlgmr.msra.gmra.mrb[96].mxu0 %v9293_v55 }
0x3e49   :  { %v11305_v63 = vpop.f32.mrb[96].mxu0 }
0x3e4a   :  { %v9391_v42 = vadd.f32 %v11305_v63, %v9992_v29  ;;  %v9385_v33 = vpop.f32.mrb[97].mxu0  ;;  %v10007_v63 = vld [vmem:[%s14640_s13 + $0x5] ss:$0 sm:$0xff] }
0x3e4b   :  { %v9386_v44 = vadd.f32 %v9992_v29, %v9385_v33 }
0x3e4c   :  { %v9401_v38 = vsel %vm163_vm1, %v9391_v42, 0.0 }
0x3e4d   :  { %9402 = vadd.xlane.f32.xlu0 %v9401_v38  ;;  %v9398_v45 = vsel %vm163_vm1, %v9386_v44, 0.0 }
0x3e4e   :  { %9399 = vadd.xlane.f32.xlu1 %v9398_v45 }
0x3eda   :  { %v9403_v24 = vpop.xlane.xlu0 %9402 }
0x3edb   :  { %v9405_v35 = vmul.f32 0.03125, %v9403_v24  ;;  %v9400_v22 = vpop.xlane.xlu1 %9399 }
0x3edc   :  { %v9404_v30 = vmul.f32 0.03125, %v9400_v22 }
0x3edd   :  { %v9407_v8 = vsub.f32 %v9391_v42, %v9405_v35 }
0x3ede   :  { %v9406_v12 = vsub.f32 %v9386_v44, %v9404_v30  ;;  %v10008_v44 = vld [vmem:[%s14641_s14 + $0x5] ss:$0 sm:$0xff] }
0x3edf   :  { %v9409_v46 = vmul.f32 %v9407_v8, %v9407_v8 }
0x3ee0   :  { %v9408_v39 = vmul.f32 %v9406_v12, %v9406_v12 }
0x3ee1   :  { %v9413_v58 = vsel %vm163_vm1, %v9409_v46, 0.0 }
0x3ee2   :  { %9414 = vadd.xlane.f32.xlu1 %v9413_v58  ;;  %v9410_v1 = vsel %vm163_vm1, %v9408_v39, 0.0 }
0x3ee3   :  { %9411 = vadd.xlane.f32.xlu0 %v9410_v1 }
0x3f6f   :  { %v9415_v54 = vpop.xlane.xlu1 %9414 }
0x3f70   :  { %v9417_v48 = vmul.f32 0.03125, %v9415_v54  ;;  %v9412_v3 = vpop.xlane.xlu0 %9411 }
0x3f71   :  { %v9416_v21 = vmul.f32 0.03125, %v9412_v3 }
0x3f72   :  { %v9419_v23 = vadd.f32 1e-05, %v9417_v48 }
0x3f73   :  { %v9418_v57 = vadd.f32 1e-05, %v9416_v21 }
0x3f74   :  { %12545 = vrsqrt.f32 %v9419_v23 }
0x3f75   :  { %12547 = vrsqrt.f32 %v9418_v57 }
0x3f7e   :  { %v12546_v10 = vpop.eup %12545 }
0x3f7f   :  { %v12548_v4 = vpop.eup %12547  ;;  %v9423_v59 = vmul.f32 %v12546_v10, %v9407_v8 }
0x3f80   :  { %v9422_v51 = vmul.f32 %v12548_v4, %v9406_v12 }
0x3f81   :  { %v9431_v37 = vmul.f32 %v9995_v15, %v9423_v59 }
0x3f82   :  { %v9430_v53 = vmul.f32 %v9995_v15, %v9422_v51 }
0x3f83   :  { %v9439_v9 = vadd.f32 %v9996_v0, %v9431_v37 }
0x3f84   :  { %v9438_v19 = vadd.f32 %v9996_v0, %v9430_v53 }
0x3f85   :  { %v9441_v5 = vadd.f32 %v9439_v9, %v13635_v18 }
0x3f86   :  { %v9440_v14 = vadd.f32 %v9438_v19, %v13630_v36 }
0x3f88   :  { %11314 = vmatprep.mubr.msk.f32.mxu1 %vm163_vm1, %v9440_v14 }
0x3f89   :  { %11315 = vmatmul.mubr.msk.f32.vlgmr.msra.gmra.mrb[104].mxu1 %vm163_vm1, %v9441_v5 }
0x405c   :  { %v11316_v60 = vpop.f32.mrb[104].mxu1 }
0x405d   :  { %v9533_v32 = vadd.f32 %v11316_v60, %v10002_v25  ;;  %v9527_v62 = vpop.f32.mrb[105].mxu1 }
0x405e   :  { %v9528_v17 = vadd.f32 %v10002_v25, %v9527_v62 }
0x405f   :  { %v9543_v20 = vsel %vm163_vm1, %v9533_v32, 0.0 }
0x4060   :  { %9544 = vadd.xlane.f32.xlu1 %v9543_v20  ;;  %v9540_v7 = vsel %vm163_vm1, %v9528_v17, 0.0 }
0x4061   :  { %9541 = vadd.xlane.f32.xlu0 %v9540_v7 }
0x40ed   :  { %v9545_v36 = vpop.xlane.xlu1 %9544 }
0x40ee   :  { %v9547_v18 = vmul.f32 0.03125, %v9545_v36  ;;  %v9542_v50 = vpop.xlane.xlu0 %9541 }
0x40ef   :  { %v9546_v13 = vmul.f32 0.03125, %v9542_v50 }
0x40f0   :  { %v9549_v26 = vsub.f32 %v9533_v32, %v9547_v18 }
0x40f1   :  { %v9548_v52 = vsub.f32 %v9528_v17, %v9546_v13 }
0x40f2   :  { %v9551_v11 = vmul.f32 %v9549_v26, %v9549_v26 }
0x40f3   :  { %v9550_v47 = vmul.f32 %v9548_v52, %v9548_v52 }
0x40f4   :  { %v9555_v56 = vsel %vm163_vm1, %v9551_v11, 0.0 }
0x40f5   :  { %9556 = vadd.xlane.f32.xlu1 %v9555_v56  ;;  %v9552_v28 = vsel %vm163_vm1, %v9550_v47, 0.0 }
0x40f6   :  { %9553 = vadd.xlane.f32.xlu0 %v9552_v28 }
0x4182   :  { %v9557_v49 = vpop.xlane.xlu1 %9556 }
0x4183   :  { %v9559_v31 = vmul.f32 0.03125, %v9557_v49  ;;  %v9554_v6 = vpop.xlane.xlu0 %9553 }
0x4184   :  { %v9558_v16 = vmul.f32 0.03125, %v9554_v6 }
0x4185   :  { %v9561_v2 = vadd.f32 1e-05, %v9559_v31 }
0x4186   :  { %v9560_v55 = vadd.f32 1e-05, %v9558_v16 }
0x4187   :  { %12549 = vrsqrt.f32 %v9561_v2 }
0x4188   :  { %12551 = vrsqrt.f32 %v9560_v55 }
0x4191   :  { %v12550_v29 = vpop.eup %12549 }
0x4192   :  { %v12552_v42 = vpop.eup %12551  ;;  %v9565_v33 = vmul.f32 %v12550_v29, %v9549_v26 }
0x4193   :  { %v9564_v38 = vmul.f32 %v12552_v42, %v9548_v52 }
0x4194   :  { %v9573_v45 = vmul.f32 %v10007_v63, %v9565_v33 }
0x4195   :  { %v9572_v24 = vmul.f32 %v10007_v63, %v9564_v38 }
0x4196   :  { %v9581_v35 = vadd.f32 %v10008_v44, %v9573_v45 }
0x4197   :  { %v9580_v22 = vadd.f32 %v10008_v44, %v9572_v24 }
0x4198   :  { %v9583_v30 = vadd.f32 %v9581_v35, %v9441_v5 }
0x4199   :  { %v9582_v8 = vadd.f32 %v9580_v22, %v9440_v14 }
0x419a   :  { %9585 = vst.msk [vmem:[%s14642_s15 + $0x8] sm:$0xff] %vm163_vm1, %v9583_v30 }
0x419b   :  { %9584 = vst.msk [vmem:[%s14642_s15] sm:$0xff] %vm163_vm1, %v9582_v8 }

</bundles_post_ra>
